<compile_context>
chip_gen: v6e
topology: v6e:2x2x1
jax: 0.10.0
libtpu: 0.0.40
codegen_flags: <defaults>
</compile_context>

<pallas_src>
import functools

import jax
import jax.numpy as jnp
from jax.experimental import pallas as pl
from jax.experimental.pallas import tpu as pltpu

# stand-ins for `settings.*` in the original module
NUM_INPUT_CHANNELS = 3   # settings.NUMBER_OF_INPUT_CHANNELS
NUM_CLASSES = 2          # settings.NUMBER_OF_CLASSES
NDF = 64

_LANE = 128
_SUBLANE_BF16 = 16       # bf16 packs 2 rows per sublane -> pad M to 16

# (param name, cin, cout, stride, activation, fuse InstanceNorm after act)
LAYERS = (
    ("w1", NUM_INPUT_CHANNELS + NUM_CLASSES, NDF,         2, "leaky_relu", False),
    ("w2", NDF,                              NDF * 2,     2, "leaky_relu", True),
    ("w3", NDF * 2,                          NDF * 4,     2, "leaky_relu", True),
    ("w4", NDF * 4,                          NDF * 8,     1, "leaky_relu", True),
    ("w5", NDF * 8,                          NUM_CLASSES, 1, "sigmoid",    False),
)


def _round_up(x, m):
    return (x + m - 1) // m * m


def _vmem_limits():
    """Generation-aware scoped-VMEM limit and per-call block budget (bytes)."""
    phys = 64 * 1024 * 1024                       # conservative default (v7x)
    try:
        phys = int(pltpu.get_tpu_info().vmem_capacity_bytes)
    except Exception:
        pass
    scoped = max(min(phys - 16 * 1024 * 1024, 100 * 1024 * 1024),
                 32 * 1024 * 1024)
    return scoped, scoped - 4 * 1024 * 1024


def _pick_tn(npad):
    """Prefer >= 2 lane tiles so the 'parallel' N axis can shard across v7x's
    two TensorCores; never below 128 (lane-dense, unmasked stores)."""
    for tn in (512, 256, 128):
        if npad % tn == 0 and npad // tn >= 2:
            return tn
    return min(npad, 512)


def _pick_tk(kpad, m_rows, tn, out_bytes, budget):
    """Largest K tile whose double-buffered blocks (+acc if multi-K) fit."""
    cands = sorted({c for c in (kpad, 8192, 4096, 2048, 1024, 512, 256, 128)
                    if c <= kpad and kpad % c == 0}, reverse=True)
    for tk in cands:
        multi_k = tk != kpad
        vmem = (2 * m_rows * tk * 2              # A  (double-buffered bf16)
                + 2 * tk * tn * 2                # W  (double-buffered bf16)
                + 2 * m_rows * tn * out_bytes    # out (double-buffered)
                + (m_rows * tn * 4 if multi_k else 0))   # f32 acc scratch
        if vmem <= budget:
            return tk
    return 128


# ----------------------------- Pallas kernels --------------------------------

def _epilogue(y, *, act, inorm, n, mpad, hw):
    """Fused activation (+ per-sample InstanceNorm) on an f32 (n*mpad, tn) tile."""
    if act == "leaky_relu":
        y = jnp.where(y >= 0.0, y, 0.2 * y)
    elif act == "sigmoid":
        y = 1.0 / (1.0 + jnp.exp(-y))            # exact f32 sigmoid, in [0, 1]
    if inorm:
        # InstanceNorm2d(affine=False): per-sample, per-channel stats over the
        # hw real spatial rows. Pad rows are exactly 0 (zero patches x weights,
        # leaky_relu(0)=0), so the mean sum is exact with divisor hw; the
        # variance uses centered differences with pad rows masked out.
        tn = y.shape[-1]
        inv_hw = 1.0 / float(hw)
        y3 = y.reshape(n, mpad, tn)              # split M back into (sample, row)
        mean = jnp.sum(y3, axis=1, keepdims=True) * inv_hw
        diff = y3 - mean
        if mpad > hw:
            row = jax.lax.broadcasted_iota(jnp.int32, (n, mpad, tn), 1)
            diff = jnp.where(row < hw, diff, 0.0)
        var = jnp.sum(diff * diff, axis=1, keepdims=True) * inv_hw
        y3 = (y3 - mean) * jax.lax.rsqrt(var + 1e-5)
        y = y3.reshape(n * mpad, tn)
    return y


def _conv_single_k_kernel(a_ref, w_ref, o_ref, *, act, inorm, n, mpad, hw):
    """K fits in one block: no accumulator scratch, no init/finalize."""
    y = jnp.dot(a_ref[...], w_ref[...], preferred_element_type=jnp.float32)
    o_ref[...] = _epilogue(y, act=act, inorm=inorm,
                           n=n, mpad=mpad, hw=hw).astype(o_ref.dtype)


def _conv_multi_k_kernel(a_ref, w_ref, o_ref, acc_ref, *, act, inorm, n, mpad, hw):
    """K tiled on the last ('arbitrary') grid axis with an f32 VMEM accumulator."""
    k = pl.program_id(1)

    @pl.when(k == 0)
    def _init():
        acc_ref[...] = jnp.zeros_like(acc_ref)

    acc_ref[...] += jnp.dot(a_ref[...], w_ref[...],
                            preferred_element_type=jnp.float32)

    @pl.when(k == pl.num_programs(1) - 1)
    def _finalize():
        o_ref[...] = _epilogue(acc_ref[...], act=act, inorm=inorm,
                               n=n, mpad=mpad, hw=hw).astype(o_ref.dtype)


# ------------------------------ wrappers --------------------------------------

def _extract_patches(x_nhwc, kh, kw, stride, pad):
    """im2col. Returns (N, OH*OW, KH*KW*C) with feature order ((ki, kj), c)."""
    x = jnp.pad(x_nhwc, ((0, 0), (pad, pad), (pad, pad), (0, 0)))
    n, h, w, c = x.shape
    oh = (h - kh) // stride + 1
    ow = (w - kw) // stride + 1
    cols = [
        x[:, i:i + stride * oh:stride, j:j + stride * ow:stride, :]
        for i in range(kh) for j in range(kw)
    ]
    patches = jnp.stack(cols, axis=3)             # (N, OH, OW, KH*KW, C)
    return patches.reshape(n, oh * ow, kh * kw * c), oh, ow


def _conv_block(x_nhwc, w_packed, *, cout, stride, act, inorm, out_dtype):
    """Conv2d(4, stride, 1, bias=False) + activation (+ InstanceNorm), fused."""
    n = x_nhwc.shape[0]
    kh = kw = 4
    patches, oh, ow = _extract_patches(
        x_nhwc.astype(jnp.bfloat16), kh, kw, stride, 1)
    hw = oh * ow
    kraw = patches.shape[-1]

    kpad, npad = w_packed.shape                   # lane-padded K / Cout
    mpad = _round_up(hw, _SUBLANE_BF16)
    m_rows = n * mpad                             # batch folded into matmul M

    a = jnp.pad(patches, ((0, 0), (0, mpad - hw), (0, kpad - kraw)))
    a = a.reshape(m_rows, kpad)

    scoped_vmem, budget = _vmem_limits()
    out_bytes = jnp.dtype(out_dtype).itemsize
    tn = _pick_tn(npad)
    tk = _pick_tk(kpad, m_rows, tn, out_bytes, budget)

    common = dict(act=act, inorm=inorm, n=n, mpad=mpad, hw=hw)

    if tk == kpad:
        # Single K step (all layers at the test shapes): straight matmul + epilogue.
        out = pl.pallas_call(
            functools.partial(_conv_single_k_kernel, **common),
            out_shape=jax.ShapeDtypeStruct((m_rows, npad), out_dtype),
            grid_spec=pltpu.PrefetchScalarGridSpec(
                num_scalar_prefetch=0,
                grid=(npad // tn,),
                in_specs=[
                    pl.BlockSpec((m_rows, kpad), lambda j: (0, 0)),
                    pl.BlockSpec((kpad, tn), lambda j: (0, j)),
                ],
                out_specs=pl.BlockSpec((m_rows, tn), lambda j: (0, j)),
            ),
            compiler_params=pltpu.CompilerParams(
                dimension_semantics=("parallel",),
                vmem_limit_bytes=scoped_vmem,
            ),
        )(a, w_packed)
    else:
        out = pl.pallas_call(
            functools.partial(_conv_multi_k_kernel, **common),
            out_shape=jax.ShapeDtypeStruct((m_rows, npad), out_dtype),
            grid_spec=pltpu.PrefetchScalarGridSpec(
                num_scalar_prefetch=0,
                grid=(npad // tn, kpad // tk),
                in_specs=[
                    pl.BlockSpec((m_rows, tk), lambda j, k: (0, k)),
                    pl.BlockSpec((tk, tn), lambda j, k: (k, j)),
                ],
                out_specs=pl.BlockSpec((m_rows, tn), lambda j, k: (0, j)),
                scratch_shapes=[pltpu.VMEM((m_rows, tn), jnp.float32)],
            ),
            compiler_params=pltpu.CompilerParams(
                dimension_semantics=("parallel", "arbitrary"),
                vmem_limit_bytes=scoped_vmem,
            ),
        )(a, w_packed)

    out = out.reshape(n, mpad, npad)[:, :hw, :cout]
    return out.reshape(n, oh, ow, cout)


# ------------------------------ parameters ------------------------------------

def init_params(key):
    """Deterministic synthetic weights (shapes match nn.Conv2d(..., bias=False))."""
    params = {}
    for name, cin, cout, _stride, _act, _inorm in LAYERS:
        key, sub = jax.random.split(key)
        shp = (cout, cin, 4, 4)
        fan_in = cin * 16
        params[name] = jax.random.normal(sub, shp, jnp.float32) * (1.0 / jnp.sqrt(fan_in))
    return params


def pack_params(params):
    """One-time weight packing: OIHW -> (kh*kw*cin, cout), zero-padded to
    lane-aligned (Kpad, Npad), cast to bf16. Done at init, not per step."""
    packed = {}
    for name, cin, cout, _stride, _act, _inorm in LAYERS:
        w = params[name]                           # (cout, cin, 4, 4)
        co, ci, kh, kw = w.shape
        assert (co, ci) == (cout, cin)
        kraw = kh * kw * ci
        kpad = _round_up(kraw, _LANE)
        npad = _round_up(co, _LANE)
        w2 = jnp.transpose(w, (2, 3, 1, 0)).reshape(kraw, co)   # ((ki,kj),cin) x cout
        w2 = jnp.pad(w2, ((0, kpad - kraw), (0, npad - co)))
        packed[name] = w2.astype(jnp.bfloat16)
    return packed


# ------------------------------ forward ----------------------------------------

def discriminator_forward(packed_params, x_nchw, label_nchw):
    # torch.cat((x, label), dim=1)
    out = jnp.concatenate((x_nchw, label_nchw), axis=1)
    out = jnp.transpose(out, (0, 2, 3, 1))         # NCHW -> NHWC

    n_layers = len(LAYERS)
    for idx, (name, _cin, cout, stride, act, inorm) in enumerate(LAYERS):
        out = _conv_block(
            out, packed_params[name],
            cout=cout, stride=stride, act=act, inorm=inorm,
            out_dtype=jnp.float32 if idx == n_layers - 1 else jnp.bfloat16,
        )

    return jnp.transpose(out, (0, 3, 1, 2))        # NHWC -> NCHW


# --------------------------------- main -----------------------------------------

if __name__ == "__main__":
    key = jax.random.PRNGKey(0)
    kp, kx, kl = jax.random.split(key, 3)

    params = init_params(kp)
    packed = pack_params(params)                   # pre-packed once, reused every step

    batch, spatial = 2, 32
    x = jax.random.normal(kx, (batch, NUM_INPUT_CHANNELS, spatial, spatial), jnp.float32)
    label = jax.random.normal(kl, (batch, NUM_CLASSES, spatial, spatial), jnp.float32)

    fwd = jax.jit(discriminator_forward)
    out = jax.block_until_ready(fwd(packed, x, label))

    # expected: 32 -> 16 -> 8 -> 4 -> 3 -> 2 spatially, NUM_CLASSES channels
    assert out.shape == (batch, NUM_CLASSES, 2, 2), out.shape
    assert out.dtype == jnp.float32
    assert bool(jnp.all((out >= 0.0) & (out <= 1.0))), "sigmoid range violated"

    print("KERNEL_OK")
</pallas_src>

<mosaic_0001>
module attributes {stable_mosaic.version = 11 : i64} {
  func.func @_conv_single_k_kernel(%arg0: i32, %arg1: memref<512x128xbf16, #tpu.memory_space<vmem>>, %arg2: memref<128x128xbf16, #tpu.memory_space<vmem>>, %arg3: memref<512x128xbf16, #tpu.memory_space<vmem>>) attributes {dimension_semantics = [#tpu.dimension_semantics<parallel>], iteration_bounds = array<i64: 1>, scalar_prefetch = 0 : i64, scratch_operands = 0 : i64, tpu.core_type = #tpu.core_type<tc>, window_params = [{pipeline_mode = #tpu.pipeline_mode<synchronous>, transform_indices = @transform_0, window_bounds = array<i64: 512, 128>}, {transform_indices = @transform_1, window_bounds = array<i64: 128, 128>}, {transform_indices = @transform_2, window_bounds = array<i64: 512, 128>}]} {
    %c0 = arith.constant 0 : index
    %c0_0 = arith.constant 0 : index
    %0 = vector.load %arg1[%c0, %c0_0] : memref<512x128xbf16, #tpu.memory_space<vmem>>, vector<512x128xbf16>
    %c0_1 = arith.constant 0 : index
    %c0_2 = arith.constant 0 : index
    %1 = vector.load %arg2[%c0_1, %c0_2] : memref<128x128xbf16, #tpu.memory_space<vmem>>, vector<128x128xbf16>
    %cst = arith.constant dense<0.000000e+00> : vector<512x128xf32>
    %2 = tpu.matmul %0, %1, %cst {dimension_numbers = #tpu.dot_dimension_numbers<[1], [0], [0], [1], [0, 0, 1, 1], [], []>} : vector<512x128xbf16>, vector<128x128xbf16>, vector<512x128xf32> -> vector<512x128xf32>
    %cst_3 = arith.constant 0.000000e+00 : f32
    %3 = vector.broadcast %cst_3 : f32 to vector<512x128xf32>
    %4 = arith.cmpf oge, %2, %3 : vector<512x128xf32>
    %cst_4 = arith.constant 2.000000e-01 : f32
    %5 = vector.broadcast %cst_4 : f32 to vector<512x128xf32>
    %6 = arith.mulf %5, %2 : vector<512x128xf32>
    %7 = arith.select %4, %2, %6 : vector<512x128xi1>, vector<512x128xf32>
    %8 = arith.truncf %7 : vector<512x128xf32> to vector<512x128xbf16>
    %c0_5 = arith.constant 0 : index
    %c0_6 = arith.constant 0 : index
    %9 = vector.load %arg3[%c0_5, %c0_6] : memref<512x128xbf16, #tpu.memory_space<vmem>>, vector<512x128xbf16>
    tpu.vector_store %arg3[%c0_5, %c0_6], %8 {strides = array<i32>} : memref<512x128xbf16, #tpu.memory_space<vmem>>, vector<512x128xbf16>,
    return
  }
  func.func @transform_0(%arg0: i32) -> (i32, i32) {
    %c0_i32 = arith.constant 0 : i32
    %c0_i32_0 = arith.constant 0 : i32
    %c0_i32_1 = arith.constant 0 : i32
    return %c0_i32, %c0_i32_0 : i32, i32
  }
  func.func @transform_1(%arg0: i32) -> (i32, i32) {
    %c0_i32 = arith.constant 0 : i32
    %c0_i32_0 = arith.constant 0 : i32
    return %c0_i32, %arg0 : i32, i32
  }
  func.func @transform_2(%arg0: i32) -> (i32, i32) {
    %c0_i32 = arith.constant 0 : i32
    %c0_i32_0 = arith.constant 0 : i32
    return %c0_i32, %arg0 : i32, i32
  }
}

module attributes {stable_mosaic.version = 11 : i64} {
  func.func @_conv_single_k_kernel(%arg0: i32, %arg1: memref<128x1024xbf16, #tpu.memory_space<vmem>>, %arg2: memref<1024x128xbf16, #tpu.memory_space<vmem>>, %arg3: memref<128x128xbf16, #tpu.memory_space<vmem>>) attributes {dimension_semantics = [#tpu.dimension_semantics<parallel>], iteration_bounds = array<i64: 1>, scalar_prefetch = 0 : i64, scratch_operands = 0 : i64, tpu.core_type = #tpu.core_type<tc>, window_params = [{pipeline_mode = #tpu.pipeline_mode<synchronous>, transform_indices = @transform_0, window_bounds = array<i64: 128, 1024>}, {transform_indices = @transform_1, window_bounds = array<i64: 1024, 128>}, {transform_indices = @transform_2, window_bounds = array<i64: 128, 128>}]} {
    %c0 = arith.constant 0 : index
    %c0_0 = arith.constant 0 : index
    %0 = vector.load %arg1[%c0, %c0_0] : memref<128x1024xbf16, #tpu.memory_space<vmem>>, vector<128x1024xbf16>
    %c0_1 = arith.constant 0 : index
    %c0_2 = arith.constant 0 : index
    %1 = vector.load %arg2[%c0_1, %c0_2] : memref<1024x128xbf16, #tpu.memory_space<vmem>>, vector<1024x128xbf16>
    %cst = arith.constant dense<0.000000e+00> : vector<128x128xf32>
    %2 = tpu.matmul %0, %1, %cst {dimension_numbers = #tpu.dot_dimension_numbers<[1], [0], [0], [1], [0, 0, 1, 1], [], []>} : vector<128x1024xbf16>, vector<1024x128xbf16>, vector<128x128xf32> -> vector<128x128xf32>
    %cst_3 = arith.constant 0.000000e+00 : f32
    %3 = vector.broadcast %cst_3 : f32 to vector<128x128xf32>
    %4 = arith.cmpf oge, %2, %3 : vector<128x128xf32>
    %cst_4 = arith.constant 2.000000e-01 : f32
    %5 = vector.broadcast %cst_4 : f32 to vector<128x128xf32>
    %6 = arith.mulf %5, %2 : vector<128x128xf32>
    %7 = arith.select %4, %2, %6 : vector<128x128xi1>, vector<128x128xf32>
    %8 = vector.shape_cast %7 : vector<128x128xf32> to vector<2x64x128xf32>
    %cst_5 = arith.constant dense<0.000000e+00> : vector<2x128xf32>
    %9 = vector.multi_reduction <add>, %8, %cst_5 [1] : vector<2x64x128xf32> to vector<2x128xf32>
    %10 = vector.shape_cast %9 : vector<2x128xf32> to vector<2x1x128xf32>
    %cst_6 = arith.constant 1.562500e-02 : f32
    %11 = vector.broadcast %cst_6 : f32 to vector<2x1x128xf32>
    %12 = arith.mulf %10, %11 : vector<2x1x128xf32>
    %13 = vector.broadcast %12 : vector<2x1x128xf32> to vector<2x64x128xf32>
    %14 = arith.subf %8, %13 : vector<2x64x128xf32>
    %15 = arith.mulf %14, %14 : vector<2x64x128xf32>
    %cst_7 = arith.constant dense<0.000000e+00> : vector<2x128xf32>
    %16 = vector.multi_reduction <add>, %15, %cst_7 [1] : vector<2x64x128xf32> to vector<2x128xf32>
    %17 = vector.shape_cast %16 : vector<2x128xf32> to vector<2x1x128xf32>
    %cst_8 = arith.constant 1.562500e-02 : f32
    %18 = vector.broadcast %cst_8 : f32 to vector<2x1x128xf32>
    %19 = arith.mulf %17, %18 : vector<2x1x128xf32>
    %20 = vector.broadcast %12 : vector<2x1x128xf32> to vector<2x64x128xf32>
    %21 = arith.subf %8, %20 : vector<2x64x128xf32>
    %cst_9 = arith.constant 9.99999974E-6 : f32
    %22 = vector.broadcast %cst_9 : f32 to vector<2x1x128xf32>
    %23 = arith.addf %19, %22 : vector<2x1x128xf32>
    %24 = math.rsqrt %23 : vector<2x1x128xf32>
    %25 = vector.broadcast %24 : vector<2x1x128xf32> to vector<2x64x128xf32>
    %26 = arith.mulf %21, %25 : vector<2x64x128xf32>
    %27 = vector.shape_cast %26 : vector<2x64x128xf32> to vector<128x128xf32>
    %28 = arith.truncf %27 : vector<128x128xf32> to vector<128x128xbf16>
    %c0_10 = arith.constant 0 : index
    %c0_11 = arith.constant 0 : index
    %29 = vector.load %arg3[%c0_10, %c0_11] : memref<128x128xbf16, #tpu.memory_space<vmem>>, vector<128x128xbf16>
    tpu.vector_store %arg3[%c0_10, %c0_11], %28 {strides = array<i32>} : memref<128x128xbf16, #tpu.memory_space<vmem>>, vector<128x128xbf16>,
    return
  }
  func.func @transform_0(%arg0: i32) -> (i32, i32) {
    %c0_i32 = arith.constant 0 : i32
    %c0_i32_0 = arith.constant 0 : i32
    %c0_i32_1 = arith.constant 0 : i32
    return %c0_i32, %c0_i32_0 : i32, i32
  }
  func.func @transform_1(%arg0: i32) -> (i32, i32) {
    %c0_i32 = arith.constant 0 : i32
    %c0_i32_0 = arith.constant 0 : i32
    return %c0_i32, %arg0 : i32, i32
  }
  func.func @transform_2(%arg0: i32) -> (i32, i32) {
    %c0_i32 = arith.constant 0 : i32
    %c0_i32_0 = arith.constant 0 : i32
    return %c0_i32, %arg0 : i32, i32
  }
}

module attributes {stable_mosaic.version = 11 : i64} {
  func.func @_conv_single_k_kernel(%arg0: i32, %arg1: memref<32x2048xbf16, #tpu.memory_space<vmem>>, %arg2: memref<2048x128xbf16, #tpu.memory_space<vmem>>, %arg3: memref<32x128xbf16, #tpu.memory_space<vmem>>) attributes {dimension_semantics = [#tpu.dimension_semantics<parallel>], iteration_bounds = array<i64: 2>, scalar_prefetch = 0 : i64, scratch_operands = 0 : i64, tpu.core_type = #tpu.core_type<tc>, window_params = [{pipeline_mode = #tpu.pipeline_mode<synchronous>, transform_indices = @transform_0, window_bounds = array<i64: 32, 2048>}, {transform_indices = @transform_1, window_bounds = array<i64: 2048, 128>}, {transform_indices = @transform_2, window_bounds = array<i64: 32, 128>}]} {
    %c0 = arith.constant 0 : index
    %c0_0 = arith.constant 0 : index
    %0 = vector.load %arg1[%c0, %c0_0] : memref<32x2048xbf16, #tpu.memory_space<vmem>>, vector<32x2048xbf16>
    %c0_1 = arith.constant 0 : index
    %c0_2 = arith.constant 0 : index
    %1 = vector.load %arg2[%c0_1, %c0_2] : memref<2048x128xbf16, #tpu.memory_space<vmem>>, vector<2048x128xbf16>
    %cst = arith.constant dense<0.000000e+00> : vector<32x128xf32>
    %2 = tpu.matmul %0, %1, %cst {dimension_numbers = #tpu.dot_dimension_numbers<[1], [0], [0], [1], [0, 0, 1, 1], [], []>} : vector<32x2048xbf16>, vector<2048x128xbf16>, vector<32x128xf32> -> vector<32x128xf32>
    %cst_3 = arith.constant 0.000000e+00 : f32
    %3 = vector.broadcast %cst_3 : f32 to vector<32x128xf32>
    %4 = arith.cmpf oge, %2, %3 : vector<32x128xf32>
    %cst_4 = arith.constant 2.000000e-01 : f32
    %5 = vector.broadcast %cst_4 : f32 to vector<32x128xf32>
    %6 = arith.mulf %5, %2 : vector<32x128xf32>
    %7 = arith.select %4, %2, %6 : vector<32x128xi1>, vector<32x128xf32>
    %8 = vector.shape_cast %7 : vector<32x128xf32> to vector<2x16x128xf32>
    %cst_5 = arith.constant dense<0.000000e+00> : vector<2x128xf32>
    %9 = vector.multi_reduction <add>, %8, %cst_5 [1] : vector<2x16x128xf32> to vector<2x128xf32>
    %10 = vector.shape_cast %9 : vector<2x128xf32> to vector<2x1x128xf32>
    %cst_6 = arith.constant 6.250000e-02 : f32
    %11 = vector.broadcast %cst_6 : f32 to vector<2x1x128xf32>
    %12 = arith.mulf %10, %11 : vector<2x1x128xf32>
    %13 = vector.broadcast %12 : vector<2x1x128xf32> to vector<2x16x128xf32>
    %14 = arith.subf %8, %13 : vector<2x16x128xf32>
    %15 = arith.mulf %14, %14 : vector<2x16x128xf32>
    %cst_7 = arith.constant dense<0.000000e+00> : vector<2x128xf32>
    %16 = vector.multi_reduction <add>, %15, %cst_7 [1] : vector<2x16x128xf32> to vector<2x128xf32>
    %17 = vector.shape_cast %16 : vector<2x128xf32> to vector<2x1x128xf32>
    %cst_8 = arith.constant 6.250000e-02 : f32
    %18 = vector.broadcast %cst_8 : f32 to vector<2x1x128xf32>
    %19 = arith.mulf %17, %18 : vector<2x1x128xf32>
    %20 = vector.broadcast %12 : vector<2x1x128xf32> to vector<2x16x128xf32>
    %21 = arith.subf %8, %20 : vector<2x16x128xf32>
    %cst_9 = arith.constant 9.99999974E-6 : f32
    %22 = vector.broadcast %cst_9 : f32 to vector<2x1x128xf32>
    %23 = arith.addf %19, %22 : vector<2x1x128xf32>
    %24 = math.rsqrt %23 : vector<2x1x128xf32>
    %25 = vector.broadcast %24 : vector<2x1x128xf32> to vector<2x16x128xf32>
    %26 = arith.mulf %21, %25 : vector<2x16x128xf32>
    %27 = vector.shape_cast %26 : vector<2x16x128xf32> to vector<32x128xf32>
    %28 = arith.truncf %27 : vector<32x128xf32> to vector<32x128xbf16>
    %c0_10 = arith.constant 0 : index
    %c0_11 = arith.constant 0 : index
    %29 = vector.load %arg3[%c0_10, %c0_11] : memref<32x128xbf16, #tpu.memory_space<vmem>>, vector<32x128xbf16>
    tpu.vector_store %arg3[%c0_10, %c0_11], %28 {strides = array<i32>} : memref<32x128xbf16, #tpu.memory_space<vmem>>, vector<32x128xbf16>,
    return
  }
  func.func @transform_0(%arg0: i32) -> (i32, i32) {
    %c0_i32 = arith.constant 0 : i32
    %c0_i32_0 = arith.constant 0 : i32
    %c0_i32_1 = arith.constant 0 : i32
    return %c0_i32, %c0_i32_0 : i32, i32
  }
  func.func @transform_1(%arg0: i32) -> (i32, i32) {
    %c0_i32 = arith.constant 0 : i32
    %c0_i32_0 = arith.constant 0 : i32
    return %c0_i32, %arg0 : i32, i32
  }
  func.func @transform_2(%arg0: i32) -> (i32, i32) {
    %c0_i32 = arith.constant 0 : i32
    %c0_i32_0 = arith.constant 0 : i32
    return %c0_i32, %arg0 : i32, i32
  }
}

module attributes {stable_mosaic.version = 11 : i64} {
  func.func @_conv_single_k_kernel(%arg0: i32, %arg1: memref<32x4096xbf16, #tpu.memory_space<vmem>>, %arg2: memref<4096x256xbf16, #tpu.memory_space<vmem>>, %arg3: memref<32x256xbf16, #tpu.memory_space<vmem>>) attributes {dimension_semantics = [#tpu.dimension_semantics<parallel>], iteration_bounds = array<i64: 2>, scalar_prefetch = 0 : i64, scratch_operands = 0 : i64, tpu.core_type = #tpu.core_type<tc>, window_params = [{pipeline_mode = #tpu.pipeline_mode<synchronous>, transform_indices = @transform_0, window_bounds = array<i64: 32, 4096>}, {transform_indices = @transform_1, window_bounds = array<i64: 4096, 256>}, {transform_indices = @transform_2, window_bounds = array<i64: 32, 256>}]} {
    %c0 = arith.constant 0 : index
    %c0_0 = arith.constant 0 : index
    %0 = vector.load %arg1[%c0, %c0_0] : memref<32x4096xbf16, #tpu.memory_space<vmem>>, vector<32x4096xbf16>
    %c0_1 = arith.constant 0 : index
    %c0_2 = arith.constant 0 : index
    %1 = vector.load %arg2[%c0_1, %c0_2] : memref<4096x256xbf16, #tpu.memory_space<vmem>>, vector<4096x256xbf16>
    %cst = arith.constant dense<0.000000e+00> : vector<32x256xf32>
    %2 = tpu.matmul %0, %1, %cst {dimension_numbers = #tpu.dot_dimension_numbers<[1], [0], [0], [1], [0, 0, 1, 1], [], []>} : vector<32x4096xbf16>, vector<4096x256xbf16>, vector<32x256xf32> -> vector<32x256xf32>
    %cst_3 = arith.constant 0.000000e+00 : f32
    %3 = vector.broadcast %cst_3 : f32 to vector<32x256xf32>
    %4 = arith.cmpf oge, %2, %3 : vector<32x256xf32>
    %cst_4 = arith.constant 2.000000e-01 : f32
    %5 = vector.broadcast %cst_4 : f32 to vector<32x256xf32>
    %6 = arith.mulf %5, %2 : vector<32x256xf32>
    %7 = arith.select %4, %2, %6 : vector<32x256xi1>, vector<32x256xf32>
    %8 = vector.shape_cast %7 : vector<32x256xf32> to vector<2x16x256xf32>
    %cst_5 = arith.constant dense<0.000000e+00> : vector<2x256xf32>
    %9 = vector.multi_reduction <add>, %8, %cst_5 [1] : vector<2x16x256xf32> to vector<2x256xf32>
    %10 = vector.shape_cast %9 : vector<2x256xf32> to vector<2x1x256xf32>
    %cst_6 = arith.constant 0.111111112 : f32
    %11 = vector.broadcast %cst_6 : f32 to vector<2x1x256xf32>
    %12 = arith.mulf %10, %11 : vector<2x1x256xf32>
    %13 = vector.broadcast %12 : vector<2x1x256xf32> to vector<2x16x256xf32>
    %14 = arith.subf %8, %13 : vector<2x16x256xf32>
    %15 = tpu.iota {dimensions = array<i32: 1>} : vector<2x16x256xi32>
    %c9_i32 = arith.constant 9 : i32
    %16 = vector.broadcast %c9_i32 : i32 to vector<2x16x256xi32>
    %17 = arith.cmpi slt, %15, %16 : vector<2x16x256xi32>
    %cst_7 = arith.constant 0.000000e+00 : f32
    %18 = vector.broadcast %cst_7 : f32 to vector<2x16x256xf32>
    %19 = arith.select %17, %14, %18 : vector<2x16x256xi1>, vector<2x16x256xf32>
    %20 = arith.mulf %19, %19 : vector<2x16x256xf32>
    %cst_8 = arith.constant dense<0.000000e+00> : vector<2x256xf32>
    %21 = vector.multi_reduction <add>, %20, %cst_8 [1] : vector<2x16x256xf32> to vector<2x256xf32>
    %22 = vector.shape_cast %21 : vector<2x256xf32> to vector<2x1x256xf32>
    %cst_9 = arith.constant 0.111111112 : f32
    %23 = vector.broadcast %cst_9 : f32 to vector<2x1x256xf32>
    %24 = arith.mulf %22, %23 : vector<2x1x256xf32>
    %25 = vector.broadcast %12 : vector<2x1x256xf32> to vector<2x16x256xf32>
    %26 = arith.subf %8, %25 : vector<2x16x256xf32>
    %cst_10 = arith.constant 9.99999974E-6 : f32
    %27 = vector.broadcast %cst_10 : f32 to vector<2x1x256xf32>
    %28 = arith.addf %24, %27 : vector<2x1x256xf32>
    %29 = math.rsqrt %28 : vector<2x1x256xf32>
    %30 = vector.broadcast %29 : vector<2x1x256xf32> to vector<2x16x256xf32>
    %31 = arith.mulf %26, %30 : vector<2x16x256xf32>
    %32 = vector.shape_cast %31 : vector<2x16x256xf32> to vector<32x256xf32>
    %33 = arith.truncf %32 : vector<32x256xf32> to vector<32x256xbf16>
    %c0_11 = arith.constant 0 : index
    %c0_12 = arith.constant 0 : index
    %34 = vector.load %arg3[%c0_11, %c0_12] : memref<32x256xbf16, #tpu.memory_space<vmem>>, vector<32x256xbf16>
    tpu.vector_store %arg3[%c0_11, %c0_12], %33 {strides = array<i32>} : memref<32x256xbf16, #tpu.memory_space<vmem>>, vector<32x256xbf16>,
    return
  }
  func.func @transform_0(%arg0: i32) -> (i32, i32) {
    %c0_i32 = arith.constant 0 : i32
    %c0_i32_0 = arith.constant 0 : i32
    %c0_i32_1 = arith.constant 0 : i32
    return %c0_i32, %c0_i32_0 : i32, i32
  }
  func.func @transform_1(%arg0: i32) -> (i32, i32) {
    %c0_i32 = arith.constant 0 : i32
    %c0_i32_0 = arith.constant 0 : i32
    return %c0_i32, %arg0 : i32, i32
  }
  func.func @transform_2(%arg0: i32) -> (i32, i32) {
    %c0_i32 = arith.constant 0 : i32
    %c0_i32_0 = arith.constant 0 : i32
    return %c0_i32, %arg0 : i32, i32
  }
}

module attributes {stable_mosaic.version = 11 : i64} {
  func.func @_conv_single_k_kernel(%arg0: i32, %arg1: memref<32x8192xbf16, #tpu.memory_space<vmem>>, %arg2: memref<8192x128xbf16, #tpu.memory_space<vmem>>, %arg3: memref<32x128xf32, #tpu.memory_space<vmem>>) attributes {dimension_semantics = [#tpu.dimension_semantics<parallel>], iteration_bounds = array<i64: 1>, scalar_prefetch = 0 : i64, scratch_operands = 0 : i64, tpu.core_type = #tpu.core_type<tc>, window_params = [{pipeline_mode = #tpu.pipeline_mode<synchronous>, transform_indices = @transform_0, window_bounds = array<i64: 32, 8192>}, {transform_indices = @transform_1, window_bounds = array<i64: 8192, 128>}, {transform_indices = @transform_2, window_bounds = array<i64: 32, 128>}]} {
    %c0 = arith.constant 0 : index
    %c0_0 = arith.constant 0 : index
    %0 = vector.load %arg1[%c0, %c0_0] : memref<32x8192xbf16, #tpu.memory_space<vmem>>, vector<32x8192xbf16>
    %c0_1 = arith.constant 0 : index
    %c0_2 = arith.constant 0 : index
    %1 = vector.load %arg2[%c0_1, %c0_2] : memref<8192x128xbf16, #tpu.memory_space<vmem>>, vector<8192x128xbf16>
    %cst = arith.constant dense<0.000000e+00> : vector<32x128xf32>
    %2 = tpu.matmul %0, %1, %cst {dimension_numbers = #tpu.dot_dimension_numbers<[1], [0], [0], [1], [0, 0, 1, 1], [], []>} : vector<32x8192xbf16>, vector<8192x128xbf16>, vector<32x128xf32> -> vector<32x128xf32>
    %cst_3 = arith.constant 0.000000e+00 : f32
    %3 = vector.broadcast %cst_3 : f32 to vector<32x128xf32>
    %4 = arith.subf %3, %2 : vector<32x128xf32>
    %5 = math.exp %4 : vector<32x128xf32>
    %cst_4 = arith.constant 1.000000e+00 : f32
    %6 = vector.broadcast %cst_4 : f32 to vector<32x128xf32>
    %7 = arith.addf %6, %5 : vector<32x128xf32>
    %cst_5 = arith.constant 1.000000e+00 : f32
    %8 = vector.broadcast %cst_5 : f32 to vector<32x128xf32>
    %9 = arith.divf %8, %7 : vector<32x128xf32>
    %c0_6 = arith.constant 0 : index
    %c0_7 = arith.constant 0 : index
    %10 = vector.load %arg3[%c0_6, %c0_7] : memref<32x128xf32, #tpu.memory_space<vmem>>, vector<32x128xf32>
    tpu.vector_store %arg3[%c0_6, %c0_7], %9 {strides = array<i32>} : memref<32x128xf32, #tpu.memory_space<vmem>>, vector<32x128xf32>,
    return
  }
  func.func @transform_0(%arg0: i32) -> (i32, i32) {
    %c0_i32 = arith.constant 0 : i32
    %c0_i32_0 = arith.constant 0 : i32
    %c0_i32_1 = arith.constant 0 : i32
    return %c0_i32, %c0_i32_0 : i32, i32
  }
  func.func @transform_1(%arg0: i32) -> (i32, i32) {
    %c0_i32 = arith.constant 0 : i32
    %c0_i32_0 = arith.constant 0 : i32
    return %c0_i32, %arg0 : i32, i32
  }
  func.func @transform_2(%arg0: i32) -> (i32, i32) {
    %c0_i32 = arith.constant 0 : i32
    %c0_i32_0 = arith.constant 0 : i32
    return %c0_i32, %arg0 : i32, i32
  }
}

</mosaic_0001>

<bundles_post_ra>
// kernel: discriminator_forward.5
= control target key start
LH: loop header
LB: loop body
LE: loop exit
PB: predicated region body
PF: predicated region fallthrough
CT: control target
= control target key end

     0   :  { %s1912_s1 = inlined_call_operand.vmem [shape: bf16[128,128], index: 1, kind: input, shape index: {}]   ;;  %s1913_s0 = inlined_call_operand.vmem [shape: bf16[512,128], index: 0, kind: input, shape index: {}]   ;;  %s1914_s2 = inlined_call_operand.vmem [shape: bf16[512,128], index: 2, kind: output, shape index: {}]  }
   0x1   :  { %v1632_v0 = vld [vmem:[%s1912_s1 + $0x38] sm:$0xff]   ;;  %v1633_v1 = vld [vmem:[%s1912_s1 + $0x30] sm:$0xff]   ;;  %v1634_v2 = vld [vmem:[%s1912_s1 + $0x28] sm:$0xff]  }
   0x2   :  { %1536 = vmatprep.subr.bf16.mxu0 %v1632_v0  ;;  %1616 = vmatprep.subr.bf16.mxu1 %v1632_v0  ;;  %v1635_v3 = vld [vmem:[%s1912_s1 + $0x20] sm:$0xff]   ;;  %v1636_v6 = vld [vmem:[%s1912_s1 + $0x18] sm:$0xff]   ;;  %v1637_v7 = vld [vmem:[%s1912_s1 + $0x10] sm:$0xff]  }
   0x3   :  { %1537 = vmatpush3.bf16.msra.mxu0 %v1632_v0  ;;  %1624 = vmatpush3.bf16.msra.mxu1 %v1632_v0  ;;  %v1640_v4 = vld [vmem:[%s1913_s0] sm:$0xff]   ;;  %v1638_v8 = vld [vmem:[%s1912_s1 + $0x8] sm:$0xff]   ;;  %v1644_v12 = vld [vmem:[%s1913_s0 + $0x10] sm:$0xff]  }
   0x4   :  { %1538 = vmatprep.subr.bf16.mxu0 %v1633_v1  ;;  %1617 = vmatprep.subr.bf16.mxu1 %v1633_v1  ;;  %v1641_v5 = vld [vmem:[%s1913_s0 + $0x80] sm:$0xff]   ;;  %v1642_v10 = vld [vmem:[%s1913_s0 + $0x8] sm:$0xff]   ;;  %v1645_v13 = vld [vmem:[%s1913_s0 + $0x90] sm:$0xff]  }
   0x5   :  { %1552 = vmatprep.mubr.bf16.mxu0 %v1640_v4  ;;  %1584 = vmatprep.mubr.bf16.mxu1 %v1641_v5  ;;  %v1639_v9 = vld [vmem:[%s1912_s1] sm:$0xff]   ;;  %v1643_v11 = vld [vmem:[%s1913_s0 + $0x88] sm:$0xff]   ;;  %v1646_v14 = vld [vmem:[%s1913_s0 + $0x18] sm:$0xff]  }
   0x6   :  { %v1647_v15 = vld [vmem:[%s1913_s0 + $0x98] sm:$0xff]   ;;  %v1648_v16 = vld [vmem:[%s1913_s0 + $0x20] sm:$0xff]   ;;  %v1650_v18 = vld [vmem:[%s1913_s0 + $0x28] sm:$0xff]  }
   0x7   :  { %1539 = vmatpush3.bf16.msra.mxu0 %v1633_v1  ;;  %1625 = vmatpush3.bf16.msra.mxu1 %v1633_v1  ;;  %v1649_v17 = vld [vmem:[%s1913_s0 + $0xa0] sm:$0xff]   ;;  %v1651_v19 = vld [vmem:[%s1913_s0 + $0xa8] sm:$0xff]   ;;  %v1652_v20 = vld [vmem:[%s1913_s0 + $0x30] sm:$0xff]  }
   0x8   :  { %1540 = vmatprep.subr.bf16.mxu0 %v1634_v2  ;;  %1618 = vmatprep.subr.bf16.mxu1 %v1634_v2  ;;  %v1653_v21 = vld [vmem:[%s1913_s0 + $0xb0] sm:$0xff]   ;;  %v1654_v22 = vld [vmem:[%s1913_s0 + $0x38] sm:$0xff]   ;;  %v1656_v24 = vld [vmem:[%s1913_s0 + $0x40] sm:$0xff]  }
   0x9   :  { %v1655_v23 = vld [vmem:[%s1913_s0 + $0xb8] sm:$0xff]   ;;  %v1657_v25 = vld [vmem:[%s1913_s0 + $0xc0] sm:$0xff]   ;;  %v1658_v26 = vld [vmem:[%s1913_s0 + $0x48] sm:$0xff]  }
   0xa   :  { %v1659_v27 = vld [vmem:[%s1913_s0 + $0xc8] sm:$0xff]   ;;  %v1660_v28 = vld [vmem:[%s1913_s0 + $0x50] sm:$0xff]   ;;  %v1662_v30 = vld [vmem:[%s1913_s0 + $0x58] sm:$0xff]  }
   0xb   :  { %1541 = vmatpush3.bf16.msra.mxu0 %v1634_v2  ;;  %1626 = vmatpush3.bf16.msra.mxu1 %v1634_v2  ;;  %v1661_v29 = vld [vmem:[%s1913_s0 + $0xd0] sm:$0xff]   ;;  %v1663_v31 = vld [vmem:[%s1913_s0 + $0xd8] sm:$0xff]   ;;  %v1664_v32 = vld [vmem:[%s1913_s0 + $0x60] sm:$0xff]  }
   0xc   :  { %1542 = vmatprep.subr.bf16.mxu0 %v1635_v3  ;;  %1619 = vmatprep.subr.bf16.mxu1 %v1635_v3  ;;  %v1665_v33 = vld [vmem:[%s1913_s0 + $0xe0] sm:$0xff]   ;;  %v1666_v34 = vld [vmem:[%s1913_s0 + $0x68] sm:$0xff]   ;;  %v1668_v36 = vld [vmem:[%s1913_s0 + $0x70] sm:$0xff]  }
   0xd   :  { %v1667_v35 = vld [vmem:[%s1913_s0 + $0xe8] sm:$0xff]   ;;  %v1669_v37 = vld [vmem:[%s1913_s0 + $0xf0] sm:$0xff]   ;;  %v1670_v38 = vld [vmem:[%s1913_s0 + $0x78] sm:$0xff]  }
   0xe   :  { %v1671_v39 = vld [vmem:[%s1913_s0 + $0xf8] sm:$0xff]  }
   0xf   :  { %1543 = vmatpush3.bf16.msra.mxu0 %v1635_v3  ;;  %1627 = vmatpush3.bf16.msra.mxu1 %v1635_v3 }
  0x10   :  { %1544 = vmatprep.subr.bf16.mxu0 %v1636_v6  ;;  %1620 = vmatprep.subr.bf16.mxu1 %v1636_v6 }
  0x13   :  { %1545 = vmatpush3.bf16.msra.mxu0 %v1636_v6  ;;  %1628 = vmatpush3.bf16.msra.mxu1 %v1636_v6 }
  0x14   :  { %1546 = vmatprep.subr.bf16.mxu0 %v1637_v7  ;;  %1621 = vmatprep.subr.bf16.mxu1 %v1637_v7 }
  0x17   :  { %1547 = vmatpush3.bf16.msra.mxu0 %v1637_v7  ;;  %1629 = vmatpush3.bf16.msra.mxu1 %v1637_v7 }
  0x18   :  { %1548 = vmatprep.subr.bf16.mxu0 %v1638_v8  ;;  %1622 = vmatprep.subr.bf16.mxu1 %v1638_v8 }
  0x1b   :  { %1549 = vmatpush3.bf16.msra.mxu0 %v1638_v8  ;;  %1630 = vmatpush3.bf16.msra.mxu1 %v1638_v8 }
  0x1c   :  { %1550 = vmatprep.subr.bf16.mxu0 %v1639_v9  ;;  %1623 = vmatprep.subr.bf16.mxu1 %v1639_v9 }
  0x1f   :  { %1551 = vmatpush3.bf16.msra.mxu0 %v1639_v9  ;;  %1631 = vmatpush3.bf16.msra.mxu1 %v1639_v9 }
  0x22   :  { %1553 = vmatmul.mubr.bf16.vlgmr.msra.gmra.mxu0 %v1642_v10  ;;  %1585 = vmatmul.mubr.bf16.vlgmr.msra.gmra.mxu1 %v1643_v11 }
  0x23   :  { %1556 = vmatprep.mubr.bf16.mxu0 %v1644_v12  ;;  %1588 = vmatprep.mubr.bf16.mxu1 %v1645_v13 }
  0x2a   :  { %1557 = vmatmul.mubr.bf16.gmra.mxu0 %v1646_v14  ;;  %1589 = vmatmul.mubr.bf16.gmra.mxu1 %v1647_v15 }
  0x2b   :  { %1560 = vmatprep.mubr.bf16.mxu0 %v1648_v16  ;;  %1592 = vmatprep.mubr.bf16.mxu1 %v1649_v17 }
  0x32   :  { %1561 = vmatmul.mubr.bf16.gmra.mxu0 %v1650_v18  ;;  %1593 = vmatmul.mubr.bf16.gmra.mxu1 %v1651_v19 }
  0x33   :  { %1564 = vmatprep.mubr.bf16.mxu0 %v1652_v20  ;;  %1596 = vmatprep.mubr.bf16.mxu1 %v1653_v21 }
  0x3a   :  { %1565 = vmatmul.mubr.bf16.gmra.mxu0 %v1654_v22  ;;  %1597 = vmatmul.mubr.bf16.gmra.mxu1 %v1655_v23 }
  0x3b   :  { %1568 = vmatprep.mubr.bf16.mxu0 %v1656_v24  ;;  %1600 = vmatprep.mubr.bf16.mxu1 %v1657_v25 }
  0x42   :  { %1569 = vmatmul.mubr.bf16.gmra.mxu0 %v1658_v26  ;;  %1601 = vmatmul.mubr.bf16.gmra.mxu1 %v1659_v27 }
  0x43   :  { %1572 = vmatprep.mubr.bf16.mxu0 %v1660_v28  ;;  %1604 = vmatprep.mubr.bf16.mxu1 %v1661_v29 }
  0x4a   :  { %1573 = vmatmul.mubr.bf16.gmra.mxu0 %v1662_v30  ;;  %1605 = vmatmul.mubr.bf16.gmra.mxu1 %v1663_v31 }
  0x4b   :  { %1576 = vmatprep.mubr.bf16.mxu0 %v1664_v32  ;;  %1608 = vmatprep.mubr.bf16.mxu1 %v1665_v33 }
  0x52   :  { %1577 = vmatmul.mubr.bf16.gmra.mxu0 %v1666_v34  ;;  %1609 = vmatmul.mubr.bf16.gmra.mxu1 %v1667_v35 }
  0x53   :  { %1580 = vmatprep.mubr.bf16.mxu0 %v1668_v36  ;;  %1612 = vmatprep.mubr.bf16.mxu1 %v1669_v37 }
  0x5a   :  { %1581 = vmatmul.mubr.bf16.gmra.mxu0 %v1670_v38  ;;  %1613 = vmatmul.mubr.bf16.gmra.mxu1 %v1671_v39 }
  0xe2   :  { %v1554_v40 = vpop.f32.mrf.mxu0  ;;  %v1586_v41 = vpop.f32.mrf.mxu1 }
  0xe3   :  { %vm623_vm0 = vcmp.ge.f32.partialorder %v1554_v40, 0.0  ;;  %v687_v42 = vmul.f32 0.2, %v1554_v40  ;;  %v719_v43 = vmul.f32 0.2, %v1586_v41  ;;  %vm655_vm1 = vcmp.ge.f32.partialorder %v1586_v41, 0.0 }
  0xe4   :  { %v366_v44 = vpop.f32.mrf.mxu0  ;;  %v494_v45 = vpop.f32.mrf.mxu1 }
  0xe5   :  { %v751_v46 = vsel %vm623_vm0, %v1554_v40, %v687_v42  ;;  %v685_v47 = vmul.f32 0.2, %v366_v44  ;;  %vm621_vm2 = vcmp.ge.f32.partialorder %v366_v44, 0.0  ;;  %v783_v51 = vsel %vm655_vm1, %v1586_v41, %v719_v43 }
  0xe6   :  { %v1555_v48 = vpop.f32.mrf.mxu0  ;;  %v1587_v49 = vpop.f32.mrf.mxu1  ;;  %vm653_vm5 = vcmp.ge.f32.partialorder %v494_v45, 0.0  ;;  %v717_v52 = vmul.f32 0.2, %v494_v45 }
  0xe7   :  { %vm624_vm3 = vcmp.ge.f32.partialorder %v1555_v48, 0.0  ;;  %v688_v50 = vmul.f32 0.2, %v1555_v48  ;;  %vm656_vm4 = vcmp.ge.f32.partialorder %v1587_v49, 0.0  ;;  %v720_v53 = vmul.f32 0.2, %v1587_v49 }
  0xe8   :  { %v369_v54 = vpop.f32.mrf.mxu0  ;;  %v497_v55 = vpop.f32.mrf.mxu1  ;;  %v749_v58 = vsel %vm621_vm2, %v366_v44, %v685_v47  ;;  %v781_v3 = vsel %vm653_vm5, %v494_v45, %v717_v52 }
  0xe9   :  { %v752_v56 = vsel %vm624_vm3, %v1555_v48, %v688_v50  ;;  %vm622_vm6 = vcmp.ge.f32.partialorder %v369_v54, 0.0  ;;  %v686_v57 = vmul.f32 0.2, %v369_v54  ;;  %vm654_vm7 = vcmp.ge.f32.partialorder %v497_v55, 0.0 }
  0xea   :  { %v1313_v59 = vpack.c.bf16 %v752_v56, %v751_v46  ;;  %v784_v60 = vsel %vm656_vm4, %v1587_v49, %v720_v53  ;;  %v718_v61 = vmul.f32 0.2, %v497_v55  ;;  %v1558_v62 = vpop.f32.mrf.mxu0  ;;  %v1590_v63 = vpop.f32.mrf.mxu1 }
  0xeb   :  { %v1393_v0 = vpack.c.bf16 %v784_v60, %v783_v51  ;;  %v750_v1 = vsel %vm622_vm6, %v369_v54, %v686_v57  ;;  %vm627_vm8 = vcmp.ge.f32.partialorder %v1558_v62, 0.0  ;;  %v691_v2 = vmul.f32 0.2, %v1558_v62 }
  0xec   :  { %1465 = vst [vmem:[%s1914_s2 + $0x8] sm:$0xff] %v1313_v59   ;;  %v1308_v4 = vpack.c.bf16 %v750_v1, %v749_v58  ;;  %v782_v5 = vsel %vm654_vm7, %v497_v55, %v718_v61  ;;  %v723_v6 = vmul.f32 0.2, %v1590_v63  ;;  %v382_v7 = vpop.f32.mrf.mxu0  ;;  %v510_v8 = vpop.f32.mrf.mxu1  ;;  %vm659_vm9 = vcmp.ge.f32.partialorder %v1590_v63, 0.0 }
  0xed   :  { %1481 = vst [vmem:[%s1914_s2 + $0x88] sm:$0xff] %v1393_v0   ;;  %v1388_v9 = vpack.c.bf16 %v782_v5, %v781_v3  ;;  %v755_v10 = vsel %vm627_vm8, %v1558_v62, %v691_v2  ;;  %v689_v11 = vmul.f32 0.2, %v382_v7  ;;  %vm625_vm10 = vcmp.ge.f32.partialorder %v382_v7, 0.0 }
  0xee   :  { %1309 = vst [vmem:[%s1914_s2] sm:$0xff] %v1308_v4   ;;  %v1559_v12 = vpop.f32.mrf.mxu0  ;;  %v1591_v13 = vpop.f32.mrf.mxu1  ;;  %v787_v15 = vsel %vm659_vm9, %v1590_v63, %v723_v6  ;;  %vm657_vm13 = vcmp.ge.f32.partialorder %v510_v8, 0.0  ;;  %v721_v16 = vmul.f32 0.2, %v510_v8 }
  0xef   :  { %1480 = vst [vmem:[%s1914_s2 + $0x80] sm:$0xff] %v1388_v9   ;;  %vm628_vm11 = vcmp.ge.f32.partialorder %v1559_v12, 0.0  ;;  %v692_v14 = vmul.f32 0.2, %v1559_v12  ;;  %vm660_vm12 = vcmp.ge.f32.partialorder %v1591_v13, 0.0  ;;  %v753_v22 = vsel %vm625_vm10, %v382_v7, %v689_v11 }
  0xf0   :  { %v724_v17 = vmul.f32 0.2, %v1591_v13  ;;  %v385_v18 = vpop.f32.mrf.mxu0  ;;  %v513_v19 = vpop.f32.mrf.mxu1  ;;  %v785_v31 = vsel %vm657_vm13, %v510_v8, %v721_v16 }
  0xf1   :  { %v756_v20 = vsel %vm628_vm11, %v1559_v12, %v692_v14  ;;  %vm626_vm14 = vcmp.ge.f32.partialorder %v385_v18, 0.0  ;;  %v690_v21 = vmul.f32 0.2, %v385_v18  ;;  %vm658_vm15 = vcmp.ge.f32.partialorder %v513_v19, 0.0 }
  0xf2   :  { %v1323_v23 = vpack.c.bf16 %v756_v20, %v755_v10  ;;  %v788_v24 = vsel %vm660_vm12, %v1591_v13, %v724_v17  ;;  %v722_v25 = vmul.f32 0.2, %v513_v19  ;;  %v1562_v26 = vpop.f32.mrf.mxu0  ;;  %v1594_v27 = vpop.f32.mrf.mxu1 }
  0xf3   :  { %v1403_v28 = vpack.c.bf16 %v788_v24, %v787_v15  ;;  %v754_v29 = vsel %vm626_vm14, %v385_v18, %v690_v21  ;;  %vm631_vm0 = vcmp.ge.f32.partialorder %v1562_v26, 0.0  ;;  %v695_v30 = vmul.f32 0.2, %v1562_v26 }
  0xf4   :  { %1467 = vst [vmem:[%s1914_s2 + $0x18] sm:$0xff] %v1323_v23   ;;  %v1318_v32 = vpack.c.bf16 %v754_v29, %v753_v22  ;;  %v786_v33 = vsel %vm658_vm15, %v513_v19, %v722_v25  ;;  %v727_v34 = vmul.f32 0.2, %v1594_v27  ;;  %v398_v35 = vpop.f32.mrf.mxu0  ;;  %v526_v36 = vpop.f32.mrf.mxu1  ;;  %vm663_vm1 = vcmp.ge.f32.partialorder %v1594_v27, 0.0 }
  0xf5   :  { %1483 = vst [vmem:[%s1914_s2 + $0x98] sm:$0xff] %v1403_v28   ;;  %v1398_v37 = vpack.c.bf16 %v786_v33, %v785_v31  ;;  %v759_v38 = vsel %vm631_vm0, %v1562_v26, %v695_v30  ;;  %v693_v39 = vmul.f32 0.2, %v398_v35  ;;  %vm629_vm2 = vcmp.ge.f32.partialorder %v398_v35, 0.0 }
  0xf6   :  { %1466 = vst [vmem:[%s1914_s2 + $0x10] sm:$0xff] %v1318_v32   ;;  %v1563_v40 = vpop.f32.mrf.mxu0  ;;  %v1595_v41 = vpop.f32.mrf.mxu1  ;;  %v791_v43 = vsel %vm663_vm1, %v1594_v27, %v727_v34  ;;  %vm661_vm5 = vcmp.ge.f32.partialorder %v526_v36, 0.0  ;;  %v725_v44 = vmul.f32 0.2, %v526_v36 }
  0xf7   :  { %1482 = vst [vmem:[%s1914_s2 + $0x90] sm:$0xff] %v1398_v37   ;;  %vm632_vm3 = vcmp.ge.f32.partialorder %v1563_v40, 0.0  ;;  %v696_v42 = vmul.f32 0.2, %v1563_v40  ;;  %vm664_vm4 = vcmp.ge.f32.partialorder %v1595_v41, 0.0  ;;  %v757_v50 = vsel %vm629_vm2, %v398_v35, %v693_v39 }
  0xf8   :  { %v728_v45 = vmul.f32 0.2, %v1595_v41  ;;  %v401_v46 = vpop.f32.mrf.mxu0  ;;  %v529_v47 = vpop.f32.mrf.mxu1  ;;  %v789_v59 = vsel %vm661_vm5, %v526_v36, %v725_v44 }
  0xf9   :  { %v760_v48 = vsel %vm632_vm3, %v1563_v40, %v696_v42  ;;  %vm630_vm6 = vcmp.ge.f32.partialorder %v401_v46, 0.0  ;;  %v694_v49 = vmul.f32 0.2, %v401_v46  ;;  %vm662_vm7 = vcmp.ge.f32.partialorder %v529_v47, 0.0 }
  0xfa   :  { %v1333_v51 = vpack.c.bf16 %v760_v48, %v759_v38  ;;  %v792_v52 = vsel %vm664_vm4, %v1595_v41, %v728_v45  ;;  %v726_v53 = vmul.f32 0.2, %v529_v47  ;;  %v1566_v54 = vpop.f32.mrf.mxu0  ;;  %v1598_v55 = vpop.f32.mrf.mxu1 }
  0xfb   :  { %v1413_v56 = vpack.c.bf16 %v792_v52, %v791_v43  ;;  %v758_v57 = vsel %vm630_vm6, %v401_v46, %v694_v49  ;;  %vm635_vm8 = vcmp.ge.f32.partialorder %v1566_v54, 0.0  ;;  %v699_v58 = vmul.f32 0.2, %v1566_v54 }
  0xfc   :  { %1469 = vst [vmem:[%s1914_s2 + $0x28] sm:$0xff] %v1333_v51   ;;  %v1328_v60 = vpack.c.bf16 %v758_v57, %v757_v50  ;;  %v790_v61 = vsel %vm662_vm7, %v529_v47, %v726_v53  ;;  %v731_v62 = vmul.f32 0.2, %v1598_v55  ;;  %v414_v63 = vpop.f32.mrf.mxu0  ;;  %v542_v0 = vpop.f32.mrf.mxu1  ;;  %vm667_vm9 = vcmp.ge.f32.partialorder %v1598_v55, 0.0 }
  0xfd   :  { %1485 = vst [vmem:[%s1914_s2 + $0xa8] sm:$0xff] %v1413_v56   ;;  %v1408_v1 = vpack.c.bf16 %v790_v61, %v789_v59  ;;  %v763_v2 = vsel %vm635_vm8, %v1566_v54, %v699_v58  ;;  %v697_v3 = vmul.f32 0.2, %v414_v63  ;;  %vm633_vm10 = vcmp.ge.f32.partialorder %v414_v63, 0.0 }
  0xfe   :  { %1468 = vst [vmem:[%s1914_s2 + $0x20] sm:$0xff] %v1328_v60   ;;  %v1567_v4 = vpop.f32.mrf.mxu0  ;;  %v1599_v5 = vpop.f32.mrf.mxu1  ;;  %v795_v7 = vsel %vm667_vm9, %v1598_v55, %v731_v62  ;;  %vm665_vm13 = vcmp.ge.f32.partialorder %v542_v0, 0.0  ;;  %v729_v8 = vmul.f32 0.2, %v542_v0 }
  0xff   :  { %1484 = vst [vmem:[%s1914_s2 + $0xa0] sm:$0xff] %v1408_v1   ;;  %vm636_vm11 = vcmp.ge.f32.partialorder %v1567_v4, 0.0  ;;  %v700_v6 = vmul.f32 0.2, %v1567_v4  ;;  %vm668_vm12 = vcmp.ge.f32.partialorder %v1599_v5, 0.0  ;;  %v761_v14 = vsel %vm633_vm10, %v414_v63, %v697_v3 }
 0x100   :  { %v732_v9 = vmul.f32 0.2, %v1599_v5  ;;  %v417_v10 = vpop.f32.mrf.mxu0  ;;  %v545_v11 = vpop.f32.mrf.mxu1  ;;  %v793_v23 = vsel %vm665_vm13, %v542_v0, %v729_v8 }
 0x101   :  { %v764_v12 = vsel %vm636_vm11, %v1567_v4, %v700_v6  ;;  %vm634_vm14 = vcmp.ge.f32.partialorder %v417_v10, 0.0  ;;  %v698_v13 = vmul.f32 0.2, %v417_v10  ;;  %vm666_vm15 = vcmp.ge.f32.partialorder %v545_v11, 0.0 }
 0x102   :  { %v1343_v15 = vpack.c.bf16 %v764_v12, %v763_v2  ;;  %v796_v16 = vsel %vm668_vm12, %v1599_v5, %v732_v9  ;;  %v730_v17 = vmul.f32 0.2, %v545_v11  ;;  %v1570_v18 = vpop.f32.mrf.mxu0  ;;  %v1602_v19 = vpop.f32.mrf.mxu1 }
 0x103   :  { %v1423_v20 = vpack.c.bf16 %v796_v16, %v795_v7  ;;  %v762_v21 = vsel %vm634_vm14, %v417_v10, %v698_v13  ;;  %vm639_vm0 = vcmp.ge.f32.partialorder %v1570_v18, 0.0  ;;  %v703_v22 = vmul.f32 0.2, %v1570_v18 }
 0x104   :  { %1471 = vst [vmem:[%s1914_s2 + $0x38] sm:$0xff] %v1343_v15   ;;  %v1338_v24 = vpack.c.bf16 %v762_v21, %v761_v14  ;;  %v794_v25 = vsel %vm666_vm15, %v545_v11, %v730_v17  ;;  %v735_v26 = vmul.f32 0.2, %v1602_v19  ;;  %v430_v27 = vpop.f32.mrf.mxu0  ;;  %v558_v28 = vpop.f32.mrf.mxu1  ;;  %vm671_vm1 = vcmp.ge.f32.partialorder %v1602_v19, 0.0 }
 0x105   :  { %1487 = vst [vmem:[%s1914_s2 + $0xb8] sm:$0xff] %v1423_v20   ;;  %v1418_v29 = vpack.c.bf16 %v794_v25, %v793_v23  ;;  %v767_v30 = vsel %vm639_vm0, %v1570_v18, %v703_v22  ;;  %v701_v31 = vmul.f32 0.2, %v430_v27  ;;  %vm637_vm2 = vcmp.ge.f32.partialorder %v430_v27, 0.0 }
 0x106   :  { %1470 = vst [vmem:[%s1914_s2 + $0x30] sm:$0xff] %v1338_v24   ;;  %v1571_v32 = vpop.f32.mrf.mxu0  ;;  %v1603_v33 = vpop.f32.mrf.mxu1  ;;  %v799_v35 = vsel %vm671_vm1, %v1602_v19, %v735_v26  ;;  %vm669_vm5 = vcmp.ge.f32.partialorder %v558_v28, 0.0  ;;  %v733_v36 = vmul.f32 0.2, %v558_v28 }
 0x107   :  { %1486 = vst [vmem:[%s1914_s2 + $0xb0] sm:$0xff] %v1418_v29   ;;  %vm640_vm3 = vcmp.ge.f32.partialorder %v1571_v32, 0.0  ;;  %v704_v34 = vmul.f32 0.2, %v1571_v32  ;;  %vm672_vm4 = vcmp.ge.f32.partialorder %v1603_v33, 0.0  ;;  %v765_v42 = vsel %vm637_vm2, %v430_v27, %v701_v31 }
 0x108   :  { %v736_v37 = vmul.f32 0.2, %v1603_v33  ;;  %v433_v38 = vpop.f32.mrf.mxu0  ;;  %v561_v39 = vpop.f32.mrf.mxu1  ;;  %v797_v51 = vsel %vm669_vm5, %v558_v28, %v733_v36 }
 0x109   :  { %v768_v40 = vsel %vm640_vm3, %v1571_v32, %v704_v34  ;;  %vm638_vm6 = vcmp.ge.f32.partialorder %v433_v38, 0.0  ;;  %v702_v41 = vmul.f32 0.2, %v433_v38  ;;  %vm670_vm7 = vcmp.ge.f32.partialorder %v561_v39, 0.0 }
 0x10a   :  { %v1353_v43 = vpack.c.bf16 %v768_v40, %v767_v30  ;;  %v800_v44 = vsel %vm672_vm4, %v1603_v33, %v736_v37  ;;  %v734_v45 = vmul.f32 0.2, %v561_v39  ;;  %v1574_v46 = vpop.f32.mrf.mxu0  ;;  %v1606_v47 = vpop.f32.mrf.mxu1 }
 0x10b   :  { %v1433_v48 = vpack.c.bf16 %v800_v44, %v799_v35  ;;  %v766_v49 = vsel %vm638_vm6, %v433_v38, %v702_v41  ;;  %vm643_vm8 = vcmp.ge.f32.partialorder %v1574_v46, 0.0  ;;  %v707_v50 = vmul.f32 0.2, %v1574_v46 }
 0x10c   :  { %1473 = vst [vmem:[%s1914_s2 + $0x48] sm:$0xff] %v1353_v43   ;;  %v1348_v52 = vpack.c.bf16 %v766_v49, %v765_v42  ;;  %v798_v53 = vsel %vm670_vm7, %v561_v39, %v734_v45  ;;  %v739_v54 = vmul.f32 0.2, %v1606_v47  ;;  %v446_v55 = vpop.f32.mrf.mxu0  ;;  %v574_v56 = vpop.f32.mrf.mxu1  ;;  %vm675_vm9 = vcmp.ge.f32.partialorder %v1606_v47, 0.0 }
 0x10d   :  { %1489 = vst [vmem:[%s1914_s2 + $0xc8] sm:$0xff] %v1433_v48   ;;  %v1428_v57 = vpack.c.bf16 %v798_v53, %v797_v51  ;;  %v771_v58 = vsel %vm643_vm8, %v1574_v46, %v707_v50  ;;  %v705_v59 = vmul.f32 0.2, %v446_v55  ;;  %vm641_vm10 = vcmp.ge.f32.partialorder %v446_v55, 0.0 }
 0x10e   :  { %1472 = vst [vmem:[%s1914_s2 + $0x40] sm:$0xff] %v1348_v52   ;;  %v1575_v60 = vpop.f32.mrf.mxu0  ;;  %v1607_v61 = vpop.f32.mrf.mxu1  ;;  %v803_v63 = vsel %vm675_vm9, %v1606_v47, %v739_v54  ;;  %vm673_vm13 = vcmp.ge.f32.partialorder %v574_v56, 0.0  ;;  %v737_v0 = vmul.f32 0.2, %v574_v56 }
 0x10f   :  { %1488 = vst [vmem:[%s1914_s2 + $0xc0] sm:$0xff] %v1428_v57   ;;  %vm644_vm11 = vcmp.ge.f32.partialorder %v1575_v60, 0.0  ;;  %v708_v62 = vmul.f32 0.2, %v1575_v60  ;;  %vm676_vm12 = vcmp.ge.f32.partialorder %v1607_v61, 0.0  ;;  %v769_v6 = vsel %vm641_vm10, %v446_v55, %v705_v59 }
 0x110   :  { %v740_v1 = vmul.f32 0.2, %v1607_v61  ;;  %v449_v2 = vpop.f32.mrf.mxu0  ;;  %v577_v3 = vpop.f32.mrf.mxu1  ;;  %v801_v15 = vsel %vm673_vm13, %v574_v56, %v737_v0 }
 0x111   :  { %v772_v4 = vsel %vm644_vm11, %v1575_v60, %v708_v62  ;;  %vm642_vm14 = vcmp.ge.f32.partialorder %v449_v2, 0.0  ;;  %v706_v5 = vmul.f32 0.2, %v449_v2  ;;  %vm674_vm15 = vcmp.ge.f32.partialorder %v577_v3, 0.0 }
 0x112   :  { %v1363_v7 = vpack.c.bf16 %v772_v4, %v771_v58  ;;  %v804_v8 = vsel %vm676_vm12, %v1607_v61, %v740_v1  ;;  %v738_v9 = vmul.f32 0.2, %v577_v3  ;;  %v1578_v10 = vpop.f32.mrf.mxu0  ;;  %v1610_v11 = vpop.f32.mrf.mxu1 }
 0x113   :  { %v1443_v12 = vpack.c.bf16 %v804_v8, %v803_v63  ;;  %v770_v13 = vsel %vm642_vm14, %v449_v2, %v706_v5  ;;  %vm647_vm0 = vcmp.ge.f32.partialorder %v1578_v10, 0.0  ;;  %v711_v14 = vmul.f32 0.2, %v1578_v10 }
 0x114   :  { %1475 = vst [vmem:[%s1914_s2 + $0x58] sm:$0xff] %v1363_v7   ;;  %v1358_v16 = vpack.c.bf16 %v770_v13, %v769_v6  ;;  %v802_v17 = vsel %vm674_vm15, %v577_v3, %v738_v9  ;;  %v743_v18 = vmul.f32 0.2, %v1610_v11  ;;  %v462_v19 = vpop.f32.mrf.mxu0  ;;  %v590_v20 = vpop.f32.mrf.mxu1  ;;  %vm679_vm1 = vcmp.ge.f32.partialorder %v1610_v11, 0.0 }
 0x115   :  { %1491 = vst [vmem:[%s1914_s2 + $0xd8] sm:$0xff] %v1443_v12   ;;  %v1438_v21 = vpack.c.bf16 %v802_v17, %v801_v15  ;;  %v775_v22 = vsel %vm647_vm0, %v1578_v10, %v711_v14  ;;  %v709_v23 = vmul.f32 0.2, %v462_v19  ;;  %vm645_vm2 = vcmp.ge.f32.partialorder %v462_v19, 0.0 }
 0x116   :  { %1474 = vst [vmem:[%s1914_s2 + $0x50] sm:$0xff] %v1358_v16   ;;  %v1579_v24 = vpop.f32.mrf.mxu0  ;;  %v1611_v25 = vpop.f32.mrf.mxu1  ;;  %v807_v27 = vsel %vm679_vm1, %v1610_v11, %v743_v18  ;;  %vm677_vm5 = vcmp.ge.f32.partialorder %v590_v20, 0.0  ;;  %v741_v28 = vmul.f32 0.2, %v590_v20 }
 0x117   :  { %1490 = vst [vmem:[%s1914_s2 + $0xd0] sm:$0xff] %v1438_v21   ;;  %vm648_vm3 = vcmp.ge.f32.partialorder %v1579_v24, 0.0  ;;  %v712_v26 = vmul.f32 0.2, %v1579_v24  ;;  %vm680_vm4 = vcmp.ge.f32.partialorder %v1611_v25, 0.0  ;;  %v773_v34 = vsel %vm645_vm2, %v462_v19, %v709_v23 }
 0x118   :  { %v744_v29 = vmul.f32 0.2, %v1611_v25  ;;  %v465_v30 = vpop.f32.mrf.mxu0  ;;  %v593_v31 = vpop.f32.mrf.mxu1  ;;  %v805_v43 = vsel %vm677_vm5, %v590_v20, %v741_v28 }
 0x119   :  { %v776_v32 = vsel %vm648_vm3, %v1579_v24, %v712_v26  ;;  %vm646_vm6 = vcmp.ge.f32.partialorder %v465_v30, 0.0  ;;  %v710_v33 = vmul.f32 0.2, %v465_v30  ;;  %vm678_vm7 = vcmp.ge.f32.partialorder %v593_v31, 0.0 }
 0x11a   :  { %v1373_v35 = vpack.c.bf16 %v776_v32, %v775_v22  ;;  %v808_v36 = vsel %vm680_vm4, %v1611_v25, %v744_v29  ;;  %v742_v37 = vmul.f32 0.2, %v593_v31  ;;  %v1582_v38 = vpop.f32.mrf.mxu0  ;;  %v1614_v39 = vpop.f32.mrf.mxu1 }
 0x11b   :  { %v1453_v40 = vpack.c.bf16 %v808_v36, %v807_v27  ;;  %v774_v41 = vsel %vm646_vm6, %v465_v30, %v710_v33  ;;  %vm651_vm8 = vcmp.ge.f32.partialorder %v1582_v38, 0.0  ;;  %v715_v42 = vmul.f32 0.2, %v1582_v38 }
 0x11c   :  { %1477 = vst [vmem:[%s1914_s2 + $0x68] sm:$0xff] %v1373_v35   ;;  %v1368_v44 = vpack.c.bf16 %v774_v41, %v773_v34  ;;  %v806_v45 = vsel %vm678_vm7, %v593_v31, %v742_v37  ;;  %v478_v46 = vpop.f32.mrf.mxu0  ;;  %v606_v47 = vpop.f32.mrf.mxu1  ;;  %vm683_vm9 = vcmp.ge.f32.partialorder %v1614_v39, 0.0  ;;  %v747_v50 = vmul.f32 0.2, %v1614_v39 }
 0x11d   :  { %1493 = vst [vmem:[%s1914_s2 + $0xe8] sm:$0xff] %v1453_v40   ;;  %v1448_v48 = vpack.c.bf16 %v806_v45, %v805_v43  ;;  %v779_v49 = vsel %vm651_vm8, %v1582_v38, %v715_v42  ;;  %v713_v53 = vmul.f32 0.2, %v478_v46  ;;  %vm649_vm12 = vcmp.ge.f32.partialorder %v478_v46, 0.0 }
 0x11e   :  { %1476 = vst [vmem:[%s1914_s2 + $0x60] sm:$0xff] %v1368_v44   ;;  %v1583_v51 = vpop.f32.mrf.mxu0  ;;  %v1615_v52 = vpop.f32.mrf.mxu1  ;;  %vm681_vm13 = vcmp.ge.f32.partialorder %v606_v47, 0.0  ;;  %v745_v55 = vmul.f32 0.2, %v606_v47  ;;  %v811_v61 = vsel %vm683_vm9, %v1614_v39, %v747_v50 }
 0x11f   :  { %1492 = vst [vmem:[%s1914_s2 + $0xe0] sm:$0xff] %v1448_v48   ;;  %vm652_vm10 = vcmp.ge.f32.partialorder %v1583_v51, 0.0  ;;  %v716_v54 = vmul.f32 0.2, %v1583_v51  ;;  %vm684_vm11 = vcmp.ge.f32.partialorder %v1615_v52, 0.0  ;;  %v777_v1 = vsel %vm649_vm12, %v478_v46, %v713_v53 }
 0x120   :  { %v748_v56 = vmul.f32 0.2, %v1615_v52  ;;  %v481_v57 = vpop.f32.mrf.mxu0  ;;  %v609_v58 = vpop.f32.mrf.mxu1  ;;  %v809_v4 = vsel %vm681_vm13, %v606_v47, %v745_v55 }
 0x121   :  { %v780_v59 = vsel %vm652_vm10, %v1583_v51, %v716_v54  ;;  %vm650_vm14 = vcmp.ge.f32.partialorder %v481_v57, 0.0  ;;  %v714_v60 = vmul.f32 0.2, %v481_v57  ;;  %vm682_vm15 = vcmp.ge.f32.partialorder %v609_v58, 0.0 }
 0x122   :  { %v1383_v62 = vpack.c.bf16 %v780_v59, %v779_v49  ;;  %v812_v63 = vsel %vm684_vm11, %v1615_v52, %v748_v56  ;;  %v746_v0 = vmul.f32 0.2, %v609_v58 }
 0x123   :  { %v1463_v2 = vpack.c.bf16 %v812_v63, %v811_v61  ;;  %v778_v3 = vsel %vm650_vm14, %v481_v57, %v714_v60 }
 0x124   :  { %1479 = vst [vmem:[%s1914_s2 + $0x78] sm:$0xff] %v1383_v62   ;;  %v1378_v5 = vpack.c.bf16 %v778_v3, %v777_v1  ;;  %v810_v6 = vsel %vm682_vm15, %v609_v58, %v746_v0 }
 0x125   :  { %1495 = vst [vmem:[%s1914_s2 + $0xf8] sm:$0xff] %v1463_v2   ;;  %v1458_v7 = vpack.c.bf16 %v810_v6, %v809_v4 }
 0x126   :  { %1478 = vst [vmem:[%s1914_s2 + $0x70] sm:$0xff] %v1378_v5  }
 0x127   :  { %1494 = vst [vmem:[%s1914_s2 + $0xf0] sm:$0xff] %v1458_v7  }

// kernel: discriminator_forward.6
= control target key start
LH: loop header
LB: loop body
LE: loop exit
PB: predicated region body
PF: predicated region fallthrough
CT: control target
= control target key end

     0   :  { %s2635_s1 = inlined_call_operand.vmem [shape: bf16[1024,128], index: 1, kind: input, shape index: {}]   ;;  %s2636_s0 = inlined_call_operand.vmem [shape: bf16[128,1024], index: 0, kind: input, shape index: {}]   ;;  %s2637_s2 = inlined_call_operand.vmem [shape: bf16[128,128], index: 2, kind: output, shape index: {}]  }
   0x1   :  { %v1999_v0 = vld [vmem:[%s2635_s1 + $0x78] sm:$0xff]   ;;  %v2003_v4 = vld [vmem:[%s2635_s1 + $0x70] sm:$0xff]   ;;  %v2007_v8 = vld [vmem:[%s2635_s1 + $0x68] sm:$0xff]  }
   0x2   :  { %v2000_v1 = vld [vmem:[%s2635_s1 + $0xf8] sm:$0xff]   ;;  %1743 = vmatprep.subr.bf16.mxu0 %v1999_v0  ;;  %v2004_v5 = vld [vmem:[%s2635_s1 + $0xf0] sm:$0xff]   ;;  %v2008_v9 = vld [vmem:[%s2635_s1 + $0xe8] sm:$0xff]  }
   0x3   :  { %v2001_v2 = vld [vmem:[%s2635_s1 + $0x38] sm:$0xff]   ;;  %1807 = vmatprep.subr.bf16.mxu1 %v2000_v1  ;;  %v2005_v6 = vld [vmem:[%s2635_s1 + $0x30] sm:$0xff]   ;;  %v2009_v10 = vld [vmem:[%s2635_s1 + $0x28] sm:$0xff]  }
   0x4   :  { %v2002_v3 = vld [vmem:[%s2635_s1 + $0xb8] sm:$0xff]   ;;  %1744 = vmatpush3.bf16.msra.mxu0 %v2001_v2  ;;  %v2006_v7 = vld [vmem:[%s2635_s1 + $0xb0] sm:$0xff]   ;;  %v2010_v11 = vld [vmem:[%s2635_s1 + $0xa8] sm:$0xff]  }
   0x5   :  { %1808 = vmatpush3.bf16.msra.mxu1 %v2002_v3  ;;  %1745 = vmatprep.subr.bf16.mxu0 %v2003_v4  ;;  %v2011_v12 = vld [vmem:[%s2635_s1 + $0x60] sm:$0xff]   ;;  %v2015_v16 = vld [vmem:[%s2635_s1 + $0x58] sm:$0xff]   ;;  %v2019_v20 = vld [vmem:[%s2635_s1 + $0x50] sm:$0xff]  }
   0x6   :  { %1809 = vmatprep.subr.bf16.mxu1 %v2004_v5  ;;  %v2012_v13 = vld [vmem:[%s2635_s1 + $0xe0] sm:$0xff]   ;;  %v2016_v17 = vld [vmem:[%s2635_s1 + $0xd8] sm:$0xff]   ;;  %v2020_v21 = vld [vmem:[%s2635_s1 + $0xd0] sm:$0xff]  }
   0x7   :  { %v2013_v14 = vld [vmem:[%s2635_s1 + $0x20] sm:$0xff]   ;;  %v2017_v18 = vld [vmem:[%s2635_s1 + $0x18] sm:$0xff]   ;;  %v2021_v22 = vld [vmem:[%s2635_s1 + $0x10] sm:$0xff]  }
   0x8   :  { %1746 = vmatpush3.bf16.msra.mxu0 %v2005_v6  ;;  %v2014_v15 = vld [vmem:[%s2635_s1 + $0xa0] sm:$0xff]   ;;  %v2018_v19 = vld [vmem:[%s2635_s1 + $0x98] sm:$0xff]   ;;  %v2022_v23 = vld [vmem:[%s2635_s1 + $0x90] sm:$0xff]  }
   0x9   :  { %1810 = vmatpush3.bf16.msra.mxu1 %v2006_v7  ;;  %1747 = vmatprep.subr.bf16.mxu0 %v2007_v8  ;;  %v2023_v24 = vld [vmem:[%s2635_s1 + $0x48] sm:$0xff]   ;;  %v2027_v28 = vld [vmem:[%s2635_s1 + $0x40] sm:$0xff]   ;;  %v2031_v40 = vld [vmem:[%s2635_s1 + $0x178] sm:$0xff]  }
   0xa   :  { %1811 = vmatprep.subr.bf16.mxu1 %v2008_v9  ;;  %v2024_v25 = vld [vmem:[%s2635_s1 + $0xc8] sm:$0xff]   ;;  %v2028_v29 = vld [vmem:[%s2635_s1 + $0xc0] sm:$0xff]   ;;  %v2032_v41 = vld [vmem:[%s2635_s1 + $0x138] sm:$0xff]  }
   0xb   :  { %v2025_v26 = vld [vmem:[%s2635_s1 + $0x8] sm:$0xff]   ;;  %v2029_v30 = vld [vmem:[%s2635_s1] sm:$0xff]   ;;  %v2033_v42 = vld [vmem:[%s2635_s1 + $0x1f8] sm:$0xff]  }
   0xc   :  { %1748 = vmatpush3.bf16.msra.mxu0 %v2009_v10  ;;  %v2026_v27 = vld [vmem:[%s2635_s1 + $0x88] sm:$0xff]   ;;  %v2030_v31 = vld [vmem:[%s2635_s1 + $0x80] sm:$0xff]   ;;  %v2034_v43 = vld [vmem:[%s2635_s1 + $0x1b8] sm:$0xff]  }
   0xd   :  { %1812 = vmatpush3.bf16.msra.mxu1 %v2010_v11  ;;  %1749 = vmatprep.subr.bf16.mxu0 %v2011_v12  ;;  %v12_v32 = vld [vmem:[%s2636_s0] sm:$0xff]  ;;  %v13_v34 = vld [vmem:[%s2636_s0 + $0x8] sm:$0xff]  ;;  %v2035_v50 = vld [vmem:[%s2635_s1 + $0x170] sm:$0xff]  }
   0xe   :  { %1813 = vmatprep.subr.bf16.mxu1 %v2012_v13  ;;  %v16_v33 = vld [vmem:[%s2636_s0 + $0x20] sm:$0xff]  ;;  %v17_v37 = vld [vmem:[%s2636_s0 + $0x28] sm:$0xff]  ;;  %v2036_v52 = vld [vmem:[%s2635_s1 + $0x130] sm:$0xff]  }
   0xf   :  { %v1536_v35 = vcombine.low %v12_v32, %v16_v33  ;;  %v1537_v36 = vcombine.high %v12_v32, %v16_v33  ;;  %v1538_v38 = vcombine.low %v13_v34, %v17_v37  ;;  %v1539_v39 = vcombine.high %v13_v34, %v17_v37  ;;  %v20_v44 = vld [vmem:[%s2636_s0 + $0x40] sm:$0xff]  ;;  %v21_v47 = vld [vmem:[%s2636_s0 + $0x48] sm:$0xff]  ;;  %v2037_v54 = vld [vmem:[%s2635_s1 + $0x1f0] sm:$0xff]  }
  0x10   :  { %1750 = vmatpush3.bf16.msra.mxu0 %v2013_v14  ;;  %v24_v45 = vld [vmem:[%s2636_s0 + $0x60] sm:$0xff]  ;;  %v25_v48 = vld [vmem:[%s2636_s0 + $0x68] sm:$0xff]  ;;  %v2038_v55 = vld [vmem:[%s2635_s1 + $0x1b0] sm:$0xff]  }
  0x11   :  { %1814 = vmatpush3.bf16.msra.mxu1 %v2014_v15  ;;  %1751 = vmatprep.subr.bf16.mxu0 %v2015_v16  ;;  %v1545_v46 = vcombine.high %v20_v44, %v24_v45  ;;  %v1547_v49 = vcombine.high %v21_v47, %v25_v48  ;;  %v1544_v51 = vcombine.low %v20_v44, %v24_v45  ;;  %v28_v56 = vld [vmem:[%s2636_s0 + $0x80] sm:$0xff]  ;;  %v29_v58 = vld [vmem:[%s2636_s0 + $0x88] sm:$0xff]  ;;  %v2053_v32 = vld [vmem:[%s2635_s1 + $0x1d0] sm:$0xff]  }
  0x12   :  { %1815 = vmatprep.subr.bf16.mxu1 %v2016_v17  ;;  %940 = vmatprep.mubr.bf16.mxu0 %v1537_v36  ;;  %v1546_v53 = vcombine.low %v21_v47, %v25_v48  ;;  %v32_v57 = vld [vmem:[%s2636_s0 + $0xa0] sm:$0xff]  ;;  %v33_v59 = vld [vmem:[%s2636_s0 + $0xa8] sm:$0xff]  ;;  %v2054_v33 = vld [vmem:[%s2635_s1 + $0x190] sm:$0xff]  }
  0x13   :  { %1037 = vmatprep.mubr.bf16.mxu1 %v1539_v39  ;;  %v1553_v60 = vcombine.high %v28_v56, %v32_v57  ;;  %v1555_v61 = vcombine.high %v29_v58, %v33_v59  ;;  %v2039_v62 = vld [vmem:[%s2635_s1 + $0x168] sm:$0xff]   ;;  %v1552_v2 = vcombine.low %v28_v56, %v32_v57  ;;  %v36_v3 = vld [vmem:[%s2636_s0 + $0xc0] sm:$0xff]  ;;  %v1554_v6 = vcombine.low %v29_v58, %v33_v59 }
  0x14   :  { %1752 = vmatpush3.bf16.msra.mxu0 %v2017_v18  ;;  %v2040_v63 = vld [vmem:[%s2635_s1 + $0x128] sm:$0xff]   ;;  %v40_v4 = vld [vmem:[%s2636_s0 + $0xe0] sm:$0xff]  ;;  %v2047_v18 = vld [vmem:[%s2635_s1 + $0x158] sm:$0xff]  }
  0x15   :  { %1816 = vmatpush3.bf16.msra.mxu1 %v2018_v19  ;;  %1753 = vmatprep.subr.bf16.mxu0 %v2019_v20  ;;  %v2041_v0 = vld [vmem:[%s2635_s1 + $0x1e8] sm:$0xff]   ;;  %v1561_v7 = vcombine.high %v36_v3, %v40_v4  ;;  %v2043_v10 = vld [vmem:[%s2635_s1 + $0x160] sm:$0xff]   ;;  %v1560_v19 = vcombine.low %v36_v3, %v40_v4  ;;  %v2048_v20 = vld [vmem:[%s2635_s1 + $0x118] sm:$0xff]  }
  0x16   :  { %1817 = vmatprep.subr.bf16.mxu1 %v2020_v21  ;;  %v2042_v1 = vld [vmem:[%s2635_s1 + $0x1a8] sm:$0xff]   ;;  %v2044_v11 = vld [vmem:[%s2635_s1 + $0x120] sm:$0xff]  }
  0x17   :  { %v37_v5 = vld [vmem:[%s2636_s0 + $0xc8] sm:$0xff]  ;;  %v2045_v12 = vld [vmem:[%s2635_s1 + $0x1e0] sm:$0xff]  }
  0x18   :  { %1754 = vmatpush3.bf16.msra.mxu0 %v2021_v22  ;;  %v41_v8 = vld [vmem:[%s2636_s0 + $0xe8] sm:$0xff]  ;;  %v2046_v13 = vld [vmem:[%s2635_s1 + $0x1a0] sm:$0xff]  }
  0x19   :  { %1818 = vmatpush3.bf16.msra.mxu1 %v2022_v23  ;;  %1755 = vmatprep.subr.bf16.mxu0 %v2023_v24  ;;  %v1563_v9 = vcombine.high %v37_v5, %v41_v8  ;;  %v44_v14 = vld [vmem:[%s2636_s0 + $0x100] sm:$0xff]  ;;  %v45_v16 = vld [vmem:[%s2636_s0 + $0x108] sm:$0xff]  ;;  %v1562_v21 = vcombine.low %v37_v5, %v41_v8  ;;  %v2049_v23 = vld [vmem:[%s2635_s1 + $0x1d8] sm:$0xff]  }
  0x1a   :  { %1819 = vmatprep.subr.bf16.mxu1 %v2024_v25  ;;  %v48_v15 = vld [vmem:[%s2636_s0 + $0x120] sm:$0xff]  ;;  %v49_v17 = vld [vmem:[%s2636_s0 + $0x128] sm:$0xff]  ;;  %v2050_v25 = vld [vmem:[%s2635_s1 + $0x198] sm:$0xff]  }
  0x1b   :  { %v1569_v22 = vcombine.high %v44_v14, %v48_v15  ;;  %v1571_v24 = vcombine.high %v45_v16, %v49_v17  ;;  %v1568_v34 = vcombine.low %v44_v14, %v48_v15  ;;  %v2056_v39 = vld [vmem:[%s2635_s1 + $0x108] sm:$0xff]   ;;  %v2060_v48 = vld [vmem:[%s2635_s1 + $0x100] sm:$0xff]   ;;  %v23_v8 = vld [vmem:[%s2636_s0 + $0x58] sm:$0xff] }
  0x1c   :  { %1756 = vmatpush3.bf16.msra.mxu0 %v2025_v26  ;;  %v52_v26 = vld [vmem:[%s2636_s0 + $0x140] sm:$0xff]  ;;  %v61_v44 = vld [vmem:[%s2636_s0 + $0x188] sm:$0xff]  ;;  %v30_v14 = vld [vmem:[%s2636_s0 + $0x90] sm:$0xff] }
  0x1d   :  { %1820 = vmatpush3.bf16.msra.mxu1 %v2026_v27  ;;  %1757 = vmatprep.subr.bf16.mxu0 %v2027_v28  ;;  %v56_v27 = vld [vmem:[%s2636_s0 + $0x160] sm:$0xff]  ;;  %v2051_v28 = vld [vmem:[%s2635_s1 + $0x150] sm:$0xff]   ;;  %v65_v45 = vld [vmem:[%s2636_s0 + $0x1a8] sm:$0xff] }
  0x1e   :  { %1821 = vmatprep.subr.bf16.mxu1 %v2028_v29  ;;  %v53_v29 = vld [vmem:[%s2636_s0 + $0x148] sm:$0xff]  ;;  %v1577_v36 = vcombine.high %v52_v26, %v56_v27  ;;  %v1576_v47 = vcombine.low %v52_v26, %v56_v27  ;;  %v1586_v59 = vcombine.low %v61_v44, %v65_v45  ;;  %v34_v15 = vld [vmem:[%s2636_s0 + $0xb0] sm:$0xff] }
  0x1f   :  { %v69_v56 = vld [vmem:[%s2636_s0 + $0x1c8] sm:$0xff]  ;;  %v1556_v26 = vcombine.low %v30_v14, %v34_v15 }
  0x20   :  { %1758 = vmatpush3.bf16.msra.mxu0 %v2029_v30  ;;  %v57_v30 = vld [vmem:[%s2636_s0 + $0x168] sm:$0xff] }
  0x21   :  { %1822 = vmatpush3.bf16.msra.mxu1 %v2030_v31  ;;  %1871 = vmatprep.subr.bf16.mxu0 %v2031_v40  ;;  %v2052_v31 = vld [vmem:[%s2635_s1 + $0x110] sm:$0xff]   ;;  %v1579_v37 = vcombine.high %v53_v29, %v57_v30  ;;  %v2057_v40 = vld [vmem:[%s2635_s1 + $0x1c8] sm:$0xff]  }
  0x22   :  { %1935 = vmatprep.subr.bf16.mxu1 %v2033_v42  ;;  %v64_v42 = vld [vmem:[%s2636_s0 + $0x1a0] sm:$0xff]  ;;  %v73_v57 = vld [vmem:[%s2636_s0 + $0x1e8] sm:$0xff] }
  0x23   :  { %941 = vmatmul.mubr.bf16.vlgmr.msra.gmra.mxu0 %v1536_v35  ;;  %v1570_v35 = vcombine.low %v45_v16, %v49_v17  ;;  %v1594_v3 = vcombine.low %v69_v56, %v73_v57  ;;  %v31_v16 = vld [vmem:[%s2636_s0 + $0x98] sm:$0xff] }
  0x24   :  { %1038 = vmatmul.mubr.bf16.vlgmr.msra.gmra.mxu1 %v1538_v38  ;;  %1872 = vmatpush3.bf16.msra.mxu0 %v2032_v41  ;;  %v2055_v38 = vld [vmem:[%s2635_s1 + $0x148] sm:$0xff]   ;;  %v60_v41 = vld [vmem:[%s2636_s0 + $0x180] sm:$0xff]  ;;  %v35_v17 = vld [vmem:[%s2636_s0 + $0xb8] sm:$0xff] }
  0x25   :  { %1936 = vmatpush3.bf16.msra.mxu1 %v2034_v43  ;;  %948 = vmatprep.mubr.bf16.mxu0 %v1545_v46  ;;  %v2058_v43 = vld [vmem:[%s2635_s1 + $0x188] sm:$0xff]   ;;  %v2059_v46 = vld [vmem:[%s2635_s1 + $0x140] sm:$0xff]   ;;  %v1584_v58 = vcombine.low %v60_v41, %v64_v42  ;;  %v1558_v27 = vcombine.low %v31_v16, %v35_v17 }
  0x26   :  { %1045 = vmatprep.mubr.bf16.mxu1 %v1547_v49  ;;  %1873 = vmatprep.subr.bf16.mxu0 %v2035_v50  ;;  %v1578_v49 = vcombine.low %v53_v29, %v57_v30  ;;  %v1585_v50 = vcombine.high %v60_v41, %v64_v42  ;;  %v46_v30 = vld [vmem:[%s2636_s0 + $0x110] sm:$0xff]  ;;  %v59_v41 = vld [vmem:[%s2636_s0 + $0x178] sm:$0xff] }
  0x27   :  { %1937 = vmatprep.subr.bf16.mxu1 %v2037_v54  ;;  %v68_v54 = vld [vmem:[%s2636_s0 + $0x1c0] sm:$0xff] }
  0x28   :  { %1874 = vmatpush3.bf16.msra.mxu0 %v2036_v52  ;;  %v1587_v52 = vcombine.high %v61_v44, %v65_v45 }
  0x29   :  { %1938 = vmatpush3.bf16.msra.mxu1 %v2038_v55  ;;  %1875 = vmatprep.subr.bf16.mxu0 %v2039_v62  ;;  %v72_v55 = vld [vmem:[%s2636_s0 + $0x1e0] sm:$0xff]  ;;  %v14_v62 = vld [vmem:[%s2636_s0 + $0x10] sm:$0xff] }
  0x2a   :  { %1939 = vmatprep.subr.bf16.mxu1 %v2041_v0  ;;  %v15_v0 = vld [vmem:[%s2636_s0 + $0x18] sm:$0xff] }
  0x2b   :  { %949 = vmatmul.mubr.bf16.gmra.mxu0 %v1544_v51  ;;  %v2061_v51 = vld [vmem:[%s2635_s1 + $0x1c0] sm:$0xff]  }
  0x2c   :  { %1046 = vmatmul.mubr.bf16.gmra.mxu1 %v1546_v53  ;;  %956 = vmatprep.mubr.bf16.mxu0 %v1553_v60  ;;  %v2062_v53 = vld [vmem:[%s2635_s1 + $0x180] sm:$0xff]   ;;  %v1593_v60 = vcombine.high %v68_v54, %v72_v55 }
  0x2d   :  { %1053 = vmatprep.mubr.bf16.mxu1 %v1555_v61  ;;  %1876 = vmatpush3.bf16.msra.mxu0 %v2040_v63  ;;  %v1595_v61 = vcombine.high %v69_v56, %v73_v57  ;;  %v18_v63 = vld [vmem:[%s2636_s0 + $0x30] sm:$0xff]  ;;  %v71_v56 = vld [vmem:[%s2636_s0 + $0x1d8] sm:$0xff] }
  0x2e   :  { %1940 = vmatpush3.bf16.msra.mxu1 %v2042_v1  ;;  %1877 = vmatprep.subr.bf16.mxu0 %v2043_v10  ;;  %v19_v1 = vld [vmem:[%s2636_s0 + $0x38] sm:$0xff]  ;;  %v1541_v4 = vcombine.high %v14_v62, %v18_v63  ;;  %v1540_v10 = vcombine.low %v14_v62, %v18_v63 }
  0x2f   :  { %1941 = vmatprep.subr.bf16.mxu1 %v2045_v12  ;;  %v1543_v5 = vcombine.high %v15_v0, %v19_v1  ;;  %v75_v57 = vld [vmem:[%s2636_s0 + $0x1f8] sm:$0xff] }
  0x30   :  { %v1598_v63 = vcombine.low %v71_v56, %v75_v57 }
  0x31   :  { %1878 = vmatpush3.bf16.msra.mxu0 %v2044_v11  ;;  %v1542_v11 = vcombine.low %v15_v0, %v19_v1 }
  0x32   :  { %1942 = vmatpush3.bf16.msra.mxu1 %v2046_v13  ;;  %1879 = vmatprep.subr.bf16.mxu0 %v2047_v18 }
  0x33   :  { %957 = vmatmul.mubr.bf16.gmra.mxu0 %v1552_v2  ;;  %1943 = vmatprep.subr.bf16.mxu1 %v2049_v23  ;;  %v1592_v2 = vcombine.low %v68_v54, %v72_v55  ;;  %v42_v23 = vld [vmem:[%s2636_s0 + $0xf0] sm:$0xff] }
  0x34   :  { %1054 = vmatmul.mubr.bf16.gmra.mxu1 %v1554_v6  ;;  %964 = vmatprep.mubr.bf16.mxu0 %v1561_v7  ;;  %v22_v6 = vld [vmem:[%s2636_s0 + $0x50] sm:$0xff] }
  0x35   :  { %1061 = vmatprep.mubr.bf16.mxu1 %v1563_v9  ;;  %1880 = vmatpush3.bf16.msra.mxu0 %v2048_v20  ;;  %v26_v7 = vld [vmem:[%s2636_s0 + $0x70] sm:$0xff]  ;;  %v27_v9 = vld [vmem:[%s2636_s0 + $0x78] sm:$0xff]  ;;  %v1557_v20 = vcombine.high %v30_v14, %v34_v15 }
  0x36   :  { %1944 = vmatpush3.bf16.msra.mxu1 %v2050_v25  ;;  %1881 = vmatprep.subr.bf16.mxu0 %v2051_v28  ;;  %v1549_v12 = vcombine.high %v22_v6, %v26_v7  ;;  %v1551_v13 = vcombine.high %v23_v8, %v27_v9  ;;  %v1548_v18 = vcombine.low %v22_v6, %v26_v7  ;;  %v43_v25 = vld [vmem:[%s2636_s0 + $0xf8] sm:$0xff]  ;;  %v70_v54 = vld [vmem:[%s2636_s0 + $0x1d0] sm:$0xff] }
  0x37   :  { %1945 = vmatprep.subr.bf16.mxu1 %v2053_v32  ;;  %v47_v32 = vld [vmem:[%s2636_s0 + $0x118] sm:$0xff]  ;;  %v74_v55 = vld [vmem:[%s2636_s0 + $0x1f0] sm:$0xff] }
  0x38   :  { %v1596_v62 = vcombine.low %v70_v54, %v74_v55 }
  0x39   :  { %1882 = vmatpush3.bf16.msra.mxu0 %v2052_v31  ;;  %v50_v31 = vld [vmem:[%s2636_s0 + $0x130] sm:$0xff] }
  0x3a   :  { %1946 = vmatpush3.bf16.msra.mxu1 %v2054_v33  ;;  %1883 = vmatprep.subr.bf16.mxu0 %v2055_v38  ;;  %v51_v33 = vld [vmem:[%s2636_s0 + $0x138] sm:$0xff]  ;;  %v54_v38 = vld [vmem:[%s2636_s0 + $0x150] sm:$0xff]  ;;  %v1572_v42 = vcombine.low %v46_v30, %v50_v31 }
  0x3b   :  { %965 = vmatmul.mubr.bf16.gmra.mxu0 %v1560_v19  ;;  %1947 = vmatprep.subr.bf16.mxu1 %v2057_v40  ;;  %v1550_v19 = vcombine.low %v23_v8, %v27_v9  ;;  %v55_v40 = vld [vmem:[%s2636_s0 + $0x158] sm:$0xff] }
  0x3c   :  { %1062 = vmatmul.mubr.bf16.gmra.mxu1 %v1562_v21  ;;  %972 = vmatprep.mubr.bf16.mxu0 %v1569_v22  ;;  %v1559_v21 = vcombine.high %v31_v16, %v35_v17  ;;  %v38_v22 = vld [vmem:[%s2636_s0 + $0xd0] sm:$0xff]  ;;  %v1583_v45 = vcombine.high %v55_v40, %v59_v41 }
  0x3d   :  { %1069 = vmatprep.mubr.bf16.mxu1 %v1571_v24  ;;  %1884 = vmatpush3.bf16.msra.mxu0 %v2056_v39  ;;  %v39_v24 = vld [vmem:[%s2636_s0 + $0xd8] sm:$0xff]  ;;  %v1565_v28 = vcombine.high %v38_v22, %v42_v23  ;;  %v58_v39 = vld [vmem:[%s2636_s0 + $0x170] sm:$0xff] }
  0x3e   :  { %1948 = vmatpush3.bf16.msra.mxu1 %v2058_v43  ;;  %1885 = vmatprep.subr.bf16.mxu0 %v2059_v46  ;;  %v1567_v29 = vcombine.high %v39_v24, %v43_v25  ;;  %v1574_v43 = vcombine.low %v47_v32, %v51_v33  ;;  %v1581_v44 = vcombine.high %v54_v38, %v58_v39  ;;  %v62_v46 = vld [vmem:[%s2636_s0 + $0x190] sm:$0xff] }
  0x3f   :  { %1949 = vmatprep.subr.bf16.mxu1 %v2061_v51  ;;  %v1582_v51 = vcombine.low %v55_v40, %v59_v41 }
  0x41   :  { %1886 = vmatpush3.bf16.msra.mxu0 %v2060_v48  ;;  %v63_v48 = vld [vmem:[%s2636_s0 + $0x198] sm:$0xff] }
  0x42   :  { %1950 = vmatpush3.bf16.msra.mxu1 %v2062_v53 }
  0x43   :  { %973 = vmatmul.mubr.bf16.gmra.mxu0 %v1568_v34  ;;  %v1564_v34 = vcombine.low %v38_v22, %v42_v23 }
  0x44   :  { %1070 = vmatmul.mubr.bf16.gmra.mxu1 %v1570_v35  ;;  %980 = vmatprep.mubr.bf16.mxu0 %v1577_v36  ;;  %v1566_v35 = vcombine.low %v39_v24, %v43_v25  ;;  %v1573_v36 = vcombine.high %v46_v30, %v50_v31 }
  0x45   :  { %1077 = vmatprep.mubr.bf16.mxu1 %v1579_v37  ;;  %v1575_v37 = vcombine.high %v47_v32, %v51_v33 }
  0x4b   :  { %981 = vmatmul.mubr.bf16.gmra.mxu0 %v1576_v47  ;;  %v66_v47 = vld [vmem:[%s2636_s0 + $0x1b0] sm:$0xff] }
  0x4c   :  { %1078 = vmatmul.mubr.bf16.gmra.mxu1 %v1578_v49  ;;  %988 = vmatprep.mubr.bf16.mxu0 %v1585_v50  ;;  %v67_v49 = vld [vmem:[%s2636_s0 + $0x1b8] sm:$0xff]  ;;  %v1580_v50 = vcombine.low %v54_v38, %v58_v39 }
  0x4d   :  { %1085 = vmatprep.mubr.bf16.mxu1 %v1587_v52  ;;  %v1589_v52 = vcombine.high %v62_v46, %v66_v47  ;;  %v1591_v53 = vcombine.high %v63_v48, %v67_v49 }
  0x53   :  { %989 = vmatmul.mubr.bf16.gmra.mxu0 %v1584_v58  ;;  %v1588_v58 = vcombine.low %v62_v46, %v66_v47 }
  0x54   :  { %1086 = vmatmul.mubr.bf16.gmra.mxu1 %v1586_v59  ;;  %996 = vmatprep.mubr.bf16.mxu0 %v1593_v60  ;;  %v1590_v59 = vcombine.low %v63_v48, %v67_v49  ;;  %v1597_v60 = vcombine.high %v70_v54, %v74_v55 }
  0x55   :  { %1093 = vmatprep.mubr.bf16.mxu1 %v1595_v61  ;;  %v1599_v61 = vcombine.high %v71_v56, %v75_v57 }
  0x5b   :  { %997 = vmatmul.mubr.bf16.gmra.mxu0 %v1592_v2 }
  0x5c   :  { %1094 = vmatmul.mubr.bf16.gmra.mxu1 %v1594_v3  ;;  %1134 = vmatprep.mubr.bf16.mxu0 %v1541_v4 }
  0x5d   :  { %1231 = vmatprep.mubr.bf16.mxu1 %v1543_v5 }
  0x63   :  { %1135 = vmatmul.mubr.bf16.vlgmr.msra.gmra.mxu0 %v1540_v10 }
  0x64   :  { %1232 = vmatmul.mubr.bf16.vlgmr.msra.gmra.mxu1 %v1542_v11  ;;  %1142 = vmatprep.mubr.bf16.mxu0 %v1549_v12 }
  0x65   :  { %1239 = vmatprep.mubr.bf16.mxu1 %v1551_v13 }
  0x6b   :  { %1143 = vmatmul.mubr.bf16.gmra.mxu0 %v1548_v18 }
  0x6c   :  { %1240 = vmatmul.mubr.bf16.gmra.mxu1 %v1550_v19  ;;  %1150 = vmatprep.mubr.bf16.mxu0 %v1557_v20 }
  0x6d   :  { %1247 = vmatprep.mubr.bf16.mxu1 %v1559_v21 }
  0x73   :  { %1151 = vmatmul.mubr.bf16.gmra.mxu0 %v1556_v26 }
  0x74   :  { %1248 = vmatmul.mubr.bf16.gmra.mxu1 %v1558_v27  ;;  %1158 = vmatprep.mubr.bf16.mxu0 %v1565_v28 }
  0x75   :  { %1255 = vmatprep.mubr.bf16.mxu1 %v1567_v29 }
  0x7b   :  { %1159 = vmatmul.mubr.bf16.gmra.mxu0 %v1564_v34 }
  0x7c   :  { %1256 = vmatmul.mubr.bf16.gmra.mxu1 %v1566_v35  ;;  %1166 = vmatprep.mubr.bf16.mxu0 %v1573_v36 }
  0x7d   :  { %1263 = vmatprep.mubr.bf16.mxu1 %v1575_v37 }
  0x83   :  { %1167 = vmatmul.mubr.bf16.gmra.mxu0 %v1572_v42 }
  0x84   :  { %1264 = vmatmul.mubr.bf16.gmra.mxu1 %v1574_v43  ;;  %1174 = vmatprep.mubr.bf16.mxu0 %v1581_v44 }
  0x85   :  { %1271 = vmatprep.mubr.bf16.mxu1 %v1583_v45 }
  0x8b   :  { %1175 = vmatmul.mubr.bf16.gmra.mxu0 %v1580_v50 }
  0x8c   :  { %1272 = vmatmul.mubr.bf16.gmra.mxu1 %v1582_v51  ;;  %1182 = vmatprep.mubr.bf16.mxu0 %v1589_v52 }
  0x8d   :  { %1279 = vmatprep.mubr.bf16.mxu1 %v1591_v53 }
  0x93   :  { %1183 = vmatmul.mubr.bf16.gmra.mxu0 %v1588_v58 }
  0x94   :  { %1280 = vmatmul.mubr.bf16.gmra.mxu1 %v1590_v59  ;;  %1190 = vmatprep.mubr.bf16.mxu0 %v1597_v60 }
  0x95   :  { %1287 = vmatprep.mubr.bf16.mxu1 %v1599_v61 }
  0x9b   :  { %1191 = vmatmul.mubr.bf16.gmra.mxu0 %v1596_v62 }
  0x9c   :  { %1288 = vmatmul.mubr.bf16.gmra.mxu1 %v1598_v63 }
  0xe3   :  { %v1759_v0 = vpop.f32.mrf.mxu0 }
  0xe4   :  { %v1823_v1 = vpop.f32.mrf.mxu1 }
  0xe5   :  { %v1760_v2 = vpop.f32.mrf.mxu0 }
  0xe6   :  { %v1761_v3 = vadd.f32 %v1760_v2, %v1759_v0  ;;  %v1824_v4 = vpop.f32.mrf.mxu1 }
  0xe7   :  { %v1825_v5 = vadd.f32 %v1824_v4, %v1823_v1  ;;  %v1762_v6 = vpop.f32.mrf.mxu0 }
  0xe8   :  { %v1826_v7 = vpop.f32.mrf.mxu1 }
  0xe9   :  { %v2466_v8 = vadd.f32 %v1825_v5, %v1761_v3  ;;  %v1763_v9 = vpop.f32.mrf.mxu0 }
  0xea   :  { %v1764_v10 = vadd.f32 %v1763_v9, %v1762_v6  ;;  %v1827_v11 = vpop.f32.mrf.mxu1 }
  0xeb   :  { %v1828_v12 = vadd.f32 %v1827_v11, %v1826_v7  ;;  %v1765_v13 = vpop.f32.mrf.mxu0 }
  0xec   :  { %v1829_v14 = vpop.f32.mrf.mxu1 }
  0xed   :  { %v2468_v15 = vadd.f32 %v1828_v12, %v1764_v10  ;;  %v1766_v16 = vpop.f32.mrf.mxu0 }
  0xee   :  { %v1767_v17 = vadd.f32 %v1766_v16, %v1765_v13  ;;  %v1830_v18 = vpop.f32.mrf.mxu1 }
  0xef   :  { %v1831_v19 = vadd.f32 %v1830_v18, %v1829_v14  ;;  %v1768_v20 = vpop.f32.mrf.mxu0 }
  0xf0   :  { %v1832_v21 = vpop.f32.mrf.mxu1 }
  0xf1   :  { %v2470_v22 = vadd.f32 %v1831_v19, %v1767_v17  ;;  %v1769_v23 = vpop.f32.mrf.mxu0 }
  0xf2   :  { %v1770_v24 = vadd.f32 %v1769_v23, %v1768_v20  ;;  %v1833_v25 = vpop.f32.mrf.mxu1 }
  0xf3   :  { %v1834_v26 = vadd.f32 %v1833_v25, %v1832_v21  ;;  %v1771_v27 = vpop.f32.mrf.mxu0 }
  0xf4   :  { %v1835_v28 = vpop.f32.mrf.mxu1 }
  0xf5   :  { %v2472_v29 = vadd.f32 %v1834_v26, %v1770_v24  ;;  %v1772_v30 = vpop.f32.mrf.mxu0 }
  0xf6   :  { %v1773_v31 = vadd.f32 %v1772_v30, %v1771_v27  ;;  %v1836_v32 = vpop.f32.mrf.mxu1 }
  0xf7   :  { %v1837_v33 = vadd.f32 %v1836_v32, %v1835_v28  ;;  %v1774_v34 = vpop.f32.mrf.mxu0 }
  0xf8   :  { %v1838_v35 = vpop.f32.mrf.mxu1 }
  0xf9   :  { %v2474_v36 = vadd.f32 %v1837_v33, %v1773_v31  ;;  %v1775_v37 = vpop.f32.mrf.mxu0 }
  0xfa   :  { %v1776_v38 = vadd.f32 %v1775_v37, %v1774_v34  ;;  %v1839_v39 = vpop.f32.mrf.mxu1 }
  0xfb   :  { %v1840_v40 = vadd.f32 %v1839_v39, %v1838_v35  ;;  %v1777_v41 = vpop.f32.mrf.mxu0 }
  0xfc   :  { %v1841_v42 = vpop.f32.mrf.mxu1 }
  0xfd   :  { %v2476_v43 = vadd.f32 %v1840_v40, %v1776_v38  ;;  %v1778_v44 = vpop.f32.mrf.mxu0 }
  0xfe   :  { %v1779_v45 = vadd.f32 %v1778_v44, %v1777_v41  ;;  %v1842_v46 = vpop.f32.mrf.mxu1 }
  0xff   :  { %v1843_v47 = vadd.f32 %v1842_v46, %v1841_v42  ;;  %v2478_v48 = vpop.f32.mrf.mxu0 }
 0x100   :  { %v2480_v49 = vpop.f32.mrf.mxu1 }
 0x101   :  { %v2482_v50 = vadd.f32 %v1843_v47, %v1779_v45  ;;  %v2484_v51 = vpop.f32.mrf.mxu0 }
 0x102   :  { %v2486_v52 = vpop.f32.mrf.mxu1 }
 0x103   :  { %v1783_v53 = vpop.f32.mrf.mxu0 }
 0x104   :  { %v1847_v54 = vpop.f32.mrf.mxu1 }
 0x105   :  { %v1784_v55 = vpop.f32.mrf.mxu0 }
 0x106   :  { %v1785_v56 = vadd.f32 %v1784_v55, %v1783_v53  ;;  %v1848_v57 = vpop.f32.mrf.mxu1 }
 0x107   :  { %v1849_v58 = vadd.f32 %v1848_v57, %v1847_v54  ;;  %v1786_v59 = vpop.f32.mrf.mxu0 }
 0x108   :  { %v1850_v60 = vpop.f32.mrf.mxu1 }
 0x109   :  { %v2488_v61 = vadd.f32 %v1849_v58, %v1785_v56  ;;  %v1787_v62 = vpop.f32.mrf.mxu0 }
 0x10a   :  { %v1788_v63 = vadd.f32 %v1787_v62, %v1786_v59  ;;  %v1851_v0 = vpop.f32.mrf.mxu1 }
 0x10b   :  { %v1852_v1 = vadd.f32 %v1851_v0, %v1850_v60  ;;  %v1789_v2 = vpop.f32.mrf.mxu0 }
 0x10c   :  { %v1853_v3 = vpop.f32.mrf.mxu1 }
 0x10d   :  { %v2490_v4 = vadd.f32 %v1852_v1, %v1788_v63  ;;  %v1790_v5 = vpop.f32.mrf.mxu0 }
 0x10e   :  { %v1791_v6 = vadd.f32 %v1790_v5, %v1789_v2  ;;  %v1854_v7 = vpop.f32.mrf.mxu1 }
 0x10f   :  { %v1855_v9 = vadd.f32 %v1854_v7, %v1853_v3  ;;  %v1792_v10 = vpop.f32.mrf.mxu0 }
 0x110   :  { %v1856_v11 = vpop.f32.mrf.mxu1 }
 0x111   :  { %v2492_v12 = vadd.f32 %v1855_v9, %v1791_v6  ;;  %v1793_v13 = vpop.f32.mrf.mxu0 }
 0x112   :  { %v1794_v14 = vadd.f32 %v1793_v13, %v1792_v10  ;;  %v1857_v16 = vpop.f32.mrf.mxu1 }
 0x113   :  { %v1858_v17 = vadd.f32 %v1857_v16, %v1856_v11  ;;  %v1795_v18 = vpop.f32.mrf.mxu0 }
 0x114   :  { %v1859_v19 = vpop.f32.mrf.mxu1 }
 0x115   :  { %v2494_v20 = vadd.f32 %v1858_v17, %v1794_v14  ;;  %v1796_v21 = vpop.f32.mrf.mxu0 }
 0x116   :  { %v1797_v23 = vadd.f32 %v1796_v21, %v1795_v18  ;;  %v1860_v24 = vpop.f32.mrf.mxu1 }
 0x117   :  { %v1861_v25 = vadd.f32 %v1860_v24, %v1859_v19  ;;  %v1798_v26 = vpop.f32.mrf.mxu0 }
 0x118   :  { %v1862_v27 = vpop.f32.mrf.mxu1 }
 0x119   :  { %v2496_v28 = vadd.f32 %v1861_v25, %v1797_v23  ;;  %v1799_v30 = vpop.f32.mrf.mxu0 }
 0x11a   :  { %v1800_v31 = vadd.f32 %v1799_v30, %v1798_v26  ;;  %v1863_v32 = vpop.f32.mrf.mxu1 }
 0x11b   :  { %v1864_v33 = vadd.f32 %v1863_v32, %v1862_v27  ;;  %v1801_v34 = vpop.f32.mrf.mxu0 }
 0x11c   :  { %v1865_v35 = vpop.f32.mrf.mxu1 }
 0x11d   :  { %v2498_v37 = vadd.f32 %v1864_v33, %v1800_v31  ;;  %v1802_v38 = vpop.f32.mrf.mxu0 }
 0x11e   :  { %v1803_v39 = vadd.f32 %v1802_v38, %v1801_v34  ;;  %v1866_v40 = vpop.f32.mrf.mxu1 }
 0x11f   :  { %v1867_v41 = vadd.f32 %v1866_v40, %v1865_v35  ;;  %v1804_v42 = vpop.f32.mrf.mxu0 }
 0x120   :  { %v1868_v44 = vpop.f32.mrf.mxu1 }
 0x121   :  { %v2500_v45 = vadd.f32 %v1867_v41, %v1803_v39  ;;  %v1805_v46 = vpop.f32.mrf.mxu0 }
 0x122   :  { %v1806_v47 = vadd.f32 %v1805_v46, %v1804_v42  ;;  %v1869_v53 = vpop.f32.mrf.mxu1 }
 0x123   :  { %v1870_v54 = vadd.f32 %v1869_v53, %v1868_v44  ;;  %v1887_v55 = vpop.f32.mrf.mxu0 }
 0x124   :  { %v1951_v56 = vpop.f32.mrf.mxu1 }
 0x125   :  { %v2502_v57 = vadd.f32 %v1870_v54, %v1806_v47  ;;  %v1888_v58 = vpop.f32.mrf.mxu0 }
 0x126   :  { %v1889_v59 = vadd.f32 %v1888_v58, %v1887_v55  ;;  %v1952_v60 = vpop.f32.mrf.mxu1 }
 0x127   :  { %v1890_v62 = vpop.f32.mrf.mxu0  ;;  %v1953_v0 = vadd.f32 %v1952_v60, %v1951_v56 }
 0x128   :  { %v1137_v63 = vadd.f32 %v1889_v59, %v2466_v8  ;;  %v1954_v1 = vpop.f32.mrf.mxu1 }
 0x129   :  { %v1891_v2 = vpop.f32.mrf.mxu0 }
 0x12a   :  { %v1234_v3 = vadd.f32 %v1953_v0, %v1137_v63  ;;  %v1892_v5 = vadd.f32 %v1891_v2, %v1890_v62  ;;  %v1955_v6 = vpop.f32.mrf.mxu1 }
 0x12b   :  { %v1893_v7 = vpop.f32.mrf.mxu0  ;;  %v1956_v10 = vadd.f32 %v1955_v6, %v1954_v1 }
 0x12c   :  { %v1140_v9 = vadd.f32 %v1892_v5, %v2468_v15  ;;  %v1957_v11 = vpop.f32.mrf.mxu1  ;;  %v1312_v14 = vmul.f32 0.2, %v1234_v3  ;;  %vm1296_vm0 = vcmp.ge.f32.partialorder %v1234_v3, 0.0 }
 0x12d   :  { %v1894_v13 = vpop.f32.mrf.mxu0 }
 0x12e   :  { %v1237_v16 = vadd.f32 %v1956_v10, %v1140_v9  ;;  %v1895_v17 = vadd.f32 %v1894_v13, %v1893_v7  ;;  %v1958_v18 = vpop.f32.mrf.mxu1  ;;  %v2507_v26 = vsel %vm1296_vm0, %v1234_v3, %v1312_v14  ;;  %v1846_v7 = vadd.f32 %v2486_v52, %v2480_v49 }
 0x12f   :  { %v1896_v19 = vpop.f32.mrf.mxu0  ;;  %v1959_v23 = vadd.f32 %v1958_v18, %v1957_v11 }
 0x130   :  { %vm1297_vm1 = vcmp.ge.f32.partialorder %v1237_v16, 0.0  ;;  %v1313_v8 = vmul.f32 0.2, %v1237_v16  ;;  %v1145_v21 = vadd.f32 %v1895_v17, %v2470_v22  ;;  %v1960_v24 = vpop.f32.mrf.mxu1 }
 0x131   :  { %v1897_v25 = vpop.f32.mrf.mxu0 }
 0x132   :  { %v2509_v27 = vsel %vm1297_vm1, %v1237_v16, %v1313_v8  ;;  %v1242_v15 = vadd.f32 %v1959_v23, %v1145_v21  ;;  %v1898_v30 = vadd.f32 %v1897_v25, %v1896_v19  ;;  %v1961_v31 = vpop.f32.mrf.mxu1 }
 0x133   :  { %v1344_v32 = vadd.f32 %v2509_v27, %v2507_v26  ;;  %v1899_v33 = vpop.f32.mrf.mxu0  ;;  %v1962_v38 = vadd.f32 %v1961_v31, %v1960_v24 }
 0x134   :  { %vm1298_vm2 = vcmp.ge.f32.partialorder %v1242_v15, 0.0  ;;  %v1314_v34 = vmul.f32 0.2, %v1242_v15  ;;  %v1148_v35 = vadd.f32 %v1898_v30, %v2472_v29  ;;  %v1963_v22 = vpop.f32.mrf.mxu1 }
 0x135   :  { %v1900_v39 = vpop.f32.mrf.mxu0 }
 0x136   :  { %v2514_v40 = vsel %vm1298_vm2, %v1242_v15, %v1314_v34  ;;  %v1245_v41 = vadd.f32 %v1962_v38, %v1148_v35  ;;  %v1901_v42 = vadd.f32 %v1900_v39, %v1899_v33  ;;  %v1964_v44 = vpop.f32.mrf.mxu1 }
 0x137   :  { %v1345_v46 = vadd.f32 %v1344_v32, %v2514_v40  ;;  %v1902_v47 = vpop.f32.mrf.mxu0  ;;  %v1965_v55 = vadd.f32 %v1964_v44, %v1963_v22 }
 0x138   :  { %vm1299_vm3 = vcmp.ge.f32.partialorder %v1245_v41, 0.0  ;;  %v1315_v53 = vmul.f32 0.2, %v1245_v41  ;;  %v1153_v54 = vadd.f32 %v1901_v42, %v2474_v36  ;;  %v1966_v56 = vpop.f32.mrf.mxu1  ;;  %v1782_v36 = vadd.f32 %v2484_v51, %v2478_v48 }
 0x139   :  { %v1903_v58 = vpop.f32.mrf.mxu0 }
 0x13a   :  { %v2518_v59 = vsel %vm1299_vm3, %v1245_v41, %v1315_v53  ;;  %v1250_v29 = vadd.f32 %v1965_v55, %v1153_v54  ;;  %v1904_v60 = vadd.f32 %v1903_v58, %v1902_v47  ;;  %v1967_v62 = vpop.f32.mrf.mxu1  ;;  %v1067_v48 = vadd.f32 %v1846_v7, %v1782_v36 }
 0x13b   :  { %v1346_v63 = vadd.f32 %v1345_v46, %v2518_v59  ;;  %v1905_v0 = vpop.f32.mrf.mxu0  ;;  %v1968_v3 = vadd.f32 %v1967_v62, %v1966_v56 }
 0x13c   :  { %vm1300_vm4 = vcmp.ge.f32.partialorder %v1250_v29, 0.0  ;;  %v1316_v1 = vmul.f32 0.2, %v1250_v29  ;;  %v1156_v2 = vadd.f32 %v1904_v60, %v2476_v43  ;;  %v1969_v5 = vpop.f32.mrf.mxu1 }
 0x13d   :  { %v1906_v6 = vpop.f32.mrf.mxu0 }
 0x13e   :  { %v2526_v9 = vsel %vm1300_vm4, %v1250_v29, %v1316_v1  ;;  %v1253_v10 = vadd.f32 %v1968_v3, %v1156_v2  ;;  %v1907_v11 = vadd.f32 %v1906_v6, %v1905_v0  ;;  %v1970_v13 = vpop.f32.mrf.mxu1 }
 0x13f   :  { %v1347_v14 = vadd.f32 %v1346_v63, %v2526_v9  ;;  %v1908_v16 = vpop.f32.mrf.mxu0  ;;  %v1971_v18 = vadd.f32 %v1970_v13, %v1969_v5 }
 0x140   :  { %vm1301_vm5 = vcmp.ge.f32.partialorder %v1253_v10, 0.0  ;;  %v1317_v17 = vmul.f32 0.2, %v1253_v10  ;;  %v1161_v43 = vadd.f32 %v1907_v11, %v2482_v50  ;;  %v1972_v19 = vpop.f32.mrf.mxu1 }
 0x141   :  { %v1909_v8 = vpop.f32.mrf.mxu0 }
 0x142   :  { %v2530_v51 = vsel %vm1301_vm5, %v1253_v10, %v1317_v17  ;;  %v1258_v21 = vadd.f32 %v1971_v18, %v1161_v43  ;;  %v1910_v49 = vadd.f32 %v1909_v8, %v1908_v16  ;;  %v1973_v52 = vpop.f32.mrf.mxu1 }
 0x143   :  { %v1348_v23 = vadd.f32 %v1347_v14, %v2530_v51  ;;  %v1911_v24 = vpop.f32.mrf.mxu0  ;;  %v1974_v30 = vadd.f32 %v1973_v52, %v1972_v19 }
 0x144   :  { %vm1302_vm6 = vcmp.ge.f32.partialorder %v1258_v21, 0.0  ;;  %v1318_v25 = vmul.f32 0.2, %v1258_v21  ;;  %v1164_v15 = vadd.f32 %v1910_v49, %v1067_v48  ;;  %v1975_v31 = vpop.f32.mrf.mxu1 }
 0x145   :  { %v1912_v32 = vpop.f32.mrf.mxu0 }
 0x146   :  { %v2533_v33 = vsel %vm1302_vm6, %v1258_v21, %v1318_v25  ;;  %v1261_v50 = vadd.f32 %v1974_v30, %v1164_v15  ;;  %v1913_v34 = vadd.f32 %v1912_v32, %v1911_v24  ;;  %v1976_v35 = vpop.f32.mrf.mxu1 }
 0x147   :  { %v1349_v38 = vadd.f32 %v1348_v23, %v2533_v33  ;;  %v1914_v22 = vpop.f32.mrf.mxu0  ;;  %v1977_v42 = vadd.f32 %v1976_v35, %v1975_v31 }
 0x148   :  { %vm1303_vm7 = vcmp.ge.f32.partialorder %v1261_v50, 0.0  ;;  %v1319_v39 = vmul.f32 0.2, %v1261_v50  ;;  %v1169_v41 = vadd.f32 %v1913_v34, %v2488_v61  ;;  %v1978_v44 = vpop.f32.mrf.mxu1 }
 0x149   :  { %v1915_v46 = vpop.f32.mrf.mxu0 }
 0x14a   :  { %v2537_v47 = vsel %vm1303_vm7, %v1261_v50, %v1319_v39  ;;  %v1266_v53 = vadd.f32 %v1977_v42, %v1169_v41  ;;  %v1916_v54 = vadd.f32 %v1915_v46, %v1914_v22  ;;  %v1979_v55 = vpop.f32.mrf.mxu1 }
 0x14b   :  { %v1350_v56 = vadd.f32 %v1349_v38, %v2537_v47  ;;  %v1917_v58 = vpop.f32.mrf.mxu0  ;;  %v1980_v60 = vadd.f32 %v1979_v55, %v1978_v44 }
 0x14c   :  { %v1172_v29 = vadd.f32 %v1916_v54, %v2490_v4  ;;  %v1981_v62 = vpop.f32.mrf.mxu1  ;;  %v1320_v1 = vmul.f32 0.2, %v1266_v53  ;;  %vm1304_vm8 = vcmp.ge.f32.partialorder %v1266_v53, 0.0 }
 0x14d   :  { %v1351_v63 = vrot.slane %v1350_v56, 4  ;;  %v1918_v0 = vpop.f32.mrf.mxu0 }
 0x14e   :  { %v1269_v2 = vadd.f32 %v1980_v60, %v1172_v29  ;;  %v1919_v61 = vadd.f32 %v1918_v0, %v1917_v58  ;;  %v1982_v3 = vpop.f32.mrf.mxu1  ;;  %v2542_v4 = vsel %vm1304_vm8, %v1266_v53, %v1320_v1 }
 0x14f   :  { %v1352_v5 = vadd.f32 %v1351_v63, %v1350_v56  ;;  %v1920_v36 = vpop.f32.mrf.mxu0  ;;  %v1983_v10 = vadd.f32 %v1982_v3, %v1981_v62 }
 0x150   :  { %vm1305_vm9 = vcmp.ge.f32.partialorder %v1269_v2, 0.0  ;;  %v1321_v6 = vmul.f32 0.2, %v1269_v2  ;;  %v1177_v7 = vadd.f32 %v1919_v61, %v2492_v12  ;;  %v1984_v11 = vpop.f32.mrf.mxu1 }
 0x151   :  { %v1353_v13 = vrot.slane %v1352_v5, 2  ;;  %v1921_v14 = vpop.f32.mrf.mxu0 }
 0x152   :  { %v2544_v16 = vsel %vm1305_vm9, %v1269_v2, %v1321_v6  ;;  %v1274_v17 = vadd.f32 %v1983_v10, %v1177_v7  ;;  %v1922_v43 = vadd.f32 %v1921_v14, %v1920_v36  ;;  %v1985_v18 = vpop.f32.mrf.mxu1 }
 0x153   :  { %v1354_v19 = vadd.f32 %v1353_v13, %v1352_v5  ;;  %v1357_v8 = vadd.f32 %v2544_v16, %v2542_v4  ;;  %v1923_v48 = vpop.f32.mrf.mxu0  ;;  %v1986_v49 = vadd.f32 %v1985_v18, %v1984_v11 }
 0x154   :  { %vm1306_vm10 = vcmp.ge.f32.partialorder %v1274_v17, 0.0  ;;  %v1322_v21 = vmul.f32 0.2, %v1274_v17  ;;  %v1180_v12 = vadd.f32 %v1922_v43, %v2494_v20  ;;  %v1987_v52 = vpop.f32.mrf.mxu1 }
 0x155   :  { %v1355_v23 = vrot.slane %v1354_v19, 1  ;;  %v1924_v24 = vpop.f32.mrf.mxu0 }
 0x156   :  { %v2549_v25 = vsel %vm1306_vm10, %v1274_v17, %v1322_v21  ;;  %v1277_v15 = vadd.f32 %v1986_v49, %v1180_v12  ;;  %v1925_v30 = vadd.f32 %v1924_v24, %v1923_v48  ;;  %v1988_v31 = vpop.f32.mrf.mxu1 }
 0x157   :  { %v1356_v32 = vadd.f32 %v1355_v23, %v1354_v19  ;;  %v1358_v50 = vadd.f32 %v1357_v8, %v2549_v25  ;;  %v1926_v34 = vpop.f32.mrf.mxu0  ;;  %v1989_v22 = vadd.f32 %v1988_v31, %v1987_v52 }
 0x158   :  { %vm1307_vm11 = vcmp.ge.f32.partialorder %v1277_v15, 0.0  ;;  %v1323_v35 = vmul.f32 0.2, %v1277_v15  ;;  %v1185_v38 = vadd.f32 %v1925_v30, %v2496_v28  ;;  %v1990_v39 = vpop.f32.mrf.mxu1 }
 0x159   :  { %v1370_v20 = vmul.f32 0.015625, %v1356_v32  ;;  %v1927_v41 = vpop.f32.mrf.mxu0 }
 0x15a   :  { %v2553_v42 = vsel %vm1307_vm11, %v1277_v15, %v1323_v35  ;;  %v1282_v44 = vadd.f32 %v1989_v22, %v1185_v38  ;;  %v1928_v46 = vadd.f32 %v1927_v41, %v1926_v34  ;;  %v1991_v53 = vpop.f32.mrf.mxu1 }
 0x15b   :  { %v2556_v54 = vsub.f32 %v2507_v26, %v1370_v20  ;;  %v2559_v55 = vsub.f32 %v2509_v27, %v1370_v20  ;;  %v2562_v56 = vsub.f32 %v2514_v40, %v1370_v20  ;;  %v2565_v28 = vsub.f32 %v2518_v59, %v1370_v20  ;;  %v1929_v58 = vpop.f32.mrf.mxu0 }
 0x15c   :  { %v2568_v29 = vsub.f32 %v2526_v9, %v1370_v20  ;;  %v2571_v60 = vsub.f32 %v2530_v51, %v1370_v20  ;;  %v2574_v62 = vsub.f32 %v2533_v33, %v1370_v20  ;;  %v2577_v26 = vsub.f32 %v2537_v47, %v1370_v20  ;;  %v1993_v27 = vpop.f32.mrf.mxu1 }
 0x15d   :  { %v1388_v40 = vmul.f32 %v2556_v54, %v2556_v54  ;;  %v1389_v59 = vmul.f32 %v2559_v55, %v2559_v55  ;;  %v1930_v63 = vpop.f32.mrf.mxu0  ;;  %v1390_v9 = vmul.f32 %v2562_v56, %v2562_v56  ;;  %v1359_v1 = vadd.f32 %v1358_v50, %v2553_v42 }
 0x15e   :  { %v1994_v0 = vpop.f32.mrf.mxu1  ;;  %vm1308_vm12 = vcmp.ge.f32.partialorder %v1282_v44, 0.0  ;;  %v1324_v33 = vmul.f32 0.2, %v1282_v44  ;;  %v1188_v47 = vadd.f32 %v1928_v46, %v2498_v37  ;;  %v1992_v61 = vadd.f32 %v1991_v53, %v1990_v39 }
 0x15f   :  { %v1404_v51 = vadd.f32 %v1389_v59, %v1388_v40  ;;  %v1932_v2 = vpop.f32.mrf.mxu0  ;;  %v1931_v3 = vadd.f32 %v1930_v63, %v1929_v58  ;;  %v1391_v36 = vmul.f32 %v2565_v28, %v2565_v28  ;;  %v1995_v10 = vadd.f32 %v1994_v0, %v1993_v27 }
 0x160   :  { %v1996_v5 = vpop.f32.mrf.mxu1  ;;  %v1340_v7 = vsel %vm1308_vm12, %v1282_v44, %v1324_v33  ;;  %v1285_v14 = vadd.f32 %v1992_v61, %v1188_v47  ;;  %v1392_v19 = vmul.f32 %v2568_v29, %v2568_v29  ;;  %v1393_v49 = vmul.f32 %v2571_v60, %v2571_v60 }
 0x161   :  { %v1405_v6 = vadd.f32 %v1404_v51, %v1390_v9  ;;  %v1933_v11 = vpop.f32.mrf.mxu0  ;;  %v1360_v13 = vadd.f32 %v1359_v1, %v1340_v7  ;;  %v1193_v17 = vadd.f32 %v1931_v3, %v2500_v45  ;;  %v1394_v15 = vmul.f32 %v2574_v62, %v2574_v62 }
 0x162   :  { %v1934_v43 = vadd.f32 %v1933_v11, %v1932_v2  ;;  %v1997_v18 = vpop.f32.mrf.mxu1  ;;  %vm1309_vm13 = vcmp.ge.f32.partialorder %v1285_v14, 0.0  ;;  %v1325_v48 = vmul.f32 0.2, %v1285_v14  ;;  %v1395_v34 = vmul.f32 %v2577_v26, %v2577_v26 }
 0x163   :  { %v1406_v37 = vadd.f32 %v1405_v6, %v1391_v36  ;;  %v1998_v8 = vadd.f32 %v1997_v18, %v1996_v5  ;;  %v1290_v21 = vadd.f32 %v1995_v10, %v1193_v17 }
 0x164   :  { %v1196_v12 = vadd.f32 %v1934_v43, %v2502_v57  ;;  %v1341_v23 = vsel %vm1309_vm13, %v1285_v14, %v1325_v48 }
 0x165   :  { %v1407_v52 = vadd.f32 %v1406_v37, %v1392_v19  ;;  %vm1310_vm14 = vcmp.ge.f32.partialorder %v1290_v21, 0.0  ;;  %v1326_v24 = vmul.f32 0.2, %v1290_v21  ;;  %v1361_v31 = vadd.f32 %v1360_v13, %v1341_v23 }
 0x166   :  { %v1293_v45 = vadd.f32 %v1998_v8, %v1196_v12 }
 0x167   :  { %v1408_v30 = vadd.f32 %v1407_v52, %v1393_v49  ;;  %v1342_v32 = vsel %vm1310_vm14, %v1290_v21, %v1326_v24 }
 0x168   :  { %vm1311_vm15 = vcmp.ge.f32.partialorder %v1293_v45, 0.0  ;;  %v1327_v50 = vmul.f32 0.2, %v1293_v45  ;;  %v1362_v35 = vadd.f32 %v1361_v31, %v1342_v32 }
 0x169   :  { %v1409_v57 = vadd.f32 %v1408_v30, %v1394_v15 }
 0x16a   :  { %v1343_v38 = vsel %vm1311_vm15, %v1293_v45, %v1327_v50 }
 0x16b   :  { %v1410_v22 = vadd.f32 %v1409_v57, %v1395_v34  ;;  %v1363_v39 = vadd.f32 %v1362_v35, %v1343_v38 }
 0x16d   :  { %v1411_v20 = vrot.slane %v1410_v22, 4  ;;  %v1364_v41 = vrot.slane %v1363_v39, 4 }
 0x16f   :  { %v1412_v44 = vadd.f32 %v1411_v20, %v1410_v22  ;;  %v1365_v46 = vadd.f32 %v1364_v41, %v1363_v39 }
 0x171   :  { %v1413_v53 = vrot.slane %v1412_v44, 2  ;;  %v1366_v58 = vrot.slane %v1365_v46, 2 }
 0x173   :  { %v1414_v27 = vadd.f32 %v1413_v53, %v1412_v44  ;;  %v1367_v40 = vadd.f32 %v1366_v58, %v1365_v46 }
 0x175   :  { %v1415_v59 = vrot.slane %v1414_v27, 1  ;;  %v1368_v63 = vrot.slane %v1367_v40, 1 }
 0x177   :  { %v1416_v9 = vadd.f32 %v1415_v59, %v1414_v27  ;;  %v1369_v0 = vadd.f32 %v1368_v63, %v1367_v40 }
 0x179   :  { %v1430_v51 = vmul.f32 0.015625, %v1416_v9  ;;  %v1371_v1 = vmul.f32 0.015625, %v1369_v0 }
 0x17b   :  { %v1432_v33 = vadd.f32 1e-05, %v1430_v51  ;;  %v1380_v2 = vsub.f32 %v2542_v4, %v1371_v1  ;;  %v1381_v47 = vsub.f32 %v2544_v16, %v1371_v1  ;;  %v1382_v61 = vsub.f32 %v2549_v25, %v1371_v1 }
 0x17c   :  { %v1383_v3 = vsub.f32 %v2553_v42, %v1371_v1  ;;  %v1384_v5 = vsub.f32 %v1340_v7, %v1371_v1  ;;  %v1385_v36 = vsub.f32 %v1341_v23, %v1371_v1  ;;  %v1386_v6 = vsub.f32 %v1342_v32, %v1371_v1 }
 0x17d   :  { %2063 = vrsqrt.f32 %v1432_v33  ;;  %v1387_v10 = vsub.f32 %v1343_v38, %v1371_v1  ;;  %v1396_v11 = vmul.f32 %v1380_v2, %v1380_v2  ;;  %v1397_v13 = vmul.f32 %v1381_v47, %v1381_v47 }
 0x17e   :  { %v1398_v14 = vmul.f32 %v1382_v61, %v1382_v61  ;;  %v1399_v43 = vmul.f32 %v1383_v3, %v1383_v3  ;;  %v1400_v19 = vmul.f32 %v1384_v5, %v1384_v5  ;;  %v1401_v4 = vmul.f32 %v1385_v36, %v1385_v36 }
 0x17f   :  { %v1417_v17 = vadd.f32 %v1397_v13, %v1396_v11  ;;  %v1402_v16 = vmul.f32 %v1386_v6, %v1386_v6  ;;  %v1403_v42 = vmul.f32 %v1387_v10, %v1387_v10 }
 0x181   :  { %v1418_v18 = vadd.f32 %v1417_v17, %v1398_v14 }
 0x183   :  { %v1419_v37 = vadd.f32 %v1418_v18, %v1399_v43 }
 0x185   :  { %v1420_v8 = vadd.f32 %v1419_v37, %v1400_v19 }
 0x187   :  { %v1421_v48 = vadd.f32 %v1420_v8, %v1401_v4 }
 0x189   :  { %v1422_v25 = vadd.f32 %v1421_v48, %v1402_v16 }
 0x18a   :  { %v2064_v21 = vpop.eup %2063 }
 0x18b   :  { %v1436_v7 = vmul.f32 %v2064_v21, %v2556_v54  ;;  %v1437_v12 = vmul.f32 %v2064_v21, %v2559_v55  ;;  %v1438_v49 = vmul.f32 %v2064_v21, %v2562_v56  ;;  %v1439_v52 = vmul.f32 %v2064_v21, %v2565_v28 }
 0x18c   :  { %v1440_v23 = vmul.f32 %v2064_v21, %v2568_v29  ;;  %v1441_v24 = vmul.f32 %v2064_v21, %v2571_v60  ;;  %v1442_v45 = vmul.f32 %v2064_v21, %v2574_v62  ;;  %v1443_v15 = vmul.f32 %v2064_v21, %v2577_v26 }
 0x18d   :  { %v1699_v30 = vpack.c.bf16 %v1437_v12, %v1436_v7  ;;  %v1704_v31 = vpack.c.bf16 %v1439_v52, %v1438_v49  ;;  %v1423_v32 = vadd.f32 %v1422_v25, %v1403_v42 }
 0x18e   :  { %v1709_v50 = vpack.c.bf16 %v1441_v24, %v1440_v23  ;;  %v1714_v34 = vpack.c.bf16 %v1443_v15, %v1442_v45 }
 0x18f   :  { %1700 = vst [vmem:[%s2637_s2] sm:$0xff] %v1699_v30   ;;  %1736 = vst [vmem:[%s2637_s2 + $0x8] sm:$0xff] %v1704_v31   ;;  %v1424_v54 = vrot.slane %v1423_v32, 4 }
 0x190   :  { %1737 = vst [vmem:[%s2637_s2 + $0x10] sm:$0xff] %v1709_v50   ;;  %1738 = vst [vmem:[%s2637_s2 + $0x18] sm:$0xff] %v1714_v34  }
 0x191   :  { %v1425_v55 = vadd.f32 %v1424_v54, %v1423_v32 }
 0x193   :  { %v1426_v56 = vrot.slane %v1425_v55, 2 }
 0x195   :  { %v1427_v28 = vadd.f32 %v1426_v56, %v1425_v55 }
 0x197   :  { %v1428_v29 = vrot.slane %v1427_v28, 1 }
 0x199   :  { %v1429_v60 = vadd.f32 %v1428_v29, %v1427_v28 }
 0x19b   :  { %v1431_v62 = vmul.f32 0.015625, %v1429_v60 }
 0x19d   :  { %v1433_v26 = vadd.f32 1e-05, %v1431_v62 }
 0x19f   :  { %2065 = vrsqrt.f32 %v1433_v26 }
 0x1ac   :  { %v2066_v57 = vpop.eup %2065 }
 0x1ad   :  { %v1444_v35 = vmul.f32 %v2066_v57, %v1380_v2  ;;  %v1445_v38 = vmul.f32 %v2066_v57, %v1381_v47  ;;  %v1446_v22 = vmul.f32 %v2066_v57, %v1382_v61  ;;  %v1447_v39 = vmul.f32 %v2066_v57, %v1383_v3 }
 0x1ae   :  { %v1448_v20 = vmul.f32 %v2066_v57, %v1384_v5  ;;  %v1449_v41 = vmul.f32 %v2066_v57, %v1385_v36  ;;  %v1450_v44 = vmul.f32 %v2066_v57, %v1386_v6  ;;  %v1451_v46 = vmul.f32 %v2066_v57, %v1387_v10 }
 0x1af   :  { %v1719_v53 = vpack.c.bf16 %v1445_v38, %v1444_v35  ;;  %v1724_v58 = vpack.c.bf16 %v1447_v39, %v1446_v22 }
 0x1b0   :  { %v1729_v27 = vpack.c.bf16 %v1449_v41, %v1448_v20  ;;  %v1734_v40 = vpack.c.bf16 %v1451_v46, %v1450_v44 }
 0x1b1   :  { %1739 = vst [vmem:[%s2637_s2 + $0x20] sm:$0xff] %v1719_v53   ;;  %1740 = vst [vmem:[%s2637_s2 + $0x28] sm:$0xff] %v1724_v58  }
 0x1b2   :  { %1741 = vst [vmem:[%s2637_s2 + $0x30] sm:$0xff] %v1729_v27   ;;  %1742 = vst [vmem:[%s2637_s2 + $0x38] sm:$0xff] %v1734_v40  }

// kernel: discriminator_forward.7
= control target key start
LH: loop header
LB: loop body
LE: loop exit
PB: predicated region body
PF: predicated region fallthrough
CT: control target
= control target key end

     0   :  { %s3619_s9 = smov 0   ;;  %s3621_s10 = smov 0   ;;  %s4441_s0 = inlined_call_operand.vmem [shape: bf16[32,2048], index: 0, kind: input, shape index: {}]   ;;  %s4442_s1 = inlined_call_operand.vmem [shape: bf16[2048,256], index: 1, kind: input, shape index: {}]   ;;  %s4443_s2 = inlined_call_operand.vmem [shape: bf16[32,256], index: 2, kind: output, shape index: {}]  }
   0x1   :  { %s3623_s11 = smov 0  }
   0x2 LB: > { %s3008_s12 = sadd.s32 4294967295, %s3602_s11   ;;  %s3636_s13 = sadd.s32 1, %s3602_s11   ;;  %s3602_s11 = sphi %s3623_s11, %s4447_s11   ;;  %s3598_s10 = sphi %s3621_s10, %s4446_s10   ;;  %s3594_s9 = sphi %s3619_s9, %s4445_s9  }
   0x3   : > { %s37_s14 = ssub.s32 %s3602_s11, %s3636_s13  ;;  %s40_s15 = sadd.s32 1, %s3598_s10 }
   0x4   : > { %p38_p0 = scmp.eq.s32.totalorder %s37_s14, 0  ;;  %p47_p1 = scmp.ne.s32.totalorder %s3598_s10, %s3594_s9 }
   0x5   : > { %p48_p2 = scmp.eq.s32.totalorder %s3602_s11, 0  ;;  %p77_p3 = scmp.eq.s32.totalorder %s3008_s12, 1 }
   0x6   : > { %s3647_s16 = scalar_select %p38_p0, %s3598_s10, %s40_s15  }
   0x7   : > { %p49_p4 = por %p48_p2, %p47_p1  ;;  %p3649_p5 = por %p77_p3, %p47_p1 }
   0x8   : > { %p3011_p6 = scmp.ge.s32.totalorder %s3602_s11, 2 }
   0xa   : > { %102 = sbr.rel (%p3011_p6) target bundleno = 189 (0xbd), region = 20 }
   0xf   : > { %105 = sbr.rel (!%p49_p4) target bundleno = 189 (0xbd), region = 24  ;;  %s107_s18 = sand.u32 (%p49_p4), 1, %s3598_s10  }
  0x10   : > { %s3013_s19 = sshll.u32 (%p49_p4), %s3602_s11, 2  ;;  %s3012_s20 = sshll.u32 (%p49_p4), %s107_s18, 10 }
  0x11   : > { %s3659_s23 = scalar_lea.vmem (%p49_p4), %s4442_s1, %s3013_s19  ;;  %s3663_s24 = scalar_lea.vmem (%p49_p4), [#allocation2], %s3012_s20 }
  0x12   : > { %v128_v0 = vld [vmem:[%s3659_s23] sm:$0xf] (%p49_p4)  ;;  %v130_v1 = vld [vmem:[%s3659_s23 + $0x8] sm:$0xf] (%p49_p4)  ;;  %v132_v2 = vld [vmem:[%s3659_s23 + $0x10] sm:$0xf] (%p49_p4) }
  0x13   : > { %129 = vst [vmem:[%s3663_s24] sm:$0xf] (%p49_p4), %v128_v0  ;;  %131 = vst [vmem:[%s3663_s24 + $0x4] sm:$0xf] (%p49_p4), %v130_v1  ;;  %v134_v3 = vld [vmem:[%s3659_s23 + $0x18] sm:$0xf] (%p49_p4) }
  0x14   : > { %v136_v4 = vld [vmem:[%s3659_s23 + $0x20] sm:$0xf]  ;;  %133 = vst [vmem:[%s3663_s24 + $0x8] sm:$0xf] %v132_v2  ;;  %135 = vst [vmem:[%s3663_s24 + $0xc] sm:$0xf] %v134_v3 }
  0x15   : > { %137 = vst [vmem:[%s3663_s24 + $0x10] sm:$0xf] %v136_v4  ;;  %v138_v5 = vld [vmem:[%s3659_s23 + $0x28] sm:$0xf]  ;;  %v140_v6 = vld [vmem:[%s3659_s23 + $0x30] sm:$0xf] }
  0x16   : > { %v142_v7 = vld [vmem:[%s3659_s23 + $0x38] sm:$0xf]  ;;  %139 = vst [vmem:[%s3663_s24 + $0x14] sm:$0xf] %v138_v5  ;;  %141 = vst [vmem:[%s3663_s24 + $0x18] sm:$0xf] %v140_v6 }
  0x17   : > { %143 = vst [vmem:[%s3663_s24 + $0x1c] sm:$0xf] %v142_v7  ;;  %v144_v8 = vld [vmem:[%s3659_s23 + $0x40] sm:$0xf]  ;;  %v146_v9 = vld [vmem:[%s3659_s23 + $0x48] sm:$0xf] }
  0x18   : > { %v148_v10 = vld [vmem:[%s3659_s23 + $0x50] sm:$0xf]  ;;  %145 = vst [vmem:[%s3663_s24 + $0x20] sm:$0xf] %v144_v8  ;;  %147 = vst [vmem:[%s3663_s24 + $0x24] sm:$0xf] %v146_v9 }
  0x19   : > { %149 = vst [vmem:[%s3663_s24 + $0x28] sm:$0xf] %v148_v10  ;;  %v150_v11 = vld [vmem:[%s3659_s23 + $0x58] sm:$0xf]  ;;  %v152_v12 = vld [vmem:[%s3659_s23 + $0x60] sm:$0xf] }
  0x1a   : > { %v154_v13 = vld [vmem:[%s3659_s23 + $0x68] sm:$0xf]  ;;  %151 = vst [vmem:[%s3663_s24 + $0x2c] sm:$0xf] %v150_v11  ;;  %153 = vst [vmem:[%s3663_s24 + $0x30] sm:$0xf] %v152_v12 }
  0x1b   : > { %155 = vst [vmem:[%s3663_s24 + $0x34] sm:$0xf] %v154_v13  ;;  %v156_v14 = vld [vmem:[%s3659_s23 + $0x70] sm:$0xf]  ;;  %v158_v15 = vld [vmem:[%s3659_s23 + $0x78] sm:$0xf] }
  0x1c   : > { %v160_v16 = vld [vmem:[%s3659_s23 + $0x80] sm:$0xf]  ;;  %157 = vst [vmem:[%s3663_s24 + $0x38] sm:$0xf] %v156_v14  ;;  %159 = vst [vmem:[%s3663_s24 + $0x3c] sm:$0xf] %v158_v15 }
  0x1d   : > { %161 = vst [vmem:[%s3663_s24 + $0x40] sm:$0xf] %v160_v16  ;;  %v162_v17 = vld [vmem:[%s3659_s23 + $0x88] sm:$0xf]  ;;  %v164_v18 = vld [vmem:[%s3659_s23 + $0x90] sm:$0xf] }
  0x1e   : > { %v166_v19 = vld [vmem:[%s3659_s23 + $0x98] sm:$0xf]  ;;  %163 = vst [vmem:[%s3663_s24 + $0x44] sm:$0xf] %v162_v17  ;;  %165 = vst [vmem:[%s3663_s24 + $0x48] sm:$0xf] %v164_v18 }
  0x1f   : > { %167 = vst [vmem:[%s3663_s24 + $0x4c] sm:$0xf] %v166_v19  ;;  %v168_v20 = vld [vmem:[%s3659_s23 + $0xa0] sm:$0xf]  ;;  %v170_v21 = vld [vmem:[%s3659_s23 + $0xa8] sm:$0xf] }
  0x20   : > { %v172_v22 = vld [vmem:[%s3659_s23 + $0xb0] sm:$0xf]  ;;  %169 = vst [vmem:[%s3663_s24 + $0x50] sm:$0xf] %v168_v20  ;;  %171 = vst [vmem:[%s3663_s24 + $0x54] sm:$0xf] %v170_v21 }
  0x21   : > { %173 = vst [vmem:[%s3663_s24 + $0x58] sm:$0xf] %v172_v22  ;;  %v174_v23 = vld [vmem:[%s3659_s23 + $0xb8] sm:$0xf]  ;;  %v176_v24 = vld [vmem:[%s3659_s23 + $0xc0] sm:$0xf] }
  0x22   : > { %v178_v25 = vld [vmem:[%s3659_s23 + $0xc8] sm:$0xf]  ;;  %175 = vst [vmem:[%s3663_s24 + $0x5c] sm:$0xf] %v174_v23  ;;  %177 = vst [vmem:[%s3663_s24 + $0x60] sm:$0xf] %v176_v24 }
  0x23   : > { %179 = vst [vmem:[%s3663_s24 + $0x64] sm:$0xf] %v178_v25  ;;  %v180_v26 = vld [vmem:[%s3659_s23 + $0xd0] sm:$0xf]  ;;  %v182_v27 = vld [vmem:[%s3659_s23 + $0xd8] sm:$0xf] }
  0x24   : > { %v184_v28 = vld [vmem:[%s3659_s23 + $0xe0] sm:$0xf]  ;;  %181 = vst [vmem:[%s3663_s24 + $0x68] sm:$0xf] %v180_v26  ;;  %183 = vst [vmem:[%s3663_s24 + $0x6c] sm:$0xf] %v182_v27 }
  0x25   : > { %185 = vst [vmem:[%s3663_s24 + $0x70] sm:$0xf] %v184_v28  ;;  %v186_v29 = vld [vmem:[%s3659_s23 + $0xe8] sm:$0xf]  ;;  %v188_v30 = vld [vmem:[%s3659_s23 + $0xf0] sm:$0xf] }
  0x26   : > { %v190_v31 = vld [vmem:[%s3659_s23 + $0xf8] sm:$0xf]  ;;  %187 = vst [vmem:[%s3663_s24 + $0x74] sm:$0xf] %v186_v29  ;;  %189 = vst [vmem:[%s3663_s24 + $0x78] sm:$0xf] %v188_v30 }
  0x27   : > { %191 = vst [vmem:[%s3663_s24 + $0x7c] sm:$0xf] %v190_v31  ;;  %v192_v32 = vld [vmem:[%s3659_s23 + $0x100] sm:$0xf]  ;;  %v194_v33 = vld [vmem:[%s3659_s23 + $0x108] sm:$0xf] }
  0x28   : > { %v196_v34 = vld [vmem:[%s3659_s23 + $0x110] sm:$0xf]  ;;  %193 = vst [vmem:[%s3663_s24 + $0x80] sm:$0xf] %v192_v32  ;;  %195 = vst [vmem:[%s3663_s24 + $0x84] sm:$0xf] %v194_v33 }
  0x29   : > { %197 = vst [vmem:[%s3663_s24 + $0x88] sm:$0xf] %v196_v34  ;;  %v198_v35 = vld [vmem:[%s3659_s23 + $0x118] sm:$0xf]  ;;  %v200_v36 = vld [vmem:[%s3659_s23 + $0x120] sm:$0xf] }
  0x2a   : > { %v202_v37 = vld [vmem:[%s3659_s23 + $0x128] sm:$0xf]  ;;  %199 = vst [vmem:[%s3663_s24 + $0x8c] sm:$0xf] %v198_v35  ;;  %201 = vst [vmem:[%s3663_s24 + $0x90] sm:$0xf] %v200_v36 }
  0x2b   : > { %203 = vst [vmem:[%s3663_s24 + $0x94] sm:$0xf] %v202_v37  ;;  %v204_v38 = vld [vmem:[%s3659_s23 + $0x130] sm:$0xf]  ;;  %v206_v39 = vld [vmem:[%s3659_s23 + $0x138] sm:$0xf] }
  0x2c   : > { %v208_v40 = vld [vmem:[%s3659_s23 + $0x140] sm:$0xf]  ;;  %205 = vst [vmem:[%s3663_s24 + $0x98] sm:$0xf] %v204_v38  ;;  %207 = vst [vmem:[%s3663_s24 + $0x9c] sm:$0xf] %v206_v39 }
  0x2d   : > { %209 = vst [vmem:[%s3663_s24 + $0xa0] sm:$0xf] %v208_v40  ;;  %v210_v41 = vld [vmem:[%s3659_s23 + $0x148] sm:$0xf]  ;;  %v212_v42 = vld [vmem:[%s3659_s23 + $0x150] sm:$0xf] }
  0x2e   : > { %v214_v43 = vld [vmem:[%s3659_s23 + $0x158] sm:$0xf]  ;;  %211 = vst [vmem:[%s3663_s24 + $0xa4] sm:$0xf] %v210_v41  ;;  %213 = vst [vmem:[%s3663_s24 + $0xa8] sm:$0xf] %v212_v42 }
  0x2f   : > { %215 = vst [vmem:[%s3663_s24 + $0xac] sm:$0xf] %v214_v43  ;;  %v216_v44 = vld [vmem:[%s3659_s23 + $0x160] sm:$0xf]  ;;  %v218_v45 = vld [vmem:[%s3659_s23 + $0x168] sm:$0xf] }
  0x30   : > { %v220_v46 = vld [vmem:[%s3659_s23 + $0x170] sm:$0xf]  ;;  %217 = vst [vmem:[%s3663_s24 + $0xb0] sm:$0xf] %v216_v44  ;;  %219 = vst [vmem:[%s3663_s24 + $0xb4] sm:$0xf] %v218_v45 }
  0x31   : > { %221 = vst [vmem:[%s3663_s24 + $0xb8] sm:$0xf] %v220_v46  ;;  %v222_v47 = vld [vmem:[%s3659_s23 + $0x178] sm:$0xf]  ;;  %v224_v48 = vld [vmem:[%s3659_s23 + $0x180] sm:$0xf] }
  0x32   : > { %v226_v49 = vld [vmem:[%s3659_s23 + $0x188] sm:$0xf]  ;;  %223 = vst [vmem:[%s3663_s24 + $0xbc] sm:$0xf] %v222_v47  ;;  %225 = vst [vmem:[%s3663_s24 + $0xc0] sm:$0xf] %v224_v48 }
  0x33   : > { %227 = vst [vmem:[%s3663_s24 + $0xc4] sm:$0xf] %v226_v49  ;;  %v228_v50 = vld [vmem:[%s3659_s23 + $0x190] sm:$0xf]  ;;  %v230_v51 = vld [vmem:[%s3659_s23 + $0x198] sm:$0xf] }
  0x34   : > { %v232_v52 = vld [vmem:[%s3659_s23 + $0x1a0] sm:$0xf]  ;;  %229 = vst [vmem:[%s3663_s24 + $0xc8] sm:$0xf] %v228_v50  ;;  %231 = vst [vmem:[%s3663_s24 + $0xcc] sm:$0xf] %v230_v51 }
  0x35   : > { %233 = vst [vmem:[%s3663_s24 + $0xd0] sm:$0xf] %v232_v52  ;;  %v234_v53 = vld [vmem:[%s3659_s23 + $0x1a8] sm:$0xf]  ;;  %v236_v54 = vld [vmem:[%s3659_s23 + $0x1b0] sm:$0xf] }
  0x36   : > { %v238_v55 = vld [vmem:[%s3659_s23 + $0x1b8] sm:$0xf]  ;;  %235 = vst [vmem:[%s3663_s24 + $0xd4] sm:$0xf] %v234_v53  ;;  %237 = vst [vmem:[%s3663_s24 + $0xd8] sm:$0xf] %v236_v54 }
  0x37   : > { %239 = vst [vmem:[%s3663_s24 + $0xdc] sm:$0xf] %v238_v55  ;;  %v240_v56 = vld [vmem:[%s3659_s23 + $0x1c0] sm:$0xf]  ;;  %v242_v57 = vld [vmem:[%s3659_s23 + $0x1c8] sm:$0xf] }
  0x38   : > { %v244_v58 = vld [vmem:[%s3659_s23 + $0x1d0] sm:$0xf]  ;;  %241 = vst [vmem:[%s3663_s24 + $0xe0] sm:$0xf] %v240_v56  ;;  %243 = vst [vmem:[%s3663_s24 + $0xe4] sm:$0xf] %v242_v57 }
  0x39   : > { %245 = vst [vmem:[%s3663_s24 + $0xe8] sm:$0xf] %v244_v58  ;;  %v246_v59 = vld [vmem:[%s3659_s23 + $0x1d8] sm:$0xf]  ;;  %v248_v60 = vld [vmem:[%s3659_s23 + $0x1e0] sm:$0xf] }
  0x3a   : > { %v250_v61 = vld [vmem:[%s3659_s23 + $0x1e8] sm:$0xf]  ;;  %247 = vst [vmem:[%s3663_s24 + $0xec] sm:$0xf] %v246_v59  ;;  %249 = vst [vmem:[%s3663_s24 + $0xf0] sm:$0xf] %v248_v60 }
  0x3b   : > { %251 = vst [vmem:[%s3663_s24 + $0xf4] sm:$0xf] %v250_v61  ;;  %v252_v62 = vld [vmem:[%s3659_s23 + $0x1f0] sm:$0xf]  ;;  %v254_v63 = vld [vmem:[%s3659_s23 + $0x1f8] sm:$0xf] }
  0x3c   : > { %v256_v0 = vld [vmem:[%s3659_s23 + $0x200] sm:$0xf]  ;;  %253 = vst [vmem:[%s3663_s24 + $0xf8] sm:$0xf] %v252_v62  ;;  %255 = vst [vmem:[%s3663_s24 + $0xfc] sm:$0xf] %v254_v63 }
  0x3d   : > { %257 = vst [vmem:[%s3663_s24 + $0x100] sm:$0xf] %v256_v0  ;;  %v258_v1 = vld [vmem:[%s3659_s23 + $0x208] sm:$0xf]  ;;  %v260_v2 = vld [vmem:[%s3659_s23 + $0x210] sm:$0xf] }
  0x3e   : > { %v262_v3 = vld [vmem:[%s3659_s23 + $0x218] sm:$0xf]  ;;  %259 = vst [vmem:[%s3663_s24 + $0x104] sm:$0xf] %v258_v1  ;;  %261 = vst [vmem:[%s3663_s24 + $0x108] sm:$0xf] %v260_v2 }
  0x3f   : > { %263 = vst [vmem:[%s3663_s24 + $0x10c] sm:$0xf] %v262_v3  ;;  %v264_v4 = vld [vmem:[%s3659_s23 + $0x220] sm:$0xf]  ;;  %v266_v5 = vld [vmem:[%s3659_s23 + $0x228] sm:$0xf] }
  0x40   : > { %v268_v6 = vld [vmem:[%s3659_s23 + $0x230] sm:$0xf]  ;;  %265 = vst [vmem:[%s3663_s24 + $0x110] sm:$0xf] %v264_v4  ;;  %267 = vst [vmem:[%s3663_s24 + $0x114] sm:$0xf] %v266_v5 }
  0x41   : > { %269 = vst [vmem:[%s3663_s24 + $0x118] sm:$0xf] %v268_v6  ;;  %v270_v7 = vld [vmem:[%s3659_s23 + $0x238] sm:$0xf]  ;;  %v272_v8 = vld [vmem:[%s3659_s23 + $0x240] sm:$0xf] }
  0x42   : > { %v274_v9 = vld [vmem:[%s3659_s23 + $0x248] sm:$0xf]  ;;  %271 = vst [vmem:[%s3663_s24 + $0x11c] sm:$0xf] %v270_v7  ;;  %273 = vst [vmem:[%s3663_s24 + $0x120] sm:$0xf] %v272_v8 }
  0x43   : > { %275 = vst [vmem:[%s3663_s24 + $0x124] sm:$0xf] %v274_v9  ;;  %v276_v10 = vld [vmem:[%s3659_s23 + $0x250] sm:$0xf]  ;;  %v278_v11 = vld [vmem:[%s3659_s23 + $0x258] sm:$0xf] }
  0x44   : > { %v280_v12 = vld [vmem:[%s3659_s23 + $0x260] sm:$0xf]  ;;  %277 = vst [vmem:[%s3663_s24 + $0x128] sm:$0xf] %v276_v10  ;;  %279 = vst [vmem:[%s3663_s24 + $0x12c] sm:$0xf] %v278_v11 }
  0x45   : > { %281 = vst [vmem:[%s3663_s24 + $0x130] sm:$0xf] %v280_v12  ;;  %v282_v13 = vld [vmem:[%s3659_s23 + $0x268] sm:$0xf]  ;;  %v284_v14 = vld [vmem:[%s3659_s23 + $0x270] sm:$0xf] }
  0x46   : > { %v286_v15 = vld [vmem:[%s3659_s23 + $0x278] sm:$0xf]  ;;  %283 = vst [vmem:[%s3663_s24 + $0x134] sm:$0xf] %v282_v13  ;;  %285 = vst [vmem:[%s3663_s24 + $0x138] sm:$0xf] %v284_v14 }
  0x47   : > { %287 = vst [vmem:[%s3663_s24 + $0x13c] sm:$0xf] %v286_v15  ;;  %v288_v16 = vld [vmem:[%s3659_s23 + $0x280] sm:$0xf]  ;;  %v290_v17 = vld [vmem:[%s3659_s23 + $0x288] sm:$0xf] }
  0x48   : > { %v292_v18 = vld [vmem:[%s3659_s23 + $0x290] sm:$0xf]  ;;  %289 = vst [vmem:[%s3663_s24 + $0x140] sm:$0xf] %v288_v16  ;;  %291 = vst [vmem:[%s3663_s24 + $0x144] sm:$0xf] %v290_v17 }
  0x49   : > { %293 = vst [vmem:[%s3663_s24 + $0x148] sm:$0xf] %v292_v18  ;;  %v294_v19 = vld [vmem:[%s3659_s23 + $0x298] sm:$0xf]  ;;  %v296_v20 = vld [vmem:[%s3659_s23 + $0x2a0] sm:$0xf] }
  0x4a   : > { %v298_v21 = vld [vmem:[%s3659_s23 + $0x2a8] sm:$0xf]  ;;  %295 = vst [vmem:[%s3663_s24 + $0x14c] sm:$0xf] %v294_v19  ;;  %297 = vst [vmem:[%s3663_s24 + $0x150] sm:$0xf] %v296_v20 }
  0x4b   : > { %299 = vst [vmem:[%s3663_s24 + $0x154] sm:$0xf] %v298_v21  ;;  %v300_v22 = vld [vmem:[%s3659_s23 + $0x2b0] sm:$0xf]  ;;  %v302_v23 = vld [vmem:[%s3659_s23 + $0x2b8] sm:$0xf] }
  0x4c   : > { %v304_v24 = vld [vmem:[%s3659_s23 + $0x2c0] sm:$0xf]  ;;  %301 = vst [vmem:[%s3663_s24 + $0x158] sm:$0xf] %v300_v22  ;;  %303 = vst [vmem:[%s3663_s24 + $0x15c] sm:$0xf] %v302_v23 }
  0x4d   : > { %305 = vst [vmem:[%s3663_s24 + $0x160] sm:$0xf] %v304_v24  ;;  %v306_v25 = vld [vmem:[%s3659_s23 + $0x2c8] sm:$0xf]  ;;  %v308_v26 = vld [vmem:[%s3659_s23 + $0x2d0] sm:$0xf] }
  0x4e   : > { %v310_v27 = vld [vmem:[%s3659_s23 + $0x2d8] sm:$0xf]  ;;  %307 = vst [vmem:[%s3663_s24 + $0x164] sm:$0xf] %v306_v25  ;;  %309 = vst [vmem:[%s3663_s24 + $0x168] sm:$0xf] %v308_v26 }
  0x4f   : > { %311 = vst [vmem:[%s3663_s24 + $0x16c] sm:$0xf] %v310_v27  ;;  %v312_v28 = vld [vmem:[%s3659_s23 + $0x2e0] sm:$0xf]  ;;  %v314_v29 = vld [vmem:[%s3659_s23 + $0x2e8] sm:$0xf] }
  0x50   : > { %v316_v30 = vld [vmem:[%s3659_s23 + $0x2f0] sm:$0xf]  ;;  %313 = vst [vmem:[%s3663_s24 + $0x170] sm:$0xf] %v312_v28  ;;  %315 = vst [vmem:[%s3663_s24 + $0x174] sm:$0xf] %v314_v29 }
  0x51   : > { %317 = vst [vmem:[%s3663_s24 + $0x178] sm:$0xf] %v316_v30  ;;  %v318_v31 = vld [vmem:[%s3659_s23 + $0x2f8] sm:$0xf]  ;;  %v320_v32 = vld [vmem:[%s3659_s23 + $0x300] sm:$0xf] }
  0x52   : > { %v322_v33 = vld [vmem:[%s3659_s23 + $0x308] sm:$0xf]  ;;  %319 = vst [vmem:[%s3663_s24 + $0x17c] sm:$0xf] %v318_v31  ;;  %321 = vst [vmem:[%s3663_s24 + $0x180] sm:$0xf] %v320_v32 }
  0x53   : > { %323 = vst [vmem:[%s3663_s24 + $0x184] sm:$0xf] %v322_v33  ;;  %v324_v34 = vld [vmem:[%s3659_s23 + $0x310] sm:$0xf]  ;;  %v326_v35 = vld [vmem:[%s3659_s23 + $0x318] sm:$0xf] }
  0x54   : > { %v328_v36 = vld [vmem:[%s3659_s23 + $0x320] sm:$0xf]  ;;  %325 = vst [vmem:[%s3663_s24 + $0x188] sm:$0xf] %v324_v34  ;;  %327 = vst [vmem:[%s3663_s24 + $0x18c] sm:$0xf] %v326_v35 }
  0x55   : > { %329 = vst [vmem:[%s3663_s24 + $0x190] sm:$0xf] %v328_v36  ;;  %v330_v37 = vld [vmem:[%s3659_s23 + $0x328] sm:$0xf]  ;;  %v332_v38 = vld [vmem:[%s3659_s23 + $0x330] sm:$0xf] }
  0x56   : > { %v334_v39 = vld [vmem:[%s3659_s23 + $0x338] sm:$0xf]  ;;  %331 = vst [vmem:[%s3663_s24 + $0x194] sm:$0xf] %v330_v37  ;;  %333 = vst [vmem:[%s3663_s24 + $0x198] sm:$0xf] %v332_v38 }
  0x57   : > { %335 = vst [vmem:[%s3663_s24 + $0x19c] sm:$0xf] %v334_v39  ;;  %v336_v40 = vld [vmem:[%s3659_s23 + $0x340] sm:$0xf]  ;;  %v338_v41 = vld [vmem:[%s3659_s23 + $0x348] sm:$0xf] }
  0x58   : > { %v340_v42 = vld [vmem:[%s3659_s23 + $0x350] sm:$0xf]  ;;  %337 = vst [vmem:[%s3663_s24 + $0x1a0] sm:$0xf] %v336_v40  ;;  %339 = vst [vmem:[%s3663_s24 + $0x1a4] sm:$0xf] %v338_v41 }
  0x59   : > { %341 = vst [vmem:[%s3663_s24 + $0x1a8] sm:$0xf] %v340_v42  ;;  %v342_v43 = vld [vmem:[%s3659_s23 + $0x358] sm:$0xf]  ;;  %v344_v44 = vld [vmem:[%s3659_s23 + $0x360] sm:$0xf] }
  0x5a   : > { %v346_v45 = vld [vmem:[%s3659_s23 + $0x368] sm:$0xf]  ;;  %343 = vst [vmem:[%s3663_s24 + $0x1ac] sm:$0xf] %v342_v43  ;;  %345 = vst [vmem:[%s3663_s24 + $0x1b0] sm:$0xf] %v344_v44 }
  0x5b   : > { %347 = vst [vmem:[%s3663_s24 + $0x1b4] sm:$0xf] %v346_v45  ;;  %v348_v46 = vld [vmem:[%s3659_s23 + $0x370] sm:$0xf]  ;;  %v350_v47 = vld [vmem:[%s3659_s23 + $0x378] sm:$0xf] }
  0x5c   : > { %v352_v48 = vld [vmem:[%s3659_s23 + $0x380] sm:$0xf]  ;;  %349 = vst [vmem:[%s3663_s24 + $0x1b8] sm:$0xf] %v348_v46  ;;  %351 = vst [vmem:[%s3663_s24 + $0x1bc] sm:$0xf] %v350_v47 }
  0x5d   : > { %353 = vst [vmem:[%s3663_s24 + $0x1c0] sm:$0xf] %v352_v48  ;;  %v354_v49 = vld [vmem:[%s3659_s23 + $0x388] sm:$0xf]  ;;  %v356_v50 = vld [vmem:[%s3659_s23 + $0x390] sm:$0xf] }
  0x5e   : > { %v358_v51 = vld [vmem:[%s3659_s23 + $0x398] sm:$0xf]  ;;  %355 = vst [vmem:[%s3663_s24 + $0x1c4] sm:$0xf] %v354_v49  ;;  %357 = vst [vmem:[%s3663_s24 + $0x1c8] sm:$0xf] %v356_v50 }
  0x5f   : > { %359 = vst [vmem:[%s3663_s24 + $0x1cc] sm:$0xf] %v358_v51  ;;  %v360_v52 = vld [vmem:[%s3659_s23 + $0x3a0] sm:$0xf]  ;;  %v362_v53 = vld [vmem:[%s3659_s23 + $0x3a8] sm:$0xf] }
  0x60   : > { %v364_v54 = vld [vmem:[%s3659_s23 + $0x3b0] sm:$0xf]  ;;  %361 = vst [vmem:[%s3663_s24 + $0x1d0] sm:$0xf] %v360_v52  ;;  %363 = vst [vmem:[%s3663_s24 + $0x1d4] sm:$0xf] %v362_v53 }
  0x61   : > { %365 = vst [vmem:[%s3663_s24 + $0x1d8] sm:$0xf] %v364_v54  ;;  %v366_v55 = vld [vmem:[%s3659_s23 + $0x3b8] sm:$0xf]  ;;  %v368_v56 = vld [vmem:[%s3659_s23 + $0x3c0] sm:$0xf] }
  0x62   : > { %v370_v57 = vld [vmem:[%s3659_s23 + $0x3c8] sm:$0xf]  ;;  %367 = vst [vmem:[%s3663_s24 + $0x1dc] sm:$0xf] %v366_v55  ;;  %369 = vst [vmem:[%s3663_s24 + $0x1e0] sm:$0xf] %v368_v56 }
  0x63   : > { %371 = vst [vmem:[%s3663_s24 + $0x1e4] sm:$0xf] %v370_v57  ;;  %v372_v58 = vld [vmem:[%s3659_s23 + $0x3d0] sm:$0xf]  ;;  %v374_v59 = vld [vmem:[%s3659_s23 + $0x3d8] sm:$0xf] }
  0x64   : > { %v376_v60 = vld [vmem:[%s3659_s23 + $0x3e0] sm:$0xf]  ;;  %373 = vst [vmem:[%s3663_s24 + $0x1e8] sm:$0xf] %v372_v58  ;;  %375 = vst [vmem:[%s3663_s24 + $0x1ec] sm:$0xf] %v374_v59 }
  0x65   : > { %377 = vst [vmem:[%s3663_s24 + $0x1f0] sm:$0xf] %v376_v60  ;;  %v378_v61 = vld [vmem:[%s3659_s23 + $0x3e8] sm:$0xf]  ;;  %v380_v62 = vld [vmem:[%s3659_s23 + $0x3f0] sm:$0xf] }
  0x66   : > { %v382_v63 = vld [vmem:[%s3659_s23 + $0x3f8] sm:$0xf]  ;;  %379 = vst [vmem:[%s3663_s24 + $0x1f4] sm:$0xf] %v378_v61  ;;  %381 = vst [vmem:[%s3663_s24 + $0x1f8] sm:$0xf] %v380_v62 }
  0x67   : > { %383 = vst [vmem:[%s3663_s24 + $0x1fc] sm:$0xf] %v382_v63  ;;  %v384_v0 = vld [vmem:[%s3659_s23 + $0x400] sm:$0xf]  ;;  %v386_v1 = vld [vmem:[%s3659_s23 + $0x408] sm:$0xf] }
  0x68   : > { %v388_v2 = vld [vmem:[%s3659_s23 + $0x410] sm:$0xf]  ;;  %385 = vst [vmem:[%s3663_s24 + $0x200] sm:$0xf] %v384_v0  ;;  %387 = vst [vmem:[%s3663_s24 + $0x204] sm:$0xf] %v386_v1 }
  0x69   : > { %389 = vst [vmem:[%s3663_s24 + $0x208] sm:$0xf] %v388_v2  ;;  %v390_v3 = vld [vmem:[%s3659_s23 + $0x418] sm:$0xf]  ;;  %v392_v4 = vld [vmem:[%s3659_s23 + $0x420] sm:$0xf] }
  0x6a   : > { %v394_v5 = vld [vmem:[%s3659_s23 + $0x428] sm:$0xf]  ;;  %391 = vst [vmem:[%s3663_s24 + $0x20c] sm:$0xf] %v390_v3  ;;  %393 = vst [vmem:[%s3663_s24 + $0x210] sm:$0xf] %v392_v4 }
  0x6b   : > { %395 = vst [vmem:[%s3663_s24 + $0x214] sm:$0xf] %v394_v5  ;;  %v396_v6 = vld [vmem:[%s3659_s23 + $0x430] sm:$0xf]  ;;  %v398_v7 = vld [vmem:[%s3659_s23 + $0x438] sm:$0xf] }
  0x6c   : > { %v400_v8 = vld [vmem:[%s3659_s23 + $0x440] sm:$0xf]  ;;  %397 = vst [vmem:[%s3663_s24 + $0x218] sm:$0xf] %v396_v6  ;;  %399 = vst [vmem:[%s3663_s24 + $0x21c] sm:$0xf] %v398_v7 }
  0x6d   : > { %401 = vst [vmem:[%s3663_s24 + $0x220] sm:$0xf] %v400_v8  ;;  %v402_v9 = vld [vmem:[%s3659_s23 + $0x448] sm:$0xf]  ;;  %v404_v10 = vld [vmem:[%s3659_s23 + $0x450] sm:$0xf] }
  0x6e   : > { %v406_v11 = vld [vmem:[%s3659_s23 + $0x458] sm:$0xf]  ;;  %403 = vst [vmem:[%s3663_s24 + $0x224] sm:$0xf] %v402_v9  ;;  %405 = vst [vmem:[%s3663_s24 + $0x228] sm:$0xf] %v404_v10 }
  0x6f   : > { %407 = vst [vmem:[%s3663_s24 + $0x22c] sm:$0xf] %v406_v11  ;;  %v408_v12 = vld [vmem:[%s3659_s23 + $0x460] sm:$0xf]  ;;  %v410_v13 = vld [vmem:[%s3659_s23 + $0x468] sm:$0xf] }
  0x70   : > { %v412_v14 = vld [vmem:[%s3659_s23 + $0x470] sm:$0xf]  ;;  %409 = vst [vmem:[%s3663_s24 + $0x230] sm:$0xf] %v408_v12  ;;  %411 = vst [vmem:[%s3663_s24 + $0x234] sm:$0xf] %v410_v13 }
  0x71   : > { %413 = vst [vmem:[%s3663_s24 + $0x238] sm:$0xf] %v412_v14  ;;  %v414_v15 = vld [vmem:[%s3659_s23 + $0x478] sm:$0xf]  ;;  %v416_v16 = vld [vmem:[%s3659_s23 + $0x480] sm:$0xf] }
  0x72   : > { %v418_v17 = vld [vmem:[%s3659_s23 + $0x488] sm:$0xf]  ;;  %415 = vst [vmem:[%s3663_s24 + $0x23c] sm:$0xf] %v414_v15  ;;  %417 = vst [vmem:[%s3663_s24 + $0x240] sm:$0xf] %v416_v16 }
  0x73   : > { %419 = vst [vmem:[%s3663_s24 + $0x244] sm:$0xf] %v418_v17  ;;  %v420_v18 = vld [vmem:[%s3659_s23 + $0x490] sm:$0xf]  ;;  %v422_v19 = vld [vmem:[%s3659_s23 + $0x498] sm:$0xf] }
  0x74   : > { %v424_v20 = vld [vmem:[%s3659_s23 + $0x4a0] sm:$0xf]  ;;  %421 = vst [vmem:[%s3663_s24 + $0x248] sm:$0xf] %v420_v18  ;;  %423 = vst [vmem:[%s3663_s24 + $0x24c] sm:$0xf] %v422_v19 }
  0x75   : > { %425 = vst [vmem:[%s3663_s24 + $0x250] sm:$0xf] %v424_v20  ;;  %v426_v21 = vld [vmem:[%s3659_s23 + $0x4a8] sm:$0xf]  ;;  %v428_v22 = vld [vmem:[%s3659_s23 + $0x4b0] sm:$0xf] }
  0x76   : > { %v430_v23 = vld [vmem:[%s3659_s23 + $0x4b8] sm:$0xf]  ;;  %427 = vst [vmem:[%s3663_s24 + $0x254] sm:$0xf] %v426_v21  ;;  %429 = vst [vmem:[%s3663_s24 + $0x258] sm:$0xf] %v428_v22 }
  0x77   : > { %431 = vst [vmem:[%s3663_s24 + $0x25c] sm:$0xf] %v430_v23  ;;  %v432_v24 = vld [vmem:[%s3659_s23 + $0x4c0] sm:$0xf]  ;;  %v434_v25 = vld [vmem:[%s3659_s23 + $0x4c8] sm:$0xf] }
  0x78   : > { %v436_v26 = vld [vmem:[%s3659_s23 + $0x4d0] sm:$0xf]  ;;  %433 = vst [vmem:[%s3663_s24 + $0x260] sm:$0xf] %v432_v24  ;;  %435 = vst [vmem:[%s3663_s24 + $0x264] sm:$0xf] %v434_v25 }
  0x79   : > { %437 = vst [vmem:[%s3663_s24 + $0x268] sm:$0xf] %v436_v26  ;;  %v438_v27 = vld [vmem:[%s3659_s23 + $0x4d8] sm:$0xf]  ;;  %v440_v28 = vld [vmem:[%s3659_s23 + $0x4e0] sm:$0xf] }
  0x7a   : > { %v442_v29 = vld [vmem:[%s3659_s23 + $0x4e8] sm:$0xf]  ;;  %439 = vst [vmem:[%s3663_s24 + $0x26c] sm:$0xf] %v438_v27  ;;  %441 = vst [vmem:[%s3663_s24 + $0x270] sm:$0xf] %v440_v28 }
  0x7b   : > { %443 = vst [vmem:[%s3663_s24 + $0x274] sm:$0xf] %v442_v29  ;;  %v444_v30 = vld [vmem:[%s3659_s23 + $0x4f0] sm:$0xf]  ;;  %v446_v31 = vld [vmem:[%s3659_s23 + $0x4f8] sm:$0xf] }
  0x7c   : > { %v448_v32 = vld [vmem:[%s3659_s23 + $0x500] sm:$0xf]  ;;  %445 = vst [vmem:[%s3663_s24 + $0x278] sm:$0xf] %v444_v30  ;;  %447 = vst [vmem:[%s3663_s24 + $0x27c] sm:$0xf] %v446_v31 }
  0x7d   : > { %449 = vst [vmem:[%s3663_s24 + $0x280] sm:$0xf] %v448_v32  ;;  %v450_v33 = vld [vmem:[%s3659_s23 + $0x508] sm:$0xf]  ;;  %v452_v34 = vld [vmem:[%s3659_s23 + $0x510] sm:$0xf] }
  0x7e   : > { %v454_v35 = vld [vmem:[%s3659_s23 + $0x518] sm:$0xf]  ;;  %451 = vst [vmem:[%s3663_s24 + $0x284] sm:$0xf] %v450_v33  ;;  %453 = vst [vmem:[%s3663_s24 + $0x288] sm:$0xf] %v452_v34 }
  0x7f   : > { %455 = vst [vmem:[%s3663_s24 + $0x28c] sm:$0xf] %v454_v35  ;;  %v456_v36 = vld [vmem:[%s3659_s23 + $0x520] sm:$0xf]  ;;  %v458_v37 = vld [vmem:[%s3659_s23 + $0x528] sm:$0xf] }
  0x80   : > { %v460_v38 = vld [vmem:[%s3659_s23 + $0x530] sm:$0xf]  ;;  %457 = vst [vmem:[%s3663_s24 + $0x290] sm:$0xf] %v456_v36  ;;  %459 = vst [vmem:[%s3663_s24 + $0x294] sm:$0xf] %v458_v37 }
  0x81   : > { %461 = vst [vmem:[%s3663_s24 + $0x298] sm:$0xf] %v460_v38  ;;  %v462_v39 = vld [vmem:[%s3659_s23 + $0x538] sm:$0xf]  ;;  %v464_v40 = vld [vmem:[%s3659_s23 + $0x540] sm:$0xf] }
  0x82   : > { %v466_v41 = vld [vmem:[%s3659_s23 + $0x548] sm:$0xf]  ;;  %463 = vst [vmem:[%s3663_s24 + $0x29c] sm:$0xf] %v462_v39  ;;  %465 = vst [vmem:[%s3663_s24 + $0x2a0] sm:$0xf] %v464_v40 }
  0x83   : > { %467 = vst [vmem:[%s3663_s24 + $0x2a4] sm:$0xf] %v466_v41  ;;  %v468_v42 = vld [vmem:[%s3659_s23 + $0x550] sm:$0xf]  ;;  %v470_v43 = vld [vmem:[%s3659_s23 + $0x558] sm:$0xf] }
  0x84   : > { %v472_v44 = vld [vmem:[%s3659_s23 + $0x560] sm:$0xf]  ;;  %469 = vst [vmem:[%s3663_s24 + $0x2a8] sm:$0xf] %v468_v42  ;;  %471 = vst [vmem:[%s3663_s24 + $0x2ac] sm:$0xf] %v470_v43 }
  0x85   : > { %473 = vst [vmem:[%s3663_s24 + $0x2b0] sm:$0xf] %v472_v44  ;;  %v474_v45 = vld [vmem:[%s3659_s23 + $0x568] sm:$0xf]  ;;  %v476_v46 = vld [vmem:[%s3659_s23 + $0x570] sm:$0xf] }
  0x86   : > { %v478_v47 = vld [vmem:[%s3659_s23 + $0x578] sm:$0xf]  ;;  %475 = vst [vmem:[%s3663_s24 + $0x2b4] sm:$0xf] %v474_v45  ;;  %477 = vst [vmem:[%s3663_s24 + $0x2b8] sm:$0xf] %v476_v46 }
  0x87   : > { %479 = vst [vmem:[%s3663_s24 + $0x2bc] sm:$0xf] %v478_v47  ;;  %v480_v48 = vld [vmem:[%s3659_s23 + $0x580] sm:$0xf]  ;;  %v482_v49 = vld [vmem:[%s3659_s23 + $0x588] sm:$0xf] }
  0x88   : > { %v484_v50 = vld [vmem:[%s3659_s23 + $0x590] sm:$0xf]  ;;  %481 = vst [vmem:[%s3663_s24 + $0x2c0] sm:$0xf] %v480_v48  ;;  %483 = vst [vmem:[%s3663_s24 + $0x2c4] sm:$0xf] %v482_v49 }
  0x89   : > { %485 = vst [vmem:[%s3663_s24 + $0x2c8] sm:$0xf] %v484_v50  ;;  %v486_v51 = vld [vmem:[%s3659_s23 + $0x598] sm:$0xf]  ;;  %v488_v52 = vld [vmem:[%s3659_s23 + $0x5a0] sm:$0xf] }
  0x8a   : > { %v490_v53 = vld [vmem:[%s3659_s23 + $0x5a8] sm:$0xf]  ;;  %487 = vst [vmem:[%s3663_s24 + $0x2cc] sm:$0xf] %v486_v51  ;;  %489 = vst [vmem:[%s3663_s24 + $0x2d0] sm:$0xf] %v488_v52 }
  0x8b   : > { %491 = vst [vmem:[%s3663_s24 + $0x2d4] sm:$0xf] %v490_v53  ;;  %v492_v54 = vld [vmem:[%s3659_s23 + $0x5b0] sm:$0xf]  ;;  %v494_v55 = vld [vmem:[%s3659_s23 + $0x5b8] sm:$0xf] }
  0x8c   : > { %v496_v56 = vld [vmem:[%s3659_s23 + $0x5c0] sm:$0xf]  ;;  %493 = vst [vmem:[%s3663_s24 + $0x2d8] sm:$0xf] %v492_v54  ;;  %495 = vst [vmem:[%s3663_s24 + $0x2dc] sm:$0xf] %v494_v55 }
  0x8d   : > { %497 = vst [vmem:[%s3663_s24 + $0x2e0] sm:$0xf] %v496_v56  ;;  %v498_v57 = vld [vmem:[%s3659_s23 + $0x5c8] sm:$0xf]  ;;  %v500_v58 = vld [vmem:[%s3659_s23 + $0x5d0] sm:$0xf] }
  0x8e   : > { %v502_v59 = vld [vmem:[%s3659_s23 + $0x5d8] sm:$0xf]  ;;  %499 = vst [vmem:[%s3663_s24 + $0x2e4] sm:$0xf] %v498_v57  ;;  %501 = vst [vmem:[%s3663_s24 + $0x2e8] sm:$0xf] %v500_v58 }
  0x8f   : > { %503 = vst [vmem:[%s3663_s24 + $0x2ec] sm:$0xf] %v502_v59  ;;  %v504_v60 = vld [vmem:[%s3659_s23 + $0x5e0] sm:$0xf]  ;;  %v506_v61 = vld [vmem:[%s3659_s23 + $0x5e8] sm:$0xf] }
  0x90   : > { %v508_v62 = vld [vmem:[%s3659_s23 + $0x5f0] sm:$0xf]  ;;  %505 = vst [vmem:[%s3663_s24 + $0x2f0] sm:$0xf] %v504_v60  ;;  %507 = vst [vmem:[%s3663_s24 + $0x2f4] sm:$0xf] %v506_v61 }
  0x91   : > { %509 = vst [vmem:[%s3663_s24 + $0x2f8] sm:$0xf] %v508_v62  ;;  %v510_v63 = vld [vmem:[%s3659_s23 + $0x5f8] sm:$0xf]  ;;  %v512_v0 = vld [vmem:[%s3659_s23 + $0x600] sm:$0xf] }
  0x92   : > { %v514_v1 = vld [vmem:[%s3659_s23 + $0x608] sm:$0xf]  ;;  %511 = vst [vmem:[%s3663_s24 + $0x2fc] sm:$0xf] %v510_v63  ;;  %513 = vst [vmem:[%s3663_s24 + $0x300] sm:$0xf] %v512_v0 }
  0x93   : > { %515 = vst [vmem:[%s3663_s24 + $0x304] sm:$0xf] %v514_v1  ;;  %v516_v2 = vld [vmem:[%s3659_s23 + $0x610] sm:$0xf]  ;;  %v518_v3 = vld [vmem:[%s3659_s23 + $0x618] sm:$0xf] }
  0x94   : > { %v520_v4 = vld [vmem:[%s3659_s23 + $0x620] sm:$0xf]  ;;  %517 = vst [vmem:[%s3663_s24 + $0x308] sm:$0xf] %v516_v2  ;;  %519 = vst [vmem:[%s3663_s24 + $0x30c] sm:$0xf] %v518_v3 }
  0x95   : > { %521 = vst [vmem:[%s3663_s24 + $0x310] sm:$0xf] %v520_v4  ;;  %v522_v5 = vld [vmem:[%s3659_s23 + $0x628] sm:$0xf]  ;;  %v524_v6 = vld [vmem:[%s3659_s23 + $0x630] sm:$0xf] }
  0x96   : > { %v526_v7 = vld [vmem:[%s3659_s23 + $0x638] sm:$0xf]  ;;  %523 = vst [vmem:[%s3663_s24 + $0x314] sm:$0xf] %v522_v5  ;;  %525 = vst [vmem:[%s3663_s24 + $0x318] sm:$0xf] %v524_v6 }
  0x97   : > { %527 = vst [vmem:[%s3663_s24 + $0x31c] sm:$0xf] %v526_v7  ;;  %v528_v8 = vld [vmem:[%s3659_s23 + $0x640] sm:$0xf]  ;;  %v530_v9 = vld [vmem:[%s3659_s23 + $0x648] sm:$0xf] }
  0x98   : > { %v532_v10 = vld [vmem:[%s3659_s23 + $0x650] sm:$0xf]  ;;  %529 = vst [vmem:[%s3663_s24 + $0x320] sm:$0xf] %v528_v8  ;;  %531 = vst [vmem:[%s3663_s24 + $0x324] sm:$0xf] %v530_v9 }
  0x99   : > { %533 = vst [vmem:[%s3663_s24 + $0x328] sm:$0xf] %v532_v10  ;;  %v534_v11 = vld [vmem:[%s3659_s23 + $0x658] sm:$0xf]  ;;  %v536_v12 = vld [vmem:[%s3659_s23 + $0x660] sm:$0xf] }
  0x9a   : > { %v538_v13 = vld [vmem:[%s3659_s23 + $0x668] sm:$0xf]  ;;  %535 = vst [vmem:[%s3663_s24 + $0x32c] sm:$0xf] %v534_v11  ;;  %537 = vst [vmem:[%s3663_s24 + $0x330] sm:$0xf] %v536_v12 }
  0x9b   : > { %539 = vst [vmem:[%s3663_s24 + $0x334] sm:$0xf] %v538_v13  ;;  %v540_v14 = vld [vmem:[%s3659_s23 + $0x670] sm:$0xf]  ;;  %v542_v15 = vld [vmem:[%s3659_s23 + $0x678] sm:$0xf] }
  0x9c   : > { %v544_v16 = vld [vmem:[%s3659_s23 + $0x680] sm:$0xf]  ;;  %541 = vst [vmem:[%s3663_s24 + $0x338] sm:$0xf] %v540_v14  ;;  %543 = vst [vmem:[%s3663_s24 + $0x33c] sm:$0xf] %v542_v15 }
  0x9d   : > { %545 = vst [vmem:[%s3663_s24 + $0x340] sm:$0xf] %v544_v16  ;;  %v546_v17 = vld [vmem:[%s3659_s23 + $0x688] sm:$0xf]  ;;  %v548_v18 = vld [vmem:[%s3659_s23 + $0x690] sm:$0xf] }
  0x9e   : > { %v550_v19 = vld [vmem:[%s3659_s23 + $0x698] sm:$0xf]  ;;  %547 = vst [vmem:[%s3663_s24 + $0x344] sm:$0xf] %v546_v17  ;;  %549 = vst [vmem:[%s3663_s24 + $0x348] sm:$0xf] %v548_v18 }
  0x9f   : > { %551 = vst [vmem:[%s3663_s24 + $0x34c] sm:$0xf] %v550_v19  ;;  %v552_v20 = vld [vmem:[%s3659_s23 + $0x6a0] sm:$0xf]  ;;  %v554_v21 = vld [vmem:[%s3659_s23 + $0x6a8] sm:$0xf] }
  0xa0   : > { %v556_v22 = vld [vmem:[%s3659_s23 + $0x6b0] sm:$0xf]  ;;  %553 = vst [vmem:[%s3663_s24 + $0x350] sm:$0xf] %v552_v20  ;;  %555 = vst [vmem:[%s3663_s24 + $0x354] sm:$0xf] %v554_v21 }
  0xa1   : > { %557 = vst [vmem:[%s3663_s24 + $0x358] sm:$0xf] %v556_v22  ;;  %v558_v23 = vld [vmem:[%s3659_s23 + $0x6b8] sm:$0xf]  ;;  %v560_v24 = vld [vmem:[%s3659_s23 + $0x6c0] sm:$0xf] }
  0xa2   : > { %v562_v25 = vld [vmem:[%s3659_s23 + $0x6c8] sm:$0xf]  ;;  %559 = vst [vmem:[%s3663_s24 + $0x35c] sm:$0xf] %v558_v23  ;;  %561 = vst [vmem:[%s3663_s24 + $0x360] sm:$0xf] %v560_v24 }
  0xa3   : > { %563 = vst [vmem:[%s3663_s24 + $0x364] sm:$0xf] %v562_v25  ;;  %v564_v26 = vld [vmem:[%s3659_s23 + $0x6d0] sm:$0xf]  ;;  %v566_v27 = vld [vmem:[%s3659_s23 + $0x6d8] sm:$0xf] }
  0xa4   : > { %v568_v28 = vld [vmem:[%s3659_s23 + $0x6e0] sm:$0xf]  ;;  %565 = vst [vmem:[%s3663_s24 + $0x368] sm:$0xf] %v564_v26  ;;  %567 = vst [vmem:[%s3663_s24 + $0x36c] sm:$0xf] %v566_v27 }
  0xa5   : > { %569 = vst [vmem:[%s3663_s24 + $0x370] sm:$0xf] %v568_v28  ;;  %v570_v29 = vld [vmem:[%s3659_s23 + $0x6e8] sm:$0xf]  ;;  %v572_v30 = vld [vmem:[%s3659_s23 + $0x6f0] sm:$0xf] }
  0xa6   : > { %v574_v31 = vld [vmem:[%s3659_s23 + $0x6f8] sm:$0xf]  ;;  %571 = vst [vmem:[%s3663_s24 + $0x374] sm:$0xf] %v570_v29  ;;  %573 = vst [vmem:[%s3663_s24 + $0x378] sm:$0xf] %v572_v30 }
  0xa7   : > { %575 = vst [vmem:[%s3663_s24 + $0x37c] sm:$0xf] %v574_v31  ;;  %v576_v32 = vld [vmem:[%s3659_s23 + $0x700] sm:$0xf]  ;;  %v578_v33 = vld [vmem:[%s3659_s23 + $0x708] sm:$0xf] }
  0xa8   : > { %v580_v34 = vld [vmem:[%s3659_s23 + $0x710] sm:$0xf]  ;;  %577 = vst [vmem:[%s3663_s24 + $0x380] sm:$0xf] %v576_v32  ;;  %579 = vst [vmem:[%s3663_s24 + $0x384] sm:$0xf] %v578_v33 }
  0xa9   : > { %581 = vst [vmem:[%s3663_s24 + $0x388] sm:$0xf] %v580_v34  ;;  %v582_v35 = vld [vmem:[%s3659_s23 + $0x718] sm:$0xf]  ;;  %v584_v36 = vld [vmem:[%s3659_s23 + $0x720] sm:$0xf] }
  0xaa   : > { %v586_v37 = vld [vmem:[%s3659_s23 + $0x728] sm:$0xf]  ;;  %583 = vst [vmem:[%s3663_s24 + $0x38c] sm:$0xf] %v582_v35  ;;  %585 = vst [vmem:[%s3663_s24 + $0x390] sm:$0xf] %v584_v36 }
  0xab   : > { %587 = vst [vmem:[%s3663_s24 + $0x394] sm:$0xf] %v586_v37  ;;  %v588_v38 = vld [vmem:[%s3659_s23 + $0x730] sm:$0xf]  ;;  %v590_v39 = vld [vmem:[%s3659_s23 + $0x738] sm:$0xf] }
  0xac   : > { %v592_v40 = vld [vmem:[%s3659_s23 + $0x740] sm:$0xf]  ;;  %589 = vst [vmem:[%s3663_s24 + $0x398] sm:$0xf] %v588_v38  ;;  %591 = vst [vmem:[%s3663_s24 + $0x39c] sm:$0xf] %v590_v39 }
  0xad   : > { %593 = vst [vmem:[%s3663_s24 + $0x3a0] sm:$0xf] %v592_v40  ;;  %v594_v41 = vld [vmem:[%s3659_s23 + $0x748] sm:$0xf]  ;;  %v596_v42 = vld [vmem:[%s3659_s23 + $0x750] sm:$0xf] }
  0xae   : > { %v598_v43 = vld [vmem:[%s3659_s23 + $0x758] sm:$0xf]  ;;  %595 = vst [vmem:[%s3663_s24 + $0x3a4] sm:$0xf] %v594_v41  ;;  %597 = vst [vmem:[%s3663_s24 + $0x3a8] sm:$0xf] %v596_v42 }
  0xaf   : > { %599 = vst [vmem:[%s3663_s24 + $0x3ac] sm:$0xf] %v598_v43  ;;  %v600_v44 = vld [vmem:[%s3659_s23 + $0x760] sm:$0xf]  ;;  %v602_v45 = vld [vmem:[%s3659_s23 + $0x768] sm:$0xf] }
  0xb0   : > { %v604_v46 = vld [vmem:[%s3659_s23 + $0x770] sm:$0xf]  ;;  %601 = vst [vmem:[%s3663_s24 + $0x3b0] sm:$0xf] %v600_v44  ;;  %603 = vst [vmem:[%s3663_s24 + $0x3b4] sm:$0xf] %v602_v45 }
  0xb1   : > { %605 = vst [vmem:[%s3663_s24 + $0x3b8] sm:$0xf] %v604_v46  ;;  %v606_v47 = vld [vmem:[%s3659_s23 + $0x778] sm:$0xf]  ;;  %v608_v48 = vld [vmem:[%s3659_s23 + $0x780] sm:$0xf] }
  0xb2   : > { %v610_v49 = vld [vmem:[%s3659_s23 + $0x788] sm:$0xf]  ;;  %607 = vst [vmem:[%s3663_s24 + $0x3bc] sm:$0xf] %v606_v47  ;;  %609 = vst [vmem:[%s3663_s24 + $0x3c0] sm:$0xf] %v608_v48 }
  0xb3   : > { %611 = vst [vmem:[%s3663_s24 + $0x3c4] sm:$0xf] %v610_v49  ;;  %v612_v50 = vld [vmem:[%s3659_s23 + $0x790] sm:$0xf]  ;;  %v614_v51 = vld [vmem:[%s3659_s23 + $0x798] sm:$0xf] }
  0xb4   : > { %v616_v52 = vld [vmem:[%s3659_s23 + $0x7a0] sm:$0xf]  ;;  %613 = vst [vmem:[%s3663_s24 + $0x3c8] sm:$0xf] %v612_v50  ;;  %615 = vst [vmem:[%s3663_s24 + $0x3cc] sm:$0xf] %v614_v51 }
  0xb5   : > { %617 = vst [vmem:[%s3663_s24 + $0x3d0] sm:$0xf] %v616_v52  ;;  %v618_v53 = vld [vmem:[%s3659_s23 + $0x7a8] sm:$0xf]  ;;  %v620_v54 = vld [vmem:[%s3659_s23 + $0x7b0] sm:$0xf] }
  0xb6   : > { %v622_v55 = vld [vmem:[%s3659_s23 + $0x7b8] sm:$0xf]  ;;  %619 = vst [vmem:[%s3663_s24 + $0x3d4] sm:$0xf] %v618_v53  ;;  %621 = vst [vmem:[%s3663_s24 + $0x3d8] sm:$0xf] %v620_v54 }
  0xb7   : > { %623 = vst [vmem:[%s3663_s24 + $0x3dc] sm:$0xf] %v622_v55  ;;  %v624_v56 = vld [vmem:[%s3659_s23 + $0x7c0] sm:$0xf]  ;;  %v626_v57 = vld [vmem:[%s3659_s23 + $0x7c8] sm:$0xf] }
  0xb8   : > { %v628_v58 = vld [vmem:[%s3659_s23 + $0x7d0] sm:$0xf]  ;;  %625 = vst [vmem:[%s3663_s24 + $0x3e0] sm:$0xf] %v624_v56  ;;  %627 = vst [vmem:[%s3663_s24 + $0x3e4] sm:$0xf] %v626_v57 }
  0xb9   : > { %629 = vst [vmem:[%s3663_s24 + $0x3e8] sm:$0xf] %v628_v58  ;;  %v630_v59 = vld [vmem:[%s3659_s23 + $0x7d8] sm:$0xf]  ;;  %v632_v60 = vld [vmem:[%s3659_s23 + $0x7e0] sm:$0xf] }
  0xba   : > { %v634_v61 = vld [vmem:[%s3659_s23 + $0x7e8] sm:$0xf]  ;;  %631 = vst [vmem:[%s3663_s24 + $0x3ec] sm:$0xf] %v630_v59  ;;  %633 = vst [vmem:[%s3663_s24 + $0x3f0] sm:$0xf] %v632_v60 }
  0xbb   : > { %635 = vst [vmem:[%s3663_s24 + $0x3f4] sm:$0xf] %v634_v61  ;;  %v636_v62 = vld [vmem:[%s3659_s23 + $0x7f0] sm:$0xf]  ;;  %v638_v63 = vld [vmem:[%s3659_s23 + $0x7f8] sm:$0xf] }
  0xbc   : > { %637 = vst [vmem:[%s3663_s24 + $0x3f8] sm:$0xf] %v636_v62  ;;  %639 = vst [vmem:[%s3663_s24 + $0x3fc] sm:$0xf] %v638_v63 }
  0xbd PF: > { %p3014_p7 = scmp.ge.s32.totalorder %s3602_s11, 1  ;;  %p1174_p8 = scmp.lt.s32.totalorder %s3602_s11, 3 }
  0xbf   : > { %p1175_p9 = pnand %p3014_p7, %p1174_p8 }
  0xc0   : > { %s1181_s25 = sand.u32 (!%p1175_p9), 1, %s3594_s9  }
  0xc1   : > { %1178 = sbr.rel (%p1175_p9) target bundleno = 609 (0x261), region = 65  ;;  %s3015_s4 = sshll.u32 (!%p1175_p9), %s1181_s25, 10 }
  0xc2   : > { %s4204_s7 = scalar_lea.vmem (!%p1175_p9), [#allocation2], %s3015_s4  ;;  %s3016_s5 = sshll.u32 (!%p1175_p9), %s1181_s25, 4 }
  0xc3   : > { %s1200_s6 = scalar_lea.vmem (!%p1175_p9), [#allocation3], %s3016_s5 }
  0xc6   : > { %v4181_v0 = vld [vmem:[%s4441_s0] sm:$0xff]  ;;  %v4191_v2 = vld [vmem:[%s4441_s0 + $0x8] sm:$0xff]  ;;  %v3448_v6 = vld [vmem:[%s4204_s7 + $0x78] sm:$0xff]   ;;  %s3182_s8 = sshll.u32 (%p3649_p5), %s3008_s12, 2 }
  0xc7   : > { %v4186_v1 = vld [vmem:[%s4441_s0 + $0x40] sm:$0xff]  ;;  %v4200_v4 = vld [vmem:[%s4441_s0 + $0x48] sm:$0xff]  ;;  %v3449_v7 = vld [vmem:[%s4204_s7 + $0xf8] sm:$0xff]   ;;  %3200 = vmatprep.subr.bf16.mxu0 %v3448_v6  ;;  %s2898_s14 = scalar_lea.vmem (%p3649_p5), %s4443_s2, %s3182_s8 }
  0xc8   : > { %v3018_v3 = vcombine.high %v4181_v0, %v4186_v1  ;;  %v3020_v5 = vcombine.high %v4191_v2, %v4200_v4  ;;  %v3450_v8 = vld [vmem:[%s4204_s7 + $0x38] sm:$0xff]   ;;  %3228 = vmatprep.subr.bf16.mxu1 %v3449_v7  ;;  %v3452_v10 = vld [vmem:[%s4204_s7 + $0x70] sm:$0xff]   ;;  %v3456_v14 = vld [vmem:[%s4204_s7 + $0x68] sm:$0xff]   ;;  %v3017_v42 = vcombine.low %v4181_v0, %v4186_v1  ;;  %v3019_v43 = vcombine.low %v4191_v2, %v4200_v4 }
  0xc9   : > { %v3451_v9 = vld [vmem:[%s4204_s7 + $0xb8] sm:$0xff]   ;;  %3201 = vmatpush3.bf16.msra.mxu0 %v3450_v8  ;;  %v3453_v11 = vld [vmem:[%s4204_s7 + $0xf0] sm:$0xff]   ;;  %v3457_v15 = vld [vmem:[%s4204_s7 + $0xe8] sm:$0xff]  }
  0xca   : > { %2450 = vmatprep.mubr.bf16.mxu0 %v3018_v3  ;;  %2499 = vmatprep.mubr.bf16.mxu1 %v3020_v5  ;;  %v3454_v12 = vld [vmem:[%s4204_s7 + $0x30] sm:$0xff]   ;;  %v3458_v16 = vld [vmem:[%s4204_s7 + $0x28] sm:$0xff]   ;;  %v3460_v18 = vld [vmem:[%s4204_s7 + $0x60] sm:$0xff]  }
  0xcb   : > { %3229 = vmatpush3.bf16.msra.mxu1 %v3451_v9  ;;  %3202 = vmatprep.subr.bf16.mxu0 %v3452_v10  ;;  %v3455_v13 = vld [vmem:[%s4204_s7 + $0xb0] sm:$0xff]   ;;  %v3459_v17 = vld [vmem:[%s4204_s7 + $0xa8] sm:$0xff]   ;;  %v3461_v19 = vld [vmem:[%s4204_s7 + $0xe0] sm:$0xff]  }
  0xcc   : > { %3230 = vmatprep.subr.bf16.mxu1 %v3453_v11  ;;  %v3462_v20 = vld [vmem:[%s4204_s7 + $0x20] sm:$0xff]   ;;  %v3464_v22 = vld [vmem:[%s4204_s7 + $0x58] sm:$0xff]   ;;  %v3468_v26 = vld [vmem:[%s4204_s7 + $0x50] sm:$0xff]  }
  0xcd   : > { %3203 = vmatpush3.bf16.msra.mxu0 %v3454_v12  ;;  %v3463_v21 = vld [vmem:[%s4204_s7 + $0xa0] sm:$0xff]   ;;  %v3465_v23 = vld [vmem:[%s4204_s7 + $0xd8] sm:$0xff]   ;;  %v3469_v27 = vld [vmem:[%s4204_s7 + $0xd0] sm:$0xff]  }
  0xce   : > { %3204 = vmatprep.subr.bf16.mxu0 %v3456_v14  ;;  %v3466_v24 = vld [vmem:[%s4204_s7 + $0x18] sm:$0xff]   ;;  %v3470_v28 = vld [vmem:[%s4204_s7 + $0x10] sm:$0xff]   ;;  %v3472_v30 = vld [vmem:[%s4204_s7 + $0x48] sm:$0xff]  }
  0xcf   : > { %3231 = vmatpush3.bf16.msra.mxu1 %v3455_v13  ;;  %v3467_v25 = vld [vmem:[%s4204_s7 + $0x98] sm:$0xff]   ;;  %v3471_v29 = vld [vmem:[%s4204_s7 + $0x90] sm:$0xff]   ;;  %v3473_v31 = vld [vmem:[%s4204_s7 + $0xc8] sm:$0xff]  }
  0xd0   : > { %3232 = vmatprep.subr.bf16.mxu1 %v3457_v15  ;;  %v3474_v32 = vld [vmem:[%s4204_s7 + $0x8] sm:$0xff]   ;;  %v3476_v34 = vld [vmem:[%s4204_s7 + $0x40] sm:$0xff]   ;;  %v3480_v44 = vld [vmem:[%s4204_s7 + $0x178] sm:$0xff]  }
  0xd1   : > { %3205 = vmatpush3.bf16.msra.mxu0 %v3458_v16  ;;  %v3475_v33 = vld [vmem:[%s4204_s7 + $0x88] sm:$0xff]   ;;  %v1218_v35 = vld [vmem:[%s4441_s0 + $0x80] sm:$0xff]  ;;  %v3481_v45 = vld [vmem:[%s4204_s7 + $0x1f8] sm:$0xff]  }
  0xd2   : > { %3206 = vmatprep.subr.bf16.mxu0 %v3460_v18  ;;  %v1226_v36 = vld [vmem:[%s4441_s0 + $0xc0] sm:$0xff]  ;;  %v1219_v38 = vld [vmem:[%s4441_s0 + $0x88] sm:$0xff]  ;;  %v3482_v47 = vld [vmem:[%s4204_s7 + $0x138] sm:$0xff]  }
  0xd3   : > { %3233 = vmatpush3.bf16.msra.mxu1 %v3459_v17  ;;  %v3477_v37 = vld [vmem:[%s4204_s7 + $0xc0] sm:$0xff]   ;;  %v1227_v39 = vld [vmem:[%s4441_s0 + $0xc8] sm:$0xff]  ;;  %v3034_v46 = vcombine.high %v1218_v35, %v1226_v36  ;;  %v3483_v49 = vld [vmem:[%s4204_s7 + $0x1b8] sm:$0xff]   ;;  %v3033_v54 = vcombine.low %v1218_v35, %v1226_v36 }
  0xd4   : > { %3234 = vmatprep.subr.bf16.mxu1 %v3461_v19  ;;  %v3478_v40 = vld [vmem:[%s4204_s7] sm:$0xff]   ;;  %v3036_v48 = vcombine.high %v1219_v38, %v1227_v39  ;;  %v3484_v50 = vld [vmem:[%s4204_s7 + $0x170] sm:$0xff]   ;;  %v3488_v55 = vld [vmem:[%s4204_s7 + $0x168] sm:$0xff]   ;;  %v3035_v56 = vcombine.low %v1219_v38, %v1227_v39 }
  0xd5   : > { %3207 = vmatpush3.bf16.msra.mxu0 %v3462_v20  ;;  %v3479_v41 = vld [vmem:[%s4204_s7 + $0x80] sm:$0xff]   ;;  %v3485_v51 = vld [vmem:[%s4204_s7 + $0x1f0] sm:$0xff]   ;;  %v3489_v57 = vld [vmem:[%s4204_s7 + $0x1e8] sm:$0xff]  }
  0xd6   : > { %3208 = vmatprep.subr.bf16.mxu0 %v3464_v22  ;;  %v3486_v52 = vld [vmem:[%s4204_s7 + $0x130] sm:$0xff]   ;;  %v3490_v58 = vld [vmem:[%s4204_s7 + $0x128] sm:$0xff]   ;;  %v3492_v60 = vld [vmem:[%s4204_s7 + $0x160] sm:$0xff]  }
  0xd7   : > { %3235 = vmatpush3.bf16.msra.mxu1 %v3463_v21  ;;  %v3487_v53 = vld [vmem:[%s4204_s7 + $0x1b0] sm:$0xff]   ;;  %v3491_v59 = vld [vmem:[%s4204_s7 + $0x1a8] sm:$0xff]   ;;  %v3493_v61 = vld [vmem:[%s4204_s7 + $0x1e0] sm:$0xff]  }
  0xd8   : > { %3236 = vmatprep.subr.bf16.mxu1 %v3465_v23  ;;  %v3494_v62 = vld [vmem:[%s4204_s7 + $0x120] sm:$0xff]   ;;  %v3496_v0 = vld [vmem:[%s4204_s7 + $0x158] sm:$0xff]   ;;  %v3500_v4 = vld [vmem:[%s4204_s7 + $0x150] sm:$0xff]  }
  0xd9   : > { %3209 = vmatpush3.bf16.msra.mxu0 %v3466_v24  ;;  %v3495_v63 = vld [vmem:[%s4204_s7 + $0x1a0] sm:$0xff]   ;;  %v3497_v1 = vld [vmem:[%s4204_s7 + $0x1d8] sm:$0xff]   ;;  %v3501_v5 = vld [vmem:[%s4204_s7 + $0x1d0] sm:$0xff]  }
  0xda   : > { %3210 = vmatprep.subr.bf16.mxu0 %v3468_v26  ;;  %v3498_v2 = vld [vmem:[%s4204_s7 + $0x118] sm:$0xff]   ;;  %v3502_v6 = vld [vmem:[%s4204_s7 + $0x110] sm:$0xff]   ;;  %v3504_v8 = vld [vmem:[%s4204_s7 + $0x148] sm:$0xff]  }
  0xdb   : > { %3237 = vmatpush3.bf16.msra.mxu1 %v3467_v25  ;;  %v3499_v3 = vld [vmem:[%s4204_s7 + $0x198] sm:$0xff]   ;;  %v3503_v7 = vld [vmem:[%s4204_s7 + $0x190] sm:$0xff]   ;;  %v3505_v9 = vld [vmem:[%s4204_s7 + $0x1c8] sm:$0xff]  }
  0xdc   : > { %3238 = vmatprep.subr.bf16.mxu1 %v3469_v27  ;;  %v3506_v10 = vld [vmem:[%s4204_s7 + $0x108] sm:$0xff]   ;;  %v3508_v12 = vld [vmem:[%s4204_s7 + $0x140] sm:$0xff]   ;;  %v1204_v13 = vld [vmem:[%s4441_s0 + $0x10] sm:$0xff] }
  0xdd   : > { %3211 = vmatpush3.bf16.msra.mxu0 %v3470_v28  ;;  %v3507_v11 = vld [vmem:[%s4204_s7 + $0x188] sm:$0xff]   ;;  %v3509_v14 = vld [vmem:[%s4204_s7 + $0x1c0] sm:$0xff]   ;;  %v1212_v17 = vld [vmem:[%s4441_s0 + $0x50] sm:$0xff] }
  0xde   : > { %3212 = vmatprep.subr.bf16.mxu0 %v3472_v30  ;;  %v3510_v15 = vld [vmem:[%s4204_s7 + $0x100] sm:$0xff]   ;;  %v1205_v18 = vld [vmem:[%s4441_s0 + $0x18] sm:$0xff]  ;;  %v3021_v20 = vcombine.low %v1204_v13, %v1212_v17  ;;  %v3022_v21 = vcombine.high %v1204_v13, %v1212_v17  ;;  %v3516_v28 = vld [vmem:[%s4204_s7 + $0x270] sm:$0xff]  }
  0xdf   : > { %3239 = vmatpush3.bf16.msra.mxu1 %v3471_v29  ;;  %v3511_v16 = vld [vmem:[%s4204_s7 + $0x180] sm:$0xff]   ;;  %v1213_v19 = vld [vmem:[%s4441_s0 + $0x58] sm:$0xff]  ;;  %v3517_v29 = vld [vmem:[%s4204_s7 + $0x2f0] sm:$0xff]  }
  0xe0   : > { %3240 = vmatprep.subr.bf16.mxu1 %v3473_v31  ;;  %v3023_v22 = vcombine.low %v1205_v18, %v1213_v19  ;;  %v3024_v23 = vcombine.high %v1205_v18, %v1213_v19  ;;  %v3512_v24 = vld [vmem:[%s4204_s7 + $0x278] sm:$0xff]   ;;  %v3518_v30 = vld [vmem:[%s4204_s7 + $0x230] sm:$0xff]   ;;  %v3520_v36 = vld [vmem:[%s4204_s7 + $0x268] sm:$0xff]  }
  0xe1   : > { %3213 = vmatpush3.bf16.msra.mxu0 %v3474_v32  ;;  %v3513_v25 = vld [vmem:[%s4204_s7 + $0x2f8] sm:$0xff]   ;;  %v3519_v31 = vld [vmem:[%s4204_s7 + $0x2b0] sm:$0xff]   ;;  %v1230_v17 = vld [vmem:[%s4441_s0 + $0xe0] sm:$0xff] }
  0xe2   : > { %3214 = vmatprep.subr.bf16.mxu0 %v3476_v34  ;;  %v3514_v26 = vld [vmem:[%s4204_s7 + $0x238] sm:$0xff]   ;;  %v1220_v32 = vld [vmem:[%s4441_s0 + $0x90] sm:$0xff] }
  0xe3   : > { %3241 = vmatpush3.bf16.msra.mxu1 %v3475_v33  ;;  %v3515_v27 = vld [vmem:[%s4204_s7 + $0x2b8] sm:$0xff]   ;;  %v1228_v33 = vld [vmem:[%s4441_s0 + $0xd0] sm:$0xff] }
  0xe4   : > { %3242 = vmatprep.subr.bf16.mxu1 %v3477_v37  ;;  %v3038_v34 = vcombine.high %v1220_v32, %v1228_v33  ;;  %v3037_v35 = vcombine.low %v1220_v32, %v1228_v33  ;;  %v3521_v37 = vld [vmem:[%s4204_s7 + $0x2e8] sm:$0xff]   ;;  %v1221_v38 = vld [vmem:[%s4441_s0 + $0x98] sm:$0xff]  ;;  %v3549_v13 = vld [vmem:[%s4204_s7 + $0x3f0] sm:$0xff]  }
  0xe5   : > { %3215 = vmatpush3.bf16.msra.mxu0 %v3478_v40  ;;  %v1229_v39 = vld [vmem:[%s4441_s0 + $0xd8] sm:$0xff] }
  0xe6   : > { %3256 = vmatprep.subr.bf16.mxu0 %v3480_v44  ;;  %v3040_v40 = vcombine.high %v1221_v38, %v1229_v39  ;;  %v3524_v44 = vld [vmem:[%s4204_s7 + $0x260] sm:$0xff]   ;;  %v3560_v32 = vld [vmem:[%s4204_s7 + $0x358] sm:$0xff]  }
  0xe7   : > { %3243 = vmatpush3.bf16.msra.mxu1 %v3479_v41  ;;  %v3522_v41 = vld [vmem:[%s4204_s7 + $0x228] sm:$0xff]   ;;  %v3561_v33 = vld [vmem:[%s4204_s7 + $0x3d8] sm:$0xff]  }
  0xe8   : > { %2451 = vmatmul.mubr.bf16.vlgmr.msra.gmra.mxu0 %v3017_v42  ;;  %3284 = vmatprep.subr.bf16.mxu1 %v3481_v45  ;;  %v3039_v42 = vcombine.low %v1221_v38, %v1229_v39  ;;  %v3525_v45 = vld [vmem:[%s4204_s7 + $0x2e0] sm:$0xff]   ;;  %v3566_v38 = vld [vmem:[%s4204_s7 + $0x310] sm:$0xff]  }
  0xe9   : > { %3257 = vmatpush3.bf16.msra.mxu0 %v3482_v47  ;;  %2458 = vmatprep.mubr.bf16.mxu0 %v3034_v46  ;;  %v3526_v46 = vld [vmem:[%s4204_s7 + $0x220] sm:$0xff]   ;;  %v3567_v39 = vld [vmem:[%s4204_s7 + $0x390] sm:$0xff]  }
  0xea   : > { %2500 = vmatmul.mubr.bf16.vlgmr.msra.gmra.mxu1 %v3019_v43  ;;  %3258 = vmatprep.subr.bf16.mxu0 %v3484_v50  ;;  %v3523_v43 = vld [vmem:[%s4204_s7 + $0x2a8] sm:$0xff]   ;;  %v3527_v47 = vld [vmem:[%s4204_s7 + $0x2a0] sm:$0xff]   ;;  %v3530_v50 = vld [vmem:[%s4204_s7 + $0x218] sm:$0xff]  }
  0xeb   : > { %3285 = vmatpush3.bf16.msra.mxu1 %v3483_v49  ;;  %2507 = vmatprep.mubr.bf16.mxu1 %v3036_v48  ;;  %v3528_v48 = vld [vmem:[%s4204_s7 + $0x258] sm:$0xff]  }
  0xec   : > { %3286 = vmatprep.subr.bf16.mxu1 %v3485_v51  ;;  %v3529_v49 = vld [vmem:[%s4204_s7 + $0x2d8] sm:$0xff]  }
  0xed   : > { %3259 = vmatpush3.bf16.msra.mxu0 %v3486_v52  ;;  %v3531_v51 = vld [vmem:[%s4204_s7 + $0x298] sm:$0xff]   ;;  %v3532_v52 = vld [vmem:[%s4204_s7 + $0x250] sm:$0xff]  }
  0xee   : > { %3260 = vmatprep.subr.bf16.mxu0 %v3488_v55  ;;  %v3535_v55 = vld [vmem:[%s4204_s7 + $0x290] sm:$0xff]  }
  0xef   : > { %3287 = vmatpush3.bf16.msra.mxu1 %v3487_v53  ;;  %v3533_v53 = vld [vmem:[%s4204_s7 + $0x2d0] sm:$0xff]  }
  0xf0   : > { %3288 = vmatprep.subr.bf16.mxu1 %v3489_v57  ;;  %2459 = vmatmul.mubr.bf16.gmra.mxu0 %v3033_v54  ;;  %v3534_v54 = vld [vmem:[%s4204_s7 + $0x210] sm:$0xff]   ;;  %v3537_v57 = vld [vmem:[%s4204_s7 + $0x2c8] sm:$0xff]  }
  0xf1   : > { %3261 = vmatpush3.bf16.msra.mxu0 %v3490_v58  ;;  %2548 = vmatprep.mubr.bf16.mxu0 %v3022_v21  ;;  %v3538_v58 = vld [vmem:[%s4204_s7 + $0x208] sm:$0xff]  }
  0xf2   : > { %2508 = vmatmul.mubr.bf16.gmra.mxu1 %v3035_v56  ;;  %3262 = vmatprep.subr.bf16.mxu0 %v3492_v60  ;;  %v3536_v56 = vld [vmem:[%s4204_s7 + $0x248] sm:$0xff]   ;;  %v3540_v60 = vld [vmem:[%s4204_s7 + $0x240] sm:$0xff]  }
  0xf3   : > { %3289 = vmatpush3.bf16.msra.mxu1 %v3491_v59  ;;  %2597 = vmatprep.mubr.bf16.mxu1 %v3024_v23  ;;  %v3539_v59 = vld [vmem:[%s4204_s7 + $0x288] sm:$0xff]  }
  0xf4   : > { %3290 = vmatprep.subr.bf16.mxu1 %v3493_v61  ;;  %v3541_v61 = vld [vmem:[%s4204_s7 + $0x2c0] sm:$0xff]   ;;  %v3553_v21 = vld [vmem:[%s4204_s7 + $0x3e8] sm:$0xff]  }
  0xf5   : > { %3263 = vmatpush3.bf16.msra.mxu0 %v3494_v62  ;;  %v3542_v62 = vld [vmem:[%s4204_s7 + $0x200] sm:$0xff]   ;;  %v1231_v23 = vld [vmem:[%s4441_s0 + $0xe8] sm:$0xff] }
  0xf6   : > { %3264 = vmatprep.subr.bf16.mxu0 %v3496_v0  ;;  %v1206_v0 = vld [vmem:[%s4441_s0 + $0x20] sm:$0xff] }
  0xf7   : > { %3291 = vmatpush3.bf16.msra.mxu1 %v3495_v63  ;;  %v3543_v63 = vld [vmem:[%s4204_s7 + $0x280] sm:$0xff]  }
  0xf8   : > { %3292 = vmatprep.subr.bf16.mxu1 %v3497_v1  ;;  %v1214_v1 = vld [vmem:[%s4441_s0 + $0x60] sm:$0xff] }
  0xf9   : > { %3265 = vmatpush3.bf16.msra.mxu0 %v3498_v2  ;;  %v3025_v2 = vcombine.low %v1206_v0, %v1214_v1 }
  0xfa   : > { %3266 = vmatprep.subr.bf16.mxu0 %v3500_v4  ;;  %v1207_v4 = vld [vmem:[%s4441_s0 + $0x28] sm:$0xff] }
  0xfb   : > { %3293 = vmatpush3.bf16.msra.mxu1 %v3499_v3  ;;  %v3026_v3 = vcombine.high %v1206_v0, %v1214_v1 }
  0xfc   : > { %3294 = vmatprep.subr.bf16.mxu1 %v3501_v5  ;;  %v1215_v5 = vld [vmem:[%s4441_s0 + $0x68] sm:$0xff] }
  0xfd   : > { %3267 = vmatpush3.bf16.msra.mxu0 %v3502_v6  ;;  %v3027_v6 = vcombine.low %v1207_v4, %v1215_v5 }
  0xfe   : > { %3268 = vmatprep.subr.bf16.mxu0 %v3504_v8  ;;  %v3544_v8 = vld [vmem:[%s4204_s7 + $0x378] sm:$0xff]  }
  0xff   : > { %3295 = vmatpush3.bf16.msra.mxu1 %v3503_v7  ;;  %v3028_v7 = vcombine.high %v1207_v4, %v1215_v5 }
 0x100   : > { %3296 = vmatprep.subr.bf16.mxu1 %v3505_v9  ;;  %v3545_v9 = vld [vmem:[%s4204_s7 + $0x3f8] sm:$0xff]  }
 0x101   : > { %3269 = vmatpush3.bf16.msra.mxu0 %v3506_v10  ;;  %v3546_v10 = vld [vmem:[%s4204_s7 + $0x338] sm:$0xff]  }
 0x102   : > { %3270 = vmatprep.subr.bf16.mxu0 %v3508_v12  ;;  %v3548_v12 = vld [vmem:[%s4204_s7 + $0x370] sm:$0xff]  }
 0x103   : > { %3297 = vmatpush3.bf16.msra.mxu1 %v3507_v11  ;;  %v3547_v11 = vld [vmem:[%s4204_s7 + $0x3b8] sm:$0xff]  }
 0x104   : > { %3298 = vmatprep.subr.bf16.mxu1 %v3509_v14  ;;  %v3550_v14 = vld [vmem:[%s4204_s7 + $0x330] sm:$0xff]  }
 0x105   : > { %3271 = vmatpush3.bf16.msra.mxu0 %v3510_v15  ;;  %v3551_v15 = vld [vmem:[%s4204_s7 + $0x3b0] sm:$0xff]  }
 0x106   : > { %3312 = vmatprep.subr.bf16.mxu0 %v3512_v24 }
 0x107   : > { %3299 = vmatpush3.bf16.msra.mxu1 %v3511_v16  ;;  %v1222_v16 = vld [vmem:[%s4441_s0 + $0xa0] sm:$0xff] }
 0x108   : > { %2549 = vmatmul.mubr.bf16.vlgmr.msra.gmra.mxu0 %v3021_v20  ;;  %3340 = vmatprep.subr.bf16.mxu1 %v3513_v25  ;;  %v3042_v18 = vcombine.high %v1222_v16, %v1230_v17  ;;  %v3041_v19 = vcombine.low %v1222_v16, %v1230_v17  ;;  %v3552_v20 = vld [vmem:[%s4204_s7 + $0x368] sm:$0xff]  }
 0x109   : > { %3313 = vmatpush3.bf16.msra.mxu0 %v3514_v26  ;;  %2556 = vmatprep.mubr.bf16.mxu0 %v3038_v34  ;;  %v3554_v25 = vld [vmem:[%s4204_s7 + $0x328] sm:$0xff]   ;;  %v3562_v34 = vld [vmem:[%s4204_s7 + $0x318] sm:$0xff]  }
 0x10a   : > { %2598 = vmatmul.mubr.bf16.vlgmr.msra.gmra.mxu1 %v3023_v22  ;;  %3314 = vmatprep.subr.bf16.mxu0 %v3516_v28  ;;  %v1223_v22 = vld [vmem:[%s4441_s0 + $0xa8] sm:$0xff]  ;;  %v3556_v28 = vld [vmem:[%s4204_s7 + $0x360] sm:$0xff]  }
 0x10b   : > { %3341 = vmatpush3.bf16.msra.mxu1 %v3515_v27  ;;  %2605 = vmatprep.mubr.bf16.mxu1 %v3040_v40  ;;  %v3044_v24 = vcombine.high %v1223_v22, %v1231_v23  ;;  %v3043_v26 = vcombine.low %v1223_v22, %v1231_v23  ;;  %v3555_v27 = vld [vmem:[%s4204_s7 + $0x3a8] sm:$0xff]  }
 0x10c   : > { %3342 = vmatprep.subr.bf16.mxu1 %v3517_v29  ;;  %v3557_v29 = vld [vmem:[%s4204_s7 + $0x3e0] sm:$0xff]   ;;  %v3568_v40 = vld [vmem:[%s4204_s7 + $0x348] sm:$0xff]  }
 0x10d   : > { %3315 = vmatpush3.bf16.msra.mxu0 %v3518_v30  ;;  %v3558_v30 = vld [vmem:[%s4204_s7 + $0x320] sm:$0xff]  }
 0x10e   : > { %3316 = vmatprep.subr.bf16.mxu0 %v3520_v36  ;;  %v3564_v36 = vld [vmem:[%s4204_s7 + $0x350] sm:$0xff]  }
 0x10f   : > { %3343 = vmatpush3.bf16.msra.mxu1 %v3519_v31  ;;  %v3559_v31 = vld [vmem:[%s4204_s7 + $0x3a0] sm:$0xff]  }
 0x110   : > { %2557 = vmatmul.mubr.bf16.gmra.mxu0 %v3037_v35  ;;  %3344 = vmatprep.subr.bf16.mxu1 %v3521_v37  ;;  %v3563_v35 = vld [vmem:[%s4204_s7 + $0x398] sm:$0xff]   ;;  %v3565_v37 = vld [vmem:[%s4204_s7 + $0x3d0] sm:$0xff]  }
 0x111   : > { %3317 = vmatpush3.bf16.msra.mxu0 %v3522_v41  ;;  %2646 = vmatprep.mubr.bf16.mxu0 %v3026_v3  ;;  %v3569_v41 = vld [vmem:[%s4204_s7 + $0x3c8] sm:$0xff]  }
 0x112   : > { %2606 = vmatmul.mubr.bf16.gmra.mxu1 %v3039_v42  ;;  %3318 = vmatprep.subr.bf16.mxu0 %v3524_v44  ;;  %v3570_v42 = vld [vmem:[%s4204_s7 + $0x308] sm:$0xff]   ;;  %v3572_v44 = vld [vmem:[%s4204_s7 + $0x340] sm:$0xff]  }
 0x113   : > { %3345 = vmatpush3.bf16.msra.mxu1 %v3523_v43  ;;  %2695 = vmatprep.mubr.bf16.mxu1 %v3028_v7  ;;  %v3571_v43 = vld [vmem:[%s4204_s7 + $0x388] sm:$0xff]  }
 0x114   : > { %3346 = vmatprep.subr.bf16.mxu1 %v3525_v45  ;;  %v3573_v45 = vld [vmem:[%s4204_s7 + $0x3c0] sm:$0xff]  }
 0x115   : > { %3319 = vmatpush3.bf16.msra.mxu0 %v3526_v46  ;;  %v3574_v46 = vld [vmem:[%s4204_s7 + $0x300] sm:$0xff]  }
 0x116   : > { %3320 = vmatprep.subr.bf16.mxu0 %v3528_v48  ;;  %v1208_v48 = vld [vmem:[%s4441_s0 + $0x30] sm:$0xff] }
 0x117   : > { %3347 = vmatpush3.bf16.msra.mxu1 %v3527_v47  ;;  %v3575_v47 = vld [vmem:[%s4204_s7 + $0x380] sm:$0xff]  }
 0x118   : > { %3348 = vmatprep.subr.bf16.mxu1 %v3529_v49  ;;  %v1216_v49 = vld [vmem:[%s4441_s0 + $0x70] sm:$0xff] }
 0x119   : > { %3321 = vmatpush3.bf16.msra.mxu0 %v3530_v50  ;;  %v1209_v50 = vld [vmem:[%s4441_s0 + $0x38] sm:$0xff] }
 0x11a   : > { %3322 = vmatprep.subr.bf16.mxu0 %v3532_v52  ;;  %v3030_v52 = vcombine.high %v1208_v48, %v1216_v49 }
 0x11b   : > { %3349 = vmatpush3.bf16.msra.mxu1 %v3531_v51  ;;  %v3029_v51 = vcombine.low %v1208_v48, %v1216_v49 }
 0x11c   : > { %3350 = vmatprep.subr.bf16.mxu1 %v3533_v53  ;;  %v1217_v53 = vld [vmem:[%s4441_s0 + $0x78] sm:$0xff] }
 0x11d   : > { %3323 = vmatpush3.bf16.msra.mxu0 %v3534_v54  ;;  %v1224_v54 = vld [vmem:[%s4441_s0 + $0xb0] sm:$0xff] }
 0x11e   : > { %3324 = vmatprep.subr.bf16.mxu0 %v3536_v56  ;;  %v3031_v56 = vcombine.low %v1209_v50, %v1217_v53 }
 0x11f   : > { %3351 = vmatpush3.bf16.msra.mxu1 %v3535_v55  ;;  %v1232_v55 = vld [vmem:[%s4441_s0 + $0xf0] sm:$0xff] }
 0x120   : > { %3352 = vmatprep.subr.bf16.mxu1 %v3537_v57  ;;  %v3032_v57 = vcombine.high %v1209_v50, %v1217_v53 }
 0x121   : > { %3325 = vmatpush3.bf16.msra.mxu0 %v3538_v58  ;;  %v3046_v58 = vcombine.high %v1224_v54, %v1232_v55 }
 0x122   : > { %3326 = vmatprep.subr.bf16.mxu0 %v3540_v60  ;;  %v1233_v60 = vld [vmem:[%s4441_s0 + $0xf8] sm:$0xff] }
 0x123   : > { %3353 = vmatpush3.bf16.msra.mxu1 %v3539_v59  ;;  %v1225_v59 = vld [vmem:[%s4441_s0 + $0xb8] sm:$0xff] }
 0x124   : > { %3354 = vmatprep.subr.bf16.mxu1 %v3541_v61  ;;  %v3048_v61 = vcombine.high %v1225_v59, %v1233_v60 }
 0x125   : > { %3327 = vmatpush3.bf16.msra.mxu0 %v3542_v62  ;;  %v3045_v62 = vcombine.low %v1224_v54, %v1232_v55 }
 0x126   : > { %3368 = vmatprep.subr.bf16.mxu0 %v3544_v8 }
 0x127   : > { %3355 = vmatpush3.bf16.msra.mxu1 %v3543_v63  ;;  %v3047_v63 = vcombine.low %v1225_v59, %v1233_v60 }
 0x128   : > { %2647 = vmatmul.mubr.bf16.vlgmr.msra.gmra.mxu0 %v3025_v2  ;;  %3396 = vmatprep.subr.bf16.mxu1 %v3545_v9 }
 0x129   : > { %3369 = vmatpush3.bf16.msra.mxu0 %v3546_v10  ;;  %2654 = vmatprep.mubr.bf16.mxu0 %v3042_v18 }
 0x12a   : > { %2696 = vmatmul.mubr.bf16.vlgmr.msra.gmra.mxu1 %v3027_v6  ;;  %3370 = vmatprep.subr.bf16.mxu0 %v3548_v12 }
 0x12b   : > { %3397 = vmatpush3.bf16.msra.mxu1 %v3547_v11  ;;  %2703 = vmatprep.mubr.bf16.mxu1 %v3044_v24 }
 0x12c   : > { %3398 = vmatprep.subr.bf16.mxu1 %v3549_v13 }
 0x12d   : > { %3371 = vmatpush3.bf16.msra.mxu0 %v3550_v14 }
 0x12e   : > { %3372 = vmatprep.subr.bf16.mxu0 %v3552_v20 }
 0x12f   : > { %3399 = vmatpush3.bf16.msra.mxu1 %v3551_v15 }
 0x130   : > { %2655 = vmatmul.mubr.bf16.gmra.mxu0 %v3041_v19  ;;  %3400 = vmatprep.subr.bf16.mxu1 %v3553_v21 }
 0x131   : > { %3373 = vmatpush3.bf16.msra.mxu0 %v3554_v25  ;;  %2744 = vmatprep.mubr.bf16.mxu0 %v3030_v52 }
 0x132   : > { %2704 = vmatmul.mubr.bf16.gmra.mxu1 %v3043_v26  ;;  %3374 = vmatprep.subr.bf16.mxu0 %v3556_v28 }
 0x133   : > { %3401 = vmatpush3.bf16.msra.mxu1 %v3555_v27  ;;  %2793 = vmatprep.mubr.bf16.mxu1 %v3032_v57 }
 0x134   : > { %3402 = vmatprep.subr.bf16.mxu1 %v3557_v29 }
 0x135   : > { %3375 = vmatpush3.bf16.msra.mxu0 %v3558_v30 }
 0x136   : > { %3376 = vmatprep.subr.bf16.mxu0 %v3560_v32 }
 0x137   : > { %3403 = vmatpush3.bf16.msra.mxu1 %v3559_v31 }
 0x138   : > { %3404 = vmatprep.subr.bf16.mxu1 %v3561_v33 }
 0x139   : > { %3377 = vmatpush3.bf16.msra.mxu0 %v3562_v34 }
 0x13a   : > { %3378 = vmatprep.subr.bf16.mxu0 %v3564_v36 }
 0x13b   : > { %3405 = vmatpush3.bf16.msra.mxu1 %v3563_v35 }
 0x13c   : > { %3406 = vmatprep.subr.bf16.mxu1 %v3565_v37 }
 0x13d   : > { %3379 = vmatpush3.bf16.msra.mxu0 %v3566_v38 }
 0x13e   : > { %3380 = vmatprep.subr.bf16.mxu0 %v3568_v40 }
 0x13f   : > { %3407 = vmatpush3.bf16.msra.mxu1 %v3567_v39 }
 0x140   : > { %3408 = vmatprep.subr.bf16.mxu1 %v3569_v41 }
 0x141   : > { %3381 = vmatpush3.bf16.msra.mxu0 %v3570_v42 }
 0x142   : > { %3382 = vmatprep.subr.bf16.mxu0 %v3572_v44 }
 0x143   : > { %3409 = vmatpush3.bf16.msra.mxu1 %v3571_v43 }
 0x144   : > { %3410 = vmatprep.subr.bf16.mxu1 %v3573_v45 }
 0x145   : > { %3383 = vmatpush3.bf16.msra.mxu0 %v3574_v46 }
 0x147   : > { %3411 = vmatpush3.bf16.msra.mxu1 %v3575_v47 }
 0x148   : > { %2745 = vmatmul.mubr.bf16.vlgmr.msra.gmra.mxu0 %v3029_v51 }
 0x149   : > { %2752 = vmatprep.mubr.bf16.mxu0 %v3046_v58 }
 0x14a   : > { %2794 = vmatmul.mubr.bf16.vlgmr.msra.gmra.mxu1 %v3031_v56 }
 0x14b   : > { %2801 = vmatprep.mubr.bf16.mxu1 %v3048_v61 }
 0x150   : > { %2753 = vmatmul.mubr.bf16.gmra.mxu0 %v3045_v62 }
 0x152   : > { %2802 = vmatmul.mubr.bf16.gmra.mxu1 %v3047_v63 }
 0x1a8   : > { %v3216_v0 = vpop.f32.mrf.mxu0 }
 0x1aa   : > { %v3217_v1 = vpop.f32.mrf.mxu0  ;;  %v3244_v2 = vpop.f32.mrf.mxu1 }
 0x1ab   : > { %v3218_v41 = vadd.f32 %v3217_v1, %v3216_v0 }
 0x1ac   : > { %v3219_v3 = vpop.f32.mrf.mxu0  ;;  %v3245_v4 = vpop.f32.mrf.mxu1 }
 0x1ad   : > { %v3246_v42 = vadd.f32 %v3245_v4, %v3244_v2 }
 0x1ae   : > { %v3220_v5 = vpop.f32.mrf.mxu0  ;;  %v3247_v6 = vpop.f32.mrf.mxu1 }
 0x1af   : > { %v3221_v45 = vadd.f32 %v3220_v5, %v3219_v3  ;;  %v2502_v48 = vadd.f32 %v3246_v42, %v3218_v41 }
 0x1b0   : > { %v3222_v7 = vpop.f32.mrf.mxu0  ;;  %v3248_v8 = vpop.f32.mrf.mxu1 }
 0x1b1   : > { %v3249_v46 = vadd.f32 %v3248_v8, %v3247_v6 }
 0x1b2   : > { %v3223_v9 = vpop.f32.mrf.mxu0  ;;  %v3250_v10 = vpop.f32.mrf.mxu1 }
 0x1b3   : > { %v2505_v53 = vadd.f32 %v3249_v46, %v3221_v45  ;;  %v3224_v55 = vadd.f32 %v3223_v9, %v3222_v7 }
 0x1b4   : > { %v3225_v11 = vpop.f32.mrf.mxu0  ;;  %v3251_v12 = vpop.f32.mrf.mxu1 }
 0x1b5   : > { %v3252_v56 = vadd.f32 %v3251_v12, %v3250_v10 }
 0x1b6   : > { %v3226_v13 = vpop.f32.mrf.mxu0  ;;  %v3253_v14 = vpop.f32.mrf.mxu1 }
 0x1b7   : > { %v3227_v62 = vadd.f32 %v3226_v13, %v3225_v11  ;;  %v2510_v3 = vadd.f32 %v3252_v56, %v3224_v55 }
 0x1b8   : > { %v3254_v16 = vpop.f32.mrf.mxu1 }
 0x1b9   : > { %v3255_v63 = vadd.f32 %v3254_v16, %v3253_v14 }
 0x1bb   : > { %v2513_v10 = vadd.f32 %v3255_v63, %v3227_v62 }
 0x1c8   : > { %v3272_v15 = vpop.f32.mrf.mxu0 }
 0x1ca   : > { %v3273_v17 = vpop.f32.mrf.mxu0  ;;  %v3300_v18 = vpop.f32.mrf.mxu1 }
 0x1cb   : > { %v3274_v44 = vadd.f32 %v3273_v17, %v3272_v15 }
 0x1cc   : > { %v3275_v19 = vpop.f32.mrf.mxu0  ;;  %v3301_v20 = vpop.f32.mrf.mxu1 }
 0x1cd   : > { %v2551_v51 = vadd.f32 %v3274_v44, %v2502_v48  ;;  %v3302_v52 = vadd.f32 %v3301_v20, %v3300_v18 }
 0x1ce   : > { %v3276_v21 = vpop.f32.mrf.mxu0  ;;  %v3303_v22 = vpop.f32.mrf.mxu1 }
 0x1cf   : > { %v3277_v50 = vadd.f32 %v3276_v21, %v3275_v19  ;;  %v2600_v60 = vadd.f32 %v3302_v52, %v2551_v51 }
 0x1d0   : > { %v3278_v23 = vpop.f32.mrf.mxu0  ;;  %v3304_v24 = vpop.f32.mrf.mxu1 }
 0x1d1   : > { %v2554_v59 = vadd.f32 %v3277_v50, %v2505_v53  ;;  %v3305_v0 = vadd.f32 %v3304_v24, %v3303_v22 }
 0x1d2   : > { %v3306_v25 = vpop.f32.mrf.mxu1  ;;  %v3279_v26 = vpop.f32.mrf.mxu0 }
 0x1d3   : > { %v3280_v61 = vadd.f32 %v3279_v26, %v3278_v23  ;;  %v2603_v8 = vadd.f32 %v3305_v0, %v2554_v59 }
 0x1d4   : > { %v3307_v27 = vpop.f32.mrf.mxu1  ;;  %v3281_v28 = vpop.f32.mrf.mxu0 }
 0x1d5   : > { %v2559_v18 = vadd.f32 %v3280_v61, %v2510_v3  ;;  %v3308_v7 = vadd.f32 %v3307_v27, %v3306_v25 }
 0x1d6   : > { %v3309_v29 = vpop.f32.mrf.mxu1  ;;  %v3282_v30 = vpop.f32.mrf.mxu0 }
 0x1d7   : > { %v3283_v15 = vadd.f32 %v3282_v30, %v3281_v28  ;;  %v2608_v24 = vadd.f32 %v3308_v7, %v2559_v18 }
 0x1d8   : > { %v3310_v32 = vpop.f32.mrf.mxu1 }
 0x1d9   : > { %v2562_v14 = vadd.f32 %v3283_v15, %v2513_v10  ;;  %v3311_v16 = vadd.f32 %v3310_v32, %v3309_v29 }
 0x1db   : > { %v2611_v41 = vadd.f32 %v3311_v16, %v2562_v14 }
 0x1e8   : > { %v3328_v31 = vpop.f32.mrf.mxu0 }
 0x1ea   : > { %v3356_v33 = vpop.f32.mrf.mxu1  ;;  %v3329_v34 = vpop.f32.mrf.mxu0 }
 0x1eb   : > { %v3330_v57 = vadd.f32 %v3329_v34, %v3328_v31 }
 0x1ec   : > { %v3357_v35 = vpop.f32.mrf.mxu1  ;;  %v3331_v36 = vpop.f32.mrf.mxu0 }
 0x1ed   : > { %v2649_v4 = vadd.f32 %v3330_v57, %v2600_v60  ;;  %v3358_v5 = vadd.f32 %v3357_v35, %v3356_v33 }
 0x1ee   : > { %v3359_v37 = vpop.f32.mrf.mxu1  ;;  %v3332_v38 = vpop.f32.mrf.mxu0 }
 0x1ef   : > { %v3333_v1 = vadd.f32 %v3332_v38, %v3331_v36  ;;  %v2698_v20 = vadd.f32 %v3358_v5, %v2649_v4 }
 0x1f0   : > { %v3360_v39 = vpop.f32.mrf.mxu1  ;;  %v3334_v40 = vpop.f32.mrf.mxu0 }
 0x1f1   : > { %v2652_v12 = vadd.f32 %v3333_v1, %v2603_v8  ;;  %v3361_v22 = vadd.f32 %v3360_v39, %v3359_v37 }
 0x1f2   : > { %v3362_v43 = vpop.f32.mrf.mxu1  ;;  %v3335_v47 = vpop.f32.mrf.mxu0 }
 0x1f3   : > { %v3336_v21 = vadd.f32 %v3335_v47, %v3334_v40  ;;  %v2701_v28 = vadd.f32 %v3361_v22, %v2652_v12 }
 0x1f4   : > { %v3363_v49 = vpop.f32.mrf.mxu1  ;;  %v3337_v54 = vpop.f32.mrf.mxu0 }
 0x1f5   : > { %v2657_v25 = vadd.f32 %v3336_v21, %v2608_v24  ;;  %v3364_v27 = vadd.f32 %v3363_v49, %v3362_v43 }
 0x1f6   : > { %v3365_v58 = vpop.f32.mrf.mxu1  ;;  %v3338_v2 = vpop.f32.mrf.mxu0 }
 0x1f7   : > { %v3339_v30 = vadd.f32 %v3338_v2, %v3337_v54  ;;  %v2706_v39 = vadd.f32 %v3364_v27, %v2657_v25 }
 0x1f8   : > { %v3366_v6 = vpop.f32.mrf.mxu1 }
 0x1f9   : > { %v2660_v29 = vadd.f32 %v3339_v30, %v2611_v41  ;;  %v3367_v32 = vadd.f32 %v3366_v6, %v3365_v58 }
 0x1fb   : > { %v2709_v54 = vadd.f32 %v3367_v32, %v2660_v29 }
 0x208   : > { %v3384_v17 = vpop.f32.mrf.mxu0 }
 0x20a   : > { %v3412_v9 = vpop.f32.mrf.mxu1  ;;  %v3385_v19 = vpop.f32.mrf.mxu0 }
 0x20b   : > { %v3386_v11 = vadd.f32 %v3385_v19, %v3384_v17 }
 0x20c   : > { %v3413_v13 = vpop.f32.mrf.mxu1  ;;  %v3387_v23 = vpop.f32.mrf.mxu0 }
 0x20d   : > { %v2747_v26 = vadd.f32 %v3386_v11, %v2698_v20  ;;  %v3414_v31 = vadd.f32 %v3413_v13, %v3412_v9 }
 0x20e   : > { %v3415_v33 = vpop.f32.mrf.mxu1  ;;  %v3388_v34 = vpop.f32.mrf.mxu0 }
 0x20f   : > { %v2796_v35 = vadd.f32 %v3414_v31, %v2747_v26  ;;  %v3389_v36 = vadd.f32 %v3388_v34, %v3387_v23 }
 0x210   : > { %v3416_v38 = vpop.f32.mrf.mxu1  ;;  %v3390_v40 = vpop.f32.mrf.mxu0 }
 0x211   : > { %v2750_v42 = vadd.f32 %v3389_v36, %v2701_v28  ;;  %v3417_v44 = vadd.f32 %v3416_v38, %v3415_v33  ;;  %v2814_v46 = vmul.f32 0.2, %v2796_v35  ;;  %vm2810_vm0 = vcmp.ge.f32.partialorder %v2796_v35, 0.0 }
 0x212   : > { %v3418_v45 = vpop.f32.mrf.mxu1  ;;  %v3391_v37 = vpop.f32.mrf.mxu0 }
 0x213   : > { %v2799_v47 = vadd.f32 %v3417_v44, %v2750_v42  ;;  %v3392_v48 = vadd.f32 %v3391_v37, %v3390_v40  ;;  %v2818_v56 = vsel %vm2810_vm0, %v2796_v35, %v2814_v46 }
 0x214   : > { %v3419_v50 = vpop.f32.mrf.mxu1  ;;  %v3393_v51 = vpop.f32.mrf.mxu0 }
 0x215   : > { %vm2811_vm1 = vcmp.ge.f32.partialorder %v2799_v47, 0.0  ;;  %v2815_v43 = vmul.f32 0.2, %v2799_v47  ;;  %v2755_v49 = vadd.f32 %v3392_v48, %v2706_v39  ;;  %v3420_v52 = vadd.f32 %v3419_v50, %v3418_v45 }
 0x216   : > { %v3421_v53 = vpop.f32.mrf.mxu1  ;;  %v3394_v55 = vpop.f32.mrf.mxu0 }
 0x217   : > { %v2819_v57 = vsel %vm2811_vm1, %v2799_v47, %v2815_v43  ;;  %v2804_v59 = vadd.f32 %v3420_v52, %v2755_v49  ;;  %v3395_v60 = vadd.f32 %v3394_v55, %v3393_v51 }
 0x218   : > { %v3422_v58 = vpop.f32.mrf.mxu1  ;;  %v2822_v61 = vadd.f32 %v2819_v57, %v2818_v56 }
 0x219   : > { %v2758_v62 = vadd.f32 %v3395_v60, %v2709_v54  ;;  %v3423_v63 = vadd.f32 %v3422_v58, %v3421_v53  ;;  %v2816_v1 = vmul.f32 0.2, %v2804_v59  ;;  %vm2812_vm2 = vcmp.ge.f32.partialorder %v2804_v59, 0.0 }
 0x21a   : > { %v2823_v0 = vrot.slane %v2822_v61, 4 }
 0x21b   : > { %v2807_v2 = vadd.f32 %v3423_v63, %v2758_v62  ;;  %v2820_v6 = vsel %vm2812_vm2, %v2804_v59, %v2816_v1 }
 0x21c   : > { %v2824_v3 = vadd.f32 %v2823_v0, %v2822_v61 }
 0x21d   : > { %vm2813_vm3 = vcmp.ge.f32.partialorder %v2807_v2, 0.0  ;;  %v2817_v4 = vmul.f32 0.2, %v2807_v2 }
 0x21e   : > { %v2825_v5 = vrot.slane %v2824_v3, 2 }
 0x21f   : > { %v2821_v8 = vsel %vm2813_vm3, %v2807_v2, %v2817_v4 }
 0x220   : > { %v2826_v15 = vadd.f32 %v2825_v5, %v2824_v3  ;;  %v2829_v17 = vadd.f32 %v2821_v8, %v2820_v6 }
 0x222   : > { %v2827_v18 = vrot.slane %v2826_v15, 1  ;;  %v2830_v7 = vrot.slane %v2829_v17, 4 }
 0x224   : > { %v2828_v9 = vadd.f32 %v2827_v18, %v2826_v15  ;;  %v2831_v10 = vadd.f32 %v2830_v7, %v2829_v17 }
 0x226   : > { %v2836_v12 = vmul.f32 0.0625, %v2828_v9  ;;  %v2832_v19 = vrot.slane %v2831_v10, 2 }
 0x228   : > { %v2838_v20 = vsub.f32 %v2818_v56, %v2836_v12  ;;  %v2839_v21 = vsub.f32 %v2819_v57, %v2836_v12  ;;  %v2833_v11 = vadd.f32 %v2832_v19, %v2831_v10 }
 0x22a   : > { %v2842_v13 = vmul.f32 %v2838_v20, %v2838_v20  ;;  %v2843_v14 = vmul.f32 %v2839_v21, %v2839_v21  ;;  %v2834_v16 = vrot.slane %v2833_v11, 1 }
 0x22c   : > { %v2846_v22 = vadd.f32 %v2843_v14, %v2842_v13  ;;  %v2835_v23 = vadd.f32 %v2834_v16, %v2833_v11 }
 0x22e   : > { %v2847_v24 = vrot.slane %v2846_v22, 4  ;;  %v2837_v26 = vmul.f32 0.0625, %v2835_v23 }
 0x230   : > { %v2848_v31 = vadd.f32 %v2847_v24, %v2846_v22  ;;  %v2840_v33 = vsub.f32 %v2820_v6, %v2837_v26  ;;  %v2841_v28 = vsub.f32 %v2821_v8, %v2837_v26 }
 0x232   : > { %v2849_v30 = vrot.slane %v2848_v31, 2  ;;  %v2844_v34 = vmul.f32 %v2840_v33, %v2840_v33  ;;  %v2845_v25 = vmul.f32 %v2841_v28, %v2841_v28 }
 0x234   : > { %v2850_v27 = vadd.f32 %v2849_v30, %v2848_v31  ;;  %v2853_v35 = vadd.f32 %v2845_v25, %v2844_v34 }
 0x236   : > { %v2851_v36 = vrot.slane %v2850_v27, 1  ;;  %v2854_v38 = vrot.slane %v2853_v35, 4 }
 0x238   : > { %v2852_v41 = vadd.f32 %v2851_v36, %v2850_v27  ;;  %v2855_v40 = vadd.f32 %v2854_v38, %v2853_v35 }
 0x23a   : > { %v2860_v42 = vmul.f32 0.0625, %v2852_v41  ;;  %v2856_v44 = vrot.slane %v2855_v40, 2 }
 0x23c   : > { %v2862_v45 = vadd.f32 1e-05, %v2860_v42  ;;  %v2857_v29 = vadd.f32 %v2856_v44, %v2855_v40 }
 0x23e   : > { %3576 = vrsqrt.f32 %v2862_v45  ;;  %v2858_v32 = vrot.slane %v2857_v29, 1 }
 0x240   : > { %v2859_v37 = vadd.f32 %v2858_v32, %v2857_v29 }
 0x242   : > { %v2861_v39 = vmul.f32 0.0625, %v2859_v37 }
 0x244   : > { %v2863_v46 = vadd.f32 1e-05, %v2861_v39 }
 0x246   : > { %3578 = vrsqrt.f32 %v2863_v46 }
 0x24b   : > { %v3577_v47 = vpop.eup %3576 }
 0x24c   : > { %v2866_v48 = vmul.f32 %v3577_v47, %v2838_v20  ;;  %v2867_v50 = vmul.f32 %v3577_v47, %v2839_v21 }
 0x24e   : > { %v3192_v51 = vpack.c.bf16 %v2867_v50, %v2866_v48 }
 0x250   : > { %3193 = vst [vmem:[%s1200_s6] sm:$0xff] %v3192_v51  }
 0x253   : > { %v3579_v43 = vpop.eup %3578 }
 0x254   : > { %v2868_v49 = vmul.f32 %v3579_v43, %v2840_v33  ;;  %v2869_v52 = vmul.f32 %v3579_v43, %v2841_v28  ;;  %2896 = sbr.rel (!%p3649_p5) target bundleno = 609 (0x261), region = 73 }
 0x256   : > { %v3197_v53 = vpack.c.bf16 %v2869_v52, %v2868_v49 }
 0x257   : > { %v2915_v54 = vld [vmem:[%s1200_s6] sm:$0xf] (%p3649_p5)  ;;  %v2917_v55 = vld [vmem:[%s1200_s6 + $0x4] sm:$0xf] (%p3649_p5) }
 0x258   : > { %3199 = vst [vmem:[%s1200_s6 + $0x8] sm:$0xff] %v3197_v53   ;;  %2916 = vst [vmem:[%s2898_s14] sm:$0xf] (%p3649_p5), %v2915_v54 }
 0x259   : > { %2918 = vst [vmem:[%s2898_s14 + $0x8] sm:$0xf] %v2917_v55 }
 0x25f   : > { %v2919_v56 = vld [vmem:[%s1200_s6 + $0x8] sm:$0xf]  ;;  %v2921_v57 = vld [vmem:[%s1200_s6 + $0xc] sm:$0xf] }
 0x260   : > { %2920 = vst [vmem:[%s2898_s14 + $0x10] sm:$0xf] %v2919_v56  ;;  %2922 = vst [vmem:[%s2898_s14 + $0x18] sm:$0xf] %v2921_v57 }
 0x261 PF: > { %p9_p10 = scmp.ge.s32.totalorder %s3636_s13, 4   ;;  %s4445_s9 = smov %s3598_s10 }
 0x262   : > { %s4446_s10 = smov %s3647_s16  ;;  %s4447_s11 = smov %s3636_s13 }
 0x263   :  { %11 = sbr.rel (!%p9_p10) target bundleno = 2 (0x2), region = 145 }

// kernel: discriminator_forward.8
= control target key start
LH: loop header
LB: loop body
LE: loop exit
PB: predicated region body
PF: predicated region fallthrough
CT: control target
= control target key end

     0   :  { %s10333_s9 = smov 0   ;;  %s10335_s10 = smov 0   ;;  %s12488_s0 = inlined_call_operand.vmem [shape: bf16[32,4096], index: 0, kind: input, shape index: {}]   ;;  %s12489_s1 = inlined_call_operand.vmem [shape: bf16[4096,512], index: 1, kind: input, shape index: {}]   ;;  %s12490_s2 = inlined_call_operand.vmem [shape: bf16[32,512], index: 2, kind: output, shape index: {}]  }
   0x1   :  { %s10337_s11 = smov 0  }
   0x2 LB: > { %s8893_s12 = sadd.s32 4294967295, %s10316_s11   ;;  %s10350_s13 = sadd.s32 1, %s10316_s11   ;;  %s10316_s11 = sphi %s10337_s11, %s12522_s11   ;;  %s10312_s10 = sphi %s10335_s10, %s12521_s10   ;;  %s10308_s9 = sphi %s10333_s9, %s12520_s9  }
   0x3   : > { %s37_s14 = ssub.s32 %s10316_s11, %s10350_s13  ;;  %s40_s15 = sadd.s32 1, %s10312_s10 }
   0x4   : > { %p38_p0 = scmp.eq.s32.totalorder %s37_s14, 0  ;;  %p47_p1 = scmp.ne.s32.totalorder %s10312_s10, %s10308_s9 }
   0x5   : > { %p48_p2 = scmp.eq.s32.totalorder %s10316_s11, 0  ;;  %p77_p3 = scmp.eq.s32.totalorder %s8893_s12, 1 }
   0x6   : > { %s10361_s16 = scalar_select %p38_p0, %s10312_s10, %s40_s15  }
   0x7   : > { %p49_p4 = por %p48_p2, %p47_p1  ;;  %p10363_p5 = por %p77_p3, %p47_p1 }
   0x8   : > { %p8896_p6 = scmp.ge.s32.totalorder %s10316_s11, 2 }
   0xa   : > { %102 = sbr.rel (%p8896_p6) target bundleno = 275 (0x113), region = 20 }
   0xf   : > { %105 = sbr.rel (!%p49_p4) target bundleno = 275 (0x113), region = 24  ;;  %s107_s18 = sand.u32 (%p49_p4), 1, %s10312_s10  }
  0x10   : > { %s9488_s19 = sshll.u32 (%p49_p4), %s10316_s11, 3  ;;  %s8897_s20 = sshll.u32 (%p49_p4), %s107_s18, 12 }
  0x11   : > { %s10373_s23 = scalar_lea.vmem (%p49_p4), %s12489_s1, %s9488_s19  ;;  %s10378_s24 = scalar_lea.vmem (%p49_p4), [#allocation2], %s8897_s20 }
  0x12   : > { %v1166_v0 = vld [vmem:[%s10373_s23] sm:$0xff] (%p49_p4)  ;;  %v1168_v1 = vld [vmem:[%s10373_s23 + $0x10] sm:$0xff] (%p49_p4) }
  0x13   : > { %v1170_v2 = vld [vmem:[%s10373_s23 + $0x20] sm:$0xff] (%p49_p4)  ;;  %1167 = vst [vmem:[%s10378_s24] sm:$0xff] (%p49_p4), %v1166_v0  ;;  %1169 = vst [vmem:[%s10378_s24 + $0x8] sm:$0xff] (%p49_p4), %v1168_v1  ;;  %v1172_v3 = vld [vmem:[%s10373_s23 + $0x30] sm:$0xff] (%p49_p4) }
  0x14   : > { %1171 = vst [vmem:[%s10378_s24 + $0x10] sm:$0xff] %v1170_v2  ;;  %v1174_v4 = vld [vmem:[%s10373_s23 + $0x40] sm:$0xff]  ;;  %v1176_v5 = vld [vmem:[%s10373_s23 + $0x50] sm:$0xff]  ;;  %1173 = vst [vmem:[%s10378_s24 + $0x18] sm:$0xff] %v1172_v3 }
  0x15   : > { %1175 = vst [vmem:[%s10378_s24 + $0x20] sm:$0xff] %v1174_v4  ;;  %1177 = vst [vmem:[%s10378_s24 + $0x28] sm:$0xff] %v1176_v5  ;;  %v1178_v6 = vld [vmem:[%s10373_s23 + $0x60] sm:$0xff]  ;;  %v1180_v7 = vld [vmem:[%s10373_s23 + $0x70] sm:$0xff] }
  0x16   : > { %v1182_v8 = vld [vmem:[%s10373_s23 + $0x80] sm:$0xff]  ;;  %1179 = vst [vmem:[%s10378_s24 + $0x30] sm:$0xff] %v1178_v6  ;;  %1181 = vst [vmem:[%s10378_s24 + $0x38] sm:$0xff] %v1180_v7  ;;  %v1184_v9 = vld [vmem:[%s10373_s23 + $0x90] sm:$0xff] }
  0x17   : > { %1183 = vst [vmem:[%s10378_s24 + $0x40] sm:$0xff] %v1182_v8  ;;  %v1186_v10 = vld [vmem:[%s10373_s23 + $0xa0] sm:$0xff]  ;;  %v1188_v11 = vld [vmem:[%s10373_s23 + $0xb0] sm:$0xff]  ;;  %1185 = vst [vmem:[%s10378_s24 + $0x48] sm:$0xff] %v1184_v9 }
  0x18   : > { %1187 = vst [vmem:[%s10378_s24 + $0x50] sm:$0xff] %v1186_v10  ;;  %1189 = vst [vmem:[%s10378_s24 + $0x58] sm:$0xff] %v1188_v11  ;;  %v1190_v12 = vld [vmem:[%s10373_s23 + $0xc0] sm:$0xff]  ;;  %v1192_v13 = vld [vmem:[%s10373_s23 + $0xd0] sm:$0xff] }
  0x19   : > { %v1194_v14 = vld [vmem:[%s10373_s23 + $0xe0] sm:$0xff]  ;;  %1191 = vst [vmem:[%s10378_s24 + $0x60] sm:$0xff] %v1190_v12  ;;  %1193 = vst [vmem:[%s10378_s24 + $0x68] sm:$0xff] %v1192_v13  ;;  %v1196_v15 = vld [vmem:[%s10373_s23 + $0xf0] sm:$0xff] }
  0x1a   : > { %1195 = vst [vmem:[%s10378_s24 + $0x70] sm:$0xff] %v1194_v14  ;;  %v1198_v16 = vld [vmem:[%s10373_s23 + $0x100] sm:$0xff]  ;;  %v1200_v17 = vld [vmem:[%s10373_s23 + $0x110] sm:$0xff]  ;;  %1197 = vst [vmem:[%s10378_s24 + $0x78] sm:$0xff] %v1196_v15 }
  0x1b   : > { %1199 = vst [vmem:[%s10378_s24 + $0x80] sm:$0xff] %v1198_v16  ;;  %1201 = vst [vmem:[%s10378_s24 + $0x88] sm:$0xff] %v1200_v17  ;;  %v1202_v18 = vld [vmem:[%s10373_s23 + $0x120] sm:$0xff]  ;;  %v1204_v19 = vld [vmem:[%s10373_s23 + $0x130] sm:$0xff] }
  0x1c   : > { %v1206_v20 = vld [vmem:[%s10373_s23 + $0x140] sm:$0xff]  ;;  %1203 = vst [vmem:[%s10378_s24 + $0x90] sm:$0xff] %v1202_v18  ;;  %1205 = vst [vmem:[%s10378_s24 + $0x98] sm:$0xff] %v1204_v19  ;;  %v1208_v21 = vld [vmem:[%s10373_s23 + $0x150] sm:$0xff] }
  0x1d   : > { %1207 = vst [vmem:[%s10378_s24 + $0xa0] sm:$0xff] %v1206_v20  ;;  %v1210_v22 = vld [vmem:[%s10373_s23 + $0x160] sm:$0xff]  ;;  %v1212_v23 = vld [vmem:[%s10373_s23 + $0x170] sm:$0xff]  ;;  %1209 = vst [vmem:[%s10378_s24 + $0xa8] sm:$0xff] %v1208_v21 }
  0x1e   : > { %1211 = vst [vmem:[%s10378_s24 + $0xb0] sm:$0xff] %v1210_v22  ;;  %1213 = vst [vmem:[%s10378_s24 + $0xb8] sm:$0xff] %v1212_v23  ;;  %v1214_v24 = vld [vmem:[%s10373_s23 + $0x180] sm:$0xff]  ;;  %v1216_v25 = vld [vmem:[%s10373_s23 + $0x190] sm:$0xff] }
  0x1f   : > { %v1218_v26 = vld [vmem:[%s10373_s23 + $0x1a0] sm:$0xff]  ;;  %1215 = vst [vmem:[%s10378_s24 + $0xc0] sm:$0xff] %v1214_v24  ;;  %1217 = vst [vmem:[%s10378_s24 + $0xc8] sm:$0xff] %v1216_v25  ;;  %v1220_v27 = vld [vmem:[%s10373_s23 + $0x1b0] sm:$0xff] }
  0x20   : > { %1219 = vst [vmem:[%s10378_s24 + $0xd0] sm:$0xff] %v1218_v26  ;;  %v1222_v28 = vld [vmem:[%s10373_s23 + $0x1c0] sm:$0xff]  ;;  %v1224_v29 = vld [vmem:[%s10373_s23 + $0x1d0] sm:$0xff]  ;;  %1221 = vst [vmem:[%s10378_s24 + $0xd8] sm:$0xff] %v1220_v27 }
  0x21   : > { %1223 = vst [vmem:[%s10378_s24 + $0xe0] sm:$0xff] %v1222_v28  ;;  %1225 = vst [vmem:[%s10378_s24 + $0xe8] sm:$0xff] %v1224_v29  ;;  %v1226_v30 = vld [vmem:[%s10373_s23 + $0x1e0] sm:$0xff]  ;;  %v1228_v31 = vld [vmem:[%s10373_s23 + $0x1f0] sm:$0xff] }
  0x22   : > { %v1230_v32 = vld [vmem:[%s10373_s23 + $0x200] sm:$0xff]  ;;  %1227 = vst [vmem:[%s10378_s24 + $0xf0] sm:$0xff] %v1226_v30  ;;  %1229 = vst [vmem:[%s10378_s24 + $0xf8] sm:$0xff] %v1228_v31  ;;  %v1232_v33 = vld [vmem:[%s10373_s23 + $0x210] sm:$0xff] }
  0x23   : > { %1231 = vst [vmem:[%s10378_s24 + $0x100] sm:$0xff] %v1230_v32  ;;  %v1234_v34 = vld [vmem:[%s10373_s23 + $0x220] sm:$0xff]  ;;  %v1236_v35 = vld [vmem:[%s10373_s23 + $0x230] sm:$0xff]  ;;  %1233 = vst [vmem:[%s10378_s24 + $0x108] sm:$0xff] %v1232_v33 }
  0x24   : > { %1235 = vst [vmem:[%s10378_s24 + $0x110] sm:$0xff] %v1234_v34  ;;  %1237 = vst [vmem:[%s10378_s24 + $0x118] sm:$0xff] %v1236_v35  ;;  %v1238_v36 = vld [vmem:[%s10373_s23 + $0x240] sm:$0xff]  ;;  %v1240_v37 = vld [vmem:[%s10373_s23 + $0x250] sm:$0xff] }
  0x25   : > { %v1242_v38 = vld [vmem:[%s10373_s23 + $0x260] sm:$0xff]  ;;  %1239 = vst [vmem:[%s10378_s24 + $0x120] sm:$0xff] %v1238_v36  ;;  %1241 = vst [vmem:[%s10378_s24 + $0x128] sm:$0xff] %v1240_v37  ;;  %v1244_v39 = vld [vmem:[%s10373_s23 + $0x270] sm:$0xff] }
  0x26   : > { %1243 = vst [vmem:[%s10378_s24 + $0x130] sm:$0xff] %v1242_v38  ;;  %v1246_v40 = vld [vmem:[%s10373_s23 + $0x280] sm:$0xff]  ;;  %v1248_v41 = vld [vmem:[%s10373_s23 + $0x290] sm:$0xff]  ;;  %1245 = vst [vmem:[%s10378_s24 + $0x138] sm:$0xff] %v1244_v39 }
  0x27   : > { %1247 = vst [vmem:[%s10378_s24 + $0x140] sm:$0xff] %v1246_v40  ;;  %1249 = vst [vmem:[%s10378_s24 + $0x148] sm:$0xff] %v1248_v41  ;;  %v1250_v42 = vld [vmem:[%s10373_s23 + $0x2a0] sm:$0xff]  ;;  %v1252_v43 = vld [vmem:[%s10373_s23 + $0x2b0] sm:$0xff] }
  0x28   : > { %v1254_v44 = vld [vmem:[%s10373_s23 + $0x2c0] sm:$0xff]  ;;  %1251 = vst [vmem:[%s10378_s24 + $0x150] sm:$0xff] %v1250_v42  ;;  %1253 = vst [vmem:[%s10378_s24 + $0x158] sm:$0xff] %v1252_v43  ;;  %v1256_v45 = vld [vmem:[%s10373_s23 + $0x2d0] sm:$0xff] }
  0x29   : > { %1255 = vst [vmem:[%s10378_s24 + $0x160] sm:$0xff] %v1254_v44  ;;  %v1258_v46 = vld [vmem:[%s10373_s23 + $0x2e0] sm:$0xff]  ;;  %v1260_v47 = vld [vmem:[%s10373_s23 + $0x2f0] sm:$0xff]  ;;  %1257 = vst [vmem:[%s10378_s24 + $0x168] sm:$0xff] %v1256_v45 }
  0x2a   : > { %1259 = vst [vmem:[%s10378_s24 + $0x170] sm:$0xff] %v1258_v46  ;;  %1261 = vst [vmem:[%s10378_s24 + $0x178] sm:$0xff] %v1260_v47  ;;  %v1262_v48 = vld [vmem:[%s10373_s23 + $0x300] sm:$0xff]  ;;  %v1264_v49 = vld [vmem:[%s10373_s23 + $0x310] sm:$0xff] }
  0x2b   : > { %v1266_v50 = vld [vmem:[%s10373_s23 + $0x320] sm:$0xff]  ;;  %1263 = vst [vmem:[%s10378_s24 + $0x180] sm:$0xff] %v1262_v48  ;;  %1265 = vst [vmem:[%s10378_s24 + $0x188] sm:$0xff] %v1264_v49  ;;  %v1268_v51 = vld [vmem:[%s10373_s23 + $0x330] sm:$0xff] }
  0x2c   : > { %1267 = vst [vmem:[%s10378_s24 + $0x190] sm:$0xff] %v1266_v50  ;;  %v1270_v52 = vld [vmem:[%s10373_s23 + $0x340] sm:$0xff]  ;;  %v1272_v53 = vld [vmem:[%s10373_s23 + $0x350] sm:$0xff]  ;;  %1269 = vst [vmem:[%s10378_s24 + $0x198] sm:$0xff] %v1268_v51 }
  0x2d   : > { %1271 = vst [vmem:[%s10378_s24 + $0x1a0] sm:$0xff] %v1270_v52  ;;  %1273 = vst [vmem:[%s10378_s24 + $0x1a8] sm:$0xff] %v1272_v53  ;;  %v1274_v54 = vld [vmem:[%s10373_s23 + $0x360] sm:$0xff]  ;;  %v1276_v55 = vld [vmem:[%s10373_s23 + $0x370] sm:$0xff] }
  0x2e   : > { %v1278_v56 = vld [vmem:[%s10373_s23 + $0x380] sm:$0xff]  ;;  %1275 = vst [vmem:[%s10378_s24 + $0x1b0] sm:$0xff] %v1274_v54  ;;  %1277 = vst [vmem:[%s10378_s24 + $0x1b8] sm:$0xff] %v1276_v55  ;;  %v1280_v57 = vld [vmem:[%s10373_s23 + $0x390] sm:$0xff] }
  0x2f   : > { %1279 = vst [vmem:[%s10378_s24 + $0x1c0] sm:$0xff] %v1278_v56  ;;  %v1282_v58 = vld [vmem:[%s10373_s23 + $0x3a0] sm:$0xff]  ;;  %v1284_v59 = vld [vmem:[%s10373_s23 + $0x3b0] sm:$0xff]  ;;  %1281 = vst [vmem:[%s10378_s24 + $0x1c8] sm:$0xff] %v1280_v57 }
  0x30   : > { %1283 = vst [vmem:[%s10378_s24 + $0x1d0] sm:$0xff] %v1282_v58  ;;  %1285 = vst [vmem:[%s10378_s24 + $0x1d8] sm:$0xff] %v1284_v59  ;;  %v1286_v60 = vld [vmem:[%s10373_s23 + $0x3c0] sm:$0xff]  ;;  %v1288_v61 = vld [vmem:[%s10373_s23 + $0x3d0] sm:$0xff] }
  0x31   : > { %v1290_v62 = vld [vmem:[%s10373_s23 + $0x3e0] sm:$0xff]  ;;  %1287 = vst [vmem:[%s10378_s24 + $0x1e0] sm:$0xff] %v1286_v60  ;;  %1289 = vst [vmem:[%s10378_s24 + $0x1e8] sm:$0xff] %v1288_v61  ;;  %v1292_v63 = vld [vmem:[%s10373_s23 + $0x3f0] sm:$0xff] }
  0x32   : > { %1291 = vst [vmem:[%s10378_s24 + $0x1f0] sm:$0xff] %v1290_v62  ;;  %v1294_v0 = vld [vmem:[%s10373_s23 + $0x400] sm:$0xff]  ;;  %v1296_v1 = vld [vmem:[%s10373_s23 + $0x410] sm:$0xff]  ;;  %1293 = vst [vmem:[%s10378_s24 + $0x1f8] sm:$0xff] %v1292_v63 }
  0x33   : > { %1295 = vst [vmem:[%s10378_s24 + $0x200] sm:$0xff] %v1294_v0  ;;  %1297 = vst [vmem:[%s10378_s24 + $0x208] sm:$0xff] %v1296_v1  ;;  %v1298_v2 = vld [vmem:[%s10373_s23 + $0x420] sm:$0xff]  ;;  %v1300_v3 = vld [vmem:[%s10373_s23 + $0x430] sm:$0xff] }
  0x34   : > { %v1302_v4 = vld [vmem:[%s10373_s23 + $0x440] sm:$0xff]  ;;  %1299 = vst [vmem:[%s10378_s24 + $0x210] sm:$0xff] %v1298_v2  ;;  %1301 = vst [vmem:[%s10378_s24 + $0x218] sm:$0xff] %v1300_v3  ;;  %v1304_v5 = vld [vmem:[%s10373_s23 + $0x450] sm:$0xff] }
  0x35   : > { %1303 = vst [vmem:[%s10378_s24 + $0x220] sm:$0xff] %v1302_v4  ;;  %v1306_v6 = vld [vmem:[%s10373_s23 + $0x460] sm:$0xff]  ;;  %v1308_v7 = vld [vmem:[%s10373_s23 + $0x470] sm:$0xff]  ;;  %1305 = vst [vmem:[%s10378_s24 + $0x228] sm:$0xff] %v1304_v5 }
  0x36   : > { %1307 = vst [vmem:[%s10378_s24 + $0x230] sm:$0xff] %v1306_v6  ;;  %1309 = vst [vmem:[%s10378_s24 + $0x238] sm:$0xff] %v1308_v7  ;;  %v1310_v8 = vld [vmem:[%s10373_s23 + $0x480] sm:$0xff]  ;;  %v1312_v9 = vld [vmem:[%s10373_s23 + $0x490] sm:$0xff] }
  0x37   : > { %v1314_v10 = vld [vmem:[%s10373_s23 + $0x4a0] sm:$0xff]  ;;  %1311 = vst [vmem:[%s10378_s24 + $0x240] sm:$0xff] %v1310_v8  ;;  %1313 = vst [vmem:[%s10378_s24 + $0x248] sm:$0xff] %v1312_v9  ;;  %v1316_v11 = vld [vmem:[%s10373_s23 + $0x4b0] sm:$0xff] }
  0x38   : > { %1315 = vst [vmem:[%s10378_s24 + $0x250] sm:$0xff] %v1314_v10  ;;  %v1318_v12 = vld [vmem:[%s10373_s23 + $0x4c0] sm:$0xff]  ;;  %v1320_v13 = vld [vmem:[%s10373_s23 + $0x4d0] sm:$0xff]  ;;  %1317 = vst [vmem:[%s10378_s24 + $0x258] sm:$0xff] %v1316_v11 }
  0x39   : > { %1319 = vst [vmem:[%s10378_s24 + $0x260] sm:$0xff] %v1318_v12  ;;  %1321 = vst [vmem:[%s10378_s24 + $0x268] sm:$0xff] %v1320_v13  ;;  %v1322_v14 = vld [vmem:[%s10373_s23 + $0x4e0] sm:$0xff]  ;;  %v1324_v15 = vld [vmem:[%s10373_s23 + $0x4f0] sm:$0xff] }
  0x3a   : > { %v1326_v16 = vld [vmem:[%s10373_s23 + $0x500] sm:$0xff]  ;;  %1323 = vst [vmem:[%s10378_s24 + $0x270] sm:$0xff] %v1322_v14  ;;  %1325 = vst [vmem:[%s10378_s24 + $0x278] sm:$0xff] %v1324_v15  ;;  %v1328_v17 = vld [vmem:[%s10373_s23 + $0x510] sm:$0xff] }
  0x3b   : > { %1327 = vst [vmem:[%s10378_s24 + $0x280] sm:$0xff] %v1326_v16  ;;  %v1330_v18 = vld [vmem:[%s10373_s23 + $0x520] sm:$0xff]  ;;  %v1332_v19 = vld [vmem:[%s10373_s23 + $0x530] sm:$0xff]  ;;  %1329 = vst [vmem:[%s10378_s24 + $0x288] sm:$0xff] %v1328_v17 }
  0x3c   : > { %1331 = vst [vmem:[%s10378_s24 + $0x290] sm:$0xff] %v1330_v18  ;;  %1333 = vst [vmem:[%s10378_s24 + $0x298] sm:$0xff] %v1332_v19  ;;  %v1334_v20 = vld [vmem:[%s10373_s23 + $0x540] sm:$0xff]  ;;  %v1336_v21 = vld [vmem:[%s10373_s23 + $0x550] sm:$0xff] }
  0x3d   : > { %v1338_v22 = vld [vmem:[%s10373_s23 + $0x560] sm:$0xff]  ;;  %1335 = vst [vmem:[%s10378_s24 + $0x2a0] sm:$0xff] %v1334_v20  ;;  %1337 = vst [vmem:[%s10378_s24 + $0x2a8] sm:$0xff] %v1336_v21  ;;  %v1340_v23 = vld [vmem:[%s10373_s23 + $0x570] sm:$0xff] }
  0x3e   : > { %1339 = vst [vmem:[%s10378_s24 + $0x2b0] sm:$0xff] %v1338_v22  ;;  %v1342_v24 = vld [vmem:[%s10373_s23 + $0x580] sm:$0xff]  ;;  %v1344_v25 = vld [vmem:[%s10373_s23 + $0x590] sm:$0xff]  ;;  %1341 = vst [vmem:[%s10378_s24 + $0x2b8] sm:$0xff] %v1340_v23 }
  0x3f   : > { %1343 = vst [vmem:[%s10378_s24 + $0x2c0] sm:$0xff] %v1342_v24  ;;  %1345 = vst [vmem:[%s10378_s24 + $0x2c8] sm:$0xff] %v1344_v25  ;;  %v1346_v26 = vld [vmem:[%s10373_s23 + $0x5a0] sm:$0xff]  ;;  %v1348_v27 = vld [vmem:[%s10373_s23 + $0x5b0] sm:$0xff] }
  0x40   : > { %v1350_v28 = vld [vmem:[%s10373_s23 + $0x5c0] sm:$0xff]  ;;  %1347 = vst [vmem:[%s10378_s24 + $0x2d0] sm:$0xff] %v1346_v26  ;;  %1349 = vst [vmem:[%s10378_s24 + $0x2d8] sm:$0xff] %v1348_v27  ;;  %v1352_v29 = vld [vmem:[%s10373_s23 + $0x5d0] sm:$0xff] }
  0x41   : > { %1351 = vst [vmem:[%s10378_s24 + $0x2e0] sm:$0xff] %v1350_v28  ;;  %v1354_v30 = vld [vmem:[%s10373_s23 + $0x5e0] sm:$0xff]  ;;  %v1356_v31 = vld [vmem:[%s10373_s23 + $0x5f0] sm:$0xff]  ;;  %1353 = vst [vmem:[%s10378_s24 + $0x2e8] sm:$0xff] %v1352_v29 }
  0x42   : > { %1355 = vst [vmem:[%s10378_s24 + $0x2f0] sm:$0xff] %v1354_v30  ;;  %1357 = vst [vmem:[%s10378_s24 + $0x2f8] sm:$0xff] %v1356_v31  ;;  %v1358_v32 = vld [vmem:[%s10373_s23 + $0x600] sm:$0xff]  ;;  %v1360_v33 = vld [vmem:[%s10373_s23 + $0x610] sm:$0xff] }
  0x43   : > { %v1362_v34 = vld [vmem:[%s10373_s23 + $0x620] sm:$0xff]  ;;  %1359 = vst [vmem:[%s10378_s24 + $0x300] sm:$0xff] %v1358_v32  ;;  %1361 = vst [vmem:[%s10378_s24 + $0x308] sm:$0xff] %v1360_v33  ;;  %v1364_v35 = vld [vmem:[%s10373_s23 + $0x630] sm:$0xff] }
  0x44   : > { %1363 = vst [vmem:[%s10378_s24 + $0x310] sm:$0xff] %v1362_v34  ;;  %v1366_v36 = vld [vmem:[%s10373_s23 + $0x640] sm:$0xff]  ;;  %v1368_v37 = vld [vmem:[%s10373_s23 + $0x650] sm:$0xff]  ;;  %1365 = vst [vmem:[%s10378_s24 + $0x318] sm:$0xff] %v1364_v35 }
  0x45   : > { %1367 = vst [vmem:[%s10378_s24 + $0x320] sm:$0xff] %v1366_v36  ;;  %1369 = vst [vmem:[%s10378_s24 + $0x328] sm:$0xff] %v1368_v37  ;;  %v1370_v38 = vld [vmem:[%s10373_s23 + $0x660] sm:$0xff]  ;;  %v1372_v39 = vld [vmem:[%s10373_s23 + $0x670] sm:$0xff] }
  0x46   : > { %v1374_v40 = vld [vmem:[%s10373_s23 + $0x680] sm:$0xff]  ;;  %1371 = vst [vmem:[%s10378_s24 + $0x330] sm:$0xff] %v1370_v38  ;;  %1373 = vst [vmem:[%s10378_s24 + $0x338] sm:$0xff] %v1372_v39  ;;  %v1376_v41 = vld [vmem:[%s10373_s23 + $0x690] sm:$0xff] }
  0x47   : > { %1375 = vst [vmem:[%s10378_s24 + $0x340] sm:$0xff] %v1374_v40  ;;  %v1378_v42 = vld [vmem:[%s10373_s23 + $0x6a0] sm:$0xff]  ;;  %v1380_v43 = vld [vmem:[%s10373_s23 + $0x6b0] sm:$0xff]  ;;  %1377 = vst [vmem:[%s10378_s24 + $0x348] sm:$0xff] %v1376_v41 }
  0x48   : > { %1379 = vst [vmem:[%s10378_s24 + $0x350] sm:$0xff] %v1378_v42  ;;  %1381 = vst [vmem:[%s10378_s24 + $0x358] sm:$0xff] %v1380_v43  ;;  %v1382_v44 = vld [vmem:[%s10373_s23 + $0x6c0] sm:$0xff]  ;;  %v1384_v45 = vld [vmem:[%s10373_s23 + $0x6d0] sm:$0xff] }
  0x49   : > { %v1386_v46 = vld [vmem:[%s10373_s23 + $0x6e0] sm:$0xff]  ;;  %1383 = vst [vmem:[%s10378_s24 + $0x360] sm:$0xff] %v1382_v44  ;;  %1385 = vst [vmem:[%s10378_s24 + $0x368] sm:$0xff] %v1384_v45  ;;  %v1388_v47 = vld [vmem:[%s10373_s23 + $0x6f0] sm:$0xff] }
  0x4a   : > { %1387 = vst [vmem:[%s10378_s24 + $0x370] sm:$0xff] %v1386_v46  ;;  %v1390_v48 = vld [vmem:[%s10373_s23 + $0x700] sm:$0xff]  ;;  %v1392_v49 = vld [vmem:[%s10373_s23 + $0x710] sm:$0xff]  ;;  %1389 = vst [vmem:[%s10378_s24 + $0x378] sm:$0xff] %v1388_v47 }
  0x4b   : > { %1391 = vst [vmem:[%s10378_s24 + $0x380] sm:$0xff] %v1390_v48  ;;  %1393 = vst [vmem:[%s10378_s24 + $0x388] sm:$0xff] %v1392_v49  ;;  %v1394_v50 = vld [vmem:[%s10373_s23 + $0x720] sm:$0xff]  ;;  %v1396_v51 = vld [vmem:[%s10373_s23 + $0x730] sm:$0xff] }
  0x4c   : > { %v1398_v52 = vld [vmem:[%s10373_s23 + $0x740] sm:$0xff]  ;;  %1395 = vst [vmem:[%s10378_s24 + $0x390] sm:$0xff] %v1394_v50  ;;  %1397 = vst [vmem:[%s10378_s24 + $0x398] sm:$0xff] %v1396_v51  ;;  %v1400_v53 = vld [vmem:[%s10373_s23 + $0x750] sm:$0xff] }
  0x4d   : > { %1399 = vst [vmem:[%s10378_s24 + $0x3a0] sm:$0xff] %v1398_v52  ;;  %v1402_v54 = vld [vmem:[%s10373_s23 + $0x760] sm:$0xff]  ;;  %v1404_v55 = vld [vmem:[%s10373_s23 + $0x770] sm:$0xff]  ;;  %1401 = vst [vmem:[%s10378_s24 + $0x3a8] sm:$0xff] %v1400_v53 }
  0x4e   : > { %1403 = vst [vmem:[%s10378_s24 + $0x3b0] sm:$0xff] %v1402_v54  ;;  %1405 = vst [vmem:[%s10378_s24 + $0x3b8] sm:$0xff] %v1404_v55  ;;  %v1406_v56 = vld [vmem:[%s10373_s23 + $0x780] sm:$0xff]  ;;  %v1408_v57 = vld [vmem:[%s10373_s23 + $0x790] sm:$0xff] }
  0x4f   : > { %v1410_v58 = vld [vmem:[%s10373_s23 + $0x7a0] sm:$0xff]  ;;  %1407 = vst [vmem:[%s10378_s24 + $0x3c0] sm:$0xff] %v1406_v56  ;;  %1409 = vst [vmem:[%s10378_s24 + $0x3c8] sm:$0xff] %v1408_v57  ;;  %v1412_v59 = vld [vmem:[%s10373_s23 + $0x7b0] sm:$0xff] }
  0x50   : > { %1411 = vst [vmem:[%s10378_s24 + $0x3d0] sm:$0xff] %v1410_v58  ;;  %v1414_v60 = vld [vmem:[%s10373_s23 + $0x7c0] sm:$0xff]  ;;  %v1416_v61 = vld [vmem:[%s10373_s23 + $0x7d0] sm:$0xff]  ;;  %1413 = vst [vmem:[%s10378_s24 + $0x3d8] sm:$0xff] %v1412_v59 }
  0x51   : > { %1415 = vst [vmem:[%s10378_s24 + $0x3e0] sm:$0xff] %v1414_v60  ;;  %1417 = vst [vmem:[%s10378_s24 + $0x3e8] sm:$0xff] %v1416_v61  ;;  %v1418_v62 = vld [vmem:[%s10373_s23 + $0x7e0] sm:$0xff]  ;;  %v1420_v63 = vld [vmem:[%s10373_s23 + $0x7f0] sm:$0xff] }
  0x52   : > { %v1422_v0 = vld [vmem:[%s10373_s23 + $0x800] sm:$0xff]  ;;  %1419 = vst [vmem:[%s10378_s24 + $0x3f0] sm:$0xff] %v1418_v62  ;;  %1421 = vst [vmem:[%s10378_s24 + $0x3f8] sm:$0xff] %v1420_v63  ;;  %v1424_v1 = vld [vmem:[%s10373_s23 + $0x810] sm:$0xff] }
  0x53   : > { %1423 = vst [vmem:[%s10378_s24 + $0x400] sm:$0xff] %v1422_v0  ;;  %v1426_v2 = vld [vmem:[%s10373_s23 + $0x820] sm:$0xff]  ;;  %v1428_v3 = vld [vmem:[%s10373_s23 + $0x830] sm:$0xff]  ;;  %1425 = vst [vmem:[%s10378_s24 + $0x408] sm:$0xff] %v1424_v1 }
  0x54   : > { %1427 = vst [vmem:[%s10378_s24 + $0x410] sm:$0xff] %v1426_v2  ;;  %1429 = vst [vmem:[%s10378_s24 + $0x418] sm:$0xff] %v1428_v3  ;;  %v1430_v4 = vld [vmem:[%s10373_s23 + $0x840] sm:$0xff]  ;;  %v1432_v5 = vld [vmem:[%s10373_s23 + $0x850] sm:$0xff] }
  0x55   : > { %v1434_v6 = vld [vmem:[%s10373_s23 + $0x860] sm:$0xff]  ;;  %1431 = vst [vmem:[%s10378_s24 + $0x420] sm:$0xff] %v1430_v4  ;;  %1433 = vst [vmem:[%s10378_s24 + $0x428] sm:$0xff] %v1432_v5  ;;  %v1436_v7 = vld [vmem:[%s10373_s23 + $0x870] sm:$0xff] }
  0x56   : > { %1435 = vst [vmem:[%s10378_s24 + $0x430] sm:$0xff] %v1434_v6  ;;  %v1438_v8 = vld [vmem:[%s10373_s23 + $0x880] sm:$0xff]  ;;  %v1440_v9 = vld [vmem:[%s10373_s23 + $0x890] sm:$0xff]  ;;  %1437 = vst [vmem:[%s10378_s24 + $0x438] sm:$0xff] %v1436_v7 }
  0x57   : > { %1439 = vst [vmem:[%s10378_s24 + $0x440] sm:$0xff] %v1438_v8  ;;  %1441 = vst [vmem:[%s10378_s24 + $0x448] sm:$0xff] %v1440_v9  ;;  %v1442_v10 = vld [vmem:[%s10373_s23 + $0x8a0] sm:$0xff]  ;;  %v1444_v11 = vld [vmem:[%s10373_s23 + $0x8b0] sm:$0xff] }
  0x58   : > { %v1446_v12 = vld [vmem:[%s10373_s23 + $0x8c0] sm:$0xff]  ;;  %1443 = vst [vmem:[%s10378_s24 + $0x450] sm:$0xff] %v1442_v10  ;;  %1445 = vst [vmem:[%s10378_s24 + $0x458] sm:$0xff] %v1444_v11  ;;  %v1448_v13 = vld [vmem:[%s10373_s23 + $0x8d0] sm:$0xff] }
  0x59   : > { %1447 = vst [vmem:[%s10378_s24 + $0x460] sm:$0xff] %v1446_v12  ;;  %v1450_v14 = vld [vmem:[%s10373_s23 + $0x8e0] sm:$0xff]  ;;  %v1452_v15 = vld [vmem:[%s10373_s23 + $0x8f0] sm:$0xff]  ;;  %1449 = vst [vmem:[%s10378_s24 + $0x468] sm:$0xff] %v1448_v13 }
  0x5a   : > { %1451 = vst [vmem:[%s10378_s24 + $0x470] sm:$0xff] %v1450_v14  ;;  %1453 = vst [vmem:[%s10378_s24 + $0x478] sm:$0xff] %v1452_v15  ;;  %v1454_v16 = vld [vmem:[%s10373_s23 + $0x900] sm:$0xff]  ;;  %v1456_v17 = vld [vmem:[%s10373_s23 + $0x910] sm:$0xff] }
  0x5b   : > { %v1458_v18 = vld [vmem:[%s10373_s23 + $0x920] sm:$0xff]  ;;  %1455 = vst [vmem:[%s10378_s24 + $0x480] sm:$0xff] %v1454_v16  ;;  %1457 = vst [vmem:[%s10378_s24 + $0x488] sm:$0xff] %v1456_v17  ;;  %v1460_v19 = vld [vmem:[%s10373_s23 + $0x930] sm:$0xff] }
  0x5c   : > { %1459 = vst [vmem:[%s10378_s24 + $0x490] sm:$0xff] %v1458_v18  ;;  %v1462_v20 = vld [vmem:[%s10373_s23 + $0x940] sm:$0xff]  ;;  %v1464_v21 = vld [vmem:[%s10373_s23 + $0x950] sm:$0xff]  ;;  %1461 = vst [vmem:[%s10378_s24 + $0x498] sm:$0xff] %v1460_v19 }
  0x5d   : > { %1463 = vst [vmem:[%s10378_s24 + $0x4a0] sm:$0xff] %v1462_v20  ;;  %1465 = vst [vmem:[%s10378_s24 + $0x4a8] sm:$0xff] %v1464_v21  ;;  %v1466_v22 = vld [vmem:[%s10373_s23 + $0x960] sm:$0xff]  ;;  %v1468_v23 = vld [vmem:[%s10373_s23 + $0x970] sm:$0xff] }
  0x5e   : > { %v1470_v24 = vld [vmem:[%s10373_s23 + $0x980] sm:$0xff]  ;;  %1467 = vst [vmem:[%s10378_s24 + $0x4b0] sm:$0xff] %v1466_v22  ;;  %1469 = vst [vmem:[%s10378_s24 + $0x4b8] sm:$0xff] %v1468_v23  ;;  %v1472_v25 = vld [vmem:[%s10373_s23 + $0x990] sm:$0xff] }
  0x5f   : > { %1471 = vst [vmem:[%s10378_s24 + $0x4c0] sm:$0xff] %v1470_v24  ;;  %v1474_v26 = vld [vmem:[%s10373_s23 + $0x9a0] sm:$0xff]  ;;  %v1476_v27 = vld [vmem:[%s10373_s23 + $0x9b0] sm:$0xff]  ;;  %1473 = vst [vmem:[%s10378_s24 + $0x4c8] sm:$0xff] %v1472_v25 }
  0x60   : > { %1475 = vst [vmem:[%s10378_s24 + $0x4d0] sm:$0xff] %v1474_v26  ;;  %1477 = vst [vmem:[%s10378_s24 + $0x4d8] sm:$0xff] %v1476_v27  ;;  %v1478_v28 = vld [vmem:[%s10373_s23 + $0x9c0] sm:$0xff]  ;;  %v1480_v29 = vld [vmem:[%s10373_s23 + $0x9d0] sm:$0xff] }
  0x61   : > { %v1482_v30 = vld [vmem:[%s10373_s23 + $0x9e0] sm:$0xff]  ;;  %1479 = vst [vmem:[%s10378_s24 + $0x4e0] sm:$0xff] %v1478_v28  ;;  %1481 = vst [vmem:[%s10378_s24 + $0x4e8] sm:$0xff] %v1480_v29  ;;  %v1484_v31 = vld [vmem:[%s10373_s23 + $0x9f0] sm:$0xff] }
  0x62   : > { %1483 = vst [vmem:[%s10378_s24 + $0x4f0] sm:$0xff] %v1482_v30  ;;  %v1486_v32 = vld [vmem:[%s10373_s23 + $0xa00] sm:$0xff]  ;;  %v1488_v33 = vld [vmem:[%s10373_s23 + $0xa10] sm:$0xff]  ;;  %1485 = vst [vmem:[%s10378_s24 + $0x4f8] sm:$0xff] %v1484_v31 }
  0x63   : > { %1487 = vst [vmem:[%s10378_s24 + $0x500] sm:$0xff] %v1486_v32  ;;  %1489 = vst [vmem:[%s10378_s24 + $0x508] sm:$0xff] %v1488_v33  ;;  %v1490_v34 = vld [vmem:[%s10373_s23 + $0xa20] sm:$0xff]  ;;  %v1492_v35 = vld [vmem:[%s10373_s23 + $0xa30] sm:$0xff] }
  0x64   : > { %v1494_v36 = vld [vmem:[%s10373_s23 + $0xa40] sm:$0xff]  ;;  %1491 = vst [vmem:[%s10378_s24 + $0x510] sm:$0xff] %v1490_v34  ;;  %1493 = vst [vmem:[%s10378_s24 + $0x518] sm:$0xff] %v1492_v35  ;;  %v1496_v37 = vld [vmem:[%s10373_s23 + $0xa50] sm:$0xff] }
  0x65   : > { %1495 = vst [vmem:[%s10378_s24 + $0x520] sm:$0xff] %v1494_v36  ;;  %v1498_v38 = vld [vmem:[%s10373_s23 + $0xa60] sm:$0xff]  ;;  %v1500_v39 = vld [vmem:[%s10373_s23 + $0xa70] sm:$0xff]  ;;  %1497 = vst [vmem:[%s10378_s24 + $0x528] sm:$0xff] %v1496_v37 }
  0x66   : > { %1499 = vst [vmem:[%s10378_s24 + $0x530] sm:$0xff] %v1498_v38  ;;  %1501 = vst [vmem:[%s10378_s24 + $0x538] sm:$0xff] %v1500_v39  ;;  %v1502_v40 = vld [vmem:[%s10373_s23 + $0xa80] sm:$0xff]  ;;  %v1504_v41 = vld [vmem:[%s10373_s23 + $0xa90] sm:$0xff] }
  0x67   : > { %v1506_v42 = vld [vmem:[%s10373_s23 + $0xaa0] sm:$0xff]  ;;  %1503 = vst [vmem:[%s10378_s24 + $0x540] sm:$0xff] %v1502_v40  ;;  %1505 = vst [vmem:[%s10378_s24 + $0x548] sm:$0xff] %v1504_v41  ;;  %v1508_v43 = vld [vmem:[%s10373_s23 + $0xab0] sm:$0xff] }
  0x68   : > { %1507 = vst [vmem:[%s10378_s24 + $0x550] sm:$0xff] %v1506_v42  ;;  %v1510_v44 = vld [vmem:[%s10373_s23 + $0xac0] sm:$0xff]  ;;  %v1512_v45 = vld [vmem:[%s10373_s23 + $0xad0] sm:$0xff]  ;;  %1509 = vst [vmem:[%s10378_s24 + $0x558] sm:$0xff] %v1508_v43 }
  0x69   : > { %1511 = vst [vmem:[%s10378_s24 + $0x560] sm:$0xff] %v1510_v44  ;;  %1513 = vst [vmem:[%s10378_s24 + $0x568] sm:$0xff] %v1512_v45  ;;  %v1514_v46 = vld [vmem:[%s10373_s23 + $0xae0] sm:$0xff]  ;;  %v1516_v47 = vld [vmem:[%s10373_s23 + $0xaf0] sm:$0xff] }
  0x6a   : > { %v1518_v48 = vld [vmem:[%s10373_s23 + $0xb00] sm:$0xff]  ;;  %1515 = vst [vmem:[%s10378_s24 + $0x570] sm:$0xff] %v1514_v46  ;;  %1517 = vst [vmem:[%s10378_s24 + $0x578] sm:$0xff] %v1516_v47  ;;  %v1520_v49 = vld [vmem:[%s10373_s23 + $0xb10] sm:$0xff] }
  0x6b   : > { %1519 = vst [vmem:[%s10378_s24 + $0x580] sm:$0xff] %v1518_v48  ;;  %v1522_v50 = vld [vmem:[%s10373_s23 + $0xb20] sm:$0xff]  ;;  %v1524_v51 = vld [vmem:[%s10373_s23 + $0xb30] sm:$0xff]  ;;  %1521 = vst [vmem:[%s10378_s24 + $0x588] sm:$0xff] %v1520_v49 }
  0x6c   : > { %1523 = vst [vmem:[%s10378_s24 + $0x590] sm:$0xff] %v1522_v50  ;;  %1525 = vst [vmem:[%s10378_s24 + $0x598] sm:$0xff] %v1524_v51  ;;  %v1526_v52 = vld [vmem:[%s10373_s23 + $0xb40] sm:$0xff]  ;;  %v1528_v53 = vld [vmem:[%s10373_s23 + $0xb50] sm:$0xff] }
  0x6d   : > { %v1530_v54 = vld [vmem:[%s10373_s23 + $0xb60] sm:$0xff]  ;;  %1527 = vst [vmem:[%s10378_s24 + $0x5a0] sm:$0xff] %v1526_v52  ;;  %1529 = vst [vmem:[%s10378_s24 + $0x5a8] sm:$0xff] %v1528_v53  ;;  %v1532_v55 = vld [vmem:[%s10373_s23 + $0xb70] sm:$0xff] }
  0x6e   : > { %1531 = vst [vmem:[%s10378_s24 + $0x5b0] sm:$0xff] %v1530_v54  ;;  %v1534_v56 = vld [vmem:[%s10373_s23 + $0xb80] sm:$0xff]  ;;  %v1536_v57 = vld [vmem:[%s10373_s23 + $0xb90] sm:$0xff]  ;;  %1533 = vst [vmem:[%s10378_s24 + $0x5b8] sm:$0xff] %v1532_v55 }
  0x6f   : > { %1535 = vst [vmem:[%s10378_s24 + $0x5c0] sm:$0xff] %v1534_v56  ;;  %1537 = vst [vmem:[%s10378_s24 + $0x5c8] sm:$0xff] %v1536_v57  ;;  %v1538_v58 = vld [vmem:[%s10373_s23 + $0xba0] sm:$0xff]  ;;  %v1540_v59 = vld [vmem:[%s10373_s23 + $0xbb0] sm:$0xff] }
  0x70   : > { %v1542_v60 = vld [vmem:[%s10373_s23 + $0xbc0] sm:$0xff]  ;;  %1539 = vst [vmem:[%s10378_s24 + $0x5d0] sm:$0xff] %v1538_v58  ;;  %1541 = vst [vmem:[%s10378_s24 + $0x5d8] sm:$0xff] %v1540_v59  ;;  %v1544_v61 = vld [vmem:[%s10373_s23 + $0xbd0] sm:$0xff] }
  0x71   : > { %1543 = vst [vmem:[%s10378_s24 + $0x5e0] sm:$0xff] %v1542_v60  ;;  %v1546_v62 = vld [vmem:[%s10373_s23 + $0xbe0] sm:$0xff]  ;;  %v1548_v63 = vld [vmem:[%s10373_s23 + $0xbf0] sm:$0xff]  ;;  %1545 = vst [vmem:[%s10378_s24 + $0x5e8] sm:$0xff] %v1544_v61 }
  0x72   : > { %1547 = vst [vmem:[%s10378_s24 + $0x5f0] sm:$0xff] %v1546_v62  ;;  %1549 = vst [vmem:[%s10378_s24 + $0x5f8] sm:$0xff] %v1548_v63  ;;  %v1550_v0 = vld [vmem:[%s10373_s23 + $0xc00] sm:$0xff]  ;;  %v1552_v1 = vld [vmem:[%s10373_s23 + $0xc10] sm:$0xff] }
  0x73   : > { %v1554_v2 = vld [vmem:[%s10373_s23 + $0xc20] sm:$0xff]  ;;  %1551 = vst [vmem:[%s10378_s24 + $0x600] sm:$0xff] %v1550_v0  ;;  %1553 = vst [vmem:[%s10378_s24 + $0x608] sm:$0xff] %v1552_v1  ;;  %v1556_v3 = vld [vmem:[%s10373_s23 + $0xc30] sm:$0xff] }
  0x74   : > { %1555 = vst [vmem:[%s10378_s24 + $0x610] sm:$0xff] %v1554_v2  ;;  %v1558_v4 = vld [vmem:[%s10373_s23 + $0xc40] sm:$0xff]  ;;  %v1560_v5 = vld [vmem:[%s10373_s23 + $0xc50] sm:$0xff]  ;;  %1557 = vst [vmem:[%s10378_s24 + $0x618] sm:$0xff] %v1556_v3 }
  0x75   : > { %1559 = vst [vmem:[%s10378_s24 + $0x620] sm:$0xff] %v1558_v4  ;;  %1561 = vst [vmem:[%s10378_s24 + $0x628] sm:$0xff] %v1560_v5  ;;  %v1562_v6 = vld [vmem:[%s10373_s23 + $0xc60] sm:$0xff]  ;;  %v1564_v7 = vld [vmem:[%s10373_s23 + $0xc70] sm:$0xff] }
  0x76   : > { %v1566_v8 = vld [vmem:[%s10373_s23 + $0xc80] sm:$0xff]  ;;  %1563 = vst [vmem:[%s10378_s24 + $0x630] sm:$0xff] %v1562_v6  ;;  %1565 = vst [vmem:[%s10378_s24 + $0x638] sm:$0xff] %v1564_v7  ;;  %v1568_v9 = vld [vmem:[%s10373_s23 + $0xc90] sm:$0xff] }
  0x77   : > { %1567 = vst [vmem:[%s10378_s24 + $0x640] sm:$0xff] %v1566_v8  ;;  %v1570_v10 = vld [vmem:[%s10373_s23 + $0xca0] sm:$0xff]  ;;  %v1572_v11 = vld [vmem:[%s10373_s23 + $0xcb0] sm:$0xff]  ;;  %1569 = vst [vmem:[%s10378_s24 + $0x648] sm:$0xff] %v1568_v9 }
  0x78   : > { %1571 = vst [vmem:[%s10378_s24 + $0x650] sm:$0xff] %v1570_v10  ;;  %1573 = vst [vmem:[%s10378_s24 + $0x658] sm:$0xff] %v1572_v11  ;;  %v1574_v12 = vld [vmem:[%s10373_s23 + $0xcc0] sm:$0xff]  ;;  %v1576_v13 = vld [vmem:[%s10373_s23 + $0xcd0] sm:$0xff] }
  0x79   : > { %v1578_v14 = vld [vmem:[%s10373_s23 + $0xce0] sm:$0xff]  ;;  %1575 = vst [vmem:[%s10378_s24 + $0x660] sm:$0xff] %v1574_v12  ;;  %1577 = vst [vmem:[%s10378_s24 + $0x668] sm:$0xff] %v1576_v13  ;;  %v1580_v15 = vld [vmem:[%s10373_s23 + $0xcf0] sm:$0xff] }
  0x7a   : > { %1579 = vst [vmem:[%s10378_s24 + $0x670] sm:$0xff] %v1578_v14  ;;  %v1582_v16 = vld [vmem:[%s10373_s23 + $0xd00] sm:$0xff]  ;;  %v1584_v17 = vld [vmem:[%s10373_s23 + $0xd10] sm:$0xff]  ;;  %1581 = vst [vmem:[%s10378_s24 + $0x678] sm:$0xff] %v1580_v15 }
  0x7b   : > { %1583 = vst [vmem:[%s10378_s24 + $0x680] sm:$0xff] %v1582_v16  ;;  %1585 = vst [vmem:[%s10378_s24 + $0x688] sm:$0xff] %v1584_v17  ;;  %v1586_v18 = vld [vmem:[%s10373_s23 + $0xd20] sm:$0xff]  ;;  %v1588_v19 = vld [vmem:[%s10373_s23 + $0xd30] sm:$0xff] }
  0x7c   : > { %v1590_v20 = vld [vmem:[%s10373_s23 + $0xd40] sm:$0xff]  ;;  %1587 = vst [vmem:[%s10378_s24 + $0x690] sm:$0xff] %v1586_v18  ;;  %1589 = vst [vmem:[%s10378_s24 + $0x698] sm:$0xff] %v1588_v19  ;;  %v1592_v21 = vld [vmem:[%s10373_s23 + $0xd50] sm:$0xff] }
  0x7d   : > { %1591 = vst [vmem:[%s10378_s24 + $0x6a0] sm:$0xff] %v1590_v20  ;;  %v1594_v22 = vld [vmem:[%s10373_s23 + $0xd60] sm:$0xff]  ;;  %v1596_v23 = vld [vmem:[%s10373_s23 + $0xd70] sm:$0xff]  ;;  %1593 = vst [vmem:[%s10378_s24 + $0x6a8] sm:$0xff] %v1592_v21 }
  0x7e   : > { %1595 = vst [vmem:[%s10378_s24 + $0x6b0] sm:$0xff] %v1594_v22  ;;  %1597 = vst [vmem:[%s10378_s24 + $0x6b8] sm:$0xff] %v1596_v23  ;;  %v1598_v24 = vld [vmem:[%s10373_s23 + $0xd80] sm:$0xff]  ;;  %v1600_v25 = vld [vmem:[%s10373_s23 + $0xd90] sm:$0xff] }
  0x7f   : > { %v1602_v26 = vld [vmem:[%s10373_s23 + $0xda0] sm:$0xff]  ;;  %1599 = vst [vmem:[%s10378_s24 + $0x6c0] sm:$0xff] %v1598_v24  ;;  %1601 = vst [vmem:[%s10378_s24 + $0x6c8] sm:$0xff] %v1600_v25  ;;  %v1604_v27 = vld [vmem:[%s10373_s23 + $0xdb0] sm:$0xff] }
  0x80   : > { %1603 = vst [vmem:[%s10378_s24 + $0x6d0] sm:$0xff] %v1602_v26  ;;  %v1606_v28 = vld [vmem:[%s10373_s23 + $0xdc0] sm:$0xff]  ;;  %v1608_v29 = vld [vmem:[%s10373_s23 + $0xdd0] sm:$0xff]  ;;  %1605 = vst [vmem:[%s10378_s24 + $0x6d8] sm:$0xff] %v1604_v27 }
  0x81   : > { %1607 = vst [vmem:[%s10378_s24 + $0x6e0] sm:$0xff] %v1606_v28  ;;  %1609 = vst [vmem:[%s10378_s24 + $0x6e8] sm:$0xff] %v1608_v29  ;;  %v1610_v30 = vld [vmem:[%s10373_s23 + $0xde0] sm:$0xff]  ;;  %v1612_v31 = vld [vmem:[%s10373_s23 + $0xdf0] sm:$0xff] }
  0x82   : > { %v1614_v32 = vld [vmem:[%s10373_s23 + $0xe00] sm:$0xff]  ;;  %1611 = vst [vmem:[%s10378_s24 + $0x6f0] sm:$0xff] %v1610_v30  ;;  %1613 = vst [vmem:[%s10378_s24 + $0x6f8] sm:$0xff] %v1612_v31  ;;  %v1616_v33 = vld [vmem:[%s10373_s23 + $0xe10] sm:$0xff] }
  0x83   : > { %1615 = vst [vmem:[%s10378_s24 + $0x700] sm:$0xff] %v1614_v32  ;;  %v1618_v34 = vld [vmem:[%s10373_s23 + $0xe20] sm:$0xff]  ;;  %v1620_v35 = vld [vmem:[%s10373_s23 + $0xe30] sm:$0xff]  ;;  %1617 = vst [vmem:[%s10378_s24 + $0x708] sm:$0xff] %v1616_v33 }
  0x84   : > { %1619 = vst [vmem:[%s10378_s24 + $0x710] sm:$0xff] %v1618_v34  ;;  %1621 = vst [vmem:[%s10378_s24 + $0x718] sm:$0xff] %v1620_v35  ;;  %v1622_v36 = vld [vmem:[%s10373_s23 + $0xe40] sm:$0xff]  ;;  %v1624_v37 = vld [vmem:[%s10373_s23 + $0xe50] sm:$0xff] }
  0x85   : > { %v1626_v38 = vld [vmem:[%s10373_s23 + $0xe60] sm:$0xff]  ;;  %1623 = vst [vmem:[%s10378_s24 + $0x720] sm:$0xff] %v1622_v36  ;;  %1625 = vst [vmem:[%s10378_s24 + $0x728] sm:$0xff] %v1624_v37  ;;  %v1628_v39 = vld [vmem:[%s10373_s23 + $0xe70] sm:$0xff] }
  0x86   : > { %1627 = vst [vmem:[%s10378_s24 + $0x730] sm:$0xff] %v1626_v38  ;;  %v1630_v40 = vld [vmem:[%s10373_s23 + $0xe80] sm:$0xff]  ;;  %v1632_v41 = vld [vmem:[%s10373_s23 + $0xe90] sm:$0xff]  ;;  %1629 = vst [vmem:[%s10378_s24 + $0x738] sm:$0xff] %v1628_v39 }
  0x87   : > { %1631 = vst [vmem:[%s10378_s24 + $0x740] sm:$0xff] %v1630_v40  ;;  %1633 = vst [vmem:[%s10378_s24 + $0x748] sm:$0xff] %v1632_v41  ;;  %v1634_v42 = vld [vmem:[%s10373_s23 + $0xea0] sm:$0xff]  ;;  %v1636_v43 = vld [vmem:[%s10373_s23 + $0xeb0] sm:$0xff] }
  0x88   : > { %v1638_v44 = vld [vmem:[%s10373_s23 + $0xec0] sm:$0xff]  ;;  %1635 = vst [vmem:[%s10378_s24 + $0x750] sm:$0xff] %v1634_v42  ;;  %1637 = vst [vmem:[%s10378_s24 + $0x758] sm:$0xff] %v1636_v43  ;;  %v1640_v45 = vld [vmem:[%s10373_s23 + $0xed0] sm:$0xff] }
  0x89   : > { %1639 = vst [vmem:[%s10378_s24 + $0x760] sm:$0xff] %v1638_v44  ;;  %v1642_v46 = vld [vmem:[%s10373_s23 + $0xee0] sm:$0xff]  ;;  %v1644_v47 = vld [vmem:[%s10373_s23 + $0xef0] sm:$0xff]  ;;  %1641 = vst [vmem:[%s10378_s24 + $0x768] sm:$0xff] %v1640_v45 }
  0x8a   : > { %1643 = vst [vmem:[%s10378_s24 + $0x770] sm:$0xff] %v1642_v46  ;;  %1645 = vst [vmem:[%s10378_s24 + $0x778] sm:$0xff] %v1644_v47  ;;  %v1646_v48 = vld [vmem:[%s10373_s23 + $0xf00] sm:$0xff]  ;;  %v1648_v49 = vld [vmem:[%s10373_s23 + $0xf10] sm:$0xff] }
  0x8b   : > { %v1650_v50 = vld [vmem:[%s10373_s23 + $0xf20] sm:$0xff]  ;;  %1647 = vst [vmem:[%s10378_s24 + $0x780] sm:$0xff] %v1646_v48  ;;  %1649 = vst [vmem:[%s10378_s24 + $0x788] sm:$0xff] %v1648_v49  ;;  %v1652_v51 = vld [vmem:[%s10373_s23 + $0xf30] sm:$0xff] }
  0x8c   : > { %1651 = vst [vmem:[%s10378_s24 + $0x790] sm:$0xff] %v1650_v50  ;;  %v1654_v52 = vld [vmem:[%s10373_s23 + $0xf40] sm:$0xff]  ;;  %v1656_v53 = vld [vmem:[%s10373_s23 + $0xf50] sm:$0xff]  ;;  %1653 = vst [vmem:[%s10378_s24 + $0x798] sm:$0xff] %v1652_v51 }
  0x8d   : > { %1655 = vst [vmem:[%s10378_s24 + $0x7a0] sm:$0xff] %v1654_v52  ;;  %1657 = vst [vmem:[%s10378_s24 + $0x7a8] sm:$0xff] %v1656_v53  ;;  %v1658_v54 = vld [vmem:[%s10373_s23 + $0xf60] sm:$0xff]  ;;  %v1660_v55 = vld [vmem:[%s10373_s23 + $0xf70] sm:$0xff] }
  0x8e   : > { %v1662_v56 = vld [vmem:[%s10373_s23 + $0xf80] sm:$0xff]  ;;  %1659 = vst [vmem:[%s10378_s24 + $0x7b0] sm:$0xff] %v1658_v54  ;;  %1661 = vst [vmem:[%s10378_s24 + $0x7b8] sm:$0xff] %v1660_v55  ;;  %v1664_v57 = vld [vmem:[%s10373_s23 + $0xf90] sm:$0xff] }
  0x8f   : > { %1663 = vst [vmem:[%s10378_s24 + $0x7c0] sm:$0xff] %v1662_v56  ;;  %v1666_v58 = vld [vmem:[%s10373_s23 + $0xfa0] sm:$0xff]  ;;  %v1668_v59 = vld [vmem:[%s10373_s23 + $0xfb0] sm:$0xff]  ;;  %1665 = vst [vmem:[%s10378_s24 + $0x7c8] sm:$0xff] %v1664_v57 }
  0x90   : > { %1667 = vst [vmem:[%s10378_s24 + $0x7d0] sm:$0xff] %v1666_v58  ;;  %1669 = vst [vmem:[%s10378_s24 + $0x7d8] sm:$0xff] %v1668_v59  ;;  %v1670_v60 = vld [vmem:[%s10373_s23 + $0xfc0] sm:$0xff]  ;;  %v1672_v61 = vld [vmem:[%s10373_s23 + $0xfd0] sm:$0xff] }
  0x91   : > { %v1674_v62 = vld [vmem:[%s10373_s23 + $0xfe0] sm:$0xff]  ;;  %1671 = vst [vmem:[%s10378_s24 + $0x7e0] sm:$0xff] %v1670_v60  ;;  %1673 = vst [vmem:[%s10378_s24 + $0x7e8] sm:$0xff] %v1672_v61  ;;  %v1676_v63 = vld [vmem:[%s10373_s23 + $0xff0] sm:$0xff] }
  0x92   : > { %1675 = vst [vmem:[%s10378_s24 + $0x7f0] sm:$0xff] %v1674_v62  ;;  %v1678_v0 = vld [vmem:[%s10373_s23 + $0x1000] sm:$0xff]  ;;  %v1680_v1 = vld [vmem:[%s10373_s23 + $0x1010] sm:$0xff]  ;;  %1677 = vst [vmem:[%s10378_s24 + $0x7f8] sm:$0xff] %v1676_v63 }
  0x93   : > { %1679 = vst [vmem:[%s10378_s24 + $0x800] sm:$0xff] %v1678_v0  ;;  %1681 = vst [vmem:[%s10378_s24 + $0x808] sm:$0xff] %v1680_v1  ;;  %v1682_v2 = vld [vmem:[%s10373_s23 + $0x1020] sm:$0xff]  ;;  %v1684_v3 = vld [vmem:[%s10373_s23 + $0x1030] sm:$0xff] }
  0x94   : > { %v1686_v4 = vld [vmem:[%s10373_s23 + $0x1040] sm:$0xff]  ;;  %1683 = vst [vmem:[%s10378_s24 + $0x810] sm:$0xff] %v1682_v2  ;;  %1685 = vst [vmem:[%s10378_s24 + $0x818] sm:$0xff] %v1684_v3  ;;  %v1688_v5 = vld [vmem:[%s10373_s23 + $0x1050] sm:$0xff] }
  0x95   : > { %1687 = vst [vmem:[%s10378_s24 + $0x820] sm:$0xff] %v1686_v4  ;;  %v1690_v6 = vld [vmem:[%s10373_s23 + $0x1060] sm:$0xff]  ;;  %v1692_v7 = vld [vmem:[%s10373_s23 + $0x1070] sm:$0xff]  ;;  %1689 = vst [vmem:[%s10378_s24 + $0x828] sm:$0xff] %v1688_v5 }
  0x96   : > { %1691 = vst [vmem:[%s10378_s24 + $0x830] sm:$0xff] %v1690_v6  ;;  %1693 = vst [vmem:[%s10378_s24 + $0x838] sm:$0xff] %v1692_v7  ;;  %v1694_v8 = vld [vmem:[%s10373_s23 + $0x1080] sm:$0xff]  ;;  %v1696_v9 = vld [vmem:[%s10373_s23 + $0x1090] sm:$0xff] }
  0x97   : > { %v1698_v10 = vld [vmem:[%s10373_s23 + $0x10a0] sm:$0xff]  ;;  %1695 = vst [vmem:[%s10378_s24 + $0x840] sm:$0xff] %v1694_v8  ;;  %1697 = vst [vmem:[%s10378_s24 + $0x848] sm:$0xff] %v1696_v9  ;;  %v1700_v11 = vld [vmem:[%s10373_s23 + $0x10b0] sm:$0xff] }
  0x98   : > { %1699 = vst [vmem:[%s10378_s24 + $0x850] sm:$0xff] %v1698_v10  ;;  %v1702_v12 = vld [vmem:[%s10373_s23 + $0x10c0] sm:$0xff]  ;;  %v1704_v13 = vld [vmem:[%s10373_s23 + $0x10d0] sm:$0xff]  ;;  %1701 = vst [vmem:[%s10378_s24 + $0x858] sm:$0xff] %v1700_v11 }
  0x99   : > { %1703 = vst [vmem:[%s10378_s24 + $0x860] sm:$0xff] %v1702_v12  ;;  %1705 = vst [vmem:[%s10378_s24 + $0x868] sm:$0xff] %v1704_v13  ;;  %v1706_v14 = vld [vmem:[%s10373_s23 + $0x10e0] sm:$0xff]  ;;  %v1708_v15 = vld [vmem:[%s10373_s23 + $0x10f0] sm:$0xff] }
  0x9a   : > { %v1710_v16 = vld [vmem:[%s10373_s23 + $0x1100] sm:$0xff]  ;;  %1707 = vst [vmem:[%s10378_s24 + $0x870] sm:$0xff] %v1706_v14  ;;  %1709 = vst [vmem:[%s10378_s24 + $0x878] sm:$0xff] %v1708_v15  ;;  %v1712_v17 = vld [vmem:[%s10373_s23 + $0x1110] sm:$0xff] }
  0x9b   : > { %1711 = vst [vmem:[%s10378_s24 + $0x880] sm:$0xff] %v1710_v16  ;;  %v1714_v18 = vld [vmem:[%s10373_s23 + $0x1120] sm:$0xff]  ;;  %v1716_v19 = vld [vmem:[%s10373_s23 + $0x1130] sm:$0xff]  ;;  %1713 = vst [vmem:[%s10378_s24 + $0x888] sm:$0xff] %v1712_v17 }
  0x9c   : > { %1715 = vst [vmem:[%s10378_s24 + $0x890] sm:$0xff] %v1714_v18  ;;  %1717 = vst [vmem:[%s10378_s24 + $0x898] sm:$0xff] %v1716_v19  ;;  %v1718_v20 = vld [vmem:[%s10373_s23 + $0x1140] sm:$0xff]  ;;  %v1720_v21 = vld [vmem:[%s10373_s23 + $0x1150] sm:$0xff] }
  0x9d   : > { %v1722_v22 = vld [vmem:[%s10373_s23 + $0x1160] sm:$0xff]  ;;  %1719 = vst [vmem:[%s10378_s24 + $0x8a0] sm:$0xff] %v1718_v20  ;;  %1721 = vst [vmem:[%s10378_s24 + $0x8a8] sm:$0xff] %v1720_v21  ;;  %v1724_v23 = vld [vmem:[%s10373_s23 + $0x1170] sm:$0xff] }
  0x9e   : > { %1723 = vst [vmem:[%s10378_s24 + $0x8b0] sm:$0xff] %v1722_v22  ;;  %v1726_v24 = vld [vmem:[%s10373_s23 + $0x1180] sm:$0xff]  ;;  %v1728_v25 = vld [vmem:[%s10373_s23 + $0x1190] sm:$0xff]  ;;  %1725 = vst [vmem:[%s10378_s24 + $0x8b8] sm:$0xff] %v1724_v23 }
  0x9f   : > { %1727 = vst [vmem:[%s10378_s24 + $0x8c0] sm:$0xff] %v1726_v24  ;;  %1729 = vst [vmem:[%s10378_s24 + $0x8c8] sm:$0xff] %v1728_v25  ;;  %v1730_v26 = vld [vmem:[%s10373_s23 + $0x11a0] sm:$0xff]  ;;  %v1732_v27 = vld [vmem:[%s10373_s23 + $0x11b0] sm:$0xff] }
  0xa0   : > { %v1734_v28 = vld [vmem:[%s10373_s23 + $0x11c0] sm:$0xff]  ;;  %1731 = vst [vmem:[%s10378_s24 + $0x8d0] sm:$0xff] %v1730_v26  ;;  %1733 = vst [vmem:[%s10378_s24 + $0x8d8] sm:$0xff] %v1732_v27  ;;  %v1736_v29 = vld [vmem:[%s10373_s23 + $0x11d0] sm:$0xff] }
  0xa1   : > { %1735 = vst [vmem:[%s10378_s24 + $0x8e0] sm:$0xff] %v1734_v28  ;;  %v1738_v30 = vld [vmem:[%s10373_s23 + $0x11e0] sm:$0xff]  ;;  %v1740_v31 = vld [vmem:[%s10373_s23 + $0x11f0] sm:$0xff]  ;;  %1737 = vst [vmem:[%s10378_s24 + $0x8e8] sm:$0xff] %v1736_v29 }
  0xa2   : > { %1739 = vst [vmem:[%s10378_s24 + $0x8f0] sm:$0xff] %v1738_v30  ;;  %1741 = vst [vmem:[%s10378_s24 + $0x8f8] sm:$0xff] %v1740_v31  ;;  %v1742_v32 = vld [vmem:[%s10373_s23 + $0x1200] sm:$0xff]  ;;  %v1744_v33 = vld [vmem:[%s10373_s23 + $0x1210] sm:$0xff] }
  0xa3   : > { %v1746_v34 = vld [vmem:[%s10373_s23 + $0x1220] sm:$0xff]  ;;  %1743 = vst [vmem:[%s10378_s24 + $0x900] sm:$0xff] %v1742_v32  ;;  %1745 = vst [vmem:[%s10378_s24 + $0x908] sm:$0xff] %v1744_v33  ;;  %v1748_v35 = vld [vmem:[%s10373_s23 + $0x1230] sm:$0xff] }
  0xa4   : > { %1747 = vst [vmem:[%s10378_s24 + $0x910] sm:$0xff] %v1746_v34  ;;  %v1750_v36 = vld [vmem:[%s10373_s23 + $0x1240] sm:$0xff]  ;;  %v1752_v37 = vld [vmem:[%s10373_s23 + $0x1250] sm:$0xff]  ;;  %1749 = vst [vmem:[%s10378_s24 + $0x918] sm:$0xff] %v1748_v35 }
  0xa5   : > { %1751 = vst [vmem:[%s10378_s24 + $0x920] sm:$0xff] %v1750_v36  ;;  %1753 = vst [vmem:[%s10378_s24 + $0x928] sm:$0xff] %v1752_v37  ;;  %v1754_v38 = vld [vmem:[%s10373_s23 + $0x1260] sm:$0xff]  ;;  %v1756_v39 = vld [vmem:[%s10373_s23 + $0x1270] sm:$0xff] }
  0xa6   : > { %v1758_v40 = vld [vmem:[%s10373_s23 + $0x1280] sm:$0xff]  ;;  %1755 = vst [vmem:[%s10378_s24 + $0x930] sm:$0xff] %v1754_v38  ;;  %1757 = vst [vmem:[%s10378_s24 + $0x938] sm:$0xff] %v1756_v39  ;;  %v1760_v41 = vld [vmem:[%s10373_s23 + $0x1290] sm:$0xff] }
  0xa7   : > { %1759 = vst [vmem:[%s10378_s24 + $0x940] sm:$0xff] %v1758_v40  ;;  %v1762_v42 = vld [vmem:[%s10373_s23 + $0x12a0] sm:$0xff]  ;;  %v1764_v43 = vld [vmem:[%s10373_s23 + $0x12b0] sm:$0xff]  ;;  %1761 = vst [vmem:[%s10378_s24 + $0x948] sm:$0xff] %v1760_v41 }
  0xa8   : > { %1763 = vst [vmem:[%s10378_s24 + $0x950] sm:$0xff] %v1762_v42  ;;  %1765 = vst [vmem:[%s10378_s24 + $0x958] sm:$0xff] %v1764_v43  ;;  %v1766_v44 = vld [vmem:[%s10373_s23 + $0x12c0] sm:$0xff]  ;;  %v1768_v45 = vld [vmem:[%s10373_s23 + $0x12d0] sm:$0xff] }
  0xa9   : > { %v1770_v46 = vld [vmem:[%s10373_s23 + $0x12e0] sm:$0xff]  ;;  %1767 = vst [vmem:[%s10378_s24 + $0x960] sm:$0xff] %v1766_v44  ;;  %1769 = vst [vmem:[%s10378_s24 + $0x968] sm:$0xff] %v1768_v45  ;;  %v1772_v47 = vld [vmem:[%s10373_s23 + $0x12f0] sm:$0xff] }
  0xaa   : > { %1771 = vst [vmem:[%s10378_s24 + $0x970] sm:$0xff] %v1770_v46  ;;  %v1774_v48 = vld [vmem:[%s10373_s23 + $0x1300] sm:$0xff]  ;;  %v1776_v49 = vld [vmem:[%s10373_s23 + $0x1310] sm:$0xff]  ;;  %1773 = vst [vmem:[%s10378_s24 + $0x978] sm:$0xff] %v1772_v47 }
  0xab   : > { %1775 = vst [vmem:[%s10378_s24 + $0x980] sm:$0xff] %v1774_v48  ;;  %1777 = vst [vmem:[%s10378_s24 + $0x988] sm:$0xff] %v1776_v49  ;;  %v1778_v50 = vld [vmem:[%s10373_s23 + $0x1320] sm:$0xff]  ;;  %v1780_v51 = vld [vmem:[%s10373_s23 + $0x1330] sm:$0xff] }
  0xac   : > { %v1782_v52 = vld [vmem:[%s10373_s23 + $0x1340] sm:$0xff]  ;;  %1779 = vst [vmem:[%s10378_s24 + $0x990] sm:$0xff] %v1778_v50  ;;  %1781 = vst [vmem:[%s10378_s24 + $0x998] sm:$0xff] %v1780_v51  ;;  %v1784_v53 = vld [vmem:[%s10373_s23 + $0x1350] sm:$0xff] }
  0xad   : > { %1783 = vst [vmem:[%s10378_s24 + $0x9a0] sm:$0xff] %v1782_v52  ;;  %v1786_v54 = vld [vmem:[%s10373_s23 + $0x1360] sm:$0xff]  ;;  %v1788_v55 = vld [vmem:[%s10373_s23 + $0x1370] sm:$0xff]  ;;  %1785 = vst [vmem:[%s10378_s24 + $0x9a8] sm:$0xff] %v1784_v53 }
  0xae   : > { %1787 = vst [vmem:[%s10378_s24 + $0x9b0] sm:$0xff] %v1786_v54  ;;  %1789 = vst [vmem:[%s10378_s24 + $0x9b8] sm:$0xff] %v1788_v55  ;;  %v1790_v56 = vld [vmem:[%s10373_s23 + $0x1380] sm:$0xff]  ;;  %v1792_v57 = vld [vmem:[%s10373_s23 + $0x1390] sm:$0xff] }
  0xaf   : > { %v1794_v58 = vld [vmem:[%s10373_s23 + $0x13a0] sm:$0xff]  ;;  %1791 = vst [vmem:[%s10378_s24 + $0x9c0] sm:$0xff] %v1790_v56  ;;  %1793 = vst [vmem:[%s10378_s24 + $0x9c8] sm:$0xff] %v1792_v57  ;;  %v1796_v59 = vld [vmem:[%s10373_s23 + $0x13b0] sm:$0xff] }
  0xb0   : > { %1795 = vst [vmem:[%s10378_s24 + $0x9d0] sm:$0xff] %v1794_v58  ;;  %v1798_v60 = vld [vmem:[%s10373_s23 + $0x13c0] sm:$0xff]  ;;  %v1800_v61 = vld [vmem:[%s10373_s23 + $0x13d0] sm:$0xff]  ;;  %1797 = vst [vmem:[%s10378_s24 + $0x9d8] sm:$0xff] %v1796_v59 }
  0xb1   : > { %1799 = vst [vmem:[%s10378_s24 + $0x9e0] sm:$0xff] %v1798_v60  ;;  %1801 = vst [vmem:[%s10378_s24 + $0x9e8] sm:$0xff] %v1800_v61  ;;  %v1802_v62 = vld [vmem:[%s10373_s23 + $0x13e0] sm:$0xff]  ;;  %v1804_v63 = vld [vmem:[%s10373_s23 + $0x13f0] sm:$0xff] }
  0xb2   : > { %v1806_v0 = vld [vmem:[%s10373_s23 + $0x1400] sm:$0xff]  ;;  %1803 = vst [vmem:[%s10378_s24 + $0x9f0] sm:$0xff] %v1802_v62  ;;  %1805 = vst [vmem:[%s10378_s24 + $0x9f8] sm:$0xff] %v1804_v63  ;;  %v1808_v1 = vld [vmem:[%s10373_s23 + $0x1410] sm:$0xff] }
  0xb3   : > { %1807 = vst [vmem:[%s10378_s24 + $0xa00] sm:$0xff] %v1806_v0  ;;  %v1810_v2 = vld [vmem:[%s10373_s23 + $0x1420] sm:$0xff]  ;;  %v1812_v3 = vld [vmem:[%s10373_s23 + $0x1430] sm:$0xff]  ;;  %1809 = vst [vmem:[%s10378_s24 + $0xa08] sm:$0xff] %v1808_v1 }
  0xb4   : > { %1811 = vst [vmem:[%s10378_s24 + $0xa10] sm:$0xff] %v1810_v2  ;;  %1813 = vst [vmem:[%s10378_s24 + $0xa18] sm:$0xff] %v1812_v3  ;;  %v1814_v4 = vld [vmem:[%s10373_s23 + $0x1440] sm:$0xff]  ;;  %v1816_v5 = vld [vmem:[%s10373_s23 + $0x1450] sm:$0xff] }
  0xb5   : > { %v1818_v6 = vld [vmem:[%s10373_s23 + $0x1460] sm:$0xff]  ;;  %1815 = vst [vmem:[%s10378_s24 + $0xa20] sm:$0xff] %v1814_v4  ;;  %1817 = vst [vmem:[%s10378_s24 + $0xa28] sm:$0xff] %v1816_v5  ;;  %v1820_v7 = vld [vmem:[%s10373_s23 + $0x1470] sm:$0xff] }
  0xb6   : > { %1819 = vst [vmem:[%s10378_s24 + $0xa30] sm:$0xff] %v1818_v6  ;;  %v1822_v8 = vld [vmem:[%s10373_s23 + $0x1480] sm:$0xff]  ;;  %v1824_v9 = vld [vmem:[%s10373_s23 + $0x1490] sm:$0xff]  ;;  %1821 = vst [vmem:[%s10378_s24 + $0xa38] sm:$0xff] %v1820_v7 }
  0xb7   : > { %1823 = vst [vmem:[%s10378_s24 + $0xa40] sm:$0xff] %v1822_v8  ;;  %1825 = vst [vmem:[%s10378_s24 + $0xa48] sm:$0xff] %v1824_v9  ;;  %v1826_v10 = vld [vmem:[%s10373_s23 + $0x14a0] sm:$0xff]  ;;  %v1828_v11 = vld [vmem:[%s10373_s23 + $0x14b0] sm:$0xff] }
  0xb8   : > { %v1830_v12 = vld [vmem:[%s10373_s23 + $0x14c0] sm:$0xff]  ;;  %1827 = vst [vmem:[%s10378_s24 + $0xa50] sm:$0xff] %v1826_v10  ;;  %1829 = vst [vmem:[%s10378_s24 + $0xa58] sm:$0xff] %v1828_v11  ;;  %v1832_v13 = vld [vmem:[%s10373_s23 + $0x14d0] sm:$0xff] }
  0xb9   : > { %1831 = vst [vmem:[%s10378_s24 + $0xa60] sm:$0xff] %v1830_v12  ;;  %v1834_v14 = vld [vmem:[%s10373_s23 + $0x14e0] sm:$0xff]  ;;  %v1836_v15 = vld [vmem:[%s10373_s23 + $0x14f0] sm:$0xff]  ;;  %1833 = vst [vmem:[%s10378_s24 + $0xa68] sm:$0xff] %v1832_v13 }
  0xba   : > { %1835 = vst [vmem:[%s10378_s24 + $0xa70] sm:$0xff] %v1834_v14  ;;  %1837 = vst [vmem:[%s10378_s24 + $0xa78] sm:$0xff] %v1836_v15  ;;  %v1838_v16 = vld [vmem:[%s10373_s23 + $0x1500] sm:$0xff]  ;;  %v1840_v17 = vld [vmem:[%s10373_s23 + $0x1510] sm:$0xff] }
  0xbb   : > { %v1842_v18 = vld [vmem:[%s10373_s23 + $0x1520] sm:$0xff]  ;;  %1839 = vst [vmem:[%s10378_s24 + $0xa80] sm:$0xff] %v1838_v16  ;;  %1841 = vst [vmem:[%s10378_s24 + $0xa88] sm:$0xff] %v1840_v17  ;;  %v1844_v19 = vld [vmem:[%s10373_s23 + $0x1530] sm:$0xff] }
  0xbc   : > { %1843 = vst [vmem:[%s10378_s24 + $0xa90] sm:$0xff] %v1842_v18  ;;  %v1846_v20 = vld [vmem:[%s10373_s23 + $0x1540] sm:$0xff]  ;;  %v1848_v21 = vld [vmem:[%s10373_s23 + $0x1550] sm:$0xff]  ;;  %1845 = vst [vmem:[%s10378_s24 + $0xa98] sm:$0xff] %v1844_v19 }
  0xbd   : > { %1847 = vst [vmem:[%s10378_s24 + $0xaa0] sm:$0xff] %v1846_v20  ;;  %1849 = vst [vmem:[%s10378_s24 + $0xaa8] sm:$0xff] %v1848_v21  ;;  %v1850_v22 = vld [vmem:[%s10373_s23 + $0x1560] sm:$0xff]  ;;  %v1852_v23 = vld [vmem:[%s10373_s23 + $0x1570] sm:$0xff] }
  0xbe   : > { %v1854_v24 = vld [vmem:[%s10373_s23 + $0x1580] sm:$0xff]  ;;  %1851 = vst [vmem:[%s10378_s24 + $0xab0] sm:$0xff] %v1850_v22  ;;  %1853 = vst [vmem:[%s10378_s24 + $0xab8] sm:$0xff] %v1852_v23  ;;  %v1856_v25 = vld [vmem:[%s10373_s23 + $0x1590] sm:$0xff] }
  0xbf   : > { %1855 = vst [vmem:[%s10378_s24 + $0xac0] sm:$0xff] %v1854_v24  ;;  %v1858_v26 = vld [vmem:[%s10373_s23 + $0x15a0] sm:$0xff]  ;;  %v1860_v27 = vld [vmem:[%s10373_s23 + $0x15b0] sm:$0xff]  ;;  %1857 = vst [vmem:[%s10378_s24 + $0xac8] sm:$0xff] %v1856_v25 }
  0xc0   : > { %1859 = vst [vmem:[%s10378_s24 + $0xad0] sm:$0xff] %v1858_v26  ;;  %1861 = vst [vmem:[%s10378_s24 + $0xad8] sm:$0xff] %v1860_v27  ;;  %v1862_v28 = vld [vmem:[%s10373_s23 + $0x15c0] sm:$0xff]  ;;  %v1864_v29 = vld [vmem:[%s10373_s23 + $0x15d0] sm:$0xff] }
  0xc1   : > { %v1866_v30 = vld [vmem:[%s10373_s23 + $0x15e0] sm:$0xff]  ;;  %1863 = vst [vmem:[%s10378_s24 + $0xae0] sm:$0xff] %v1862_v28  ;;  %1865 = vst [vmem:[%s10378_s24 + $0xae8] sm:$0xff] %v1864_v29  ;;  %v1868_v31 = vld [vmem:[%s10373_s23 + $0x15f0] sm:$0xff] }
  0xc2   : > { %1867 = vst [vmem:[%s10378_s24 + $0xaf0] sm:$0xff] %v1866_v30  ;;  %v1870_v32 = vld [vmem:[%s10373_s23 + $0x1600] sm:$0xff]  ;;  %v1872_v33 = vld [vmem:[%s10373_s23 + $0x1610] sm:$0xff]  ;;  %1869 = vst [vmem:[%s10378_s24 + $0xaf8] sm:$0xff] %v1868_v31 }
  0xc3   : > { %1871 = vst [vmem:[%s10378_s24 + $0xb00] sm:$0xff] %v1870_v32  ;;  %1873 = vst [vmem:[%s10378_s24 + $0xb08] sm:$0xff] %v1872_v33  ;;  %v1874_v34 = vld [vmem:[%s10373_s23 + $0x1620] sm:$0xff]  ;;  %v1876_v35 = vld [vmem:[%s10373_s23 + $0x1630] sm:$0xff] }
  0xc4   : > { %v1878_v36 = vld [vmem:[%s10373_s23 + $0x1640] sm:$0xff]  ;;  %1875 = vst [vmem:[%s10378_s24 + $0xb10] sm:$0xff] %v1874_v34  ;;  %1877 = vst [vmem:[%s10378_s24 + $0xb18] sm:$0xff] %v1876_v35  ;;  %v1880_v37 = vld [vmem:[%s10373_s23 + $0x1650] sm:$0xff] }
  0xc5   : > { %1879 = vst [vmem:[%s10378_s24 + $0xb20] sm:$0xff] %v1878_v36  ;;  %v1882_v38 = vld [vmem:[%s10373_s23 + $0x1660] sm:$0xff]  ;;  %v1884_v39 = vld [vmem:[%s10373_s23 + $0x1670] sm:$0xff]  ;;  %1881 = vst [vmem:[%s10378_s24 + $0xb28] sm:$0xff] %v1880_v37 }
  0xc6   : > { %1883 = vst [vmem:[%s10378_s24 + $0xb30] sm:$0xff] %v1882_v38  ;;  %1885 = vst [vmem:[%s10378_s24 + $0xb38] sm:$0xff] %v1884_v39  ;;  %v1886_v40 = vld [vmem:[%s10373_s23 + $0x1680] sm:$0xff]  ;;  %v1888_v41 = vld [vmem:[%s10373_s23 + $0x1690] sm:$0xff] }
  0xc7   : > { %v1890_v42 = vld [vmem:[%s10373_s23 + $0x16a0] sm:$0xff]  ;;  %1887 = vst [vmem:[%s10378_s24 + $0xb40] sm:$0xff] %v1886_v40  ;;  %1889 = vst [vmem:[%s10378_s24 + $0xb48] sm:$0xff] %v1888_v41  ;;  %v1892_v43 = vld [vmem:[%s10373_s23 + $0x16b0] sm:$0xff] }
  0xc8   : > { %1891 = vst [vmem:[%s10378_s24 + $0xb50] sm:$0xff] %v1890_v42  ;;  %v1894_v44 = vld [vmem:[%s10373_s23 + $0x16c0] sm:$0xff]  ;;  %v1896_v45 = vld [vmem:[%s10373_s23 + $0x16d0] sm:$0xff]  ;;  %1893 = vst [vmem:[%s10378_s24 + $0xb58] sm:$0xff] %v1892_v43 }
  0xc9   : > { %1895 = vst [vmem:[%s10378_s24 + $0xb60] sm:$0xff] %v1894_v44  ;;  %1897 = vst [vmem:[%s10378_s24 + $0xb68] sm:$0xff] %v1896_v45  ;;  %v1898_v46 = vld [vmem:[%s10373_s23 + $0x16e0] sm:$0xff]  ;;  %v1900_v47 = vld [vmem:[%s10373_s23 + $0x16f0] sm:$0xff] }
  0xca   : > { %v1902_v48 = vld [vmem:[%s10373_s23 + $0x1700] sm:$0xff]  ;;  %1899 = vst [vmem:[%s10378_s24 + $0xb70] sm:$0xff] %v1898_v46  ;;  %1901 = vst [vmem:[%s10378_s24 + $0xb78] sm:$0xff] %v1900_v47  ;;  %v1904_v49 = vld [vmem:[%s10373_s23 + $0x1710] sm:$0xff] }
  0xcb   : > { %1903 = vst [vmem:[%s10378_s24 + $0xb80] sm:$0xff] %v1902_v48  ;;  %v1906_v50 = vld [vmem:[%s10373_s23 + $0x1720] sm:$0xff]  ;;  %v1908_v51 = vld [vmem:[%s10373_s23 + $0x1730] sm:$0xff]  ;;  %1905 = vst [vmem:[%s10378_s24 + $0xb88] sm:$0xff] %v1904_v49 }
  0xcc   : > { %1907 = vst [vmem:[%s10378_s24 + $0xb90] sm:$0xff] %v1906_v50  ;;  %1909 = vst [vmem:[%s10378_s24 + $0xb98] sm:$0xff] %v1908_v51  ;;  %v1910_v52 = vld [vmem:[%s10373_s23 + $0x1740] sm:$0xff]  ;;  %v1912_v53 = vld [vmem:[%s10373_s23 + $0x1750] sm:$0xff] }
  0xcd   : > { %v1914_v54 = vld [vmem:[%s10373_s23 + $0x1760] sm:$0xff]  ;;  %1911 = vst [vmem:[%s10378_s24 + $0xba0] sm:$0xff] %v1910_v52  ;;  %1913 = vst [vmem:[%s10378_s24 + $0xba8] sm:$0xff] %v1912_v53  ;;  %v1916_v55 = vld [vmem:[%s10373_s23 + $0x1770] sm:$0xff] }
  0xce   : > { %1915 = vst [vmem:[%s10378_s24 + $0xbb0] sm:$0xff] %v1914_v54  ;;  %v1918_v56 = vld [vmem:[%s10373_s23 + $0x1780] sm:$0xff]  ;;  %v1920_v57 = vld [vmem:[%s10373_s23 + $0x1790] sm:$0xff]  ;;  %1917 = vst [vmem:[%s10378_s24 + $0xbb8] sm:$0xff] %v1916_v55 }
  0xcf   : > { %1919 = vst [vmem:[%s10378_s24 + $0xbc0] sm:$0xff] %v1918_v56  ;;  %1921 = vst [vmem:[%s10378_s24 + $0xbc8] sm:$0xff] %v1920_v57  ;;  %v1922_v58 = vld [vmem:[%s10373_s23 + $0x17a0] sm:$0xff]  ;;  %v1924_v59 = vld [vmem:[%s10373_s23 + $0x17b0] sm:$0xff] }
  0xd0   : > { %v1926_v60 = vld [vmem:[%s10373_s23 + $0x17c0] sm:$0xff]  ;;  %1923 = vst [vmem:[%s10378_s24 + $0xbd0] sm:$0xff] %v1922_v58  ;;  %1925 = vst [vmem:[%s10378_s24 + $0xbd8] sm:$0xff] %v1924_v59  ;;  %v1928_v61 = vld [vmem:[%s10373_s23 + $0x17d0] sm:$0xff] }
  0xd1   : > { %1927 = vst [vmem:[%s10378_s24 + $0xbe0] sm:$0xff] %v1926_v60  ;;  %v1930_v62 = vld [vmem:[%s10373_s23 + $0x17e0] sm:$0xff]  ;;  %v1932_v63 = vld [vmem:[%s10373_s23 + $0x17f0] sm:$0xff]  ;;  %1929 = vst [vmem:[%s10378_s24 + $0xbe8] sm:$0xff] %v1928_v61 }
  0xd2   : > { %1931 = vst [vmem:[%s10378_s24 + $0xbf0] sm:$0xff] %v1930_v62  ;;  %1933 = vst [vmem:[%s10378_s24 + $0xbf8] sm:$0xff] %v1932_v63  ;;  %v1934_v0 = vld [vmem:[%s10373_s23 + $0x1800] sm:$0xff]  ;;  %v1936_v1 = vld [vmem:[%s10373_s23 + $0x1810] sm:$0xff] }
  0xd3   : > { %v1938_v2 = vld [vmem:[%s10373_s23 + $0x1820] sm:$0xff]  ;;  %1935 = vst [vmem:[%s10378_s24 + $0xc00] sm:$0xff] %v1934_v0  ;;  %1937 = vst [vmem:[%s10378_s24 + $0xc08] sm:$0xff] %v1936_v1  ;;  %v1940_v3 = vld [vmem:[%s10373_s23 + $0x1830] sm:$0xff] }
  0xd4   : > { %1939 = vst [vmem:[%s10378_s24 + $0xc10] sm:$0xff] %v1938_v2  ;;  %v1942_v4 = vld [vmem:[%s10373_s23 + $0x1840] sm:$0xff]  ;;  %v1944_v5 = vld [vmem:[%s10373_s23 + $0x1850] sm:$0xff]  ;;  %1941 = vst [vmem:[%s10378_s24 + $0xc18] sm:$0xff] %v1940_v3 }
  0xd5   : > { %1943 = vst [vmem:[%s10378_s24 + $0xc20] sm:$0xff] %v1942_v4  ;;  %1945 = vst [vmem:[%s10378_s24 + $0xc28] sm:$0xff] %v1944_v5  ;;  %v1946_v6 = vld [vmem:[%s10373_s23 + $0x1860] sm:$0xff]  ;;  %v1948_v7 = vld [vmem:[%s10373_s23 + $0x1870] sm:$0xff] }
  0xd6   : > { %v1950_v8 = vld [vmem:[%s10373_s23 + $0x1880] sm:$0xff]  ;;  %1947 = vst [vmem:[%s10378_s24 + $0xc30] sm:$0xff] %v1946_v6  ;;  %1949 = vst [vmem:[%s10378_s24 + $0xc38] sm:$0xff] %v1948_v7  ;;  %v1952_v9 = vld [vmem:[%s10373_s23 + $0x1890] sm:$0xff] }
  0xd7   : > { %1951 = vst [vmem:[%s10378_s24 + $0xc40] sm:$0xff] %v1950_v8  ;;  %v1954_v10 = vld [vmem:[%s10373_s23 + $0x18a0] sm:$0xff]  ;;  %v1956_v11 = vld [vmem:[%s10373_s23 + $0x18b0] sm:$0xff]  ;;  %1953 = vst [vmem:[%s10378_s24 + $0xc48] sm:$0xff] %v1952_v9 }
  0xd8   : > { %1955 = vst [vmem:[%s10378_s24 + $0xc50] sm:$0xff] %v1954_v10  ;;  %1957 = vst [vmem:[%s10378_s24 + $0xc58] sm:$0xff] %v1956_v11  ;;  %v1958_v12 = vld [vmem:[%s10373_s23 + $0x18c0] sm:$0xff]  ;;  %v1960_v13 = vld [vmem:[%s10373_s23 + $0x18d0] sm:$0xff] }
  0xd9   : > { %v1962_v14 = vld [vmem:[%s10373_s23 + $0x18e0] sm:$0xff]  ;;  %1959 = vst [vmem:[%s10378_s24 + $0xc60] sm:$0xff] %v1958_v12  ;;  %1961 = vst [vmem:[%s10378_s24 + $0xc68] sm:$0xff] %v1960_v13  ;;  %v1964_v15 = vld [vmem:[%s10373_s23 + $0x18f0] sm:$0xff] }
  0xda   : > { %1963 = vst [vmem:[%s10378_s24 + $0xc70] sm:$0xff] %v1962_v14  ;;  %v1966_v16 = vld [vmem:[%s10373_s23 + $0x1900] sm:$0xff]  ;;  %v1968_v17 = vld [vmem:[%s10373_s23 + $0x1910] sm:$0xff]  ;;  %1965 = vst [vmem:[%s10378_s24 + $0xc78] sm:$0xff] %v1964_v15 }
  0xdb   : > { %1967 = vst [vmem:[%s10378_s24 + $0xc80] sm:$0xff] %v1966_v16  ;;  %1969 = vst [vmem:[%s10378_s24 + $0xc88] sm:$0xff] %v1968_v17  ;;  %v1970_v18 = vld [vmem:[%s10373_s23 + $0x1920] sm:$0xff]  ;;  %v1972_v19 = vld [vmem:[%s10373_s23 + $0x1930] sm:$0xff] }
  0xdc   : > { %v1974_v20 = vld [vmem:[%s10373_s23 + $0x1940] sm:$0xff]  ;;  %1971 = vst [vmem:[%s10378_s24 + $0xc90] sm:$0xff] %v1970_v18  ;;  %1973 = vst [vmem:[%s10378_s24 + $0xc98] sm:$0xff] %v1972_v19  ;;  %v1976_v21 = vld [vmem:[%s10373_s23 + $0x1950] sm:$0xff] }
  0xdd   : > { %1975 = vst [vmem:[%s10378_s24 + $0xca0] sm:$0xff] %v1974_v20  ;;  %v1978_v22 = vld [vmem:[%s10373_s23 + $0x1960] sm:$0xff]  ;;  %v1980_v23 = vld [vmem:[%s10373_s23 + $0x1970] sm:$0xff]  ;;  %1977 = vst [vmem:[%s10378_s24 + $0xca8] sm:$0xff] %v1976_v21 }
  0xde   : > { %1979 = vst [vmem:[%s10378_s24 + $0xcb0] sm:$0xff] %v1978_v22  ;;  %1981 = vst [vmem:[%s10378_s24 + $0xcb8] sm:$0xff] %v1980_v23  ;;  %v1982_v24 = vld [vmem:[%s10373_s23 + $0x1980] sm:$0xff]  ;;  %v1984_v25 = vld [vmem:[%s10373_s23 + $0x1990] sm:$0xff] }
  0xdf   : > { %v1986_v26 = vld [vmem:[%s10373_s23 + $0x19a0] sm:$0xff]  ;;  %1983 = vst [vmem:[%s10378_s24 + $0xcc0] sm:$0xff] %v1982_v24  ;;  %1985 = vst [vmem:[%s10378_s24 + $0xcc8] sm:$0xff] %v1984_v25  ;;  %v1988_v27 = vld [vmem:[%s10373_s23 + $0x19b0] sm:$0xff] }
  0xe0   : > { %1987 = vst [vmem:[%s10378_s24 + $0xcd0] sm:$0xff] %v1986_v26  ;;  %v1990_v28 = vld [vmem:[%s10373_s23 + $0x19c0] sm:$0xff]  ;;  %v1992_v29 = vld [vmem:[%s10373_s23 + $0x19d0] sm:$0xff]  ;;  %1989 = vst [vmem:[%s10378_s24 + $0xcd8] sm:$0xff] %v1988_v27 }
  0xe1   : > { %1991 = vst [vmem:[%s10378_s24 + $0xce0] sm:$0xff] %v1990_v28  ;;  %1993 = vst [vmem:[%s10378_s24 + $0xce8] sm:$0xff] %v1992_v29  ;;  %v1994_v30 = vld [vmem:[%s10373_s23 + $0x19e0] sm:$0xff]  ;;  %v1996_v31 = vld [vmem:[%s10373_s23 + $0x19f0] sm:$0xff] }
  0xe2   : > { %v1998_v32 = vld [vmem:[%s10373_s23 + $0x1a00] sm:$0xff]  ;;  %1995 = vst [vmem:[%s10378_s24 + $0xcf0] sm:$0xff] %v1994_v30  ;;  %1997 = vst [vmem:[%s10378_s24 + $0xcf8] sm:$0xff] %v1996_v31  ;;  %v2000_v33 = vld [vmem:[%s10373_s23 + $0x1a10] sm:$0xff] }
  0xe3   : > { %1999 = vst [vmem:[%s10378_s24 + $0xd00] sm:$0xff] %v1998_v32  ;;  %v2002_v34 = vld [vmem:[%s10373_s23 + $0x1a20] sm:$0xff]  ;;  %v2004_v35 = vld [vmem:[%s10373_s23 + $0x1a30] sm:$0xff]  ;;  %2001 = vst [vmem:[%s10378_s24 + $0xd08] sm:$0xff] %v2000_v33 }
  0xe4   : > { %2003 = vst [vmem:[%s10378_s24 + $0xd10] sm:$0xff] %v2002_v34  ;;  %2005 = vst [vmem:[%s10378_s24 + $0xd18] sm:$0xff] %v2004_v35  ;;  %v2006_v36 = vld [vmem:[%s10373_s23 + $0x1a40] sm:$0xff]  ;;  %v2008_v37 = vld [vmem:[%s10373_s23 + $0x1a50] sm:$0xff] }
  0xe5   : > { %v2010_v38 = vld [vmem:[%s10373_s23 + $0x1a60] sm:$0xff]  ;;  %2007 = vst [vmem:[%s10378_s24 + $0xd20] sm:$0xff] %v2006_v36  ;;  %2009 = vst [vmem:[%s10378_s24 + $0xd28] sm:$0xff] %v2008_v37  ;;  %v2012_v39 = vld [vmem:[%s10373_s23 + $0x1a70] sm:$0xff] }
  0xe6   : > { %2011 = vst [vmem:[%s10378_s24 + $0xd30] sm:$0xff] %v2010_v38  ;;  %v2014_v40 = vld [vmem:[%s10373_s23 + $0x1a80] sm:$0xff]  ;;  %v2016_v41 = vld [vmem:[%s10373_s23 + $0x1a90] sm:$0xff]  ;;  %2013 = vst [vmem:[%s10378_s24 + $0xd38] sm:$0xff] %v2012_v39 }
  0xe7   : > { %2015 = vst [vmem:[%s10378_s24 + $0xd40] sm:$0xff] %v2014_v40  ;;  %2017 = vst [vmem:[%s10378_s24 + $0xd48] sm:$0xff] %v2016_v41  ;;  %v2018_v42 = vld [vmem:[%s10373_s23 + $0x1aa0] sm:$0xff]  ;;  %v2020_v43 = vld [vmem:[%s10373_s23 + $0x1ab0] sm:$0xff] }
  0xe8   : > { %v2022_v44 = vld [vmem:[%s10373_s23 + $0x1ac0] sm:$0xff]  ;;  %2019 = vst [vmem:[%s10378_s24 + $0xd50] sm:$0xff] %v2018_v42  ;;  %2021 = vst [vmem:[%s10378_s24 + $0xd58] sm:$0xff] %v2020_v43  ;;  %v2024_v45 = vld [vmem:[%s10373_s23 + $0x1ad0] sm:$0xff] }
  0xe9   : > { %2023 = vst [vmem:[%s10378_s24 + $0xd60] sm:$0xff] %v2022_v44  ;;  %v2026_v46 = vld [vmem:[%s10373_s23 + $0x1ae0] sm:$0xff]  ;;  %v2028_v47 = vld [vmem:[%s10373_s23 + $0x1af0] sm:$0xff]  ;;  %2025 = vst [vmem:[%s10378_s24 + $0xd68] sm:$0xff] %v2024_v45 }
  0xea   : > { %2027 = vst [vmem:[%s10378_s24 + $0xd70] sm:$0xff] %v2026_v46  ;;  %2029 = vst [vmem:[%s10378_s24 + $0xd78] sm:$0xff] %v2028_v47  ;;  %v2030_v48 = vld [vmem:[%s10373_s23 + $0x1b00] sm:$0xff]  ;;  %v2032_v49 = vld [vmem:[%s10373_s23 + $0x1b10] sm:$0xff] }
  0xeb   : > { %v2034_v50 = vld [vmem:[%s10373_s23 + $0x1b20] sm:$0xff]  ;;  %2031 = vst [vmem:[%s10378_s24 + $0xd80] sm:$0xff] %v2030_v48  ;;  %2033 = vst [vmem:[%s10378_s24 + $0xd88] sm:$0xff] %v2032_v49  ;;  %v2036_v51 = vld [vmem:[%s10373_s23 + $0x1b30] sm:$0xff] }
  0xec   : > { %2035 = vst [vmem:[%s10378_s24 + $0xd90] sm:$0xff] %v2034_v50  ;;  %v2038_v52 = vld [vmem:[%s10373_s23 + $0x1b40] sm:$0xff]  ;;  %v2040_v53 = vld [vmem:[%s10373_s23 + $0x1b50] sm:$0xff]  ;;  %2037 = vst [vmem:[%s10378_s24 + $0xd98] sm:$0xff] %v2036_v51 }
  0xed   : > { %2039 = vst [vmem:[%s10378_s24 + $0xda0] sm:$0xff] %v2038_v52  ;;  %2041 = vst [vmem:[%s10378_s24 + $0xda8] sm:$0xff] %v2040_v53  ;;  %v2042_v54 = vld [vmem:[%s10373_s23 + $0x1b60] sm:$0xff]  ;;  %v2044_v55 = vld [vmem:[%s10373_s23 + $0x1b70] sm:$0xff] }
  0xee   : > { %v2046_v56 = vld [vmem:[%s10373_s23 + $0x1b80] sm:$0xff]  ;;  %2043 = vst [vmem:[%s10378_s24 + $0xdb0] sm:$0xff] %v2042_v54  ;;  %2045 = vst [vmem:[%s10378_s24 + $0xdb8] sm:$0xff] %v2044_v55  ;;  %v2048_v57 = vld [vmem:[%s10373_s23 + $0x1b90] sm:$0xff] }
  0xef   : > { %2047 = vst [vmem:[%s10378_s24 + $0xdc0] sm:$0xff] %v2046_v56  ;;  %v2050_v58 = vld [vmem:[%s10373_s23 + $0x1ba0] sm:$0xff]  ;;  %v2052_v59 = vld [vmem:[%s10373_s23 + $0x1bb0] sm:$0xff]  ;;  %2049 = vst [vmem:[%s10378_s24 + $0xdc8] sm:$0xff] %v2048_v57 }
  0xf0   : > { %2051 = vst [vmem:[%s10378_s24 + $0xdd0] sm:$0xff] %v2050_v58  ;;  %2053 = vst [vmem:[%s10378_s24 + $0xdd8] sm:$0xff] %v2052_v59  ;;  %v2054_v60 = vld [vmem:[%s10373_s23 + $0x1bc0] sm:$0xff]  ;;  %v2056_v61 = vld [vmem:[%s10373_s23 + $0x1bd0] sm:$0xff] }
  0xf1   : > { %v2058_v62 = vld [vmem:[%s10373_s23 + $0x1be0] sm:$0xff]  ;;  %2055 = vst [vmem:[%s10378_s24 + $0xde0] sm:$0xff] %v2054_v60  ;;  %2057 = vst [vmem:[%s10378_s24 + $0xde8] sm:$0xff] %v2056_v61  ;;  %v2060_v63 = vld [vmem:[%s10373_s23 + $0x1bf0] sm:$0xff] }
  0xf2   : > { %2059 = vst [vmem:[%s10378_s24 + $0xdf0] sm:$0xff] %v2058_v62  ;;  %v2062_v0 = vld [vmem:[%s10373_s23 + $0x1c00] sm:$0xff]  ;;  %v2064_v1 = vld [vmem:[%s10373_s23 + $0x1c10] sm:$0xff]  ;;  %2061 = vst [vmem:[%s10378_s24 + $0xdf8] sm:$0xff] %v2060_v63 }
  0xf3   : > { %2063 = vst [vmem:[%s10378_s24 + $0xe00] sm:$0xff] %v2062_v0  ;;  %2065 = vst [vmem:[%s10378_s24 + $0xe08] sm:$0xff] %v2064_v1  ;;  %v2066_v2 = vld [vmem:[%s10373_s23 + $0x1c20] sm:$0xff]  ;;  %v2068_v3 = vld [vmem:[%s10373_s23 + $0x1c30] sm:$0xff] }
  0xf4   : > { %v2070_v4 = vld [vmem:[%s10373_s23 + $0x1c40] sm:$0xff]  ;;  %2067 = vst [vmem:[%s10378_s24 + $0xe10] sm:$0xff] %v2066_v2  ;;  %2069 = vst [vmem:[%s10378_s24 + $0xe18] sm:$0xff] %v2068_v3  ;;  %v2072_v5 = vld [vmem:[%s10373_s23 + $0x1c50] sm:$0xff] }
  0xf5   : > { %2071 = vst [vmem:[%s10378_s24 + $0xe20] sm:$0xff] %v2070_v4  ;;  %v2074_v6 = vld [vmem:[%s10373_s23 + $0x1c60] sm:$0xff]  ;;  %v2076_v7 = vld [vmem:[%s10373_s23 + $0x1c70] sm:$0xff]  ;;  %2073 = vst [vmem:[%s10378_s24 + $0xe28] sm:$0xff] %v2072_v5 }
  0xf6   : > { %2075 = vst [vmem:[%s10378_s24 + $0xe30] sm:$0xff] %v2074_v6  ;;  %2077 = vst [vmem:[%s10378_s24 + $0xe38] sm:$0xff] %v2076_v7  ;;  %v2078_v8 = vld [vmem:[%s10373_s23 + $0x1c80] sm:$0xff]  ;;  %v2080_v9 = vld [vmem:[%s10373_s23 + $0x1c90] sm:$0xff] }
  0xf7   : > { %v2082_v10 = vld [vmem:[%s10373_s23 + $0x1ca0] sm:$0xff]  ;;  %2079 = vst [vmem:[%s10378_s24 + $0xe40] sm:$0xff] %v2078_v8  ;;  %2081 = vst [vmem:[%s10378_s24 + $0xe48] sm:$0xff] %v2080_v9  ;;  %v2084_v11 = vld [vmem:[%s10373_s23 + $0x1cb0] sm:$0xff] }
  0xf8   : > { %2083 = vst [vmem:[%s10378_s24 + $0xe50] sm:$0xff] %v2082_v10  ;;  %v2086_v12 = vld [vmem:[%s10373_s23 + $0x1cc0] sm:$0xff]  ;;  %v2088_v13 = vld [vmem:[%s10373_s23 + $0x1cd0] sm:$0xff]  ;;  %2085 = vst [vmem:[%s10378_s24 + $0xe58] sm:$0xff] %v2084_v11 }
  0xf9   : > { %2087 = vst [vmem:[%s10378_s24 + $0xe60] sm:$0xff] %v2086_v12  ;;  %2089 = vst [vmem:[%s10378_s24 + $0xe68] sm:$0xff] %v2088_v13  ;;  %v2090_v14 = vld [vmem:[%s10373_s23 + $0x1ce0] sm:$0xff]  ;;  %v2092_v15 = vld [vmem:[%s10373_s23 + $0x1cf0] sm:$0xff] }
  0xfa   : > { %v2094_v16 = vld [vmem:[%s10373_s23 + $0x1d00] sm:$0xff]  ;;  %2091 = vst [vmem:[%s10378_s24 + $0xe70] sm:$0xff] %v2090_v14  ;;  %2093 = vst [vmem:[%s10378_s24 + $0xe78] sm:$0xff] %v2092_v15  ;;  %v2096_v17 = vld [vmem:[%s10373_s23 + $0x1d10] sm:$0xff] }
  0xfb   : > { %2095 = vst [vmem:[%s10378_s24 + $0xe80] sm:$0xff] %v2094_v16  ;;  %v2098_v18 = vld [vmem:[%s10373_s23 + $0x1d20] sm:$0xff]  ;;  %v2100_v19 = vld [vmem:[%s10373_s23 + $0x1d30] sm:$0xff]  ;;  %2097 = vst [vmem:[%s10378_s24 + $0xe88] sm:$0xff] %v2096_v17 }
  0xfc   : > { %2099 = vst [vmem:[%s10378_s24 + $0xe90] sm:$0xff] %v2098_v18  ;;  %2101 = vst [vmem:[%s10378_s24 + $0xe98] sm:$0xff] %v2100_v19  ;;  %v2102_v20 = vld [vmem:[%s10373_s23 + $0x1d40] sm:$0xff]  ;;  %v2104_v21 = vld [vmem:[%s10373_s23 + $0x1d50] sm:$0xff] }
  0xfd   : > { %v2106_v22 = vld [vmem:[%s10373_s23 + $0x1d60] sm:$0xff]  ;;  %2103 = vst [vmem:[%s10378_s24 + $0xea0] sm:$0xff] %v2102_v20  ;;  %2105 = vst [vmem:[%s10378_s24 + $0xea8] sm:$0xff] %v2104_v21  ;;  %v2108_v23 = vld [vmem:[%s10373_s23 + $0x1d70] sm:$0xff] }
  0xfe   : > { %2107 = vst [vmem:[%s10378_s24 + $0xeb0] sm:$0xff] %v2106_v22  ;;  %v2110_v24 = vld [vmem:[%s10373_s23 + $0x1d80] sm:$0xff]  ;;  %v2112_v25 = vld [vmem:[%s10373_s23 + $0x1d90] sm:$0xff]  ;;  %2109 = vst [vmem:[%s10378_s24 + $0xeb8] sm:$0xff] %v2108_v23 }
  0xff   : > { %2111 = vst [vmem:[%s10378_s24 + $0xec0] sm:$0xff] %v2110_v24  ;;  %2113 = vst [vmem:[%s10378_s24 + $0xec8] sm:$0xff] %v2112_v25  ;;  %v2114_v26 = vld [vmem:[%s10373_s23 + $0x1da0] sm:$0xff]  ;;  %v2116_v27 = vld [vmem:[%s10373_s23 + $0x1db0] sm:$0xff] }
 0x100   : > { %v2118_v28 = vld [vmem:[%s10373_s23 + $0x1dc0] sm:$0xff]  ;;  %2115 = vst [vmem:[%s10378_s24 + $0xed0] sm:$0xff] %v2114_v26  ;;  %2117 = vst [vmem:[%s10378_s24 + $0xed8] sm:$0xff] %v2116_v27  ;;  %v2120_v29 = vld [vmem:[%s10373_s23 + $0x1dd0] sm:$0xff] }
 0x101   : > { %2119 = vst [vmem:[%s10378_s24 + $0xee0] sm:$0xff] %v2118_v28  ;;  %v2122_v30 = vld [vmem:[%s10373_s23 + $0x1de0] sm:$0xff]  ;;  %v2124_v31 = vld [vmem:[%s10373_s23 + $0x1df0] sm:$0xff]  ;;  %2121 = vst [vmem:[%s10378_s24 + $0xee8] sm:$0xff] %v2120_v29 }
 0x102   : > { %2123 = vst [vmem:[%s10378_s24 + $0xef0] sm:$0xff] %v2122_v30  ;;  %2125 = vst [vmem:[%s10378_s24 + $0xef8] sm:$0xff] %v2124_v31  ;;  %v2126_v32 = vld [vmem:[%s10373_s23 + $0x1e00] sm:$0xff]  ;;  %v2128_v33 = vld [vmem:[%s10373_s23 + $0x1e10] sm:$0xff] }
 0x103   : > { %v2130_v34 = vld [vmem:[%s10373_s23 + $0x1e20] sm:$0xff]  ;;  %2127 = vst [vmem:[%s10378_s24 + $0xf00] sm:$0xff] %v2126_v32  ;;  %2129 = vst [vmem:[%s10378_s24 + $0xf08] sm:$0xff] %v2128_v33  ;;  %v2132_v35 = vld [vmem:[%s10373_s23 + $0x1e30] sm:$0xff] }
 0x104   : > { %2131 = vst [vmem:[%s10378_s24 + $0xf10] sm:$0xff] %v2130_v34  ;;  %v2134_v36 = vld [vmem:[%s10373_s23 + $0x1e40] sm:$0xff]  ;;  %v2136_v37 = vld [vmem:[%s10373_s23 + $0x1e50] sm:$0xff]  ;;  %2133 = vst [vmem:[%s10378_s24 + $0xf18] sm:$0xff] %v2132_v35 }
 0x105   : > { %2135 = vst [vmem:[%s10378_s24 + $0xf20] sm:$0xff] %v2134_v36  ;;  %2137 = vst [vmem:[%s10378_s24 + $0xf28] sm:$0xff] %v2136_v37  ;;  %v2138_v38 = vld [vmem:[%s10373_s23 + $0x1e60] sm:$0xff]  ;;  %v2140_v39 = vld [vmem:[%s10373_s23 + $0x1e70] sm:$0xff] }
 0x106   : > { %v2142_v40 = vld [vmem:[%s10373_s23 + $0x1e80] sm:$0xff]  ;;  %2139 = vst [vmem:[%s10378_s24 + $0xf30] sm:$0xff] %v2138_v38  ;;  %2141 = vst [vmem:[%s10378_s24 + $0xf38] sm:$0xff] %v2140_v39  ;;  %v2144_v41 = vld [vmem:[%s10373_s23 + $0x1e90] sm:$0xff] }
 0x107   : > { %2143 = vst [vmem:[%s10378_s24 + $0xf40] sm:$0xff] %v2142_v40  ;;  %v2146_v42 = vld [vmem:[%s10373_s23 + $0x1ea0] sm:$0xff]  ;;  %v2148_v43 = vld [vmem:[%s10373_s23 + $0x1eb0] sm:$0xff]  ;;  %2145 = vst [vmem:[%s10378_s24 + $0xf48] sm:$0xff] %v2144_v41 }
 0x108   : > { %2147 = vst [vmem:[%s10378_s24 + $0xf50] sm:$0xff] %v2146_v42  ;;  %2149 = vst [vmem:[%s10378_s24 + $0xf58] sm:$0xff] %v2148_v43  ;;  %v2150_v44 = vld [vmem:[%s10373_s23 + $0x1ec0] sm:$0xff]  ;;  %v2152_v45 = vld [vmem:[%s10373_s23 + $0x1ed0] sm:$0xff] }
 0x109   : > { %v2154_v46 = vld [vmem:[%s10373_s23 + $0x1ee0] sm:$0xff]  ;;  %2151 = vst [vmem:[%s10378_s24 + $0xf60] sm:$0xff] %v2150_v44  ;;  %2153 = vst [vmem:[%s10378_s24 + $0xf68] sm:$0xff] %v2152_v45  ;;  %v2156_v47 = vld [vmem:[%s10373_s23 + $0x1ef0] sm:$0xff] }
 0x10a   : > { %2155 = vst [vmem:[%s10378_s24 + $0xf70] sm:$0xff] %v2154_v46  ;;  %v2158_v48 = vld [vmem:[%s10373_s23 + $0x1f00] sm:$0xff]  ;;  %v2160_v49 = vld [vmem:[%s10373_s23 + $0x1f10] sm:$0xff]  ;;  %2157 = vst [vmem:[%s10378_s24 + $0xf78] sm:$0xff] %v2156_v47 }
 0x10b   : > { %2159 = vst [vmem:[%s10378_s24 + $0xf80] sm:$0xff] %v2158_v48  ;;  %2161 = vst [vmem:[%s10378_s24 + $0xf88] sm:$0xff] %v2160_v49  ;;  %v2162_v50 = vld [vmem:[%s10373_s23 + $0x1f20] sm:$0xff]  ;;  %v2164_v51 = vld [vmem:[%s10373_s23 + $0x1f30] sm:$0xff] }
 0x10c   : > { %v2166_v52 = vld [vmem:[%s10373_s23 + $0x1f40] sm:$0xff]  ;;  %2163 = vst [vmem:[%s10378_s24 + $0xf90] sm:$0xff] %v2162_v50  ;;  %2165 = vst [vmem:[%s10378_s24 + $0xf98] sm:$0xff] %v2164_v51  ;;  %v2168_v53 = vld [vmem:[%s10373_s23 + $0x1f50] sm:$0xff] }
 0x10d   : > { %2167 = vst [vmem:[%s10378_s24 + $0xfa0] sm:$0xff] %v2166_v52  ;;  %v2170_v54 = vld [vmem:[%s10373_s23 + $0x1f60] sm:$0xff]  ;;  %v2172_v55 = vld [vmem:[%s10373_s23 + $0x1f70] sm:$0xff]  ;;  %2169 = vst [vmem:[%s10378_s24 + $0xfa8] sm:$0xff] %v2168_v53 }
 0x10e   : > { %2171 = vst [vmem:[%s10378_s24 + $0xfb0] sm:$0xff] %v2170_v54  ;;  %2173 = vst [vmem:[%s10378_s24 + $0xfb8] sm:$0xff] %v2172_v55  ;;  %v2174_v56 = vld [vmem:[%s10373_s23 + $0x1f80] sm:$0xff]  ;;  %v2176_v57 = vld [vmem:[%s10373_s23 + $0x1f90] sm:$0xff] }
 0x10f   : > { %v2178_v58 = vld [vmem:[%s10373_s23 + $0x1fa0] sm:$0xff]  ;;  %2175 = vst [vmem:[%s10378_s24 + $0xfc0] sm:$0xff] %v2174_v56  ;;  %2177 = vst [vmem:[%s10378_s24 + $0xfc8] sm:$0xff] %v2176_v57  ;;  %v2180_v59 = vld [vmem:[%s10373_s23 + $0x1fb0] sm:$0xff] }
 0x110   : > { %2179 = vst [vmem:[%s10378_s24 + $0xfd0] sm:$0xff] %v2178_v58  ;;  %v2182_v60 = vld [vmem:[%s10373_s23 + $0x1fc0] sm:$0xff]  ;;  %v2184_v61 = vld [vmem:[%s10373_s23 + $0x1fd0] sm:$0xff]  ;;  %2181 = vst [vmem:[%s10378_s24 + $0xfd8] sm:$0xff] %v2180_v59 }
 0x111   : > { %2183 = vst [vmem:[%s10378_s24 + $0xfe0] sm:$0xff] %v2182_v60  ;;  %2185 = vst [vmem:[%s10378_s24 + $0xfe8] sm:$0xff] %v2184_v61  ;;  %v2186_v62 = vld [vmem:[%s10373_s23 + $0x1fe0] sm:$0xff]  ;;  %v2188_v63 = vld [vmem:[%s10373_s23 + $0x1ff0] sm:$0xff] }
 0x112   : > { %2187 = vst [vmem:[%s10378_s24 + $0xff0] sm:$0xff] %v2186_v62  ;;  %2189 = vst [vmem:[%s10378_s24 + $0xff8] sm:$0xff] %v2188_v63 }
 0x113 PF: > { %p8900_p7 = scmp.ge.s32.totalorder %s10316_s11, 1  ;;  %p4279_p8 = scmp.lt.s32.totalorder %s10316_s11, 3 }
 0x115   : > { %p4280_p9 = pnand %p8900_p7, %p4279_p8 }
 0x117   : > { %4283 = sbr.rel (%p4280_p9) target bundleno = 1082 (0x43a), region = 76 }
 0x11c   : > { %s4286_s25 = sand.u32 1, %s10308_s9   ;;  %v11407_v0 = vld [vmem:[%s12488_s0] sm:$0xff]  ;;  %v11417_v2 = vld [vmem:[%s12488_s0 + $0x8] sm:$0xff]  ;;  %s9493_s9 = sshll.u32 (%p10363_p5), %s8893_s12, 3 }
 0x11d   : > { %v11412_v1 = vld [vmem:[%s12488_s0 + $0x80] sm:$0xff]  ;;  %s8901_s4 = sshll.u32 %s4286_s25, 12  ;;  %v11428_v5 = vld [vmem:[%s12488_s0 + $0x88] sm:$0xff]  ;;  %s8782_s23 = scalar_lea.vmem (%p10363_p5), %s12490_s2, %s9493_s9 }
 0x11e   : > { %v8903_v3 = vcombine.low %v11407_v0, %v11412_v1  ;;  %v8904_v4 = vcombine.high %v11407_v0, %v11412_v1  ;;  %v8905_v6 = vcombine.low %v11417_v2, %v11428_v5  ;;  %v8906_v7 = vcombine.high %v11417_v2, %v11428_v5  ;;  %s11434_s7 = scalar_lea.vmem [#allocation2], %s8901_s4 }
 0x11f   : > { %v9518_v8 = vld [vmem:[%s11434_s7 + $0x74] ss:$8 sps:$4 sm:$0xff]   ;;  %v9522_v10 = vld [vmem:[%s11434_s7 + $0x70] ss:$8 sps:$4 sm:$0xff]   ;;  %v9524_v12 = vld [vmem:[%s11434_s7 + $0x64] ss:$8 sps:$4 sm:$0xff]  }
 0x120   : > { %7796 = vmatprep.mubr.bf16.mxu0 %v8904_v4  ;;  %v9520_v9 = vld [vmem:[%s11434_s7 + $0x174] ss:$8 sps:$4 sm:$0xff]   ;;  %7849 = vmatprep.mubr.bf16.mxu1 %v8906_v7  ;;  %v9523_v11 = vld [vmem:[%s11434_s7 + $0x170] ss:$8 sps:$4 sm:$0xff]   ;;  %v9526_v13 = vld [vmem:[%s11434_s7 + $0x164] ss:$8 sps:$4 sm:$0xff]  }
 0x121   : > { %7764 = vmatprep.subr.bf16.mxu0 %v9518_v8  ;;  %7817 = vmatprep.subr.bf16.mxu1 %v9520_v9  ;;  %v9528_v14 = vld [vmem:[%s11434_s7 + $0x60] ss:$8 sps:$4 sm:$0xff]   ;;  %v9530_v16 = vld [vmem:[%s11434_s7 + $0x54] ss:$8 sps:$4 sm:$0xff]   ;;  %v9534_v18 = vld [vmem:[%s11434_s7 + $0x50] ss:$8 sps:$4 sm:$0xff]  }
 0x122   : > { %7765 = vmatpush1.bf16.msra.mxu0 %v9522_v10  ;;  %7818 = vmatpush1.bf16.msra.mxu1 %v9523_v11  ;;  %v9529_v15 = vld [vmem:[%s11434_s7 + $0x160] ss:$8 sps:$4 sm:$0xff]   ;;  %v9532_v17 = vld [vmem:[%s11434_s7 + $0x154] ss:$8 sps:$4 sm:$0xff]   ;;  %v9535_v19 = vld [vmem:[%s11434_s7 + $0x150] ss:$8 sps:$4 sm:$0xff]  }
 0x123   : > { %7766 = vmatprep.subr.bf16.mxu0 %v9524_v12  ;;  %7819 = vmatprep.subr.bf16.mxu1 %v9526_v13  ;;  %v9536_v20 = vld [vmem:[%s11434_s7 + $0x44] ss:$8 sps:$4 sm:$0xff]   ;;  %v9540_v22 = vld [vmem:[%s11434_s7 + $0x40] ss:$8 sps:$4 sm:$0xff]   ;;  %v9542_v24 = vld [vmem:[%s11434_s7 + $0x34] ss:$8 sps:$4 sm:$0xff]  }
 0x124   : > { %v9538_v21 = vld [vmem:[%s11434_s7 + $0x144] ss:$8 sps:$4 sm:$0xff]   ;;  %v9541_v23 = vld [vmem:[%s11434_s7 + $0x140] ss:$8 sps:$4 sm:$0xff]   ;;  %v9544_v25 = vld [vmem:[%s11434_s7 + $0x134] ss:$8 sps:$4 sm:$0xff]  }
 0x125   : > { %v9546_v26 = vld [vmem:[%s11434_s7 + $0x30] ss:$8 sps:$4 sm:$0xff]   ;;  %v9548_v28 = vld [vmem:[%s11434_s7 + $0x24] ss:$8 sps:$4 sm:$0xff]   ;;  %v9552_v30 = vld [vmem:[%s11434_s7 + $0x20] ss:$8 sps:$4 sm:$0xff]  }
 0x126   : > { %7767 = vmatpush1.bf16.msra.mxu0 %v9528_v14  ;;  %7820 = vmatpush1.bf16.msra.mxu1 %v9529_v15  ;;  %v9547_v27 = vld [vmem:[%s11434_s7 + $0x130] ss:$8 sps:$4 sm:$0xff]   ;;  %v9550_v29 = vld [vmem:[%s11434_s7 + $0x124] ss:$8 sps:$4 sm:$0xff]   ;;  %v9553_v31 = vld [vmem:[%s11434_s7 + $0x120] ss:$8 sps:$4 sm:$0xff]  }
 0x127   : > { %7768 = vmatprep.subr.bf16.mxu0 %v9530_v16  ;;  %7821 = vmatprep.subr.bf16.mxu1 %v9532_v17  ;;  %v9554_v32 = vld [vmem:[%s11434_s7 + $0x14] ss:$8 sps:$4 sm:$0xff]   ;;  %v9558_v34 = vld [vmem:[%s11434_s7 + $0x10] ss:$8 sps:$4 sm:$0xff]   ;;  %v9560_v36 = vld [vmem:[%s11434_s7 + $0x4] ss:$8 sps:$4 sm:$0xff]  }
 0x128   : > { %v9556_v33 = vld [vmem:[%s11434_s7 + $0x114] ss:$8 sps:$4 sm:$0xff]   ;;  %v9559_v35 = vld [vmem:[%s11434_s7 + $0x110] ss:$8 sps:$4 sm:$0xff]   ;;  %v9562_v37 = vld [vmem:[%s11434_s7 + $0x104] ss:$8 sps:$4 sm:$0xff]  }
 0x129   : > { %v9564_v38 = vld [vmem:[%s11434_s7] ss:$8 sps:$4 sm:$0xff]   ;;  %v9566_v40 = vld [vmem:[%s11434_s7 + $0xf4] ss:$8 sps:$4 sm:$0xff]   ;;  %v9570_v42 = vld [vmem:[%s11434_s7 + $0xf0] ss:$8 sps:$4 sm:$0xff]  }
 0x12a   : > { %7769 = vmatpush1.bf16.msra.mxu0 %v9534_v18  ;;  %7822 = vmatpush1.bf16.msra.mxu1 %v9535_v19  ;;  %v9565_v39 = vld [vmem:[%s11434_s7 + $0x100] ss:$8 sps:$4 sm:$0xff]   ;;  %v9568_v41 = vld [vmem:[%s11434_s7 + $0x1f4] ss:$8 sps:$4 sm:$0xff]   ;;  %v9571_v43 = vld [vmem:[%s11434_s7 + $0x1f0] ss:$8 sps:$4 sm:$0xff]  }
 0x12b   : > { %7770 = vmatprep.subr.bf16.mxu0 %v9536_v20  ;;  %7823 = vmatprep.subr.bf16.mxu1 %v9538_v21  ;;  %v9572_v44 = vld [vmem:[%s11434_s7 + $0xe4] ss:$8 sps:$4 sm:$0xff]   ;;  %v9576_v46 = vld [vmem:[%s11434_s7 + $0xe0] ss:$8 sps:$4 sm:$0xff]   ;;  %v9578_v48 = vld [vmem:[%s11434_s7 + $0xd4] ss:$8 sps:$4 sm:$0xff]  }
 0x12c   : > { %v9574_v45 = vld [vmem:[%s11434_s7 + $0x1e4] ss:$8 sps:$4 sm:$0xff]   ;;  %v9577_v47 = vld [vmem:[%s11434_s7 + $0x1e0] ss:$8 sps:$4 sm:$0xff]   ;;  %v9580_v49 = vld [vmem:[%s11434_s7 + $0x1d4] ss:$8 sps:$4 sm:$0xff]  }
 0x12d   : > { %v9582_v50 = vld [vmem:[%s11434_s7 + $0xd0] ss:$8 sps:$4 sm:$0xff]   ;;  %v9584_v52 = vld [vmem:[%s11434_s7 + $0xc4] ss:$8 sps:$4 sm:$0xff]   ;;  %v9588_v54 = vld [vmem:[%s11434_s7 + $0xc0] ss:$8 sps:$4 sm:$0xff]  }
 0x12e   : > { %7771 = vmatpush1.bf16.msra.mxu0 %v9540_v22  ;;  %7824 = vmatpush1.bf16.msra.mxu1 %v9541_v23  ;;  %v9583_v51 = vld [vmem:[%s11434_s7 + $0x1d0] ss:$8 sps:$4 sm:$0xff]   ;;  %v9586_v53 = vld [vmem:[%s11434_s7 + $0x1c4] ss:$8 sps:$4 sm:$0xff]   ;;  %v9589_v55 = vld [vmem:[%s11434_s7 + $0x1c0] ss:$8 sps:$4 sm:$0xff]  }
 0x12f   : > { %7772 = vmatprep.subr.bf16.mxu0 %v9542_v24  ;;  %7825 = vmatprep.subr.bf16.mxu1 %v9544_v25  ;;  %v9590_v56 = vld [vmem:[%s11434_s7 + $0xb4] ss:$8 sps:$4 sm:$0xff]   ;;  %v9594_v58 = vld [vmem:[%s11434_s7 + $0xb0] ss:$8 sps:$4 sm:$0xff]   ;;  %v9596_v60 = vld [vmem:[%s11434_s7 + $0xa4] ss:$8 sps:$4 sm:$0xff]  }
 0x130   : > { %v9592_v57 = vld [vmem:[%s11434_s7 + $0x1b4] ss:$8 sps:$4 sm:$0xff]   ;;  %v9595_v59 = vld [vmem:[%s11434_s7 + $0x1b0] ss:$8 sps:$4 sm:$0xff]   ;;  %v9598_v61 = vld [vmem:[%s11434_s7 + $0x1a4] ss:$8 sps:$4 sm:$0xff]  }
 0x131   : > { %v9600_v62 = vld [vmem:[%s11434_s7 + $0xa0] ss:$8 sps:$4 sm:$0xff]   ;;  %v9602_v4 = vld [vmem:[%s11434_s7 + $0x94] ss:$8 sps:$4 sm:$0xff]   ;;  %v9606_v8 = vld [vmem:[%s11434_s7 + $0x90] ss:$8 sps:$4 sm:$0xff]  }
 0x132   : > { %7773 = vmatpush1.bf16.msra.mxu0 %v9546_v26  ;;  %7826 = vmatpush1.bf16.msra.mxu1 %v9547_v27  ;;  %v9601_v63 = vld [vmem:[%s11434_s7 + $0x1a0] ss:$8 sps:$4 sm:$0xff]   ;;  %v9604_v7 = vld [vmem:[%s11434_s7 + $0x194] ss:$8 sps:$4 sm:$0xff]   ;;  %v9607_v9 = vld [vmem:[%s11434_s7 + $0x190] ss:$8 sps:$4 sm:$0xff]  }
 0x133   : > { %7774 = vmatprep.subr.bf16.mxu0 %v9548_v28  ;;  %7827 = vmatprep.subr.bf16.mxu1 %v9550_v29  ;;  %v9608_v10 = vld [vmem:[%s11434_s7 + $0x84] ss:$8 sps:$4 sm:$0xff]   ;;  %v9612_v12 = vld [vmem:[%s11434_s7 + $0x80] ss:$8 sps:$4 sm:$0xff]   ;;  %v9616_v14 = vld [vmem:[%s11434_s7 + $0x274] ss:$8 sps:$4 sm:$0xff]  }
 0x134   : > { %v9610_v11 = vld [vmem:[%s11434_s7 + $0x184] ss:$8 sps:$4 sm:$0xff]   ;;  %v9613_v13 = vld [vmem:[%s11434_s7 + $0x180] ss:$8 sps:$4 sm:$0xff]   ;;  %v9619_v15 = vld [vmem:[%s11434_s7 + $0x374] ss:$8 sps:$4 sm:$0xff]  }
 0x135   : > { %v4340_v16 = vld [vmem:[%s12488_s0 + $0x100] sm:$0xff]  ;;  %v4341_v18 = vld [vmem:[%s12488_s0 + $0x108] sm:$0xff]  ;;  %v9614_v20 = vld [vmem:[%s11434_s7 + $0x270] ss:$8 sps:$4 sm:$0xff]  }
 0x136   : > { %7775 = vmatpush1.bf16.msra.mxu0 %v9552_v30  ;;  %7828 = vmatpush1.bf16.msra.mxu1 %v9553_v31  ;;  %v4356_v17 = vld [vmem:[%s12488_s0 + $0x180] sm:$0xff]  ;;  %v4357_v19 = vld [vmem:[%s12488_s0 + $0x188] sm:$0xff]  ;;  %v9617_v21 = vld [vmem:[%s11434_s7 + $0x370] ss:$8 sps:$4 sm:$0xff]  }
 0x137   : > { %7776 = vmatprep.subr.bf16.mxu0 %v9554_v32  ;;  %7829 = vmatprep.subr.bf16.mxu1 %v9556_v33  ;;  %v9622_v22 = vld [vmem:[%s11434_s7 + $0x264] ss:$8 sps:$4 sm:$0xff]   ;;  %v8936_v24 = vcombine.high %v4340_v16, %v4356_v17  ;;  %v8938_v25 = vcombine.high %v4341_v18, %v4357_v19  ;;  %v9620_v26 = vld [vmem:[%s11434_s7 + $0x260] ss:$8 sps:$4 sm:$0xff]   ;;  %v9628_v28 = vld [vmem:[%s11434_s7 + $0x254] ss:$8 sps:$4 sm:$0xff]   ;;  %v8937_v2 = vcombine.low %v4341_v18, %v4357_v19 }
 0x138   : > { %v9625_v23 = vld [vmem:[%s11434_s7 + $0x364] ss:$8 sps:$4 sm:$0xff]   ;;  %v9623_v27 = vld [vmem:[%s11434_s7 + $0x360] ss:$8 sps:$4 sm:$0xff]   ;;  %v9631_v29 = vld [vmem:[%s11434_s7 + $0x354] ss:$8 sps:$4 sm:$0xff]  }
 0x139   : > { %v9626_v0 = vld [vmem:[%s11434_s7 + $0x250] ss:$8 sps:$4 sm:$0xff]   ;;  %v9634_v5 = vld [vmem:[%s11434_s7 + $0x244] ss:$8 sps:$4 sm:$0xff]   ;;  %v9632_v30 = vld [vmem:[%s11434_s7 + $0x240] ss:$8 sps:$4 sm:$0xff]  }
 0x13a   : > { %7777 = vmatpush1.bf16.msra.mxu0 %v9558_v34  ;;  %7830 = vmatpush1.bf16.msra.mxu1 %v9559_v35  ;;  %v9629_v1 = vld [vmem:[%s11434_s7 + $0x350] ss:$8 sps:$4 sm:$0xff]   ;;  %v9635_v31 = vld [vmem:[%s11434_s7 + $0x340] ss:$8 sps:$4 sm:$0xff]   ;;  %v9640_v32 = vld [vmem:[%s11434_s7 + $0x234] ss:$8 sps:$4 sm:$0xff]  }
 0x13b   : > { %7778 = vmatprep.subr.bf16.mxu0 %v9560_v36  ;;  %7831 = vmatprep.subr.bf16.mxu1 %v9562_v37  ;;  %v9643_v33 = vld [vmem:[%s11434_s7 + $0x334] ss:$8 sps:$4 sm:$0xff]   ;;  %v9638_v34 = vld [vmem:[%s11434_s7 + $0x230] ss:$8 sps:$4 sm:$0xff]   ;;  %v9646_v36 = vld [vmem:[%s11434_s7 + $0x224] ss:$8 sps:$4 sm:$0xff]  }
 0x13c   : > { %v9641_v35 = vld [vmem:[%s11434_s7 + $0x330] ss:$8 sps:$4 sm:$0xff]   ;;  %v9649_v37 = vld [vmem:[%s11434_s7 + $0x324] ss:$8 sps:$4 sm:$0xff]   ;;  %v9692_v18 = vld [vmem:[%s11434_s7 + $0x2a0] ss:$8 sps:$4 sm:$0xff]  }
 0x13d   : > { %v9695_v19 = vld [vmem:[%s11434_s7 + $0x3a0] ss:$8 sps:$4 sm:$0xff]  }
 0x13e   : > { %7779 = vmatpush1.bf16.msra.mxu0 %v9564_v38  ;;  %7832 = vmatpush1.bf16.msra.mxu1 %v9565_v39  ;;  %v11543_v38 = vld [vmem:[%s12488_s0 + $0x10] sm:$0xff]  ;;  %v9644_v39 = vld [vmem:[%s11434_s7 + $0x220] ss:$8 sps:$4 sm:$0xff]  }
 0x13f   : > { %7780 = vmatprep.subr.bf16.mxu0 %v9566_v40  ;;  %7833 = vmatprep.subr.bf16.mxu1 %v9568_v41  ;;  %v9647_v40 = vld [vmem:[%s11434_s7 + $0x320] ss:$8 sps:$4 sm:$0xff]   ;;  %v9652_v41 = vld [vmem:[%s11434_s7 + $0x214] ss:$8 sps:$4 sm:$0xff]  }
 0x142   : > { %7781 = vmatpush2.bf16.msra.mxu0 %v9570_v42  ;;  %7834 = vmatpush2.bf16.msra.mxu1 %v9571_v43  ;;  %v9655_v42 = vld [vmem:[%s11434_s7 + $0x314] ss:$8 sps:$4 sm:$0xff]  }
 0x143   : > { %7782 = vmatprep.subr.bf16.mxu0 %v9572_v44  ;;  %7835 = vmatprep.subr.bf16.mxu1 %v9574_v45  ;;  %v11552_v43 = vld [vmem:[%s12488_s0 + $0x90] sm:$0xff]  ;;  %v11557_v44 = vld [vmem:[%s12488_s0 + $0x18] sm:$0xff] }
 0x144   : > { %v8908_v45 = vcombine.high %v11543_v38, %v11552_v43 }
 0x146   : > { %7783 = vmatpush2.bf16.msra.mxu0 %v9576_v46  ;;  %7836 = vmatpush2.bf16.msra.mxu1 %v9577_v47  ;;  %v11564_v46 = vld [vmem:[%s12488_s0 + $0x98] sm:$0xff] }
 0x147   : > { %7784 = vmatprep.subr.bf16.mxu0 %v9578_v48  ;;  %7837 = vmatprep.subr.bf16.mxu1 %v9580_v49  ;;  %v9650_v47 = vld [vmem:[%s11434_s7 + $0x210] ss:$8 sps:$4 sm:$0xff]   ;;  %v8910_v48 = vcombine.high %v11557_v44, %v11564_v46 }
 0x148   : > { %v9653_v49 = vld [vmem:[%s11434_s7 + $0x310] ss:$8 sps:$4 sm:$0xff]  }
 0x14a   : > { %7785 = vmatpush2.bf16.msra.mxu0 %v9582_v50  ;;  %7838 = vmatpush2.bf16.msra.mxu1 %v9583_v51  ;;  %v9658_v50 = vld [vmem:[%s11434_s7 + $0x204] ss:$8 sps:$4 sm:$0xff]  }
 0x14b   : > { %7786 = vmatprep.subr.bf16.mxu0 %v9584_v52  ;;  %7839 = vmatprep.subr.bf16.mxu1 %v9586_v53  ;;  %v9661_v51 = vld [vmem:[%s11434_s7 + $0x304] ss:$8 sps:$4 sm:$0xff]   ;;  %v9656_v52 = vld [vmem:[%s11434_s7 + $0x200] ss:$8 sps:$4 sm:$0xff]  }
 0x14c   : > { %v9659_v53 = vld [vmem:[%s11434_s7 + $0x300] ss:$8 sps:$4 sm:$0xff]  }
 0x14e   : > { %7787 = vmatpush2.bf16.msra.mxu0 %v9588_v54  ;;  %7840 = vmatpush2.bf16.msra.mxu1 %v9589_v55  ;;  %v9664_v54 = vld [vmem:[%s11434_s7 + $0x2f4] ss:$8 sps:$4 sm:$0xff]  }
 0x14f   : > { %7788 = vmatprep.subr.bf16.mxu0 %v9590_v56  ;;  %7841 = vmatprep.subr.bf16.mxu1 %v9592_v57  ;;  %v9667_v55 = vld [vmem:[%s11434_s7 + $0x3f4] ss:$8 sps:$4 sm:$0xff]   ;;  %v9662_v56 = vld [vmem:[%s11434_s7 + $0x2f0] ss:$8 sps:$4 sm:$0xff]  }
 0x150   : > { %v9665_v57 = vld [vmem:[%s11434_s7 + $0x3f0] ss:$8 sps:$4 sm:$0xff]  }
 0x152   : > { %7789 = vmatpush2.bf16.msra.mxu0 %v9594_v58  ;;  %7842 = vmatpush2.bf16.msra.mxu1 %v9595_v59  ;;  %v9670_v58 = vld [vmem:[%s11434_s7 + $0x2e4] ss:$8 sps:$4 sm:$0xff]  }
 0x153   : > { %7790 = vmatprep.subr.bf16.mxu0 %v9596_v60  ;;  %7843 = vmatprep.subr.bf16.mxu1 %v9598_v61  ;;  %v9673_v59 = vld [vmem:[%s11434_s7 + $0x3e4] ss:$8 sps:$4 sm:$0xff]   ;;  %v9668_v60 = vld [vmem:[%s11434_s7 + $0x2e0] ss:$8 sps:$4 sm:$0xff]  }
 0x154   : > { %v9671_v61 = vld [vmem:[%s11434_s7 + $0x3e0] ss:$8 sps:$4 sm:$0xff]  }
 0x156   : > { %7791 = vmatpush2.bf16.msra.mxu0 %v9600_v62  ;;  %7844 = vmatpush2.bf16.msra.mxu1 %v9601_v63  ;;  %v9676_v62 = vld [vmem:[%s11434_s7 + $0x2d4] ss:$8 sps:$4 sm:$0xff]  }
 0x157   : > { %7792 = vmatprep.subr.bf16.mxu0 %v9602_v4  ;;  %7845 = vmatprep.subr.bf16.mxu1 %v9604_v7  ;;  %v9679_v63 = vld [vmem:[%s11434_s7 + $0x3d4] ss:$8 sps:$4 sm:$0xff]   ;;  %v9674_v4 = vld [vmem:[%s11434_s7 + $0x2d0] ss:$8 sps:$4 sm:$0xff]  }
 0x158   : > { %v9677_v7 = vld [vmem:[%s11434_s7 + $0x3d0] ss:$8 sps:$4 sm:$0xff]  }
 0x15a   : > { %7793 = vmatpush2.bf16.msra.mxu0 %v9606_v8  ;;  %7846 = vmatpush2.bf16.msra.mxu1 %v9607_v9  ;;  %v9682_v8 = vld [vmem:[%s11434_s7 + $0x2c4] ss:$8 sps:$4 sm:$0xff]  }
 0x15b   : > { %7794 = vmatprep.subr.bf16.mxu0 %v9608_v10  ;;  %7847 = vmatprep.subr.bf16.mxu1 %v9610_v11  ;;  %v9685_v9 = vld [vmem:[%s11434_s7 + $0x3c4] ss:$8 sps:$4 sm:$0xff]   ;;  %v9680_v10 = vld [vmem:[%s11434_s7 + $0x2c0] ss:$8 sps:$4 sm:$0xff]  }
 0x15c   : > { %v9683_v11 = vld [vmem:[%s11434_s7 + $0x3c0] ss:$8 sps:$4 sm:$0xff]  }
 0x15e   : > { %7795 = vmatpush2.bf16.msra.mxu0 %v9612_v12  ;;  %7848 = vmatpush2.bf16.msra.mxu1 %v9613_v13  ;;  %v9688_v12 = vld [vmem:[%s11434_s7 + $0x2b4] ss:$8 sps:$4 sm:$0xff]  }
 0x15f   : > { %7870 = vmatprep.subr.bf16.mxu0 %v9616_v14  ;;  %7923 = vmatprep.subr.bf16.mxu1 %v9619_v15  ;;  %v9691_v13 = vld [vmem:[%s11434_s7 + $0x3b4] ss:$8 sps:$4 sm:$0xff]   ;;  %v9686_v14 = vld [vmem:[%s11434_s7 + $0x2b0] ss:$8 sps:$4 sm:$0xff]  }
 0x160   : > { %v9689_v15 = vld [vmem:[%s11434_s7 + $0x3b0] ss:$8 sps:$4 sm:$0xff]  }
 0x161   : > { %7797 = vmatmul.mubr.bf16.vlgmr.msra.gmra.mxu0 %v8903_v3  ;;  %7850 = vmatmul.mubr.bf16.vlgmr.msra.gmra.mxu1 %v8905_v6  ;;  %v8935_v3 = vcombine.low %v4340_v16, %v4356_v17  ;;  %v9637_v6 = vld [vmem:[%s11434_s7 + $0x344] ss:$8 sps:$4 sm:$0xff]  }
 0x162   : > { %7871 = vmatpush1.bf16.msra.mxu0 %v9614_v20  ;;  %7924 = vmatpush1.bf16.msra.mxu1 %v9617_v21  ;;  %v9694_v16 = vld [vmem:[%s11434_s7 + $0x2a4] ss:$8 sps:$4 sm:$0xff]   ;;  %v9700_v20 = vld [vmem:[%s11434_s7 + $0x294] ss:$8 sps:$4 sm:$0xff]  }
 0x163   : > { %7872 = vmatprep.subr.bf16.mxu0 %v9622_v22  ;;  %7925 = vmatprep.subr.bf16.mxu1 %v9625_v23  ;;  %v9697_v17 = vld [vmem:[%s11434_s7 + $0x3a4] ss:$8 sps:$4 sm:$0xff]   ;;  %v9703_v21 = vld [vmem:[%s11434_s7 + $0x394] ss:$8 sps:$4 sm:$0xff]   ;;  %v9698_v22 = vld [vmem:[%s11434_s7 + $0x290] ss:$8 sps:$4 sm:$0xff]  }
 0x164   : > { %7806 = vmatprep.mubr.bf16.mxu0 %v8936_v24  ;;  %7859 = vmatprep.mubr.bf16.mxu1 %v8938_v25  ;;  %v9701_v23 = vld [vmem:[%s11434_s7 + $0x390] ss:$8 sps:$4 sm:$0xff]   ;;  %v9706_v24 = vld [vmem:[%s11434_s7 + $0x284] ss:$8 sps:$4 sm:$0xff]  }
 0x165   : > { %v9709_v25 = vld [vmem:[%s11434_s7 + $0x384] ss:$8 sps:$4 sm:$0xff]  }
 0x166   : > { %7873 = vmatpush1.bf16.msra.mxu0 %v9620_v26  ;;  %7926 = vmatpush1.bf16.msra.mxu1 %v9623_v27  ;;  %v9704_v26 = vld [vmem:[%s11434_s7 + $0x280] ss:$8 sps:$4 sm:$0xff]  }
 0x167   : > { %7874 = vmatprep.subr.bf16.mxu0 %v9628_v28  ;;  %7927 = vmatprep.subr.bf16.mxu1 %v9631_v29  ;;  %v9707_v27 = vld [vmem:[%s11434_s7 + $0x380] ss:$8 sps:$4 sm:$0xff]   ;;  %v9712_v28 = vld [vmem:[%s11434_s7 + $0x474] ss:$8 sps:$4 sm:$0xff]  }
 0x168   : > { %v9715_v29 = vld [vmem:[%s11434_s7 + $0x574] ss:$8 sps:$4 sm:$0xff]  }
 0x169   : > { %7807 = vmatmul.mubr.bf16.gmra.mxu0 %v8935_v3  ;;  %7860 = vmatmul.mubr.bf16.gmra.mxu1 %v8937_v2  ;;  %v4358_v3 = vld [vmem:[%s12488_s0 + $0x190] sm:$0xff]  ;;  %v8907_v2 = vcombine.low %v11543_v38, %v11552_v43 }
 0x16a   : > { %7875 = vmatpush1.bf16.msra.mxu0 %v9626_v0  ;;  %7928 = vmatpush1.bf16.msra.mxu1 %v9629_v1  ;;  %v4342_v0 = vld [vmem:[%s12488_s0 + $0x110] sm:$0xff] }
 0x16b   : > { %7876 = vmatprep.subr.bf16.mxu0 %v9634_v5  ;;  %7929 = vmatprep.subr.bf16.mxu1 %v9637_v6  ;;  %v9710_v1 = vld [vmem:[%s11434_s7 + $0x470] ss:$8 sps:$4 sm:$0xff]   ;;  %v8909_v5 = vcombine.low %v11557_v44, %v11564_v46  ;;  %v9724_v38 = vld [vmem:[%s11434_s7 + $0x454] ss:$8 sps:$4 sm:$0xff]   ;;  %v11645_v44 = vld [vmem:[%s12488_s0 + $0x28] sm:$0xff] }
 0x16c   : > { %7902 = vmatprep.mubr.bf16.mxu0 %v8908_v45  ;;  %7955 = vmatprep.mubr.bf16.mxu1 %v8910_v48  ;;  %v4343_v6 = vld [vmem:[%s12488_s0 + $0x118] sm:$0xff]  ;;  %v11650_v45 = vld [vmem:[%s12488_s0 + $0xa8] sm:$0xff] }
 0x16d   : > { %v9722_v46 = vld [vmem:[%s11434_s7 + $0x450] ss:$8 sps:$4 sm:$0xff]   ;;  %v9730_v48 = vld [vmem:[%s11434_s7 + $0x444] ss:$8 sps:$4 sm:$0xff]  }
 0x16e   : > { %7877 = vmatpush1.bf16.msra.mxu0 %v9632_v30  ;;  %7930 = vmatpush1.bf16.msra.mxu1 %v9635_v31  ;;  %v4359_v30 = vld [vmem:[%s12488_s0 + $0x198] sm:$0xff] }
 0x16f   : > { %7878 = vmatprep.subr.bf16.mxu0 %v9640_v32  ;;  %7931 = vmatprep.subr.bf16.mxu1 %v9643_v33  ;;  %v9713_v31 = vld [vmem:[%s11434_s7 + $0x570] ss:$8 sps:$4 sm:$0xff]   ;;  %v9718_v32 = vld [vmem:[%s11434_s7 + $0x464] ss:$8 sps:$4 sm:$0xff]   ;;  %v8941_v43 = vcombine.low %v4343_v6, %v4359_v30 }
 0x170   : > { %v9721_v33 = vld [vmem:[%s11434_s7 + $0x564] ss:$8 sps:$4 sm:$0xff]  }
 0x172   : > { %7879 = vmatpush1.bf16.msra.mxu0 %v9638_v34  ;;  %7932 = vmatpush1.bf16.msra.mxu1 %v9641_v35  ;;  %v8940_v34 = vcombine.high %v4342_v0, %v4358_v3  ;;  %v8942_v35 = vcombine.high %v4343_v6, %v4359_v30  ;;  %v9791_v6 = vld [vmem:[%s11434_s7 + $0x5a0] ss:$8 sps:$4 sm:$0xff]   ;;  %v9796_v30 = vld [vmem:[%s11434_s7 + $0x494] ss:$8 sps:$4 sm:$0xff]  }
 0x173   : > { %7880 = vmatprep.subr.bf16.mxu0 %v9646_v36  ;;  %7933 = vmatprep.subr.bf16.mxu1 %v9649_v37  ;;  %v9716_v36 = vld [vmem:[%s11434_s7 + $0x460] ss:$8 sps:$4 sm:$0xff]  }
 0x174   : > { %v9719_v37 = vld [vmem:[%s11434_s7 + $0x560] ss:$8 sps:$4 sm:$0xff]  }
 0x176   : > { %7881 = vmatpush1.bf16.msra.mxu0 %v9644_v39  ;;  %7934 = vmatpush1.bf16.msra.mxu1 %v9647_v40  ;;  %v9727_v39 = vld [vmem:[%s11434_s7 + $0x554] ss:$8 sps:$4 sm:$0xff]   ;;  %v11635_v40 = vld [vmem:[%s12488_s0 + $0x20] sm:$0xff] }
 0x177   : > { %7882 = vmatprep.subr.bf16.mxu0 %v9652_v41  ;;  %7935 = vmatprep.subr.bf16.mxu1 %v9655_v42  ;;  %v11640_v41 = vld [vmem:[%s12488_s0 + $0xa0] sm:$0xff]  ;;  %v8939_v42 = vcombine.low %v4342_v0, %v4358_v3  ;;  %v9782_v0 = vld [vmem:[%s11434_s7 + $0x4b0] ss:$8 sps:$4 sm:$0xff]  }
 0x178   : > { %v9790_v3 = vld [vmem:[%s11434_s7 + $0x4a4] ss:$8 sps:$4 sm:$0xff]  }
 0x17a   : > { %7883 = vmatpush1.bf16.msra.mxu0 %v9650_v47  ;;  %7936 = vmatpush1.bf16.msra.mxu1 %v9653_v49  ;;  %v9725_v47 = vld [vmem:[%s11434_s7 + $0x550] ss:$8 sps:$4 sm:$0xff]   ;;  %v9733_v49 = vld [vmem:[%s11434_s7 + $0x544] ss:$8 sps:$4 sm:$0xff]  }
 0x17b   : > { %7884 = vmatprep.subr.bf16.mxu0 %v9658_v50  ;;  %7937 = vmatprep.subr.bf16.mxu1 %v9661_v51  ;;  %v8912_v50 = vcombine.high %v11635_v40, %v11640_v41  ;;  %v8914_v51 = vcombine.high %v11645_v44, %v11650_v45 }
 0x17e   : > { %7885 = vmatpush1.bf16.msra.mxu0 %v9656_v52  ;;  %7938 = vmatpush1.bf16.msra.mxu1 %v9659_v53  ;;  %v9728_v52 = vld [vmem:[%s11434_s7 + $0x440] ss:$8 sps:$4 sm:$0xff]  }
 0x17f   : > { %7886 = vmatprep.subr.bf16.mxu0 %v9664_v54  ;;  %7939 = vmatprep.subr.bf16.mxu1 %v9667_v55  ;;  %v9731_v53 = vld [vmem:[%s11434_s7 + $0x540] ss:$8 sps:$4 sm:$0xff]   ;;  %v9736_v54 = vld [vmem:[%s11434_s7 + $0x434] ss:$8 sps:$4 sm:$0xff]  }
 0x180   : > { %v9739_v55 = vld [vmem:[%s11434_s7 + $0x534] ss:$8 sps:$4 sm:$0xff]  }
 0x182   : > { %7887 = vmatpush2.bf16.msra.mxu0 %v9662_v56  ;;  %7940 = vmatpush2.bf16.msra.mxu1 %v9665_v57  ;;  %v9734_v56 = vld [vmem:[%s11434_s7 + $0x430] ss:$8 sps:$4 sm:$0xff]  }
 0x183   : > { %7888 = vmatprep.subr.bf16.mxu0 %v9670_v58  ;;  %7941 = vmatprep.subr.bf16.mxu1 %v9673_v59  ;;  %v9737_v57 = vld [vmem:[%s11434_s7 + $0x530] ss:$8 sps:$4 sm:$0xff]   ;;  %v9742_v58 = vld [vmem:[%s11434_s7 + $0x424] ss:$8 sps:$4 sm:$0xff]  }
 0x184   : > { %v9745_v59 = vld [vmem:[%s11434_s7 + $0x524] ss:$8 sps:$4 sm:$0xff]  }
 0x186   : > { %7889 = vmatpush2.bf16.msra.mxu0 %v9668_v60  ;;  %7942 = vmatpush2.bf16.msra.mxu1 %v9671_v61  ;;  %v9740_v60 = vld [vmem:[%s11434_s7 + $0x420] ss:$8 sps:$4 sm:$0xff]  }
 0x187   : > { %7890 = vmatprep.subr.bf16.mxu0 %v9676_v62  ;;  %7943 = vmatprep.subr.bf16.mxu1 %v9679_v63  ;;  %v9743_v61 = vld [vmem:[%s11434_s7 + $0x520] ss:$8 sps:$4 sm:$0xff]   ;;  %v9748_v62 = vld [vmem:[%s11434_s7 + $0x414] ss:$8 sps:$4 sm:$0xff]  }
 0x188   : > { %v9751_v63 = vld [vmem:[%s11434_s7 + $0x514] ss:$8 sps:$4 sm:$0xff]  }
 0x18a   : > { %7891 = vmatpush2.bf16.msra.mxu0 %v9674_v4  ;;  %7944 = vmatpush2.bf16.msra.mxu1 %v9677_v7  ;;  %v9746_v4 = vld [vmem:[%s11434_s7 + $0x410] ss:$8 sps:$4 sm:$0xff]  }
 0x18b   : > { %7892 = vmatprep.subr.bf16.mxu0 %v9682_v8  ;;  %7945 = vmatprep.subr.bf16.mxu1 %v9685_v9  ;;  %v9749_v7 = vld [vmem:[%s11434_s7 + $0x510] ss:$8 sps:$4 sm:$0xff]   ;;  %v9754_v8 = vld [vmem:[%s11434_s7 + $0x404] ss:$8 sps:$4 sm:$0xff]  }
 0x18c   : > { %v9757_v9 = vld [vmem:[%s11434_s7 + $0x504] ss:$8 sps:$4 sm:$0xff]  }
 0x18e   : > { %7893 = vmatpush2.bf16.msra.mxu0 %v9680_v10  ;;  %7946 = vmatpush2.bf16.msra.mxu1 %v9683_v11  ;;  %v9752_v10 = vld [vmem:[%s11434_s7 + $0x400] ss:$8 sps:$4 sm:$0xff]  }
 0x18f   : > { %7894 = vmatprep.subr.bf16.mxu0 %v9688_v12  ;;  %7947 = vmatprep.subr.bf16.mxu1 %v9691_v13  ;;  %v9755_v11 = vld [vmem:[%s11434_s7 + $0x500] ss:$8 sps:$4 sm:$0xff]   ;;  %v9760_v12 = vld [vmem:[%s11434_s7 + $0x4f4] ss:$8 sps:$4 sm:$0xff]  }
 0x190   : > { %v9763_v13 = vld [vmem:[%s11434_s7 + $0x5f4] ss:$8 sps:$4 sm:$0xff]  }
 0x192   : > { %7895 = vmatpush2.bf16.msra.mxu0 %v9686_v14  ;;  %7948 = vmatpush2.bf16.msra.mxu1 %v9689_v15  ;;  %v9758_v14 = vld [vmem:[%s11434_s7 + $0x4f0] ss:$8 sps:$4 sm:$0xff]  }
 0x193   : > { %7896 = vmatprep.subr.bf16.mxu0 %v9694_v16  ;;  %7949 = vmatprep.subr.bf16.mxu1 %v9697_v17  ;;  %v9761_v15 = vld [vmem:[%s11434_s7 + $0x5f0] ss:$8 sps:$4 sm:$0xff]   ;;  %v9766_v16 = vld [vmem:[%s11434_s7 + $0x4e4] ss:$8 sps:$4 sm:$0xff]  }
 0x194   : > { %v9769_v17 = vld [vmem:[%s11434_s7 + $0x5e4] ss:$8 sps:$4 sm:$0xff]  }
 0x196   : > { %7897 = vmatpush2.bf16.msra.mxu0 %v9692_v18  ;;  %7950 = vmatpush2.bf16.msra.mxu1 %v9695_v19  ;;  %v9764_v18 = vld [vmem:[%s11434_s7 + $0x4e0] ss:$8 sps:$4 sm:$0xff]  }
 0x197   : > { %7898 = vmatprep.subr.bf16.mxu0 %v9700_v20  ;;  %7951 = vmatprep.subr.bf16.mxu1 %v9703_v21  ;;  %v9767_v19 = vld [vmem:[%s11434_s7 + $0x5e0] ss:$8 sps:$4 sm:$0xff]   ;;  %v9772_v20 = vld [vmem:[%s11434_s7 + $0x4d4] ss:$8 sps:$4 sm:$0xff]  }
 0x198   : > { %v9775_v21 = vld [vmem:[%s11434_s7 + $0x5d4] ss:$8 sps:$4 sm:$0xff]  }
 0x19a   : > { %7899 = vmatpush2.bf16.msra.mxu0 %v9698_v22  ;;  %7952 = vmatpush2.bf16.msra.mxu1 %v9701_v23  ;;  %v9770_v22 = vld [vmem:[%s11434_s7 + $0x4d0] ss:$8 sps:$4 sm:$0xff]  }
 0x19b   : > { %7900 = vmatprep.subr.bf16.mxu0 %v9706_v24  ;;  %7953 = vmatprep.subr.bf16.mxu1 %v9709_v25  ;;  %v9773_v23 = vld [vmem:[%s11434_s7 + $0x5d0] ss:$8 sps:$4 sm:$0xff]   ;;  %v9778_v24 = vld [vmem:[%s11434_s7 + $0x4c4] ss:$8 sps:$4 sm:$0xff]  }
 0x19c   : > { %v9781_v25 = vld [vmem:[%s11434_s7 + $0x5c4] ss:$8 sps:$4 sm:$0xff]  }
 0x19e   : > { %7901 = vmatpush2.bf16.msra.mxu0 %v9704_v26  ;;  %7954 = vmatpush2.bf16.msra.mxu1 %v9707_v27  ;;  %v9776_v26 = vld [vmem:[%s11434_s7 + $0x4c0] ss:$8 sps:$4 sm:$0xff]  }
 0x19f   : > { %7976 = vmatprep.subr.bf16.mxu0 %v9712_v28  ;;  %8029 = vmatprep.subr.bf16.mxu1 %v9715_v29  ;;  %v9779_v27 = vld [vmem:[%s11434_s7 + $0x5c0] ss:$8 sps:$4 sm:$0xff]   ;;  %v9784_v28 = vld [vmem:[%s11434_s7 + $0x4b4] ss:$8 sps:$4 sm:$0xff]  }
 0x1a0   : > { %v9787_v29 = vld [vmem:[%s11434_s7 + $0x5b4] ss:$8 sps:$4 sm:$0xff]  }
 0x1a1   : > { %7903 = vmatmul.mubr.bf16.vlgmr.msra.gmra.mxu0 %v8907_v2  ;;  %7956 = vmatmul.mubr.bf16.vlgmr.msra.gmra.mxu1 %v8909_v5  ;;  %v9793_v2 = vld [vmem:[%s11434_s7 + $0x5a4] ss:$8 sps:$4 sm:$0xff]   ;;  %v9788_v5 = vld [vmem:[%s11434_s7 + $0x4a0] ss:$8 sps:$4 sm:$0xff]  }
 0x1a2   : > { %7977 = vmatpush1.bf16.msra.mxu0 %v9710_v1  ;;  %8030 = vmatpush1.bf16.msra.mxu1 %v9713_v31  ;;  %v9785_v1 = vld [vmem:[%s11434_s7 + $0x5b0] ss:$8 sps:$4 sm:$0xff]   ;;  %v9799_v31 = vld [vmem:[%s11434_s7 + $0x594] ss:$8 sps:$4 sm:$0xff]  }
 0x1a3   : > { %7978 = vmatprep.subr.bf16.mxu0 %v9718_v32  ;;  %8031 = vmatprep.subr.bf16.mxu1 %v9721_v33  ;;  %v9794_v32 = vld [vmem:[%s11434_s7 + $0x490] ss:$8 sps:$4 sm:$0xff]  }
 0x1a4   : > { %7912 = vmatprep.mubr.bf16.mxu0 %v8940_v34  ;;  %7965 = vmatprep.mubr.bf16.mxu1 %v8942_v35  ;;  %v9797_v33 = vld [vmem:[%s11434_s7 + $0x590] ss:$8 sps:$4 sm:$0xff]   ;;  %v9802_v34 = vld [vmem:[%s11434_s7 + $0x484] ss:$8 sps:$4 sm:$0xff]  }
 0x1a5   : > { %v9805_v35 = vld [vmem:[%s11434_s7 + $0x584] ss:$8 sps:$4 sm:$0xff]  }
 0x1a6   : > { %7979 = vmatpush1.bf16.msra.mxu0 %v9716_v36  ;;  %8032 = vmatpush1.bf16.msra.mxu1 %v9719_v37  ;;  %v9800_v36 = vld [vmem:[%s11434_s7 + $0x480] ss:$8 sps:$4 sm:$0xff]  }
 0x1a7   : > { %7980 = vmatprep.subr.bf16.mxu0 %v9724_v38  ;;  %8033 = vmatprep.subr.bf16.mxu1 %v9727_v39  ;;  %v9803_v37 = vld [vmem:[%s11434_s7 + $0x580] ss:$8 sps:$4 sm:$0xff]   ;;  %v9808_v38 = vld [vmem:[%s11434_s7 + $0x674] ss:$8 sps:$4 sm:$0xff]  }
 0x1a8   : > { %v9811_v39 = vld [vmem:[%s11434_s7 + $0x774] ss:$8 sps:$4 sm:$0xff]  }
 0x1a9   : > { %7913 = vmatmul.mubr.bf16.gmra.mxu0 %v8939_v42  ;;  %7966 = vmatmul.mubr.bf16.gmra.mxu1 %v8941_v43  ;;  %v4344_v42 = vld [vmem:[%s12488_s0 + $0x120] sm:$0xff]  ;;  %v9806_v43 = vld [vmem:[%s11434_s7 + $0x670] ss:$8 sps:$4 sm:$0xff]  }
 0x1aa   : > { %7981 = vmatpush1.bf16.msra.mxu0 %v9722_v46  ;;  %8034 = vmatpush1.bf16.msra.mxu1 %v9725_v47  ;;  %v4360_v46 = vld [vmem:[%s12488_s0 + $0x1a0] sm:$0xff]  ;;  %v8911_v47 = vcombine.low %v11635_v40, %v11640_v41 }
 0x1ab   : > { %7982 = vmatprep.subr.bf16.mxu0 %v9730_v48  ;;  %8035 = vmatprep.subr.bf16.mxu1 %v9733_v49  ;;  %v8913_v48 = vcombine.low %v11645_v44, %v11650_v45  ;;  %v4345_v49 = vld [vmem:[%s12488_s0 + $0x128] sm:$0xff]  ;;  %v8944_v41 = vcombine.high %v4344_v42, %v4360_v46 }
 0x1ac   : > { %8008 = vmatprep.mubr.bf16.mxu0 %v8912_v50  ;;  %8061 = vmatprep.mubr.bf16.mxu1 %v8914_v51  ;;  %v4361_v50 = vld [vmem:[%s12488_s0 + $0x1a8] sm:$0xff]  ;;  %v9809_v51 = vld [vmem:[%s11434_s7 + $0x770] ss:$8 sps:$4 sm:$0xff]  }
 0x1ad   : > { %v9817_v40 = vld [vmem:[%s11434_s7 + $0x764] ss:$8 sps:$4 sm:$0xff]   ;;  %v8946_v44 = vcombine.high %v4345_v49, %v4361_v50  ;;  %v9812_v45 = vld [vmem:[%s11434_s7 + $0x660] ss:$8 sps:$4 sm:$0xff]  }
 0x1ae   : > { %7983 = vmatpush1.bf16.msra.mxu0 %v9728_v52  ;;  %8036 = vmatpush1.bf16.msra.mxu1 %v9731_v53  ;;  %v9814_v52 = vld [vmem:[%s11434_s7 + $0x664] ss:$8 sps:$4 sm:$0xff]   ;;  %v9815_v53 = vld [vmem:[%s11434_s7 + $0x760] ss:$8 sps:$4 sm:$0xff]  }
 0x1af   : > { %7984 = vmatprep.subr.bf16.mxu0 %v9736_v54  ;;  %8037 = vmatprep.subr.bf16.mxu1 %v9739_v55  ;;  %v9820_v54 = vld [vmem:[%s11434_s7 + $0x654] ss:$8 sps:$4 sm:$0xff]  }
 0x1b0   : > { %v9823_v55 = vld [vmem:[%s11434_s7 + $0x754] ss:$8 sps:$4 sm:$0xff]  }
 0x1b2   : > { %7985 = vmatpush1.bf16.msra.mxu0 %v9734_v56  ;;  %8038 = vmatpush1.bf16.msra.mxu1 %v9737_v57  ;;  %v11739_v56 = vld [vmem:[%s12488_s0 + $0x30] sm:$0xff] }
 0x1b3   : > { %7986 = vmatprep.subr.bf16.mxu0 %v9742_v58  ;;  %8039 = vmatprep.subr.bf16.mxu1 %v9745_v59  ;;  %v9818_v57 = vld [vmem:[%s11434_s7 + $0x650] ss:$8 sps:$4 sm:$0xff]   ;;  %v8943_v59 = vcombine.low %v4344_v42, %v4360_v46  ;;  %v9886_v46 = vld [vmem:[%s11434_s7 + $0x6a4] ss:$8 sps:$4 sm:$0xff]  }
 0x1b4   : > { %v11745_v58 = vld [vmem:[%s12488_s0 + $0xb0] sm:$0xff] }
 0x1b5   : > { %v9878_v42 = vld [vmem:[%s11434_s7 + $0x6b0] ss:$8 sps:$4 sm:$0xff]  }
 0x1b6   : > { %7987 = vmatpush1.bf16.msra.mxu0 %v9740_v60  ;;  %8040 = vmatpush1.bf16.msra.mxu1 %v9743_v61  ;;  %v8945_v60 = vcombine.low %v4345_v49, %v4361_v50  ;;  %v11750_v61 = vld [vmem:[%s12488_s0 + $0x38] sm:$0xff]  ;;  %v9887_v49 = vld [vmem:[%s11434_s7 + $0x7a0] ss:$8 sps:$4 sm:$0xff]  }
 0x1b7   : > { %7988 = vmatprep.subr.bf16.mxu0 %v9748_v62  ;;  %8041 = vmatprep.subr.bf16.mxu1 %v9751_v63  ;;  %v11755_v62 = vld [vmem:[%s12488_s0 + $0xb8] sm:$0xff] }
 0x1b8   : > { %v9821_v63 = vld [vmem:[%s11434_s7 + $0x750] ss:$8 sps:$4 sm:$0xff]   ;;  %v9892_v50 = vld [vmem:[%s11434_s7 + $0x694] ss:$8 sps:$4 sm:$0xff]  }
 0x1ba   : > { %7989 = vmatpush1.bf16.msra.mxu0 %v9746_v4  ;;  %8042 = vmatpush1.bf16.msra.mxu1 %v9749_v7  ;;  %v9826_v4 = vld [vmem:[%s11434_s7 + $0x644] ss:$8 sps:$4 sm:$0xff]  }
 0x1bb   : > { %7990 = vmatprep.subr.bf16.mxu0 %v9754_v8  ;;  %8043 = vmatprep.subr.bf16.mxu1 %v9757_v9  ;;  %v9829_v7 = vld [vmem:[%s11434_s7 + $0x744] ss:$8 sps:$4 sm:$0xff]   ;;  %v8916_v8 = vcombine.high %v11739_v56, %v11745_v58  ;;  %v8918_v9 = vcombine.high %v11750_v61, %v11755_v62 }
 0x1be   : > { %7991 = vmatpush1.bf16.msra.mxu0 %v9752_v10  ;;  %8044 = vmatpush1.bf16.msra.mxu1 %v9755_v11  ;;  %v9824_v10 = vld [vmem:[%s11434_s7 + $0x640] ss:$8 sps:$4 sm:$0xff]  }
 0x1bf   : > { %7992 = vmatprep.subr.bf16.mxu0 %v9760_v12  ;;  %8045 = vmatprep.subr.bf16.mxu1 %v9763_v13  ;;  %v9827_v11 = vld [vmem:[%s11434_s7 + $0x740] ss:$8 sps:$4 sm:$0xff]   ;;  %v9832_v12 = vld [vmem:[%s11434_s7 + $0x634] ss:$8 sps:$4 sm:$0xff]  }
 0x1c0   : > { %v9835_v13 = vld [vmem:[%s11434_s7 + $0x734] ss:$8 sps:$4 sm:$0xff]  }
 0x1c2   : > { %7993 = vmatpush2.bf16.msra.mxu0 %v9758_v14  ;;  %8046 = vmatpush2.bf16.msra.mxu1 %v9761_v15  ;;  %v9830_v14 = vld [vmem:[%s11434_s7 + $0x630] ss:$8 sps:$4 sm:$0xff]  }
 0x1c3   : > { %7994 = vmatprep.subr.bf16.mxu0 %v9766_v16  ;;  %8047 = vmatprep.subr.bf16.mxu1 %v9769_v17  ;;  %v9833_v15 = vld [vmem:[%s11434_s7 + $0x730] ss:$8 sps:$4 sm:$0xff]   ;;  %v9838_v16 = vld [vmem:[%s11434_s7 + $0x624] ss:$8 sps:$4 sm:$0xff]  }
 0x1c4   : > { %v9841_v17 = vld [vmem:[%s11434_s7 + $0x724] ss:$8 sps:$4 sm:$0xff]  }
 0x1c6   : > { %7995 = vmatpush2.bf16.msra.mxu0 %v9764_v18  ;;  %8048 = vmatpush2.bf16.msra.mxu1 %v9767_v19  ;;  %v9836_v18 = vld [vmem:[%s11434_s7 + $0x620] ss:$8 sps:$4 sm:$0xff]  }
 0x1c7   : > { %7996 = vmatprep.subr.bf16.mxu0 %v9772_v20  ;;  %8049 = vmatprep.subr.bf16.mxu1 %v9775_v21  ;;  %v9839_v19 = vld [vmem:[%s11434_s7 + $0x720] ss:$8 sps:$4 sm:$0xff]   ;;  %v9844_v20 = vld [vmem:[%s11434_s7 + $0x614] ss:$8 sps:$4 sm:$0xff]  }
 0x1c8   : > { %v9847_v21 = vld [vmem:[%s11434_s7 + $0x714] ss:$8 sps:$4 sm:$0xff]  }
 0x1ca   : > { %7997 = vmatpush2.bf16.msra.mxu0 %v9770_v22  ;;  %8050 = vmatpush2.bf16.msra.mxu1 %v9773_v23  ;;  %v9842_v22 = vld [vmem:[%s11434_s7 + $0x610] ss:$8 sps:$4 sm:$0xff]  }
 0x1cb   : > { %7998 = vmatprep.subr.bf16.mxu0 %v9778_v24  ;;  %8051 = vmatprep.subr.bf16.mxu1 %v9781_v25  ;;  %v9845_v23 = vld [vmem:[%s11434_s7 + $0x710] ss:$8 sps:$4 sm:$0xff]   ;;  %v9850_v24 = vld [vmem:[%s11434_s7 + $0x604] ss:$8 sps:$4 sm:$0xff]  }
 0x1cc   : > { %v9853_v25 = vld [vmem:[%s11434_s7 + $0x704] ss:$8 sps:$4 sm:$0xff]  }
 0x1ce   : > { %7999 = vmatpush2.bf16.msra.mxu0 %v9776_v26  ;;  %8052 = vmatpush2.bf16.msra.mxu1 %v9779_v27  ;;  %v9848_v26 = vld [vmem:[%s11434_s7 + $0x600] ss:$8 sps:$4 sm:$0xff]  }
 0x1cf   : > { %8000 = vmatprep.subr.bf16.mxu0 %v9784_v28  ;;  %8053 = vmatprep.subr.bf16.mxu1 %v9787_v29  ;;  %v9851_v27 = vld [vmem:[%s11434_s7 + $0x700] ss:$8 sps:$4 sm:$0xff]   ;;  %v9856_v28 = vld [vmem:[%s11434_s7 + $0x6f4] ss:$8 sps:$4 sm:$0xff]  }
 0x1d0   : > { %v9859_v29 = vld [vmem:[%s11434_s7 + $0x7f4] ss:$8 sps:$4 sm:$0xff]  }
 0x1d2   : > { %8001 = vmatpush2.bf16.msra.mxu0 %v9782_v0  ;;  %8054 = vmatpush2.bf16.msra.mxu1 %v9785_v1  ;;  %v9854_v0 = vld [vmem:[%s11434_s7 + $0x6f0] ss:$8 sps:$4 sm:$0xff]  }
 0x1d3   : > { %8002 = vmatprep.subr.bf16.mxu0 %v9790_v3  ;;  %8055 = vmatprep.subr.bf16.mxu1 %v9793_v2  ;;  %v9857_v1 = vld [vmem:[%s11434_s7 + $0x7f0] ss:$8 sps:$4 sm:$0xff]   ;;  %v9862_v3 = vld [vmem:[%s11434_s7 + $0x6e4] ss:$8 sps:$4 sm:$0xff]  }
 0x1d4   : > { %v9865_v2 = vld [vmem:[%s11434_s7 + $0x7e4] ss:$8 sps:$4 sm:$0xff]  }
 0x1d6   : > { %8003 = vmatpush2.bf16.msra.mxu0 %v9788_v5  ;;  %8056 = vmatpush2.bf16.msra.mxu1 %v9791_v6  ;;  %v9860_v5 = vld [vmem:[%s11434_s7 + $0x6e0] ss:$8 sps:$4 sm:$0xff]  }
 0x1d7   : > { %8004 = vmatprep.subr.bf16.mxu0 %v9796_v30  ;;  %8057 = vmatprep.subr.bf16.mxu1 %v9799_v31  ;;  %v9863_v6 = vld [vmem:[%s11434_s7 + $0x7e0] ss:$8 sps:$4 sm:$0xff]   ;;  %v9868_v30 = vld [vmem:[%s11434_s7 + $0x6d4] ss:$8 sps:$4 sm:$0xff]  }
 0x1d8   : > { %v9871_v31 = vld [vmem:[%s11434_s7 + $0x7d4] ss:$8 sps:$4 sm:$0xff]  }
 0x1da   : > { %8005 = vmatpush2.bf16.msra.mxu0 %v9794_v32  ;;  %8058 = vmatpush2.bf16.msra.mxu1 %v9797_v33  ;;  %v9866_v32 = vld [vmem:[%s11434_s7 + $0x6d0] ss:$8 sps:$4 sm:$0xff]  }
 0x1db   : > { %8006 = vmatprep.subr.bf16.mxu0 %v9802_v34  ;;  %8059 = vmatprep.subr.bf16.mxu1 %v9805_v35  ;;  %v9869_v33 = vld [vmem:[%s11434_s7 + $0x7d0] ss:$8 sps:$4 sm:$0xff]   ;;  %v9874_v34 = vld [vmem:[%s11434_s7 + $0x6c4] ss:$8 sps:$4 sm:$0xff]  }
 0x1dc   : > { %v9877_v35 = vld [vmem:[%s11434_s7 + $0x7c4] ss:$8 sps:$4 sm:$0xff]  }
 0x1de   : > { %8007 = vmatpush2.bf16.msra.mxu0 %v9800_v36  ;;  %8060 = vmatpush2.bf16.msra.mxu1 %v9803_v37  ;;  %v9872_v36 = vld [vmem:[%s11434_s7 + $0x6c0] ss:$8 sps:$4 sm:$0xff]  }
 0x1df   : > { %8082 = vmatprep.subr.bf16.mxu0 %v9808_v38  ;;  %8135 = vmatprep.subr.bf16.mxu1 %v9811_v39  ;;  %v9875_v37 = vld [vmem:[%s11434_s7 + $0x7c0] ss:$8 sps:$4 sm:$0xff]   ;;  %v9880_v38 = vld [vmem:[%s11434_s7 + $0x6b4] ss:$8 sps:$4 sm:$0xff]  }
 0x1e0   : > { %v9883_v39 = vld [vmem:[%s11434_s7 + $0x7b4] ss:$8 sps:$4 sm:$0xff]  }
 0x1e1   : > { %8009 = vmatmul.mubr.bf16.vlgmr.msra.gmra.mxu0 %v8911_v47  ;;  %8062 = vmatmul.mubr.bf16.vlgmr.msra.gmra.mxu1 %v8913_v48  ;;  %v9889_v47 = vld [vmem:[%s11434_s7 + $0x7a4] ss:$8 sps:$4 sm:$0xff]   ;;  %v9884_v48 = vld [vmem:[%s11434_s7 + $0x6a0] ss:$8 sps:$4 sm:$0xff]  }
 0x1e2   : > { %8083 = vmatpush1.bf16.msra.mxu0 %v9806_v43  ;;  %8136 = vmatpush1.bf16.msra.mxu1 %v9809_v51  ;;  %v9881_v43 = vld [vmem:[%s11434_s7 + $0x7b0] ss:$8 sps:$4 sm:$0xff]   ;;  %v9895_v51 = vld [vmem:[%s11434_s7 + $0x794] ss:$8 sps:$4 sm:$0xff]  }
 0x1e3   : > { %8084 = vmatprep.subr.bf16.mxu0 %v9814_v52  ;;  %8137 = vmatprep.subr.bf16.mxu1 %v9817_v40  ;;  %v9890_v52 = vld [vmem:[%s11434_s7 + $0x690] ss:$8 sps:$4 sm:$0xff]  }
 0x1e4   : > { %8018 = vmatprep.mubr.bf16.mxu0 %v8944_v41  ;;  %8071 = vmatprep.mubr.bf16.mxu1 %v8946_v44  ;;  %v9893_v40 = vld [vmem:[%s11434_s7 + $0x790] ss:$8 sps:$4 sm:$0xff]   ;;  %v9898_v41 = vld [vmem:[%s11434_s7 + $0x684] ss:$8 sps:$4 sm:$0xff]  }
 0x1e5   : > { %v9901_v44 = vld [vmem:[%s11434_s7 + $0x784] ss:$8 sps:$4 sm:$0xff]  }
 0x1e6   : > { %8085 = vmatpush1.bf16.msra.mxu0 %v9812_v45  ;;  %8138 = vmatpush1.bf16.msra.mxu1 %v9815_v53  ;;  %v9896_v45 = vld [vmem:[%s11434_s7 + $0x680] ss:$8 sps:$4 sm:$0xff]  }
 0x1e7   : > { %8086 = vmatprep.subr.bf16.mxu0 %v9820_v54  ;;  %8139 = vmatprep.subr.bf16.mxu1 %v9823_v55  ;;  %v9899_v53 = vld [vmem:[%s11434_s7 + $0x780] ss:$8 sps:$4 sm:$0xff]   ;;  %v9904_v54 = vld [vmem:[%s11434_s7 + $0x874] ss:$8 sps:$4 sm:$0xff]  }
 0x1e8   : > { %v9907_v55 = vld [vmem:[%s11434_s7 + $0x974] ss:$8 sps:$4 sm:$0xff]  }
 0x1e9   : > { %8019 = vmatmul.mubr.bf16.gmra.mxu0 %v8943_v59  ;;  %8072 = vmatmul.mubr.bf16.gmra.mxu1 %v8945_v60  ;;  %v9902_v59 = vld [vmem:[%s11434_s7 + $0x870] ss:$8 sps:$4 sm:$0xff]  }
 0x1ea   : > { %8087 = vmatpush1.bf16.msra.mxu0 %v9818_v57  ;;  %8140 = vmatpush1.bf16.msra.mxu1 %v9821_v63  ;;  %v4346_v57 = vld [vmem:[%s12488_s0 + $0x130] sm:$0xff]  ;;  %v8915_v63 = vcombine.low %v11739_v56, %v11745_v58  ;;  %v9913_v56 = vld [vmem:[%s11434_s7 + $0x964] ss:$8 sps:$4 sm:$0xff]  }
 0x1eb   : > { %8088 = vmatprep.subr.bf16.mxu0 %v9826_v4  ;;  %8141 = vmatprep.subr.bf16.mxu1 %v9829_v7  ;;  %v4362_v60 = vld [vmem:[%s12488_s0 + $0x1b0] sm:$0xff]  ;;  %v8917_v4 = vcombine.low %v11750_v61, %v11755_v62  ;;  %v4347_v7 = vld [vmem:[%s12488_s0 + $0x138] sm:$0xff] }
 0x1ec   : > { %8114 = vmatprep.mubr.bf16.mxu0 %v8916_v8  ;;  %8167 = vmatprep.mubr.bf16.mxu1 %v8918_v9  ;;  %v4363_v8 = vld [vmem:[%s12488_s0 + $0x1b8] sm:$0xff]  ;;  %v8948_v58 = vcombine.high %v4346_v57, %v4362_v60 }
 0x1ed   : > { %v9905_v9 = vld [vmem:[%s11434_s7 + $0x970] ss:$8 sps:$4 sm:$0xff]   ;;  %v8950_v61 = vcombine.high %v4347_v7, %v4363_v8 }
 0x1ee   : > { %8089 = vmatpush1.bf16.msra.mxu0 %v9824_v10  ;;  %8142 = vmatpush1.bf16.msra.mxu1 %v9827_v11  ;;  %v9910_v10 = vld [vmem:[%s11434_s7 + $0x864] ss:$8 sps:$4 sm:$0xff]  }
 0x1ef   : > { %8090 = vmatprep.subr.bf16.mxu0 %v9832_v12  ;;  %8143 = vmatprep.subr.bf16.mxu1 %v9835_v13  ;;  %v9908_v12 = vld [vmem:[%s11434_s7 + $0x860] ss:$8 sps:$4 sm:$0xff]  }
 0x1f0   : > { %v9911_v13 = vld [vmem:[%s11434_s7 + $0x960] ss:$8 sps:$4 sm:$0xff]  }
 0x1f2   : > { %8091 = vmatpush1.bf16.msra.mxu0 %v9830_v14  ;;  %8144 = vmatpush1.bf16.msra.mxu1 %v9833_v15  ;;  %v9916_v15 = vld [vmem:[%s11434_s7 + $0x854] ss:$8 sps:$4 sm:$0xff]  }
 0x1f3   : > { %8092 = vmatprep.subr.bf16.mxu0 %v9838_v16  ;;  %8145 = vmatprep.subr.bf16.mxu1 %v9841_v17  ;;  %v9919_v16 = vld [vmem:[%s11434_s7 + $0x954] ss:$8 sps:$4 sm:$0xff]  }
 0x1f6   : > { %8093 = vmatpush1.bf16.msra.mxu0 %v9836_v18  ;;  %8146 = vmatpush1.bf16.msra.mxu1 %v9839_v19  ;;  %v11845_v19 = vld [vmem:[%s12488_s0 + $0x40] sm:$0xff] }
 0x1f7   : > { %8094 = vmatprep.subr.bf16.mxu0 %v9844_v20  ;;  %8147 = vmatprep.subr.bf16.mxu1 %v9847_v21  ;;  %v9914_v21 = vld [vmem:[%s11434_s7 + $0x850] ss:$8 sps:$4 sm:$0xff]  }
 0x1fa   : > { %8095 = vmatpush1.bf16.msra.mxu0 %v9842_v22  ;;  %8148 = vmatpush1.bf16.msra.mxu1 %v9845_v23  ;;  %v11853_v22 = vld [vmem:[%s12488_s0 + $0xc0] sm:$0xff] }
 0x1fb   : > { %8096 = vmatprep.subr.bf16.mxu0 %v9850_v24  ;;  %8149 = vmatprep.subr.bf16.mxu1 %v9853_v25  ;;  %v8947_v25 = vcombine.low %v4346_v57, %v4362_v60  ;;  %v9938_v57 = vld [vmem:[%s11434_s7 + $0x810] ss:$8 sps:$4 sm:$0xff]   ;;  %v9946_v60 = vld [vmem:[%s11434_s7 + $0x804] ss:$8 sps:$4 sm:$0xff]  }
 0x1fe   : > { %8097 = vmatpush1.bf16.msra.mxu0 %v9848_v26  ;;  %8150 = vmatpush1.bf16.msra.mxu1 %v9851_v27  ;;  %v8949_v26 = vcombine.low %v4347_v7, %v4363_v8  ;;  %v11858_v27 = vld [vmem:[%s12488_s0 + $0x48] sm:$0xff]  ;;  %v9952_v8 = vld [vmem:[%s11434_s7 + $0x8f4] ss:$8 sps:$4 sm:$0xff]  }
 0x1ff   : > { %8098 = vmatprep.subr.bf16.mxu0 %v9856_v28  ;;  %8151 = vmatprep.subr.bf16.mxu1 %v9859_v29  ;;  %v11863_v28 = vld [vmem:[%s12488_s0 + $0xc8] sm:$0xff] }
 0x200   : > { %v9947_v7 = vld [vmem:[%s11434_s7 + $0x900] ss:$8 sps:$4 sm:$0xff]  }
 0x202   : > { %8099 = vmatpush2.bf16.msra.mxu0 %v9854_v0  ;;  %8152 = vmatpush2.bf16.msra.mxu1 %v9857_v1  ;;  %v9917_v0 = vld [vmem:[%s11434_s7 + $0x950] ss:$8 sps:$4 sm:$0xff]   ;;  %v9922_v1 = vld [vmem:[%s11434_s7 + $0x844] ss:$8 sps:$4 sm:$0xff]  }
 0x203   : > { %8100 = vmatprep.subr.bf16.mxu0 %v9862_v3  ;;  %8153 = vmatprep.subr.bf16.mxu1 %v9865_v2 }
 0x206   : > { %8101 = vmatpush2.bf16.msra.mxu0 %v9860_v5  ;;  %8154 = vmatpush2.bf16.msra.mxu1 %v9863_v6  ;;  %v9925_v5 = vld [vmem:[%s11434_s7 + $0x944] ss:$8 sps:$4 sm:$0xff]  }
 0x207   : > { %8102 = vmatprep.subr.bf16.mxu0 %v9868_v30  ;;  %8155 = vmatprep.subr.bf16.mxu1 %v9871_v31  ;;  %v8920_v30 = vcombine.high %v11845_v19, %v11853_v22  ;;  %v8922_v31 = vcombine.high %v11858_v27, %v11863_v28 }
 0x20a   : > { %8103 = vmatpush2.bf16.msra.mxu0 %v9866_v32  ;;  %8156 = vmatpush2.bf16.msra.mxu1 %v9869_v33  ;;  %v9920_v32 = vld [vmem:[%s11434_s7 + $0x840] ss:$8 sps:$4 sm:$0xff]  }
 0x20b   : > { %8104 = vmatprep.subr.bf16.mxu0 %v9874_v34  ;;  %8157 = vmatprep.subr.bf16.mxu1 %v9877_v35  ;;  %v9923_v35 = vld [vmem:[%s11434_s7 + $0x940] ss:$8 sps:$4 sm:$0xff]  }
 0x20e   : > { %8105 = vmatpush2.bf16.msra.mxu0 %v9872_v36  ;;  %8158 = vmatpush2.bf16.msra.mxu1 %v9875_v37  ;;  %v9928_v36 = vld [vmem:[%s11434_s7 + $0x834] ss:$8 sps:$4 sm:$0xff]  }
 0x20f   : > { %8106 = vmatprep.subr.bf16.mxu0 %v9880_v38  ;;  %8159 = vmatprep.subr.bf16.mxu1 %v9883_v39  ;;  %v9931_v38 = vld [vmem:[%s11434_s7 + $0x934] ss:$8 sps:$4 sm:$0xff]  }
 0x212   : > { %8107 = vmatpush2.bf16.msra.mxu0 %v9878_v42  ;;  %8160 = vmatpush2.bf16.msra.mxu1 %v9881_v43 }
 0x213   : > { %8108 = vmatprep.subr.bf16.mxu0 %v9886_v46  ;;  %8161 = vmatprep.subr.bf16.mxu1 %v9889_v47 }
 0x216   : > { %8109 = vmatpush2.bf16.msra.mxu0 %v9884_v48  ;;  %8162 = vmatpush2.bf16.msra.mxu1 %v9887_v49  ;;  %v9926_v48 = vld [vmem:[%s11434_s7 + $0x830] ss:$8 sps:$4 sm:$0xff]  }
 0x217   : > { %8110 = vmatprep.subr.bf16.mxu0 %v9892_v50  ;;  %8163 = vmatprep.subr.bf16.mxu1 %v9895_v51  ;;  %v9929_v49 = vld [vmem:[%s11434_s7 + $0x930] ss:$8 sps:$4 sm:$0xff]   ;;  %v9934_v51 = vld [vmem:[%s11434_s7 + $0x824] ss:$8 sps:$4 sm:$0xff]  }
 0x21a   : > { %8111 = vmatpush2.bf16.msra.mxu0 %v9890_v52  ;;  %8164 = vmatpush2.bf16.msra.mxu1 %v9893_v40  ;;  %v9937_v52 = vld [vmem:[%s11434_s7 + $0x924] ss:$8 sps:$4 sm:$0xff]  }
 0x21b   : > { %8112 = vmatprep.subr.bf16.mxu0 %v9898_v41  ;;  %8165 = vmatprep.subr.bf16.mxu1 %v9901_v44 }
 0x21e   : > { %8113 = vmatpush2.bf16.msra.mxu0 %v9896_v45  ;;  %8166 = vmatpush2.bf16.msra.mxu1 %v9899_v53  ;;  %v9932_v45 = vld [vmem:[%s11434_s7 + $0x820] ss:$8 sps:$4 sm:$0xff]  }
 0x21f   : > { %8188 = vmatprep.subr.bf16.mxu0 %v9904_v54  ;;  %8241 = vmatprep.subr.bf16.mxu1 %v9907_v55  ;;  %v9935_v53 = vld [vmem:[%s11434_s7 + $0x920] ss:$8 sps:$4 sm:$0xff]   ;;  %v9940_v54 = vld [vmem:[%s11434_s7 + $0x814] ss:$8 sps:$4 sm:$0xff]  }
 0x220   : > { %v9943_v55 = vld [vmem:[%s11434_s7 + $0x914] ss:$8 sps:$4 sm:$0xff]  }
 0x221   : > { %v7798_v62 = vpop.f32.mrf.mxu0  ;;  %v7851_v11 = vpop.f32.mrf.mxu1  ;;  %8115 = vmatmul.mubr.bf16.vlgmr.msra.gmra.mxu0 %v8915_v63  ;;  %8168 = vmatmul.mubr.bf16.vlgmr.msra.gmra.mxu1 %v8917_v4  ;;  %v9949_v63 = vld [vmem:[%s11434_s7 + $0x904] ss:$8 sps:$4 sm:$0xff]   ;;  %v9944_v4 = vld [vmem:[%s11434_s7 + $0x800] ss:$8 sps:$4 sm:$0xff]  }
 0x222   : > { %v11838_v14 = vadd.f32 %v7851_v11, %v7798_v62  ;;  %8189 = vmatpush1.bf16.msra.mxu0 %v9902_v59  ;;  %8242 = vmatpush1.bf16.msra.mxu1 %v9905_v9  ;;  %v9941_v59 = vld [vmem:[%s11434_s7 + $0x910] ss:$8 sps:$4 sm:$0xff]   ;;  %v9955_v9 = vld [vmem:[%s11434_s7 + $0x9f4] ss:$8 sps:$4 sm:$0xff]   ;;  %v9956_v62 = vld [vmem:[%s11434_s7 + $0x8e0] ss:$8 sps:$4 sm:$0xff]  }
 0x223   : > { %v7800_v17 = vpop.f32.mrf.mxu0  ;;  %v7853_v18 = vpop.f32.mrf.mxu1  ;;  %8190 = vmatprep.subr.bf16.mxu0 %v9910_v10  ;;  %8243 = vmatprep.subr.bf16.mxu1 %v9913_v56  ;;  %v9950_v10 = vld [vmem:[%s11434_s7 + $0x8f0] ss:$8 sps:$4 sm:$0xff]   ;;  %v9959_v11 = vld [vmem:[%s11434_s7 + $0x9e0] ss:$8 sps:$4 sm:$0xff]  }
 0x224   : > { %v11847_v20 = vadd.f32 %v7853_v18, %v7800_v17  ;;  %8124 = vmatprep.mubr.bf16.mxu0 %v8948_v58  ;;  %8177 = vmatprep.mubr.bf16.mxu1 %v8950_v61  ;;  %v9953_v56 = vld [vmem:[%s11434_s7 + $0x9f0] ss:$8 sps:$4 sm:$0xff]   ;;  %v9958_v58 = vld [vmem:[%s11434_s7 + $0x8e4] ss:$8 sps:$4 sm:$0xff]  }
 0x225   : > { %v7802_v23 = vpop.f32.mrf.mxu0  ;;  %v7855_v24 = vpop.f32.mrf.mxu1  ;;  %v9961_v61 = vld [vmem:[%s11434_s7 + $0x9e4] ss:$8 sps:$4 sm:$0xff]  }
 0x226   : > { %v11865_v29 = vadd.f32 %v7855_v24, %v7802_v23  ;;  %8191 = vmatpush1.bf16.msra.mxu0 %v9908_v12  ;;  %8244 = vmatpush1.bf16.msra.mxu1 %v9911_v13  ;;  %v9964_v12 = vld [vmem:[%s11434_s7 + $0x8d4] ss:$8 sps:$4 sm:$0xff]   ;;  %v9970_v17 = vld [vmem:[%s11434_s7 + $0x8c4] ss:$8 sps:$4 sm:$0xff]   ;;  %v9971_v23 = vld [vmem:[%s11434_s7 + $0x9c0] ss:$8 sps:$4 sm:$0xff]  }
 0x227   : > { %v7804_v3 = vpop.f32.mrf.mxu0  ;;  %v7857_v2 = vpop.f32.mrf.mxu1  ;;  %8192 = vmatprep.subr.bf16.mxu0 %v9916_v15  ;;  %8245 = vmatprep.subr.bf16.mxu1 %v9919_v16  ;;  %v9967_v13 = vld [vmem:[%s11434_s7 + $0x9d4] ss:$8 sps:$4 sm:$0xff]   ;;  %v9962_v15 = vld [vmem:[%s11434_s7 + $0x8d0] ss:$8 sps:$4 sm:$0xff]   ;;  %v9973_v18 = vld [vmem:[%s11434_s7 + $0x9c4] ss:$8 sps:$4 sm:$0xff]  }
 0x228   : > { %v11870_v6 = vadd.f32 %v7857_v2, %v7804_v3  ;;  %v9965_v16 = vld [vmem:[%s11434_s7 + $0x9d0] ss:$8 sps:$4 sm:$0xff]   ;;  %v9976_v24 = vld [vmem:[%s11434_s7 + $0x8b4] ss:$8 sps:$4 sm:$0xff]   ;;  %v9985_v3 = vld [vmem:[%s11434_s7 + $0x9a4] ss:$8 sps:$4 sm:$0xff]  }
 0x229   : > { %8125 = vmatmul.mubr.bf16.gmra.mxu0 %v8947_v25  ;;  %8178 = vmatmul.mubr.bf16.gmra.mxu1 %v8949_v26  ;;  %v7808_v33 = vpop.f32.mrf.mxu0  ;;  %v7861_v34 = vpop.f32.mrf.mxu1  ;;  %v9979_v25 = vld [vmem:[%s11434_s7 + $0x9b4] ss:$8 sps:$4 sm:$0xff]   ;;  %v9974_v26 = vld [vmem:[%s11434_s7 + $0x8b0] ss:$8 sps:$4 sm:$0xff]   ;;  %v9980_v2 = vld [vmem:[%s11434_s7 + $0x8a0] ss:$8 sps:$4 sm:$0xff]  }
 0x22a   : > { %8193 = vmatpush1.bf16.msra.mxu0 %v9914_v21  ;;  %8246 = vmatpush1.bf16.msra.mxu1 %v9917_v0  ;;  %v11879_v37 = vadd.f32 %v7861_v34, %v7808_v33  ;;  %v9968_v21 = vld [vmem:[%s11434_s7 + $0x8c0] ss:$8 sps:$4 sm:$0xff]   ;;  %v9977_v0 = vld [vmem:[%s11434_s7 + $0x9b0] ss:$8 sps:$4 sm:$0xff]   ;;  %v9994_v34 = vld [vmem:[%s11434_s7 + $0x884] ss:$8 sps:$4 sm:$0xff]  }
 0x22b   : > { %8194 = vmatprep.subr.bf16.mxu0 %v9922_v1  ;;  %8247 = vmatprep.subr.bf16.mxu1 %v9925_v5  ;;  %v7810_v39 = vpop.f32.mrf.mxu0  ;;  %v7863_v42 = vpop.f32.mrf.mxu1  ;;  %v9982_v1 = vld [vmem:[%s11434_s7 + $0x8a4] ss:$8 sps:$4 sm:$0xff]   ;;  %v9983_v5 = vld [vmem:[%s11434_s7 + $0x9a0] ss:$8 sps:$4 sm:$0xff]   ;;  %v9989_v33 = vld [vmem:[%s11434_s7 + $0x990] ss:$8 sps:$4 sm:$0xff]  }
 0x22c   : > { %v11882_v43 = vadd.f32 %v7863_v42, %v7810_v39  ;;  %8220 = vmatprep.mubr.bf16.mxu0 %v8920_v30  ;;  %8273 = vmatprep.mubr.bf16.mxu1 %v8922_v31  ;;  %v9988_v30 = vld [vmem:[%s11434_s7 + $0x894] ss:$8 sps:$4 sm:$0xff]  }
 0x22d   : > { %v7812_v46 = vpop.f32.mrf.mxu0  ;;  %v7865_v47 = vpop.f32.mrf.mxu1  ;;  %v9991_v31 = vld [vmem:[%s11434_s7 + $0x994] ss:$8 sps:$4 sm:$0xff]  }
 0x22e   : > { %8195 = vmatpush1.bf16.msra.mxu0 %v9920_v32  ;;  %8248 = vmatpush1.bf16.msra.mxu1 %v9923_v35  ;;  %v11886_v50 = vadd.f32 %v7865_v47, %v7812_v46  ;;  %v9986_v32 = vld [vmem:[%s11434_s7 + $0x890] ss:$8 sps:$4 sm:$0xff]   ;;  %v9997_v35 = vld [vmem:[%s11434_s7 + $0x984] ss:$8 sps:$4 sm:$0xff]   ;;  %v10000_v39 = vld [vmem:[%s11434_s7 + $0xa74] ss:$8 sps:$4 sm:$0xff]  }
 0x22f   : > { %8196 = vmatprep.subr.bf16.mxu0 %v9928_v36  ;;  %8249 = vmatprep.subr.bf16.mxu1 %v9931_v38  ;;  %v7814_v40 = vpop.f32.mrf.mxu0  ;;  %v7867_v41 = vpop.f32.mrf.mxu1  ;;  %v9992_v36 = vld [vmem:[%s11434_s7 + $0x880] ss:$8 sps:$4 sm:$0xff]   ;;  %v10003_v42 = vld [vmem:[%s11434_s7 + $0xb74] ss:$8 sps:$4 sm:$0xff]   ;;  %v9998_v47 = vld [vmem:[%s11434_s7 + $0xa70] ss:$8 sps:$4 sm:$0xff]  }
 0x230   : > { %v11890_v44 = vadd.f32 %v7867_v41, %v7814_v40  ;;  %v9995_v38 = vld [vmem:[%s11434_s7 + $0x980] ss:$8 sps:$4 sm:$0xff]   ;;  %v10001_v41 = vld [vmem:[%s11434_s7 + $0xb70] ss:$8 sps:$4 sm:$0xff]  }
 0x231   : > { %v4348_v46 = vld [vmem:[%s12488_s0 + $0x140] sm:$0xff]  ;;  %v4365_v40 = vld [vmem:[%s12488_s0 + $0x1c8] sm:$0xff] }
 0x232   : > { %8197 = vmatpush1.bf16.msra.mxu0 %v9926_v48  ;;  %8250 = vmatpush1.bf16.msra.mxu1 %v9929_v49  ;;  %v8919_v48 = vcombine.low %v11845_v19, %v11853_v22  ;;  %v8921_v49 = vcombine.low %v11858_v27, %v11863_v28  ;;  %v10006_v19 = vld [vmem:[%s11434_s7 + $0xa64] ss:$8 sps:$4 sm:$0xff]   ;;  %v10004_v27 = vld [vmem:[%s11434_s7 + $0xa60] ss:$8 sps:$4 sm:$0xff]  }
 0x233   : > { %8198 = vmatprep.subr.bf16.mxu0 %v9934_v51  ;;  %8251 = vmatprep.subr.bf16.mxu1 %v9937_v52  ;;  %v4364_v51 = vld [vmem:[%s12488_s0 + $0x1c0] sm:$0xff]  ;;  %v4349_v52 = vld [vmem:[%s12488_s0 + $0x148] sm:$0xff] }
 0x234   : > { %v10009_v22 = vld [vmem:[%s11434_s7 + $0xb64] ss:$8 sps:$4 sm:$0xff]   ;;  %v10007_v28 = vld [vmem:[%s11434_s7 + $0xb60] ss:$8 sps:$4 sm:$0xff]  }
 0x236   : > { %8199 = vmatpush1.bf16.msra.mxu0 %v9932_v45  ;;  %8252 = vmatpush1.bf16.msra.mxu1 %v9935_v53  ;;  %v8952_v45 = vcombine.high %v4348_v46, %v4364_v51  ;;  %v8954_v53 = vcombine.high %v4349_v52, %v4365_v40 }
 0x237   : > { %8200 = vmatprep.subr.bf16.mxu0 %v9940_v54  ;;  %8253 = vmatprep.subr.bf16.mxu1 %v9943_v55 }
 0x23a   : > { %8201 = vmatpush1.bf16.msra.mxu0 %v9938_v57  ;;  %8254 = vmatpush1.bf16.msra.mxu1 %v9941_v59 }
 0x23b   : > { %8202 = vmatprep.subr.bf16.mxu0 %v9946_v60  ;;  %8255 = vmatprep.subr.bf16.mxu1 %v9949_v63  ;;  %v10012_v63 = vld [vmem:[%s11434_s7 + $0xa54] ss:$8 sps:$4 sm:$0xff]  }
 0x23e   : > { %8203 = vmatpush1.bf16.msra.mxu0 %v9944_v4  ;;  %8256 = vmatpush1.bf16.msra.mxu1 %v9947_v7  ;;  %v10015_v4 = vld [vmem:[%s11434_s7 + $0xb54] ss:$8 sps:$4 sm:$0xff]  }
 0x23f   : > { %8204 = vmatprep.subr.bf16.mxu0 %v9952_v8  ;;  %8257 = vmatprep.subr.bf16.mxu1 %v9955_v9  ;;  %v10010_v9 = vld [vmem:[%s11434_s7 + $0xa50] ss:$8 sps:$4 sm:$0xff]  }
 0x242   : > { %8205 = vmatpush2.bf16.msra.mxu0 %v9950_v10  ;;  %8258 = vmatpush2.bf16.msra.mxu1 %v9953_v56  ;;  %v10013_v10 = vld [vmem:[%s11434_s7 + $0xb50] ss:$8 sps:$4 sm:$0xff]  }
 0x243   : > { %8206 = vmatprep.subr.bf16.mxu0 %v9958_v58  ;;  %8259 = vmatprep.subr.bf16.mxu1 %v9961_v61  ;;  %v11974_v56 = vld [vmem:[%s12488_s0 + $0xd0] sm:$0xff] }
 0x246   : > { %8207 = vmatpush2.bf16.msra.mxu0 %v9956_v62  ;;  %8260 = vmatpush2.bf16.msra.mxu1 %v9959_v11  ;;  %v8951_v62 = vcombine.low %v4348_v46, %v4364_v51  ;;  %v11979_v11 = vld [vmem:[%s12488_s0 + $0x58] sm:$0xff] }
 0x247   : > { %8208 = vmatprep.subr.bf16.mxu0 %v9964_v12  ;;  %8261 = vmatprep.subr.bf16.mxu1 %v9967_v13  ;;  %v11984_v12 = vld [vmem:[%s12488_s0 + $0xd8] sm:$0xff] }
 0x24a   : > { %8209 = vmatpush2.bf16.msra.mxu0 %v9962_v15  ;;  %8262 = vmatpush2.bf16.msra.mxu1 %v9965_v16 }
 0x24b   : > { %8210 = vmatprep.subr.bf16.mxu0 %v9970_v17  ;;  %8263 = vmatprep.subr.bf16.mxu1 %v9973_v18  ;;  %v10018_v18 = vld [vmem:[%s11434_s7 + $0xa44] ss:$8 sps:$4 sm:$0xff]  }
 0x24e   : > { %8211 = vmatpush2.bf16.msra.mxu0 %v9968_v21  ;;  %8264 = vmatpush2.bf16.msra.mxu1 %v9971_v23  ;;  %v10021_v21 = vld [vmem:[%s11434_s7 + $0xb44] ss:$8 sps:$4 sm:$0xff]  }
 0x24f   : > { %8212 = vmatprep.subr.bf16.mxu0 %v9976_v24  ;;  %8265 = vmatprep.subr.bf16.mxu1 %v9979_v25  ;;  %v10016_v25 = vld [vmem:[%s11434_s7 + $0xa40] ss:$8 sps:$4 sm:$0xff]  }
 0x252   : > { %8213 = vmatpush2.bf16.msra.mxu0 %v9974_v26  ;;  %8266 = vmatpush2.bf16.msra.mxu1 %v9977_v0  ;;  %v10019_v26 = vld [vmem:[%s11434_s7 + $0xb40] ss:$8 sps:$4 sm:$0xff]  }
 0x253   : > { %8214 = vmatprep.subr.bf16.mxu0 %v9982_v1  ;;  %8267 = vmatprep.subr.bf16.mxu1 %v9985_v3 }
 0x256   : > { %8215 = vmatpush2.bf16.msra.mxu0 %v9980_v2  ;;  %8268 = vmatpush2.bf16.msra.mxu1 %v9983_v5 }
 0x257   : > { %8216 = vmatprep.subr.bf16.mxu0 %v9988_v30  ;;  %8269 = vmatprep.subr.bf16.mxu1 %v9991_v31  ;;  %v10024_v31 = vld [vmem:[%s11434_s7 + $0xa34] ss:$8 sps:$4 sm:$0xff]  }
 0x25a   : > { %8217 = vmatpush2.bf16.msra.mxu0 %v9986_v32  ;;  %8270 = vmatpush2.bf16.msra.mxu1 %v9989_v33  ;;  %v10027_v32 = vld [vmem:[%s11434_s7 + $0xb34] ss:$8 sps:$4 sm:$0xff]  }
 0x25b   : > { %8218 = vmatprep.subr.bf16.mxu0 %v9994_v34  ;;  %8271 = vmatprep.subr.bf16.mxu1 %v9997_v35  ;;  %v10022_v35 = vld [vmem:[%s11434_s7 + $0xa30] ss:$8 sps:$4 sm:$0xff]  }
 0x25e   : > { %8219 = vmatpush2.bf16.msra.mxu0 %v9992_v36  ;;  %8272 = vmatpush2.bf16.msra.mxu1 %v9995_v38  ;;  %v10025_v36 = vld [vmem:[%s11434_s7 + $0xb30] ss:$8 sps:$4 sm:$0xff]  }
 0x25f   : > { %8294 = vmatprep.subr.bf16.mxu0 %v10000_v39  ;;  %8347 = vmatprep.subr.bf16.mxu1 %v10003_v42 }
 0x261   : > { %v7904_v54 = vpop.f32.mrf.mxu0  ;;  %v7957_v55 = vpop.f32.mrf.mxu1  ;;  %8221 = vmatmul.mubr.bf16.vlgmr.msra.gmra.mxu0 %v8919_v48  ;;  %8274 = vmatmul.mubr.bf16.vlgmr.msra.gmra.mxu1 %v8921_v49  ;;  %v10033_v48 = vld [vmem:[%s11434_s7 + $0xb24] ss:$8 sps:$4 sm:$0xff]  }
 0x262   : > { %v7905_v57 = vadd.f32 %v7904_v54, %v11838_v14  ;;  %8295 = vmatpush1.bf16.msra.mxu0 %v9998_v47  ;;  %8348 = vmatpush1.bf16.msra.mxu1 %v10001_v41  ;;  %v11969_v14 = vld [vmem:[%s12488_s0 + $0x50] sm:$0xff]  ;;  %v10030_v47 = vld [vmem:[%s11434_s7 + $0xa24] ss:$8 sps:$4 sm:$0xff]  }
 0x263   : > { %v7906_v59 = vpop.f32.mrf.mxu0  ;;  %v7959_v60 = vpop.f32.mrf.mxu1  ;;  %8296 = vmatprep.subr.bf16.mxu0 %v10006_v19  ;;  %8349 = vmatprep.subr.bf16.mxu1 %v10009_v22  ;;  %v8924_v0 = vcombine.high %v11969_v14, %v11974_v56  ;;  %v10036_v41 = vld [vmem:[%s11434_s7 + $0xa14] ss:$8 sps:$4 sm:$0xff]   ;;  %v10037_v22 = vld [vmem:[%s11434_s7 + $0xb10] ss:$8 sps:$4 sm:$0xff]  }
 0x264   : > { %v11961_v7 = vadd.f32 %v7957_v55, %v7905_v57  ;;  %v7907_v8 = vadd.f32 %v7906_v59, %v11847_v20  ;;  %8230 = vmatprep.mubr.bf16.mxu0 %v8952_v45  ;;  %8283 = vmatprep.mubr.bf16.mxu1 %v8954_v53  ;;  %v8953_v20 = vcombine.low %v4349_v52, %v4365_v40  ;;  %v10028_v52 = vld [vmem:[%s11434_s7 + $0xa20] ss:$8 sps:$4 sm:$0xff]   ;;  %v10039_v19 = vld [vmem:[%s11434_s7 + $0xb14] ss:$8 sps:$4 sm:$0xff]   ;;  %v10046_v57 = vld [vmem:[%s11434_s7 + $0xaf0] ss:$8 sps:$4 sm:$0xff]  }
 0x265   : > { %v7908_v58 = vpop.f32.mrf.mxu0  ;;  %v7961_v61 = vpop.f32.mrf.mxu1  ;;  %v10031_v40 = vld [vmem:[%s11434_s7 + $0xb20] ss:$8 sps:$4 sm:$0xff]   ;;  %v10048_v54 = vld [vmem:[%s11434_s7 + $0xaf4] ss:$8 sps:$4 sm:$0xff]   ;;  %v10049_v59 = vld [vmem:[%s11434_s7 + $0xbf0] ss:$8 sps:$4 sm:$0xff]  }
 0x266   : > { %v11986_v13 = vadd.f32 %v7959_v60, %v7907_v8  ;;  %v7909_v15 = vadd.f32 %v7908_v58, %v11865_v29  ;;  %8297 = vmatpush1.bf16.msra.mxu0 %v10004_v27  ;;  %8350 = vmatpush1.bf16.msra.mxu1 %v10007_v28  ;;  %v8926_v29 = vcombine.high %v11979_v11, %v11984_v12  ;;  %v10042_v27 = vld [vmem:[%s11434_s7 + $0xa04] ss:$8 sps:$4 sm:$0xff]   ;;  %v10040_v45 = vld [vmem:[%s11434_s7 + $0xa00] ss:$8 sps:$4 sm:$0xff]   ;;  %v10051_v55 = vld [vmem:[%s11434_s7 + $0xbf4] ss:$8 sps:$4 sm:$0xff]  }
 0x267   : > { %v7910_v16 = vpop.f32.mrf.mxu0  ;;  %v7963_v17 = vpop.f32.mrf.mxu1  ;;  %8298 = vmatprep.subr.bf16.mxu0 %v10012_v63  ;;  %8351 = vmatprep.subr.bf16.mxu1 %v10015_v4  ;;  %v10045_v28 = vld [vmem:[%s11434_s7 + $0xb04] ss:$8 sps:$4 sm:$0xff]   ;;  %v10043_v53 = vld [vmem:[%s11434_s7 + $0xb00] ss:$8 sps:$4 sm:$0xff]   ;;  %v10058_v58 = vld [vmem:[%s11434_s7 + $0xad0] ss:$8 sps:$4 sm:$0xff]  }
 0x268   : > { %v11991_v23 = vadd.f32 %v7961_v61, %v7909_v15  ;;  %v7911_v24 = vadd.f32 %v7910_v16, %v11870_v6  ;;  %v10054_v60 = vld [vmem:[%s11434_s7 + $0xae4] ss:$8 sps:$4 sm:$0xff]   ;;  %v10052_v4 = vld [vmem:[%s11434_s7 + $0xae0] ss:$8 sps:$4 sm:$0xff]   ;;  %v10061_v61 = vld [vmem:[%s11434_s7 + $0xbd0] ss:$8 sps:$4 sm:$0xff]  }
 0x269   : > { %v7914_v1 = vpop.f32.mrf.mxu0  ;;  %8231 = vmatmul.mubr.bf16.gmra.mxu0 %v8951_v62  ;;  %v7967_v3 = vpop.f32.mrf.mxu1  ;;  %8284 = vmatmul.mubr.bf16.gmra.mxu1 %v8953_v20  ;;  %v10057_v63 = vld [vmem:[%s11434_s7 + $0xbe4] ss:$8 sps:$4 sm:$0xff]   ;;  %v10055_v8 = vld [vmem:[%s11434_s7 + $0xbe0] ss:$8 sps:$4 sm:$0xff]  }
 0x26a   : > { %v12000_v2 = vadd.f32 %v7963_v17, %v7911_v24  ;;  %v7915_v6 = vadd.f32 %v7914_v1, %v11879_v37  ;;  %8299 = vmatpush1.bf16.msra.mxu0 %v10010_v9  ;;  %8352 = vmatpush1.bf16.msra.mxu1 %v10013_v10  ;;  %v10060_v9 = vld [vmem:[%s11434_s7 + $0xad4] ss:$8 sps:$4 sm:$0xff]   ;;  %v10066_v62 = vld [vmem:[%s11434_s7 + $0xac4] ss:$8 sps:$4 sm:$0xff]   ;;  %v10064_v15 = vld [vmem:[%s11434_s7 + $0xac0] ss:$8 sps:$4 sm:$0xff]  }
 0x26b   : > { %v7916_v5 = vpop.f32.mrf.mxu0  ;;  %v7969_v30 = vpop.f32.mrf.mxu1  ;;  %8300 = vmatprep.subr.bf16.mxu0 %v10018_v18  ;;  %8353 = vmatprep.subr.bf16.mxu1 %v10021_v21  ;;  %v10063_v10 = vld [vmem:[%s11434_s7 + $0xbd4] ss:$8 sps:$4 sm:$0xff]   ;;  %v10069_v20 = vld [vmem:[%s11434_s7 + $0xbc4] ss:$8 sps:$4 sm:$0xff]   ;;  %v10067_v16 = vld [vmem:[%s11434_s7 + $0xbc0] ss:$8 sps:$4 sm:$0xff]  }
 0x26c   : > { %v7917_v33 = vadd.f32 %v7916_v5, %v11882_v43  ;;  %v12006_v34 = vadd.f32 %v7967_v3, %v7915_v6  ;;  %8326 = vmatprep.mubr.bf16.mxu0 %v8924_v0  ;;  %8379 = vmatprep.mubr.bf16.mxu1 %v8926_v29  ;;  %v10072_v17 = vld [vmem:[%s11434_s7 + $0xab4] ss:$8 sps:$4 sm:$0xff]   ;;  %v10070_v21 = vld [vmem:[%s11434_s7 + $0xab0] ss:$8 sps:$4 sm:$0xff]   ;;  %v10076_v0 = vld [vmem:[%s11434_s7 + $0xaa0] ss:$8 sps:$4 sm:$0xff]  }
 0x26d   : > { %v7918_v38 = vpop.f32.mrf.mxu0  ;;  %v7971_v37 = vpop.f32.mrf.mxu1  ;;  %v10075_v18 = vld [vmem:[%s11434_s7 + $0xbb4] ss:$8 sps:$4 sm:$0xff]   ;;  %v10073_v24 = vld [vmem:[%s11434_s7 + $0xbb0] ss:$8 sps:$4 sm:$0xff]   ;;  %v10079_v29 = vld [vmem:[%s11434_s7 + $0xba0] ss:$8 sps:$4 sm:$0xff]  }
 0x26e   : > { %v7919_v39 = vadd.f32 %v7918_v38, %v11886_v50  ;;  %v12011_v42 = vadd.f32 %v7969_v30, %v7917_v33  ;;  %8301 = vmatpush1.bf16.msra.mxu0 %v10016_v25  ;;  %8354 = vmatpush1.bf16.msra.mxu1 %v10019_v26  ;;  %v10078_v25 = vld [vmem:[%s11434_s7 + $0xaa4] ss:$8 sps:$4 sm:$0xff]   ;;  %v10084_v1 = vld [vmem:[%s11434_s7 + $0xa94] ss:$8 sps:$4 sm:$0xff]   ;;  %v10082_v6 = vld [vmem:[%s11434_s7 + $0xa90] ss:$8 sps:$4 sm:$0xff]  }
 0x26f   : > { %v7920_v43 = vpop.f32.mrf.mxu0  ;;  %v7973_v46 = vpop.f32.mrf.mxu1  ;;  %8302 = vmatprep.subr.bf16.mxu0 %v10024_v31  ;;  %8355 = vmatprep.subr.bf16.mxu1 %v10027_v32  ;;  %v10081_v26 = vld [vmem:[%s11434_s7 + $0xba4] ss:$8 sps:$4 sm:$0xff]   ;;  %v10087_v3 = vld [vmem:[%s11434_s7 + $0xb94] ss:$8 sps:$4 sm:$0xff]   ;;  %v10085_v5 = vld [vmem:[%s11434_s7 + $0xb90] ss:$8 sps:$4 sm:$0xff]  }
 0x270   : > { %v7921_v49 = vadd.f32 %v7920_v43, %v11890_v44  ;;  %v12016_v51 = vadd.f32 %v7971_v37, %v7919_v39  ;;  %v10034_v44 = vld [vmem:[%s11434_s7 + $0xa10] ss:$8 sps:$4 sm:$0xff]   ;;  %v10090_v30 = vld [vmem:[%s11434_s7 + $0xa84] ss:$8 sps:$4 sm:$0xff]   ;;  %v10088_v32 = vld [vmem:[%s11434_s7 + $0xa80] ss:$8 sps:$4 sm:$0xff]   ;;  %v8923_v37 = vcombine.low %v11969_v14, %v11974_v56  ;;  %v8925_v39 = vcombine.low %v11979_v11, %v11984_v12 }
 0x271   : > { %v10093_v31 = vld [vmem:[%s11434_s7 + $0xb84] ss:$8 sps:$4 sm:$0xff]   ;;  %v10091_v33 = vld [vmem:[%s11434_s7 + $0xb80] ss:$8 sps:$4 sm:$0xff]   ;;  %v4350_v38 = vld [vmem:[%s12488_s0 + $0x150] sm:$0xff] }
 0x272   : > { %v12018_v50 = vadd.f32 %v7973_v46, %v7921_v49  ;;  %8303 = vmatpush1.bf16.msra.mxu0 %v10022_v35  ;;  %8356 = vmatpush1.bf16.msra.mxu1 %v10025_v36  ;;  %v10096_v35 = vld [vmem:[%s11434_s7 + $0xc74] ss:$8 sps:$4 sm:$0xff]   ;;  %v10097_v14 = vld [vmem:[%s11434_s7 + $0xd70] ss:$8 sps:$4 sm:$0xff]   ;;  %v10102_v56 = vld [vmem:[%s11434_s7 + $0xc64] ss:$8 sps:$4 sm:$0xff]  }
 0x273   : > { %8304 = vmatprep.subr.bf16.mxu0 %v10030_v47  ;;  %8357 = vmatprep.subr.bf16.mxu1 %v10033_v48  ;;  %v10099_v36 = vld [vmem:[%s11434_s7 + $0xd74] ss:$8 sps:$4 sm:$0xff]   ;;  %v10094_v48 = vld [vmem:[%s11434_s7 + $0xc70] ss:$8 sps:$4 sm:$0xff]   ;;  %v10105_v11 = vld [vmem:[%s11434_s7 + $0xd64] ss:$8 sps:$4 sm:$0xff]  }
 0x274   : > { %v4366_v43 = vld [vmem:[%s12488_s0 + $0x1d0] sm:$0xff]  ;;  %v4351_v46 = vld [vmem:[%s12488_s0 + $0x158] sm:$0xff] }
 0x275   : > { %v4367_v47 = vld [vmem:[%s12488_s0 + $0x1d8] sm:$0xff]  ;;  %v8956_v12 = vcombine.high %v4350_v38, %v4366_v43 }
 0x276   : > { %8305 = vmatpush1.bf16.msra.mxu0 %v10028_v52  ;;  %8358 = vmatpush1.bf16.msra.mxu1 %v10031_v40  ;;  %v8958_v49 = vcombine.high %v4351_v46, %v4367_v47 }
 0x277   : > { %8306 = vmatprep.subr.bf16.mxu0 %v10036_v41  ;;  %8359 = vmatprep.subr.bf16.mxu1 %v10039_v19  ;;  %v10100_v19 = vld [vmem:[%s11434_s7 + $0xc60] ss:$8 sps:$4 sm:$0xff]  }
 0x27a   : > { %8307 = vmatpush1.bf16.msra.mxu0 %v10034_v44  ;;  %8360 = vmatpush1.bf16.msra.mxu1 %v10037_v22  ;;  %v10103_v44 = vld [vmem:[%s11434_s7 + $0xd60] ss:$8 sps:$4 sm:$0xff]  }
 0x27b   : > { %8308 = vmatprep.subr.bf16.mxu0 %v10042_v27  ;;  %8361 = vmatprep.subr.bf16.mxu1 %v10045_v28  ;;  %v10108_v28 = vld [vmem:[%s11434_s7 + $0xc54] ss:$8 sps:$4 sm:$0xff]  }
 0x27e   : > { %8309 = vmatpush1.bf16.msra.mxu0 %v10040_v45  ;;  %8362 = vmatpush1.bf16.msra.mxu1 %v10043_v53  ;;  %v10111_v45 = vld [vmem:[%s11434_s7 + $0xd54] ss:$8 sps:$4 sm:$0xff]  }
 0x27f   : > { %8310 = vmatprep.subr.bf16.mxu0 %v10048_v54  ;;  %8363 = vmatprep.subr.bf16.mxu1 %v10051_v55 }
 0x282   : > { %8311 = vmatpush2.bf16.msra.mxu0 %v10046_v57  ;;  %8364 = vmatpush2.bf16.msra.mxu1 %v10049_v59  ;;  %v8955_v59 = vcombine.low %v4350_v38, %v4366_v43  ;;  %v10130_v38 = vld [vmem:[%s11434_s7 + $0xc10] ss:$8 sps:$4 sm:$0xff]   ;;  %v10141_v43 = vld [vmem:[%s11434_s7 + $0xd04] ss:$8 sps:$4 sm:$0xff]  }
 0x283   : > { %8312 = vmatprep.subr.bf16.mxu0 %v10054_v60  ;;  %8365 = vmatprep.subr.bf16.mxu1 %v10057_v63  ;;  %v8957_v60 = vcombine.low %v4351_v46, %v4367_v47  ;;  %v12104_v63 = vld [vmem:[%s12488_s0 + $0xe0] sm:$0xff] }
 0x284   : > { %v10136_v46 = vld [vmem:[%s11434_s7 + $0xc00] ss:$8 sps:$4 sm:$0xff]  }
 0x285   : > { %v10139_v47 = vld [vmem:[%s11434_s7 + $0xd00] ss:$8 sps:$4 sm:$0xff]  }
 0x286   : > { %8313 = vmatpush2.bf16.msra.mxu0 %v10052_v4  ;;  %8366 = vmatpush2.bf16.msra.mxu1 %v10055_v8  ;;  %v12114_v4 = vld [vmem:[%s12488_s0 + $0xe8] sm:$0xff] }
 0x287   : > { %8314 = vmatprep.subr.bf16.mxu0 %v10060_v9  ;;  %8367 = vmatprep.subr.bf16.mxu1 %v10063_v10  ;;  %v10106_v9 = vld [vmem:[%s11434_s7 + $0xc50] ss:$8 sps:$4 sm:$0xff]  }
 0x288   : > { %v10109_v10 = vld [vmem:[%s11434_s7 + $0xd50] ss:$8 sps:$4 sm:$0xff]  }
 0x28a   : > { %8315 = vmatpush2.bf16.msra.mxu0 %v10058_v58  ;;  %8368 = vmatpush2.bf16.msra.mxu1 %v10061_v61 }
 0x28b   : > { %8316 = vmatprep.subr.bf16.mxu0 %v10066_v62  ;;  %8369 = vmatprep.subr.bf16.mxu1 %v10069_v20  ;;  %v10114_v62 = vld [vmem:[%s11434_s7 + $0xc44] ss:$8 sps:$4 sm:$0xff]  }
 0x28c   : > { %v10117_v20 = vld [vmem:[%s11434_s7 + $0xd44] ss:$8 sps:$4 sm:$0xff]  }
 0x28e   : > { %8317 = vmatpush2.bf16.msra.mxu0 %v10064_v15  ;;  %8370 = vmatpush2.bf16.msra.mxu1 %v10067_v16 }
 0x28f   : > { %8318 = vmatprep.subr.bf16.mxu0 %v10072_v17  ;;  %8371 = vmatprep.subr.bf16.mxu1 %v10075_v18 }
 0x292   : > { %8319 = vmatpush2.bf16.msra.mxu0 %v10070_v21  ;;  %8372 = vmatpush2.bf16.msra.mxu1 %v10073_v24  ;;  %v10112_v24 = vld [vmem:[%s11434_s7 + $0xc40] ss:$8 sps:$4 sm:$0xff]  }
 0x293   : > { %8320 = vmatprep.subr.bf16.mxu0 %v10078_v25  ;;  %8373 = vmatprep.subr.bf16.mxu1 %v10081_v26  ;;  %v10115_v25 = vld [vmem:[%s11434_s7 + $0xd40] ss:$8 sps:$4 sm:$0xff]  }
 0x296   : > { %8321 = vmatpush2.bf16.msra.mxu0 %v10076_v0  ;;  %8374 = vmatpush2.bf16.msra.mxu1 %v10079_v29  ;;  %v10120_v29 = vld [vmem:[%s11434_s7 + $0xc34] ss:$8 sps:$4 sm:$0xff]  }
 0x297   : > { %8322 = vmatprep.subr.bf16.mxu0 %v10084_v1  ;;  %8375 = vmatprep.subr.bf16.mxu1 %v10087_v3  ;;  %v10123_v1 = vld [vmem:[%s11434_s7 + $0xd34] ss:$8 sps:$4 sm:$0xff]  }
 0x29a   : > { %8323 = vmatpush2.bf16.msra.mxu0 %v10082_v6  ;;  %8376 = vmatpush2.bf16.msra.mxu1 %v10085_v5  ;;  %v10118_v5 = vld [vmem:[%s11434_s7 + $0xc30] ss:$8 sps:$4 sm:$0xff]  }
 0x29b   : > { %8324 = vmatprep.subr.bf16.mxu0 %v10090_v30  ;;  %8377 = vmatprep.subr.bf16.mxu1 %v10093_v31  ;;  %v10121_v30 = vld [vmem:[%s11434_s7 + $0xd30] ss:$8 sps:$4 sm:$0xff]   ;;  %v10126_v31 = vld [vmem:[%s11434_s7 + $0xc24] ss:$8 sps:$4 sm:$0xff]  }
 0x29e   : > { %8325 = vmatpush2.bf16.msra.mxu0 %v10088_v32  ;;  %8378 = vmatpush2.bf16.msra.mxu1 %v10091_v33  ;;  %v10124_v32 = vld [vmem:[%s11434_s7 + $0xc20] ss:$8 sps:$4 sm:$0xff]  }
 0x29f   : > { %8400 = vmatprep.subr.bf16.mxu0 %v10096_v35  ;;  %8453 = vmatprep.subr.bf16.mxu1 %v10099_v36  ;;  %v10127_v33 = vld [vmem:[%s11434_s7 + $0xd20] ss:$8 sps:$4 sm:$0xff]   ;;  %v10132_v35 = vld [vmem:[%s11434_s7 + $0xc14] ss:$8 sps:$4 sm:$0xff]  }
 0x2a0   : > { %v10135_v36 = vld [vmem:[%s11434_s7 + $0xd14] ss:$8 sps:$4 sm:$0xff]  }
 0x2a1   : > { %v8010_v52 = vpop.f32.mrf.mxu0  ;;  %v8063_v40 = vpop.f32.mrf.mxu1  ;;  %8327 = vmatmul.mubr.bf16.vlgmr.msra.gmra.mxu0 %v8923_v37  ;;  %8380 = vmatmul.mubr.bf16.vlgmr.msra.gmra.mxu1 %v8925_v39  ;;  %v10133_v37 = vld [vmem:[%s11434_s7 + $0xd10] ss:$8 sps:$4 sm:$0xff]   ;;  %v10138_v39 = vld [vmem:[%s11434_s7 + $0xc04] ss:$8 sps:$4 sm:$0xff]  }
 0x2a2   : > { %v8011_v41 = vadd.f32 %v8010_v52, %v11961_v7  ;;  %8401 = vmatpush1.bf16.msra.mxu0 %v10094_v48  ;;  %8454 = vmatpush1.bf16.msra.mxu1 %v10097_v14  ;;  %v12095_v7 = vld [vmem:[%s12488_s0 + $0x60] sm:$0xff]  ;;  %v10144_v48 = vld [vmem:[%s11434_s7 + $0xcf4] ss:$8 sps:$4 sm:$0xff]  }
 0x2a3   : > { %v8012_v22 = vpop.f32.mrf.mxu0  ;;  %v8065_v27 = vpop.f32.mrf.mxu1  ;;  %8402 = vmatprep.subr.bf16.mxu0 %v10102_v56  ;;  %8455 = vmatprep.subr.bf16.mxu1 %v10105_v11  ;;  %v8928_v15 = vcombine.high %v12095_v7, %v12104_v63  ;;  %v10147_v14 = vld [vmem:[%s11434_s7 + $0xdf4] ss:$8 sps:$4 sm:$0xff]   ;;  %v10142_v56 = vld [vmem:[%s11434_s7 + $0xcf0] ss:$8 sps:$4 sm:$0xff]   ;;  %v10148_v52 = vld [vmem:[%s11434_s7 + $0xce0] ss:$8 sps:$4 sm:$0xff]  }
 0x2a4   : > { %v12089_v53 = vadd.f32 %v8063_v40, %v8011_v41  ;;  %v8013_v54 = vadd.f32 %v8012_v22, %v11986_v13  ;;  %8336 = vmatprep.mubr.bf16.mxu0 %v8956_v12  ;;  %8389 = vmatprep.mubr.bf16.mxu1 %v8958_v49  ;;  %v12109_v13 = vld [vmem:[%s12488_s0 + $0x68] sm:$0xff]  ;;  %v10145_v11 = vld [vmem:[%s11434_s7 + $0xdf0] ss:$8 sps:$4 sm:$0xff]   ;;  %v10156_v41 = vld [vmem:[%s11434_s7 + $0xcd4] ss:$8 sps:$4 sm:$0xff]  }
 0x2a5   : > { %v12097_v55 = vpop.f32.mrf.mxu0  ;;  %v12099_v57 = vpop.f32.mrf.mxu1  ;;  %v8930_v16 = vcombine.high %v12109_v13, %v12114_v4  ;;  %v10150_v12 = vld [vmem:[%s11434_s7 + $0xce4] ss:$8 sps:$4 sm:$0xff]   ;;  %v10151_v40 = vld [vmem:[%s11434_s7 + $0xde0] ss:$8 sps:$4 sm:$0xff]   ;;  %v10157_v22 = vld [vmem:[%s11434_s7 + $0xdd0] ss:$8 sps:$4 sm:$0xff]  }
 0x2a6   : > { %v12116_v8 = vadd.f32 %v8065_v27, %v8013_v54  ;;  %8403 = vmatpush1.bf16.msra.mxu0 %v10100_v19  ;;  %8456 = vmatpush1.bf16.msra.mxu1 %v10103_v44  ;;  %v10153_v49 = vld [vmem:[%s11434_s7 + $0xde4] ss:$8 sps:$4 sm:$0xff]   ;;  %v10159_v19 = vld [vmem:[%s11434_s7 + $0xdd4] ss:$8 sps:$4 sm:$0xff]   ;;  %v10154_v44 = vld [vmem:[%s11434_s7 + $0xcd0] ss:$8 sps:$4 sm:$0xff]  }
 0x2a7   : > { %v12120_v58 = vpop.f32.mrf.mxu0  ;;  %v12122_v61 = vpop.f32.mrf.mxu1  ;;  %8404 = vmatprep.subr.bf16.mxu0 %v10108_v28  ;;  %8457 = vmatprep.subr.bf16.mxu1 %v10111_v45  ;;  %v10162_v27 = vld [vmem:[%s11434_s7 + $0xcc4] ss:$8 sps:$4 sm:$0xff]   ;;  %v10160_v45 = vld [vmem:[%s11434_s7 + $0xcc0] ss:$8 sps:$4 sm:$0xff]  }
 0x2a8   : > { %v10165_v28 = vld [vmem:[%s11434_s7 + $0xdc4] ss:$8 sps:$4 sm:$0xff]   ;;  %v10163_v54 = vld [vmem:[%s11434_s7 + $0xdc0] ss:$8 sps:$4 sm:$0xff]  }
 0x2a9   : > { %v8020_v17 = vpop.f32.mrf.mxu0  ;;  %8337 = vmatmul.mubr.bf16.gmra.mxu0 %v8955_v59  ;;  %v8073_v18 = vpop.f32.mrf.mxu1  ;;  %8390 = vmatmul.mubr.bf16.gmra.mxu1 %v8957_v60  ;;  %v10168_v59 = vld [vmem:[%s11434_s7 + $0xcb4] ss:$8 sps:$4 sm:$0xff]  }
 0x2aa   : > { %v8021_v21 = vadd.f32 %v8020_v17, %v12006_v34  ;;  %8405 = vmatpush1.bf16.msra.mxu0 %v10106_v9  ;;  %8458 = vmatpush1.bf16.msra.mxu1 %v10109_v10  ;;  %v10171_v60 = vld [vmem:[%s11434_s7 + $0xdb4] ss:$8 sps:$4 sm:$0xff]   ;;  %v10166_v9 = vld [vmem:[%s11434_s7 + $0xcb0] ss:$8 sps:$4 sm:$0xff]  }
 0x2ab   : > { %v8022_v26 = vpop.f32.mrf.mxu0  ;;  %v8075_v0 = vpop.f32.mrf.mxu1  ;;  %8406 = vmatprep.subr.bf16.mxu0 %v10114_v62  ;;  %8459 = vmatprep.subr.bf16.mxu1 %v10117_v20  ;;  %v10169_v10 = vld [vmem:[%s11434_s7 + $0xdb0] ss:$8 sps:$4 sm:$0xff]   ;;  %v10174_v62 = vld [vmem:[%s11434_s7 + $0xca4] ss:$8 sps:$4 sm:$0xff]   ;;  %v10180_v17 = vld [vmem:[%s11434_s7 + $0xc94] ss:$8 sps:$4 sm:$0xff]  }
 0x2ac   : > { %v8023_v3 = vadd.f32 %v8022_v26, %v12011_v42  ;;  %v12136_v6 = vadd.f32 %v8073_v18, %v8021_v21  ;;  %8432 = vmatprep.mubr.bf16.mxu0 %v8928_v15  ;;  %8485 = vmatprep.mubr.bf16.mxu1 %v8930_v16  ;;  %v10129_v42 = vld [vmem:[%s11434_s7 + $0xd24] ss:$8 sps:$4 sm:$0xff]   ;;  %v10172_v15 = vld [vmem:[%s11434_s7 + $0xca0] ss:$8 sps:$4 sm:$0xff]   ;;  %v10183_v18 = vld [vmem:[%s11434_s7 + $0xd94] ss:$8 sps:$4 sm:$0xff]  }
 0x2ad   : > { %v10177_v20 = vld [vmem:[%s11434_s7 + $0xda4] ss:$8 sps:$4 sm:$0xff]   ;;  %v10175_v16 = vld [vmem:[%s11434_s7 + $0xda0] ss:$8 sps:$4 sm:$0xff]   ;;  %v10178_v21 = vld [vmem:[%s11434_s7 + $0xc90] ss:$8 sps:$4 sm:$0xff]  }
 0x2ae   : > { %v12138_v34 = vadd.f32 %v8075_v0, %v8023_v3  ;;  %8407 = vmatpush1.bf16.msra.mxu0 %v10112_v24  ;;  %8460 = vmatpush1.bf16.msra.mxu1 %v10115_v25  ;;  %v10181_v24 = vld [vmem:[%s11434_s7 + $0xd90] ss:$8 sps:$4 sm:$0xff]   ;;  %v10186_v25 = vld [vmem:[%s11434_s7 + $0xc84] ss:$8 sps:$4 sm:$0xff]   ;;  %v10184_v0 = vld [vmem:[%s11434_s7 + $0xc80] ss:$8 sps:$4 sm:$0xff]  }
 0x2af   : > { %8408 = vmatprep.subr.bf16.mxu0 %v10120_v29  ;;  %8461 = vmatprep.subr.bf16.mxu1 %v10123_v1  ;;  %v10189_v26 = vld [vmem:[%s11434_s7 + $0xd84] ss:$8 sps:$4 sm:$0xff]   ;;  %v10187_v29 = vld [vmem:[%s11434_s7 + $0xd80] ss:$8 sps:$4 sm:$0xff]   ;;  %v10192_v1 = vld [vmem:[%s11434_s7 + $0xe74] ss:$8 sps:$4 sm:$0xff]  }
 0x2b0   : > { %v10195_v3 = vld [vmem:[%s11434_s7 + $0xf74] ss:$8 sps:$4 sm:$0xff]  }
 0x2b2   : > { %8409 = vmatpush1.bf16.msra.mxu0 %v10118_v5  ;;  %8462 = vmatpush1.bf16.msra.mxu1 %v10121_v30  ;;  %v4352_v5 = vld [vmem:[%s12488_s0 + $0x160] sm:$0xff]  ;;  %v8927_v30 = vcombine.low %v12095_v7, %v12104_v63  ;;  %v10190_v7 = vld [vmem:[%s11434_s7 + $0xe70] ss:$8 sps:$4 sm:$0xff]  }
 0x2b3   : > { %8410 = vmatprep.subr.bf16.mxu0 %v10126_v31  ;;  %8463 = vmatprep.subr.bf16.mxu1 %v10129_v42  ;;  %v8929_v31 = vcombine.low %v12109_v13, %v12114_v4  ;;  %v4368_v42 = vld [vmem:[%s12488_s0 + $0x1e0] sm:$0xff]  ;;  %v10193_v63 = vld [vmem:[%s11434_s7 + $0xf70] ss:$8 sps:$4 sm:$0xff]  }
 0x2b4   : > { %v10198_v13 = vld [vmem:[%s11434_s7 + $0xe64] ss:$8 sps:$4 sm:$0xff]  }
 0x2b5   : > { %v10201_v4 = vld [vmem:[%s11434_s7 + $0xf64] ss:$8 sps:$4 sm:$0xff]  }
 0x2b6   : > { %8411 = vmatpush1.bf16.msra.mxu0 %v10124_v32  ;;  %8464 = vmatpush1.bf16.msra.mxu1 %v10127_v33  ;;  %v4353_v32 = vld [vmem:[%s12488_s0 + $0x168] sm:$0xff] }
 0x2b7   : > { %8412 = vmatprep.subr.bf16.mxu0 %v10132_v35  ;;  %8465 = vmatprep.subr.bf16.mxu1 %v10135_v36  ;;  %v4369_v33 = vld [vmem:[%s12488_s0 + $0x1e8] sm:$0xff]  ;;  %v8960_v35 = vcombine.high %v4352_v5, %v4368_v42 }
 0x2b8   : > { %v8962_v36 = vcombine.high %v4353_v32, %v4369_v33 }
 0x2ba   : > { %8413 = vmatpush1.bf16.msra.mxu0 %v10130_v38  ;;  %8466 = vmatpush1.bf16.msra.mxu1 %v10133_v37  ;;  %v10196_v38 = vld [vmem:[%s11434_s7 + $0xe60] ss:$8 sps:$4 sm:$0xff]  }
 0x2bb   : > { %8414 = vmatprep.subr.bf16.mxu0 %v10138_v39  ;;  %8467 = vmatprep.subr.bf16.mxu1 %v10141_v43  ;;  %v10199_v37 = vld [vmem:[%s11434_s7 + $0xf60] ss:$8 sps:$4 sm:$0xff]   ;;  %v10204_v39 = vld [vmem:[%s11434_s7 + $0xe54] ss:$8 sps:$4 sm:$0xff]  }
 0x2bc   : > { %v10207_v43 = vld [vmem:[%s11434_s7 + $0xf54] ss:$8 sps:$4 sm:$0xff]  }
 0x2be   : > { %8415 = vmatpush1.bf16.msra.mxu0 %v10136_v46  ;;  %8468 = vmatpush1.bf16.msra.mxu1 %v10139_v47  ;;  %v12215_v46 = vld [vmem:[%s12488_s0 + $0x70] sm:$0xff]  ;;  %v8959_v47 = vcombine.low %v4352_v5, %v4368_v42  ;;  %v10244_v5 = vld [vmem:[%s11434_s7 + $0xee0] ss:$8 sps:$4 sm:$0xff]  }
 0x2bf   : > { %8416 = vmatprep.subr.bf16.mxu0 %v10144_v48  ;;  %8469 = vmatprep.subr.bf16.mxu1 %v10147_v14  ;;  %v8961_v48 = vcombine.low %v4353_v32, %v4369_v33  ;;  %v12220_v14 = vld [vmem:[%s12488_s0 + $0xf0] sm:$0xff] }
 0x2c0   : > { %v10255_v42 = vld [vmem:[%s11434_s7 + $0xfd4] ss:$8 sps:$4 sm:$0xff]   ;;  %v10250_v32 = vld [vmem:[%s11434_s7 + $0xed0] ss:$8 sps:$4 sm:$0xff]  }
 0x2c1   : > { %v10253_v33 = vld [vmem:[%s11434_s7 + $0xfd0] ss:$8 sps:$4 sm:$0xff]  }
 0x2c2   : > { %8417 = vmatpush2.bf16.msra.mxu0 %v10142_v56  ;;  %8470 = vmatpush2.bf16.msra.mxu1 %v10145_v11  ;;  %v12225_v56 = vld [vmem:[%s12488_s0 + $0x78] sm:$0xff] }
 0x2c3   : > { %8418 = vmatprep.subr.bf16.mxu0 %v10150_v12  ;;  %8471 = vmatprep.subr.bf16.mxu1 %v10153_v49  ;;  %v12230_v11 = vld [vmem:[%s12488_s0 + $0xf8] sm:$0xff] }
 0x2c4   : > { %v10202_v12 = vld [vmem:[%s11434_s7 + $0xe50] ss:$8 sps:$4 sm:$0xff]  }
 0x2c5   : > { %v10205_v49 = vld [vmem:[%s11434_s7 + $0xf50] ss:$8 sps:$4 sm:$0xff]  }
 0x2c6   : > { %8419 = vmatpush2.bf16.msra.mxu0 %v10148_v52  ;;  %8472 = vmatpush2.bf16.msra.mxu1 %v10151_v40  ;;  %v10210_v52 = vld [vmem:[%s11434_s7 + $0xe44] ss:$8 sps:$4 sm:$0xff]  }
 0x2c7   : > { %8420 = vmatprep.subr.bf16.mxu0 %v10156_v41  ;;  %8473 = vmatprep.subr.bf16.mxu1 %v10159_v19  ;;  %v10213_v40 = vld [vmem:[%s11434_s7 + $0xf44] ss:$8 sps:$4 sm:$0xff]   ;;  %v8932_v41 = vcombine.high %v12215_v46, %v12220_v14  ;;  %v8934_v19 = vcombine.high %v12225_v56, %v12230_v11 }
 0x2ca   : > { %8421 = vmatpush2.bf16.msra.mxu0 %v10154_v44  ;;  %8474 = vmatpush2.bf16.msra.mxu1 %v10157_v22  ;;  %v10208_v44 = vld [vmem:[%s11434_s7 + $0xe40] ss:$8 sps:$4 sm:$0xff]  }
 0x2cb   : > { %8422 = vmatprep.subr.bf16.mxu0 %v10162_v27  ;;  %8475 = vmatprep.subr.bf16.mxu1 %v10165_v28  ;;  %v10211_v22 = vld [vmem:[%s11434_s7 + $0xf40] ss:$8 sps:$4 sm:$0xff]   ;;  %v10216_v27 = vld [vmem:[%s11434_s7 + $0xe34] ss:$8 sps:$4 sm:$0xff]  }
 0x2cc   : > { %v10219_v28 = vld [vmem:[%s11434_s7 + $0xf34] ss:$8 sps:$4 sm:$0xff]  }
 0x2ce   : > { %8423 = vmatpush2.bf16.msra.mxu0 %v10160_v45  ;;  %8476 = vmatpush2.bf16.msra.mxu1 %v10163_v54  ;;  %v10214_v45 = vld [vmem:[%s11434_s7 + $0xe30] ss:$8 sps:$4 sm:$0xff]  }
 0x2cf   : > { %8424 = vmatprep.subr.bf16.mxu0 %v10168_v59  ;;  %8477 = vmatprep.subr.bf16.mxu1 %v10171_v60  ;;  %v10217_v54 = vld [vmem:[%s11434_s7 + $0xf30] ss:$8 sps:$4 sm:$0xff]   ;;  %v10222_v59 = vld [vmem:[%s11434_s7 + $0xe24] ss:$8 sps:$4 sm:$0xff]  }
 0x2d0   : > { %v10225_v60 = vld [vmem:[%s11434_s7 + $0xf24] ss:$8 sps:$4 sm:$0xff]  }
 0x2d2   : > { %8425 = vmatpush2.bf16.msra.mxu0 %v10166_v9  ;;  %8478 = vmatpush2.bf16.msra.mxu1 %v10169_v10  ;;  %v10220_v9 = vld [vmem:[%s11434_s7 + $0xe20] ss:$8 sps:$4 sm:$0xff]  }
 0x2d3   : > { %8426 = vmatprep.subr.bf16.mxu0 %v10174_v62  ;;  %8479 = vmatprep.subr.bf16.mxu1 %v10177_v20  ;;  %v10223_v10 = vld [vmem:[%s11434_s7 + $0xf20] ss:$8 sps:$4 sm:$0xff]   ;;  %v10228_v62 = vld [vmem:[%s11434_s7 + $0xe14] ss:$8 sps:$4 sm:$0xff]  }
 0x2d4   : > { %v10231_v20 = vld [vmem:[%s11434_s7 + $0xf14] ss:$8 sps:$4 sm:$0xff]  }
 0x2d6   : > { %8427 = vmatpush2.bf16.msra.mxu0 %v10172_v15  ;;  %8480 = vmatpush2.bf16.msra.mxu1 %v10175_v16  ;;  %v10226_v15 = vld [vmem:[%s11434_s7 + $0xe10] ss:$8 sps:$4 sm:$0xff]  }
 0x2d7   : > { %8428 = vmatprep.subr.bf16.mxu0 %v10180_v17  ;;  %8481 = vmatprep.subr.bf16.mxu1 %v10183_v18  ;;  %v10229_v16 = vld [vmem:[%s11434_s7 + $0xf10] ss:$8 sps:$4 sm:$0xff]   ;;  %v10234_v17 = vld [vmem:[%s11434_s7 + $0xe04] ss:$8 sps:$4 sm:$0xff]  }
 0x2d8   : > { %v10237_v18 = vld [vmem:[%s11434_s7 + $0xf04] ss:$8 sps:$4 sm:$0xff]  }
 0x2da   : > { %8429 = vmatpush2.bf16.msra.mxu0 %v10178_v21  ;;  %8482 = vmatpush2.bf16.msra.mxu1 %v10181_v24  ;;  %v10232_v21 = vld [vmem:[%s11434_s7 + $0xe00] ss:$8 sps:$4 sm:$0xff]  }
 0x2db   : > { %8430 = vmatprep.subr.bf16.mxu0 %v10186_v25  ;;  %8483 = vmatprep.subr.bf16.mxu1 %v10189_v26  ;;  %v10235_v24 = vld [vmem:[%s11434_s7 + $0xf00] ss:$8 sps:$4 sm:$0xff]   ;;  %v10240_v25 = vld [vmem:[%s11434_s7 + $0xef4] ss:$8 sps:$4 sm:$0xff]  }
 0x2dc   : > { %v10243_v26 = vld [vmem:[%s11434_s7 + $0xff4] ss:$8 sps:$4 sm:$0xff]  }
 0x2de   : > { %8431 = vmatpush2.bf16.msra.mxu0 %v10184_v0  ;;  %8484 = vmatpush2.bf16.msra.mxu1 %v10187_v29  ;;  %v10238_v0 = vld [vmem:[%s11434_s7 + $0xef0] ss:$8 sps:$4 sm:$0xff]  }
 0x2df   : > { %8506 = vmatprep.subr.bf16.mxu0 %v10192_v1  ;;  %8559 = vmatprep.subr.bf16.mxu1 %v10195_v3  ;;  %v10241_v29 = vld [vmem:[%s11434_s7 + $0xff0] ss:$8 sps:$4 sm:$0xff]   ;;  %v10246_v1 = vld [vmem:[%s11434_s7 + $0xee4] ss:$8 sps:$4 sm:$0xff]  }
 0x2e0   : > { %v10249_v3 = vld [vmem:[%s11434_s7 + $0xfe4] ss:$8 sps:$4 sm:$0xff]  }
 0x2e1   : > { %8433 = vmatmul.mubr.bf16.vlgmr.msra.gmra.mxu0 %v8927_v30  ;;  %8486 = vmatmul.mubr.bf16.vlgmr.msra.gmra.mxu1 %v8929_v31  ;;  %v10247_v30 = vld [vmem:[%s11434_s7 + $0xfe0] ss:$8 sps:$4 sm:$0xff]   ;;  %v10252_v31 = vld [vmem:[%s11434_s7 + $0xed4] ss:$8 sps:$4 sm:$0xff]  }
 0x2e2   : > { %8507 = vmatpush1.bf16.msra.mxu0 %v10190_v7  ;;  %8560 = vmatpush1.bf16.msra.mxu1 %v10193_v63  ;;  %v10258_v7 = vld [vmem:[%s11434_s7 + $0xec4] ss:$8 sps:$4 sm:$0xff]  }
 0x2e3   : > { %8508 = vmatprep.subr.bf16.mxu0 %v10198_v13  ;;  %8561 = vmatprep.subr.bf16.mxu1 %v10201_v4  ;;  %v10261_v63 = vld [vmem:[%s11434_s7 + $0xfc4] ss:$8 sps:$4 sm:$0xff]   ;;  %v10256_v13 = vld [vmem:[%s11434_s7 + $0xec0] ss:$8 sps:$4 sm:$0xff]  }
 0x2e4   : > { %8442 = vmatprep.mubr.bf16.mxu0 %v8960_v35  ;;  %8495 = vmatprep.mubr.bf16.mxu1 %v8962_v36  ;;  %v10259_v4 = vld [vmem:[%s11434_s7 + $0xfc0] ss:$8 sps:$4 sm:$0xff]   ;;  %v10264_v35 = vld [vmem:[%s11434_s7 + $0xeb4] ss:$8 sps:$4 sm:$0xff]  }
 0x2e5   : > { %v10267_v36 = vld [vmem:[%s11434_s7 + $0xfb4] ss:$8 sps:$4 sm:$0xff]  }
 0x2e6   : > { %8509 = vmatpush1.bf16.msra.mxu0 %v10196_v38  ;;  %8562 = vmatpush1.bf16.msra.mxu1 %v10199_v37  ;;  %v10262_v38 = vld [vmem:[%s11434_s7 + $0xeb0] ss:$8 sps:$4 sm:$0xff]  }
 0x2e7   : > { %8510 = vmatprep.subr.bf16.mxu0 %v10204_v39  ;;  %8563 = vmatprep.subr.bf16.mxu1 %v10207_v43  ;;  %v10265_v37 = vld [vmem:[%s11434_s7 + $0xfb0] ss:$8 sps:$4 sm:$0xff]   ;;  %v10270_v39 = vld [vmem:[%s11434_s7 + $0xea4] ss:$8 sps:$4 sm:$0xff]  }
 0x2e8   : > { %v10273_v43 = vld [vmem:[%s11434_s7 + $0xfa4] ss:$8 sps:$4 sm:$0xff]  }
 0x2e9   : > { %8443 = vmatmul.mubr.bf16.gmra.mxu0 %v8959_v47  ;;  %8496 = vmatmul.mubr.bf16.gmra.mxu1 %v8961_v48  ;;  %v10268_v47 = vld [vmem:[%s11434_s7 + $0xea0] ss:$8 sps:$4 sm:$0xff]  }
 0x2ea   : > { %8511 = vmatpush1.bf16.msra.mxu0 %v10202_v12  ;;  %8564 = vmatpush1.bf16.msra.mxu1 %v10205_v49  ;;  %v10271_v48 = vld [vmem:[%s11434_s7 + $0xfa0] ss:$8 sps:$4 sm:$0xff]   ;;  %v10276_v12 = vld [vmem:[%s11434_s7 + $0xe94] ss:$8 sps:$4 sm:$0xff]  }
 0x2eb   : > { %8512 = vmatprep.subr.bf16.mxu0 %v10210_v52  ;;  %8565 = vmatprep.subr.bf16.mxu1 %v10213_v40  ;;  %v10279_v49 = vld [vmem:[%s11434_s7 + $0xf94] ss:$8 sps:$4 sm:$0xff]   ;;  %v10274_v52 = vld [vmem:[%s11434_s7 + $0xe90] ss:$8 sps:$4 sm:$0xff]  }
 0x2ec   : > { %8538 = vmatprep.mubr.bf16.mxu0 %v8932_v41  ;;  %8591 = vmatprep.mubr.bf16.mxu1 %v8934_v19  ;;  %v10277_v40 = vld [vmem:[%s11434_s7 + $0xf90] ss:$8 sps:$4 sm:$0xff]   ;;  %v10282_v41 = vld [vmem:[%s11434_s7 + $0xe84] ss:$8 sps:$4 sm:$0xff]  }
 0x2ed   : > { %v10285_v19 = vld [vmem:[%s11434_s7 + $0xf84] ss:$8 sps:$4 sm:$0xff]  }
 0x2ee   : > { %8513 = vmatpush1.bf16.msra.mxu0 %v10208_v44  ;;  %8566 = vmatpush1.bf16.msra.mxu1 %v10211_v22  ;;  %v10280_v44 = vld [vmem:[%s11434_s7 + $0xe80] ss:$8 sps:$4 sm:$0xff]  }
 0x2ef   : > { %8514 = vmatprep.subr.bf16.mxu0 %v10216_v27  ;;  %8567 = vmatprep.subr.bf16.mxu1 %v10219_v28  ;;  %v10283_v22 = vld [vmem:[%s11434_s7 + $0xf80] ss:$8 sps:$4 sm:$0xff]   ;;  %v4354_v27 = vld [vmem:[%s12488_s0 + $0x170] sm:$0xff]  ;;  %s8902_s7 = sshll.u32 %s4286_s25, 5 }
 0x2f0   : > { %v4370_v28 = vld [vmem:[%s12488_s0 + $0x1f0] sm:$0xff]  ;;  %s4305_s21 = scalar_lea.vmem [#allocation3], %s8902_s7 }
 0x2f2   : > { %8515 = vmatpush1.bf16.msra.mxu0 %v10214_v45  ;;  %8568 = vmatpush1.bf16.msra.mxu1 %v10217_v54  ;;  %v4355_v45 = vld [vmem:[%s12488_s0 + $0x178] sm:$0xff] }
 0x2f3   : > { %8516 = vmatprep.subr.bf16.mxu0 %v10222_v59  ;;  %8569 = vmatprep.subr.bf16.mxu1 %v10225_v60  ;;  %v4371_v54 = vld [vmem:[%s12488_s0 + $0x1f8] sm:$0xff]  ;;  %v8931_v59 = vcombine.low %v12215_v46, %v12220_v14  ;;  %v8933_v60 = vcombine.low %v12225_v56, %v12230_v11  ;;  %v12310_v14 = vpop.f32.mrf.mxu1 }
 0x2f5   : > { %v12312_v11 = vpop.f32.mrf.mxu1 }
 0x2f6   : > { %8517 = vmatpush1.bf16.msra.mxu0 %v10220_v9  ;;  %8570 = vmatpush1.bf16.msra.mxu1 %v10223_v10  ;;  %v8964_v9 = vcombine.high %v4354_v27, %v4370_v28  ;;  %v8966_v10 = vcombine.high %v4355_v45, %v4371_v54 }
 0x2f7   : > { %8518 = vmatprep.subr.bf16.mxu0 %v10228_v62  ;;  %8571 = vmatprep.subr.bf16.mxu1 %v10231_v20  ;;  %v8963_v62 = vcombine.low %v4354_v27, %v4370_v28  ;;  %v8965_v20 = vcombine.low %v4355_v45, %v4371_v54 }
 0x2fa   : > { %8519 = vmatpush1.bf16.msra.mxu0 %v10226_v15  ;;  %8572 = vmatpush1.bf16.msra.mxu1 %v10229_v16  ;;  %v12306_v15 = vpop.f32.mrf.mxu0 }
 0x2fb   : > { %8520 = vmatprep.subr.bf16.mxu0 %v10234_v17  ;;  %8573 = vmatprep.subr.bf16.mxu1 %v10237_v18  ;;  %v8169_v17 = vpop.f32.mrf.mxu1 }
 0x2fc   : > { %v12308_v16 = vpop.f32.mrf.mxu0 }
 0x2fe   : > { %8521 = vmatpush1.bf16.msra.mxu0 %v10232_v21  ;;  %8574 = vmatpush1.bf16.msra.mxu1 %v10235_v24  ;;  %v8116_v46 = vpop.f32.mrf.mxu0  ;;  %v8171_v21 = vpop.f32.mrf.mxu1 }
 0x2ff   : > { %8522 = vmatprep.subr.bf16.mxu0 %v10240_v25  ;;  %8575 = vmatprep.subr.bf16.mxu1 %v10243_v26 }
 0x300   : > { %v8118_v56 = vpop.f32.mrf.mxu0  ;;  %v12314_v25 = vpop.f32.mrf.mxu1 }
 0x302   : > { %8523 = vmatpush2.bf16.msra.mxu0 %v10238_v0  ;;  %8576 = vmatpush2.bf16.msra.mxu1 %v10241_v29  ;;  %v8120_v18 = vpop.f32.mrf.mxu0  ;;  %v12318_v0 = vpop.f32.mrf.mxu1 }
 0x303   : > { %8524 = vmatprep.subr.bf16.mxu0 %v10246_v1  ;;  %8577 = vmatprep.subr.bf16.mxu1 %v10249_v3 }
 0x304   : > { %v8122_v24 = vpop.f32.mrf.mxu0  ;;  %v12322_v1 = vpop.f32.mrf.mxu1 }
 0x306   : > { %8525 = vmatpush2.bf16.msra.mxu0 %v10244_v5  ;;  %8578 = vmatpush2.bf16.msra.mxu1 %v10247_v30  ;;  %v12316_v26 = vpop.f32.mrf.mxu0  ;;  %v12326_v5 = vpop.f32.mrf.mxu1 }
 0x307   : > { %8526 = vmatprep.subr.bf16.mxu0 %v10252_v31  ;;  %8579 = vmatprep.subr.bf16.mxu1 %v10255_v42 }
 0x308   : > { %v12320_v29 = vpop.f32.mrf.mxu0  ;;  %v12330_v31 = vpop.f32.mrf.mxu1 }
 0x30a   : > { %8527 = vmatpush2.bf16.msra.mxu0 %v10250_v32  ;;  %8580 = vmatpush2.bf16.msra.mxu1 %v10253_v33  ;;  %v12324_v3 = vpop.f32.mrf.mxu0  ;;  %v12332_v32 = vpop.f32.mrf.mxu1 }
 0x30b   : > { %8528 = vmatprep.subr.bf16.mxu0 %v10258_v7  ;;  %8581 = vmatprep.subr.bf16.mxu1 %v10261_v63 }
 0x30c   : > { %v12328_v30 = vpop.f32.mrf.mxu0 }
 0x30e   : > { %8529 = vmatpush2.bf16.msra.mxu0 %v10256_v13  ;;  %8582 = vmatpush2.bf16.msra.mxu1 %v10259_v4 }
 0x30f   : > { %8530 = vmatprep.subr.bf16.mxu0 %v10264_v35  ;;  %8583 = vmatprep.subr.bf16.mxu1 %v10267_v36 }
 0x312   : > { %8531 = vmatpush2.bf16.msra.mxu0 %v10262_v38  ;;  %8584 = vmatpush2.bf16.msra.mxu1 %v10265_v37 }
 0x313   : > { %8532 = vmatprep.subr.bf16.mxu0 %v10270_v39  ;;  %8585 = vmatprep.subr.bf16.mxu1 %v10273_v43 }
 0x316   : > { %8533 = vmatpush2.bf16.msra.mxu0 %v10268_v47  ;;  %8586 = vmatpush2.bf16.msra.mxu1 %v10271_v48 }
 0x317   : > { %8534 = vmatprep.subr.bf16.mxu0 %v10276_v12  ;;  %8587 = vmatprep.subr.bf16.mxu1 %v10279_v49 }
 0x31a   : > { %8535 = vmatpush2.bf16.msra.mxu0 %v10274_v52  ;;  %8588 = vmatpush2.bf16.msra.mxu1 %v10277_v40 }
 0x31b   : > { %8536 = vmatprep.subr.bf16.mxu0 %v10282_v41  ;;  %8589 = vmatprep.subr.bf16.mxu1 %v10285_v19 }
 0x31e   : > { %8537 = vmatpush2.bf16.msra.mxu0 %v10280_v44  ;;  %8590 = vmatpush2.bf16.msra.mxu1 %v10283_v22 }
 0x321   : > { %8539 = vmatmul.mubr.bf16.vlgmr.msra.gmra.mxu0 %v8931_v59  ;;  %8592 = vmatmul.mubr.bf16.vlgmr.msra.gmra.mxu1 %v8933_v60  ;;  %v8222_v42 = vpop.f32.mrf.mxu0  ;;  %v8275_v7 = vpop.f32.mrf.mxu1 }
 0x322   : > { %8548 = vmatprep.mubr.bf16.mxu0 %v8964_v9  ;;  %8601 = vmatprep.mubr.bf16.mxu1 %v8966_v10 }
 0x323   : > { %v8224_v33 = vpop.f32.mrf.mxu0  ;;  %v8277_v13 = vpop.f32.mrf.mxu1 }
 0x325   : > { %v8226_v63 = vpop.f32.mrf.mxu0  ;;  %v12336_v35 = vpop.f32.mrf.mxu1 }
 0x327   : > { %v12334_v4 = vpop.f32.mrf.mxu0  ;;  %v12340_v38 = vpop.f32.mrf.mxu1 }
 0x329   : > { %8549 = vmatmul.mubr.bf16.gmra.mxu0 %v8963_v62  ;;  %8602 = vmatmul.mubr.bf16.gmra.mxu1 %v8965_v20  ;;  %v12338_v36 = vpop.f32.mrf.mxu0  ;;  %v12344_v39 = vpop.f32.mrf.mxu1 }
 0x32b   : > { %v12342_v37 = vpop.f32.mrf.mxu0  ;;  %v12348_v47 = vpop.f32.mrf.mxu1 }
 0x32d   : > { %v12346_v43 = vpop.f32.mrf.mxu0  ;;  %v12352_v12 = vpop.f32.mrf.mxu1 }
 0x32e   : > { %12492 = vst [vmem:[#allocation4_spill] sm:$0xff] %v12352_v12 }
 0x32f   : > { %v12350_v48 = vpop.f32.mrf.mxu0  ;;  %v12354_v52 = vpop.f32.mrf.mxu1 }
 0x330   : > { %12493 = vst [vmem:[#allocation5_spill] sm:$0xff] %v12354_v52 }
 0x361   : > { %v8328_v49 = vpop.f32.mrf.mxu0  ;;  %v8381_v40 = vpop.f32.mrf.mxu1 }
 0x363   : > { %v8330_v41 = vpop.f32.mrf.mxu0  ;;  %v12356_v19 = vpop.f32.mrf.mxu1 }
 0x365   : > { %v8332_v44 = vpop.f32.mrf.mxu0  ;;  %v12358_v22 = vpop.f32.mrf.mxu1 }
 0x366   : > { %12494 = vst [vmem:[#allocation6_spill] sm:$0xff] %v12358_v22 }
 0x367   : > { %v12360_v27 = vpop.f32.mrf.mxu0  ;;  %v12362_v28 = vpop.f32.mrf.mxu1 }
 0x368   : > { %12495 = vst [vmem:[#allocation7_spill] sm:$0xff] %v12360_v27  ;;  %12496 = vst [vmem:[#allocation8_spill] sm:$0xff] %v12362_v28 }
 0x369   : > { %v12364_v45 = vpop.f32.mrf.mxu0  ;;  %v12366_v54 = vpop.f32.mrf.mxu1 }
 0x36a   : > { %12497 = vst [vmem:[#allocation9_spill] sm:$0xff] %v12364_v45  ;;  %12498 = vst [vmem:[#allocation10_spill] sm:$0xff] %v12366_v54  ;;  %v8015_v45 = vadd.f32 %v12097_v55, %v11991_v23  ;;  %v8025_v23 = vadd.f32 %v12306_v15, %v12016_v51  ;;  %v8129_v51 = vadd.f32 %v12320_v29, %v12138_v34 }
 0x36b   : > { %v12368_v59 = vpop.f32.mrf.mxu0  ;;  %v12370_v60 = vpop.f32.mrf.mxu1 }
 0x36c   : > { %12499 = vst [vmem:[#allocation11_spill] sm:$0xff] %v12368_v59  ;;  %12500 = vst [vmem:[#allocation12_spill] sm:$0xff] %v12370_v60  ;;  %v8117_v59 = vadd.f32 %v8116_v46, %v12089_v53  ;;  %v8017_v60 = vadd.f32 %v12120_v58, %v12000_v2  ;;  %v8027_v2 = vadd.f32 %v12308_v16, %v12018_v50 }
 0x36d   : > { %v12372_v9 = vpop.f32.mrf.mxu0  ;;  %v12374_v10 = vpop.f32.mrf.mxu1 }
 0x36e   : > { %12501 = vst [vmem:[#allocation13_spill] sm:$0xff] %v12372_v9  ;;  %12502 = vst [vmem:[#allocation14_spill] sm:$0xff] %v12374_v10  ;;  %v8068_v10 = vadd.f32 %v12099_v57, %v8015_v45  ;;  %v8170_v22 = vadd.f32 %v8169_v17, %v8117_v59  ;;  %v8070_v27 = vadd.f32 %v12122_v61, %v8017_v60  ;;  %v12509_v60 = vld [vmem:[#allocation4_spill] sm:$0xff] }
 0x36f   : > { %v12376_v62 = vpop.f32.mrf.mxu0  ;;  %v12378_v20 = vpop.f32.mrf.mxu1  ;;  %v8078_v61 = vadd.f32 %v12310_v14, %v8025_v23  ;;  %v8080_v50 = vadd.f32 %v12312_v11, %v8027_v2  ;;  %v8182_v14 = vadd.f32 %v12326_v5, %v8129_v51  ;;  %v12513_v2 = vld [vmem:[#allocation8_spill] sm:$0xff] }
 0x370   : > { %12503 = vst [vmem:[#allocation15_spill] sm:$0xff] %v12376_v62  ;;  %12504 = vst [vmem:[#allocation16_spill] sm:$0xff] %v12378_v20  ;;  %v8119_v62 = vadd.f32 %v8118_v56, %v12116_v8  ;;  %v8223_v46 = vadd.f32 %v8222_v42, %v8170_v22  ;;  %v8123_v58 = vadd.f32 %v8122_v24, %v8070_v27 }
 0x371   : > { %v8127_v56 = vadd.f32 %v12316_v26, %v12136_v6  ;;  %v8131_v24 = vadd.f32 %v12324_v3, %v8078_v61  ;;  %v8235_v3 = vadd.f32 %v12342_v37, %v8182_v14  ;;  %v12506_v37 = vld [vmem:[#allocation7_spill] sm:$0xff]  ;;  %v12515_v61 = vld [vmem:[#allocation10_spill] sm:$0xff] }
 0x372   : > { %v8172_v53 = vadd.f32 %v8171_v21, %v8119_v62  ;;  %v8276_v21 = vadd.f32 %v8275_v7, %v8223_v46  ;;  %v8176_v16 = vadd.f32 %v12318_v0, %v8123_v58  ;;  %v12512_v46 = vld [vmem:[#allocation5_spill] sm:$0xff] }
 0x373   : > { %v8184_v0 = vadd.f32 %v12330_v31, %v8131_v24 }
 0x374   : > { %v8225_v17 = vadd.f32 %v8224_v33, %v8172_v53  ;;  %v8329_v26 = vadd.f32 %v8328_v49, %v8276_v21  ;;  %v8133_v33 = vadd.f32 %v12328_v30, %v8080_v50  ;;  %v8229_v34 = vadd.f32 %v12334_v4, %v8176_v16 }
 0x375   : > { %v8237_v30 = vadd.f32 %v12346_v43, %v8184_v0  ;;  %v12514_v58 = vld [vmem:[#allocation13_spill] sm:$0xff] }
 0x376   : > { %v8278_v6 = vadd.f32 %v8277_v13, %v8225_v17  ;;  %v8186_v49 = vadd.f32 %v12332_v32, %v8133_v33  ;;  %v8282_v5 = vadd.f32 %v12340_v38, %v8229_v34  ;;  %v12508_v32 = vld [vmem:[#allocation9_spill] sm:$0xff] }
 0x377   : > { %v8290_v43 = vadd.f32 %v12509_v60, %v8237_v30  ;;  %v12517_v16 = vld [vmem:[#allocation15_spill] sm:$0xff] }
 0x378   : > { %v8239_v31 = vadd.f32 %v12350_v48, %v8186_v49 }
 0x3a1   : > { %v8434_v52 = vpop.f32.mrf.mxu0  ;;  %v12380_v12 = vpop.f32.mrf.mxu1 }
 0x3a2   : > { %12505 = vst [vmem:[#allocation17_spill] sm:$0xff] %v12380_v12  ;;  %v8121_v12 = vadd.f32 %v8120_v18, %v8068_v10  ;;  %v12510_v10 = vld [vmem:[#allocation11_spill] sm:$0xff] }
 0x3a3   : > { %v8436_v28 = vpop.f32.mrf.mxu0  ;;  %v12384_v54 = vpop.f32.mrf.mxu1 }
 0x3a4   : > { %v8174_v8 = vadd.f32 %v12314_v25, %v8121_v12  ;;  %v8180_v25 = vadd.f32 %v12322_v1, %v8127_v56  ;;  %v8382_v1 = vadd.f32 %v8381_v40, %v8329_v26  ;;  %v8335_v40 = vadd.f32 %v12506_v37, %v8282_v5 }
 0x3a5   : > { %v8438_v9 = vpop.f32.mrf.mxu0  ;;  %v12391_v20 = vpop.f32.mrf.mxu1 }
 0x3a6   : > { %v8227_v42 = vadd.f32 %v8226_v63, %v8174_v8  ;;  %v8233_v11 = vadd.f32 %v12338_v36, %v8180_v25  ;;  %v8331_v63 = vadd.f32 %v8330_v41, %v8278_v6  ;;  %v8435_v36 = vadd.f32 %v8434_v52, %v8382_v1 }
 0x3a7   : > { %v12396_v55 = vpop.f32.mrf.mxu0  ;;  %v12400_v57 = vpop.f32.mrf.mxu1  ;;  %v8288_v41 = vadd.f32 %v12348_v47, %v8235_v3  ;;  %v8292_v47 = vadd.f32 %v12512_v46, %v8239_v31  ;;  %v8388_v48 = vadd.f32 %v12513_v2, %v8335_v40  ;;  %v8343_v8 = vadd.f32 %v12514_v58, %v8290_v43 }
 0x3a8   : > { %v8280_v7 = vadd.f32 %v12336_v35, %v8227_v42  ;;  %v8286_v27 = vadd.f32 %v12344_v39, %v8233_v11  ;;  %v8384_v35 = vadd.f32 %v12356_v19, %v8331_v63  ;;  %v12516_v42 = vld [vmem:[#allocation12_spill] sm:$0xff] }
 0x3a9   : > { %v8444_v15 = vpop.f32.mrf.mxu0  ;;  %v12408_v18 = vpop.f32.mrf.mxu1  ;;  %v8341_v62 = vadd.f32 %v12510_v10, %v8288_v41  ;;  %v12511_v53 = vld [vmem:[#allocation17_spill] sm:$0xff]  ;;  %v8345_v24 = vadd.f32 %v12517_v16, %v8292_v47  ;;  %v8441_v25 = vadd.f32 %v12396_v55, %v8388_v48  ;;  %v8676_v48 = vlaneseq }
 0x3aa   : > { %v8333_v13 = vadd.f32 %v8332_v44, %v8280_v7  ;;  %v12507_v44 = vld [vmem:[#allocation6_spill] sm:$0xff]  ;;  %v8339_v59 = vadd.f32 %v12508_v32, %v8286_v27  ;;  %v8437_v38 = vadd.f32 %v8436_v28, %v8384_v35  ;;  %v8488_v19 = vadd.f32 %v12511_v53, %v8435_v36  ;;  %v12519_v27 = vld [vmem:[#allocation16_spill] sm:$0xff] }
 0x3ab   : > { %v8446_v29 = vpop.f32.mrf.mxu0  ;;  %v8499_v12 = vpop.f32.mrf.mxu1  ;;  %v8394_v50 = vadd.f32 %v12516_v42, %v8341_v62  ;;  %v12518_v7 = vld [vmem:[#allocation14_spill] sm:$0xff]  ;;  %v8494_v1 = vadd.f32 %v12400_v57, %v8441_v25  ;;  %v8398_v35 = vadd.f32 %v12519_v27, %v8345_v24  ;;  %v8677_v24 = vshrl.u32 %v8676_v48, 7 }
 0x3ac   : > { %v8386_v45 = vadd.f32 %v12507_v44, %v8333_v13  ;;  %v8392_v51 = vadd.f32 %v12515_v61, %v8339_v59  ;;  %v8490_v28 = vadd.f32 %v12384_v54, %v8437_v38  ;;  %v8396_v11 = vadd.f32 %v12518_v7, %v8343_v8 }
 0x3ad   : > { %v8448_v4 = vpop.f32.mrf.mxu0  ;;  %v8501_v22 = vpop.f32.mrf.mxu1  ;;  %v8447_v63 = vadd.f32 %v8446_v29, %v8394_v50 }
 0x3ae   : > { %v8439_v52 = vadd.f32 %v8438_v9, %v8386_v45  ;;  %v8445_v14 = vadd.f32 %v8444_v15, %v8392_v51  ;;  %v8449_v13 = vadd.f32 %v8448_v4, %v8396_v11 }
 0x3af   : > { %v8450_v23 = vpop.f32.mrf.mxu0  ;;  %v8503_v39 = vpop.f32.mrf.mxu1  ;;  %v8500_v36 = vadd.f32 %v8499_v12, %v8447_v63  ;;  %v8678_v63 = vadd.s32 8, %v8677_v24 }
 0x3b0   : > { %v8492_v26 = vadd.f32 %v12391_v20, %v8439_v52  ;;  %v8498_v20 = vadd.f32 %v12408_v18, %v8445_v14  ;;  %v8451_v37 = vadd.f32 %v8450_v23, %v8398_v35  ;;  %v8502_v57 = vadd.f32 %v8501_v22, %v8449_v13 }
 0x3b1   : > { %vm8680_vm8 = vcmp.lt.s32.totalorder %v8678_v63, 9 }
 0x3b2   : > { %v8504_v52 = vadd.f32 %v8503_v39, %v8451_v37 }
 0x3e1   : > { %v8540_v56 = vpop.f32.mrf.mxu0  ;;  %v8593_v17 = vpop.f32.mrf.mxu1 }
 0x3e2   : > { %v8541_v21 = vadd.f32 %v8540_v56, %v8488_v19 }
 0x3e3   : > { %v8542_v9 = vpop.f32.mrf.mxu0  ;;  %v8595_v6 = vpop.f32.mrf.mxu1 }
 0x3e4   : > { %v8594_v33 = vadd.f32 %v8593_v17, %v8541_v21  ;;  %v8543_v34 = vadd.f32 %v8542_v9, %v8490_v28 }
 0x3e5   : > { %v8544_v0 = vpop.f32.mrf.mxu0  ;;  %v8597_v3 = vpop.f32.mrf.mxu1 }
 0x3e6   : > { %v8545_v54 = vadd.f32 %v8544_v0, %v8492_v26  ;;  %v8620_v49 = vmul.f32 0.2, %v8594_v33  ;;  %v8596_v5 = vadd.f32 %v8595_v6, %v8543_v34  ;;  %vm8612_vm0 = vcmp.ge.f32.partialorder %v8594_v33, 0.0 }
 0x3e7   : > { %v8546_v30 = vpop.f32.mrf.mxu0  ;;  %v8599_v55 = vpop.f32.mrf.mxu1 }
 0x3e8   : > { %v8598_v15 = vadd.f32 %v8597_v3, %v8545_v54  ;;  %v8547_v41 = vadd.f32 %v8546_v30, %v8494_v1  ;;  %v8628_v4 = vsel %vm8612_vm0, %v8594_v33, %v8620_v49  ;;  %v8621_v45 = vmul.f32 0.2, %v8596_v5 }
 0x3e9   : > { %v8550_v31 = vpop.f32.mrf.mxu0  ;;  %v8603_v29 = vpop.f32.mrf.mxu1  ;;  %vm8613_vm2 = vcmp.ge.f32.partialorder %v8596_v5, 0.0 }
 0x3ea   : > { %vm8614_vm1 = vcmp.ge.f32.partialorder %v8598_v15, 0.0  ;;  %v8622_v40 = vmul.f32 0.2, %v8598_v15  ;;  %v8551_v44 = vadd.f32 %v8550_v31, %v8498_v20  ;;  %v8600_v32 = vadd.f32 %v8599_v55, %v8547_v41 }
 0x3eb   : > { %v8552_v59 = vpop.f32.mrf.mxu0  ;;  %v8605_v38 = vpop.f32.mrf.mxu1  ;;  %v8629_v46 = vsel %vm8613_vm2, %v8596_v5, %v8621_v45 }
 0x3ec   : > { %v8630_v60 = vsel %vm8614_vm1, %v8598_v15, %v8622_v40  ;;  %v8604_v43 = vadd.f32 %v8603_v29, %v8551_v44  ;;  %v8553_v18 = vadd.f32 %v8552_v59, %v8500_v36  ;;  %vm8615_vm3 = vcmp.ge.f32.partialorder %v8600_v32, 0.0 }
 0x3ed   : > { %v8636_v10 = vadd.f32 %v8630_v60, %v8628_v4  ;;  %v8623_v12 = vmul.f32 0.2, %v8600_v32  ;;  %v8554_v62 = vpop.f32.mrf.mxu0  ;;  %v8607_v23 = vpop.f32.mrf.mxu1 }
 0x3ee   : > { %v8606_v53 = vadd.f32 %v8605_v38, %v8553_v18  ;;  %v8555_v19 = vadd.f32 %v8554_v62, %v8502_v57  ;;  %v8624_v8 = vmul.f32 0.2, %v8604_v43  ;;  %vm8616_vm4 = vcmp.ge.f32.partialorder %v8604_v43, 0.0 }
 0x3ef   : > { %v8637_v47 = vrot.slane %v8636_v10, 4  ;;  %v8631_v22 = vsel %vm8615_vm3, %v8600_v32, %v8623_v12  ;;  %v8556_v2 = vpop.f32.mrf.mxu0  ;;  %v8609_v21 = vpop.f32.mrf.mxu1 }
 0x3f0   : > { %v8643_v58 = vadd.f32 %v8631_v22, %v8629_v46  ;;  %v8608_v17 = vadd.f32 %v8607_v23, %v8555_v19  ;;  %v8557_v61 = vadd.f32 %v8556_v2, %v8504_v52  ;;  %v8625_v28 = vmul.f32 0.2, %v8606_v53 }
 0x3f1   : > { %v8638_v56 = vadd.f32 %v8637_v47, %v8636_v10  ;;  %v8632_v25 = vsel %vm8616_vm4, %v8604_v43, %v8624_v8  ;;  %vm8617_vm6 = vcmp.ge.f32.partialorder %v8606_v53, 0.0 }
 0x3f2   : > { %v8644_v51 = vrot.slane %v8643_v58, 4  ;;  %vm8618_vm5 = vcmp.ge.f32.partialorder %v8608_v17, 0.0  ;;  %v8626_v50 = vmul.f32 0.2, %v8608_v17  ;;  %v8610_v16 = vadd.f32 %v8609_v21, %v8557_v61 }
 0x3f3   : > { %v8639_v42 = vrot.slane %v8638_v56, 2  ;;  %v8633_v7 = vsel %vm8617_vm6, %v8606_v53, %v8625_v28 }
 0x3f4   : > { %v8645_v39 = vadd.f32 %v8644_v51, %v8643_v58  ;;  %v8634_v6 = vsel %vm8618_vm5, %v8608_v17, %v8626_v50  ;;  %vm8619_vm7 = vcmp.ge.f32.partialorder %v8610_v16, 0.0  ;;  %v8627_v26 = vmul.f32 0.2, %v8610_v16 }
 0x3f5   : > { %v8640_v9 = vadd.f32 %v8639_v42, %v8638_v56  ;;  %v8650_v33 = vadd.f32 %v8634_v6, %v8632_v25 }
 0x3f6   : > { %v8646_v14 = vrot.slane %v8645_v39, 2  ;;  %v8635_v11 = vsel %vm8619_vm7, %v8610_v16, %v8627_v26 }
 0x3f7   : > { %v8641_v34 = vrot.slane %v8640_v9, 1  ;;  %v8651_v3 = vrot.slane %v8650_v33, 4  ;;  %v8657_v54 = vadd.f32 %v8635_v11, %v8633_v7 }
 0x3f8   : > { %v8647_v0 = vadd.f32 %v8646_v14, %v8645_v39 }
 0x3f9   : > { %v8642_v1 = vadd.f32 %v8641_v34, %v8640_v9  ;;  %v8652_v49 = vadd.f32 %v8651_v3, %v8650_v33  ;;  %v8658_v5 = vrot.slane %v8657_v54, 4 }
 0x3fa   : > { %v8648_v13 = vrot.slane %v8647_v0, 1 }
 0x3fb   : > { %v8664_v30 = vmul.f32 0.11111111, %v8642_v1  ;;  %v8653_v27 = vrot.slane %v8652_v49, 2  ;;  %v8659_v35 = vadd.f32 %v8658_v5, %v8657_v54 }
 0x3fc   : > { %v8649_v55 = vadd.f32 %v8648_v13, %v8647_v0 }
 0x3fd   : > { %v12447_v20 = vsub.f32 %v8628_v4, %v8664_v30  ;;  %v12449_v15 = vsub.f32 %v8630_v60, %v8664_v30  ;;  %v8654_v41 = vadd.f32 %v8653_v27, %v8652_v49  ;;  %v8660_v31 = vrot.slane %v8659_v35, 2 }
 0x3fe   : > { %v8665_v36 = vmul.f32 0.11111111, %v8649_v55 }
 0x3ff   : > { %v8683_v29 = vsel %vm8680_vm8, %v12449_v15, 0.0  ;;  %v8689_v37 = vmul.f32 %v12447_v20, %v12447_v20  ;;  %v8655_v45 = vrot.slane %v8654_v41, 1  ;;  %v8661_v32 = vadd.f32 %v8660_v31, %v8659_v35 }
 0x400   : > { %v8691_v40 = vmul.f32 %v8683_v29, %v8683_v29  ;;  %v12455_v44 = vsub.f32 %v8629_v46, %v8665_v36  ;;  %v12457_v57 = vsub.f32 %v8631_v22, %v8665_v36 }
 0x401   : > { %v8656_v60 = vadd.f32 %v8655_v45, %v8654_v41  ;;  %v8662_v18 = vrot.slane %v8661_v32, 1 }
 0x402   : > { %v8697_v4 = vadd.f32 %v8691_v40, %v8689_v37  ;;  %v8684_v59 = vsel %vm8680_vm8, %v12457_v57, 0.0  ;;  %v8690_v38 = vmul.f32 %v12455_v44, %v12455_v44 }
 0x403   : > { %v8692_v43 = vmul.f32 %v8684_v59, %v8684_v59  ;;  %v8666_v12 = vmul.f32 0.11111111, %v8656_v60  ;;  %v8663_v53 = vadd.f32 %v8662_v18, %v8661_v32 }
 0x404   : > { %v8698_v10 = vrot.slane %v8697_v4, 4 }
 0x405   : > { %v8704_v62 = vadd.f32 %v8692_v43, %v8690_v38  ;;  %v8672_v23 = vsub.f32 %v8632_v25, %v8666_v12  ;;  %v8674_v52 = vsub.f32 %v8634_v6, %v8666_v12  ;;  %v8667_v47 = vmul.f32 0.11111111, %v8663_v53 }
 0x406   : > { %v8699_v19 = vadd.f32 %v8698_v10, %v8697_v4 }
 0x407   : > { %v8705_v46 = vrot.slane %v8704_v62, 4  ;;  %v8687_v2 = vsel %vm8680_vm8, %v8674_v52, 0.0  ;;  %v8693_v48 = vmul.f32 %v8672_v23, %v8672_v23  ;;  %v8673_v56 = vsub.f32 %v8633_v7, %v8667_v47 }
 0x408   : > { %v8700_v22 = vrot.slane %v8699_v19, 2  ;;  %v8695_v8 = vmul.f32 %v8687_v2, %v8687_v2  ;;  %v8675_v17 = vsub.f32 %v8635_v11, %v8667_v47 }
 0x409   : > { %v8706_v58 = vadd.f32 %v8705_v46, %v8704_v62  ;;  %v8694_v42 = vmul.f32 %v8673_v56, %v8673_v56 }
 0x40a   : > { %v8701_v61 = vadd.f32 %v8700_v22, %v8699_v19  ;;  %v8711_v28 = vadd.f32 %v8695_v8, %v8693_v48  ;;  %v8688_v21 = vsel %vm8680_vm8, %v8675_v17, 0.0 }
 0x40b   : > { %v8707_v51 = vrot.slane %v8706_v58, 2  ;;  %v8696_v16 = vmul.f32 %v8688_v21, %v8688_v21 }
 0x40c   : > { %v8702_v50 = vrot.slane %v8701_v61, 1  ;;  %v8712_v39 = vrot.slane %v8711_v28, 4 }
 0x40d   : > { %v8708_v24 = vadd.f32 %v8707_v51, %v8706_v58  ;;  %v8718_v9 = vadd.f32 %v8696_v16, %v8694_v42 }
 0x40e   : > { %v8703_v25 = vadd.f32 %v8702_v50, %v8701_v61  ;;  %v8713_v26 = vadd.f32 %v8712_v39, %v8711_v28 }
 0x40f   : > { %v8709_v6 = vrot.slane %v8708_v24, 1  ;;  %v8719_v33 = vrot.slane %v8718_v9, 4 }
 0x410   : > { %v8725_v14 = vmul.f32 0.11111111, %v8703_v25  ;;  %v8714_v0 = vrot.slane %v8713_v26, 2 }
 0x411   : > { %v8710_v34 = vadd.f32 %v8709_v6, %v8708_v24  ;;  %v8720_v11 = vadd.f32 %v8719_v33, %v8718_v9 }
 0x412   : > { %v8729_v7 = vadd.f32 1e-05, %v8725_v14  ;;  %v8715_v54 = vadd.f32 %v8714_v0, %v8713_v26 }
 0x413   : > { %v8726_v3 = vmul.f32 0.11111111, %v8710_v34  ;;  %v8721_v63 = vrot.slane %v8720_v11, 2 }
 0x414   : > { %10286 = vrsqrt.f32 %v8729_v7  ;;  %v8716_v13 = vrot.slane %v8715_v54, 1 }
 0x415   : > { %v8730_v1 = vadd.f32 1e-05, %v8726_v3  ;;  %v8722_v49 = vadd.f32 %v8721_v63, %v8720_v11 }
 0x416   : > { %v8717_v5 = vadd.f32 %v8716_v13, %v8715_v54 }
 0x417   : > { %10288 = vrsqrt.f32 %v8730_v1  ;;  %v8723_v30 = vrot.slane %v8722_v49, 1 }
 0x418   : > { %v8727_v55 = vmul.f32 0.11111111, %v8717_v5 }
 0x419   : > { %v8724_v27 = vadd.f32 %v8723_v30, %v8722_v49 }
 0x41a   : > { %v8731_v35 = vadd.f32 1e-05, %v8727_v55 }
 0x41b   : > { %v8728_v36 = vmul.f32 0.11111111, %v8724_v27 }
 0x41c   : > { %10290 = vrsqrt.f32 %v8731_v35 }
 0x41d   : > { %v8732_v41 = vadd.f32 1e-05, %v8728_v36 }
 0x41f   : > { %10292 = vrsqrt.f32 %v8732_v41 }
 0x421   : > { %v10287_v31 = vpop.eup %10286 }
 0x422   : > { %v8737_v29 = vmul.f32 %v10287_v31, %v12447_v20  ;;  %v8739_v37 = vmul.f32 %v10287_v31, %v12449_v15 }
 0x424   : > { %v10289_v40 = vpop.eup %10288 }
 0x425   : > { %v8738_v45 = vmul.f32 %v10289_v40, %v12455_v44  ;;  %v8740_v32 = vmul.f32 %v10289_v40, %v12457_v57 }
 0x427   : > { %v9489_v4 = vpack.c.bf16 %v8738_v45, %v8737_v29  ;;  %v9490_v59 = vpack.c.bf16 %v8740_v32, %v8739_v37 }
 0x429   : > { %8769 = vst [vmem:[%s4305_s21] sm:$0xff] %v9489_v4  ;;  %8770 = vst [vmem:[%s4305_s21 + $0x8] sm:$0xff] %v9490_v59  ;;  %v10291_v38 = vpop.eup %10290 }
 0x42a   : > { %v8741_v60 = vmul.f32 %v10291_v38, %v8672_v23  ;;  %v8743_v43 = vmul.f32 %v10291_v38, %v8674_v52 }
 0x42c   : > { %v10293_v18 = vpop.eup %10292 }
 0x42d   : > { %v8742_v10 = vmul.f32 %v10293_v18, %v8673_v56  ;;  %v8744_v20 = vmul.f32 %v10293_v18, %v8675_v17  ;;  %8779 = sbr.rel (!%p10363_p5) target bundleno = 1082 (0x43a), region = 84 }
 0x42f   : > { %v9491_v12 = vpack.c.bf16 %v8742_v10, %v8741_v60  ;;  %v9492_v15 = vpack.c.bf16 %v8744_v20, %v8743_v43 }
 0x430   : > { %v8817_v44 = vld [vmem:[%s4305_s21] sm:$0xff] (%p10363_p5)  ;;  %v8819_v57 = vld [vmem:[%s4305_s21 + $0x8] sm:$0xff] (%p10363_p5) }
 0x431   : > { %8771 = vst [vmem:[%s4305_s21 + $0x10] sm:$0xff] %v9491_v12  ;;  %8772 = vst [vmem:[%s4305_s21 + $0x18] sm:$0xff] %v9492_v15 }
 0x432   : > { %8818 = vst [vmem:[%s8782_s23] sm:$0xff] %v8817_v44  ;;  %8820 = vst [vmem:[%s8782_s23 + $0x10] sm:$0xff] %v8819_v57 }
 0x438   : > { %v8821_v62 = vld [vmem:[%s4305_s21 + $0x10] sm:$0xff]  ;;  %v8823_v53 = vld [vmem:[%s4305_s21 + $0x18] sm:$0xff] }
 0x439   : > { %8822 = vst [vmem:[%s8782_s23 + $0x20] sm:$0xff] %v8821_v62  ;;  %8824 = vst [vmem:[%s8782_s23 + $0x30] sm:$0xff] %v8823_v53 }
 0x43a PF: > { %p9_p10 = scmp.ge.s32.totalorder %s10350_s13, 4   ;;  %s12520_s9 = smov %s10312_s10 }
 0x43b   : > { %s12521_s10 = smov %s10361_s16  ;;  %s12522_s11 = smov %s10350_s13 }
 0x43c   :  { %11 = sbr.rel (!%p9_p10) target bundleno = 2 (0x2), region = 159 }

// kernel: discriminator_forward.9
= control target key start
LH: loop header
LB: loop body
LE: loop exit
PB: predicated region body
PF: predicated region fallthrough
CT: control target
= control target key end

     0   :  { %s10778_s1 = inlined_call_operand.vmem [shape: bf16[8192,128], index: 1, kind: input, shape index: {}]   ;;  %s10779_s0 = inlined_call_operand.vmem [shape: bf16[32,8192], index: 0, kind: input, shape index: {}]   ;;  %s10780_s2 = inlined_call_operand.vmem [shape: f32[32,128], index: 2, kind: output, shape index: {}]  }
   0x1   :  { %v8012_v0 = vld [vmem:[%s10778_s1 + $0x78] sm:$0xff]   ;;  %v8016_v4 = vld [vmem:[%s10778_s1 + $0x70] sm:$0xff]   ;;  %v8020_v8 = vld [vmem:[%s10778_s1 + $0x68] sm:$0xff]  }
   0x2   :  { %v8013_v1 = vld [vmem:[%s10778_s1 + $0xf8] sm:$0xff]   ;;  %7116 = vmatprep.subr.bf16.mxu0 %v8012_v0  ;;  %v8017_v5 = vld [vmem:[%s10778_s1 + $0xf0] sm:$0xff]   ;;  %v8021_v9 = vld [vmem:[%s10778_s1 + $0xe8] sm:$0xff]  }
   0x3   :  { %v8014_v2 = vld [vmem:[%s10778_s1 + $0x38] sm:$0xff]   ;;  %7144 = vmatprep.subr.bf16.mxu1 %v8013_v1  ;;  %v8018_v6 = vld [vmem:[%s10778_s1 + $0x30] sm:$0xff]   ;;  %v8022_v10 = vld [vmem:[%s10778_s1 + $0x28] sm:$0xff]  }
   0x4   :  { %v8015_v3 = vld [vmem:[%s10778_s1 + $0xb8] sm:$0xff]   ;;  %7117 = vmatpush3.bf16.msra.mxu0 %v8014_v2  ;;  %v8019_v7 = vld [vmem:[%s10778_s1 + $0xb0] sm:$0xff]   ;;  %v8023_v11 = vld [vmem:[%s10778_s1 + $0xa8] sm:$0xff]  }
   0x5   :  { %7145 = vmatpush3.bf16.msra.mxu1 %v8015_v3  ;;  %7118 = vmatprep.subr.bf16.mxu0 %v8016_v4  ;;  %v8024_v12 = vld [vmem:[%s10778_s1 + $0x60] sm:$0xff]   ;;  %v8028_v16 = vld [vmem:[%s10778_s1 + $0x58] sm:$0xff]   ;;  %v8032_v20 = vld [vmem:[%s10778_s1 + $0x50] sm:$0xff]  }
   0x6   :  { %7146 = vmatprep.subr.bf16.mxu1 %v8017_v5  ;;  %v8025_v13 = vld [vmem:[%s10778_s1 + $0xe0] sm:$0xff]   ;;  %v8029_v17 = vld [vmem:[%s10778_s1 + $0xd8] sm:$0xff]   ;;  %v8033_v21 = vld [vmem:[%s10778_s1 + $0xd0] sm:$0xff]  }
   0x7   :  { %v8026_v14 = vld [vmem:[%s10778_s1 + $0x20] sm:$0xff]   ;;  %v8030_v18 = vld [vmem:[%s10778_s1 + $0x18] sm:$0xff]   ;;  %v8034_v22 = vld [vmem:[%s10778_s1 + $0x10] sm:$0xff]  }
   0x8   :  { %7119 = vmatpush3.bf16.msra.mxu0 %v8018_v6  ;;  %v8027_v15 = vld [vmem:[%s10778_s1 + $0xa0] sm:$0xff]   ;;  %v8031_v19 = vld [vmem:[%s10778_s1 + $0x98] sm:$0xff]   ;;  %v8035_v23 = vld [vmem:[%s10778_s1 + $0x90] sm:$0xff]  }
   0x9   :  { %7147 = vmatpush3.bf16.msra.mxu1 %v8019_v7  ;;  %7120 = vmatprep.subr.bf16.mxu0 %v8020_v8  ;;  %v8036_v24 = vld [vmem:[%s10778_s1 + $0x48] sm:$0xff]   ;;  %v8040_v28 = vld [vmem:[%s10778_s1 + $0x40] sm:$0xff]   ;;  %v8044_v40 = vld [vmem:[%s10778_s1 + $0x178] sm:$0xff]  }
   0xa   :  { %7148 = vmatprep.subr.bf16.mxu1 %v8021_v9  ;;  %v8037_v25 = vld [vmem:[%s10778_s1 + $0xc8] sm:$0xff]   ;;  %v8041_v29 = vld [vmem:[%s10778_s1 + $0xc0] sm:$0xff]   ;;  %v8045_v41 = vld [vmem:[%s10778_s1 + $0x1f8] sm:$0xff]  }
   0xb   :  { %v8038_v26 = vld [vmem:[%s10778_s1 + $0x8] sm:$0xff]   ;;  %v8042_v30 = vld [vmem:[%s10778_s1] sm:$0xff]   ;;  %v8046_v42 = vld [vmem:[%s10778_s1 + $0x138] sm:$0xff]  }
   0xc   :  { %7121 = vmatpush3.bf16.msra.mxu0 %v8022_v10  ;;  %v8039_v27 = vld [vmem:[%s10778_s1 + $0x88] sm:$0xff]   ;;  %v8043_v31 = vld [vmem:[%s10778_s1 + $0x80] sm:$0xff]   ;;  %v8047_v43 = vld [vmem:[%s10778_s1 + $0x1b8] sm:$0xff]  }
   0xd   :  { %7149 = vmatpush3.bf16.msra.mxu1 %v8023_v11  ;;  %7122 = vmatprep.subr.bf16.mxu0 %v8024_v12  ;;  %v12_v32 = vld [vmem:[%s10779_s0] sm:$0xff]  ;;  %v13_v34 = vld [vmem:[%s10779_s0 + $0x8] sm:$0xff]  ;;  %v8048_v44 = vld [vmem:[%s10778_s1 + $0x170] sm:$0xff]  }
   0xe   :  { %7150 = vmatprep.subr.bf16.mxu1 %v8025_v13  ;;  %v44_v33 = vld [vmem:[%s10779_s0 + $0x100] sm:$0xff]  ;;  %v45_v37 = vld [vmem:[%s10779_s0 + $0x108] sm:$0xff]  ;;  %v8049_v45 = vld [vmem:[%s10778_s1 + $0x1f0] sm:$0xff]  }
   0xf   :  { %v6476_v35 = vcombine.low %v12_v32, %v44_v33  ;;  %v6477_v36 = vcombine.high %v12_v32, %v44_v33  ;;  %v6478_v38 = vcombine.low %v13_v34, %v45_v37  ;;  %v6479_v39 = vcombine.high %v13_v34, %v45_v37  ;;  %v8050_v46 = vld [vmem:[%s10778_s1 + $0x130] sm:$0xff]   ;;  %v8052_v48 = vld [vmem:[%s10778_s1 + $0x168] sm:$0xff]   ;;  %v8056_v52 = vld [vmem:[%s10778_s1 + $0x160] sm:$0xff]  }
  0x10   :  { %7123 = vmatpush3.bf16.msra.mxu0 %v8026_v14  ;;  %v8051_v47 = vld [vmem:[%s10778_s1 + $0x1b0] sm:$0xff]   ;;  %v8053_v49 = vld [vmem:[%s10778_s1 + $0x1e8] sm:$0xff]   ;;  %v8057_v53 = vld [vmem:[%s10778_s1 + $0x1e0] sm:$0xff]  }
  0x11   :  { %7151 = vmatpush3.bf16.msra.mxu1 %v8027_v15  ;;  %7124 = vmatprep.subr.bf16.mxu0 %v8028_v16  ;;  %v8054_v50 = vld [vmem:[%s10778_s1 + $0x128] sm:$0xff]   ;;  %v8058_v54 = vld [vmem:[%s10778_s1 + $0x120] sm:$0xff]   ;;  %v8060_v56 = vld [vmem:[%s10778_s1 + $0x158] sm:$0xff]  }
  0x12   :  { %7152 = vmatprep.subr.bf16.mxu1 %v8029_v17  ;;  %4908 = vmatprep.mubr.bf16.mxu0 %v6477_v36  ;;  %v8055_v51 = vld [vmem:[%s10778_s1 + $0x1a8] sm:$0xff]   ;;  %v8059_v55 = vld [vmem:[%s10778_s1 + $0x1a0] sm:$0xff]   ;;  %v8061_v57 = vld [vmem:[%s10778_s1 + $0x1d8] sm:$0xff]  }
  0x13   :  { %4957 = vmatprep.mubr.bf16.mxu1 %v6479_v39  ;;  %v8062_v58 = vld [vmem:[%s10778_s1 + $0x118] sm:$0xff]   ;;  %v76_v60 = vld [vmem:[%s10779_s0 + $0x200] sm:$0xff]  ;;  %v77_v63 = vld [vmem:[%s10779_s0 + $0x208] sm:$0xff] }
  0x14   :  { %7125 = vmatpush3.bf16.msra.mxu0 %v8030_v18  ;;  %v8063_v59 = vld [vmem:[%s10778_s1 + $0x198] sm:$0xff]   ;;  %v108_v61 = vld [vmem:[%s10779_s0 + $0x300] sm:$0xff]  ;;  %v109_v0 = vld [vmem:[%s10779_s0 + $0x308] sm:$0xff] }
  0x15   :  { %7153 = vmatpush3.bf16.msra.mxu1 %v8031_v19  ;;  %7126 = vmatprep.subr.bf16.mxu0 %v8032_v20  ;;  %v6541_v62 = vcombine.high %v76_v60, %v108_v61  ;;  %v6540_v1 = vcombine.low %v76_v60, %v108_v61  ;;  %v6543_v2 = vcombine.high %v77_v63, %v109_v0  ;;  %v8064_v4 = vld [vmem:[%s10778_s1 + $0x150] sm:$0xff]   ;;  %v8068_v8 = vld [vmem:[%s10778_s1 + $0x148] sm:$0xff]   ;;  %v8072_v12 = vld [vmem:[%s10778_s1 + $0x140] sm:$0xff]  }
  0x16   :  { %7154 = vmatprep.subr.bf16.mxu1 %v8033_v21  ;;  %v6542_v3 = vcombine.low %v77_v63, %v109_v0  ;;  %v8065_v5 = vld [vmem:[%s10778_s1 + $0x1d0] sm:$0xff]   ;;  %v8069_v9 = vld [vmem:[%s10778_s1 + $0x1c8] sm:$0xff]   ;;  %v8073_v13 = vld [vmem:[%s10778_s1 + $0x1c0] sm:$0xff]  }
  0x17   :  { %v8066_v6 = vld [vmem:[%s10778_s1 + $0x110] sm:$0xff]   ;;  %v8070_v10 = vld [vmem:[%s10778_s1 + $0x108] sm:$0xff]   ;;  %v8074_v14 = vld [vmem:[%s10778_s1 + $0x100] sm:$0xff]  }
  0x18   :  { %7127 = vmatpush3.bf16.msra.mxu0 %v8034_v22  ;;  %v8067_v7 = vld [vmem:[%s10778_s1 + $0x190] sm:$0xff]   ;;  %v8071_v11 = vld [vmem:[%s10778_s1 + $0x188] sm:$0xff]   ;;  %v8075_v15 = vld [vmem:[%s10778_s1 + $0x180] sm:$0xff]  }
  0x19   :  { %7155 = vmatpush3.bf16.msra.mxu1 %v8035_v23  ;;  %7128 = vmatprep.subr.bf16.mxu0 %v8036_v24  ;;  %v14_v16 = vld [vmem:[%s10779_s0 + $0x10] sm:$0xff]  ;;  %v15_v18 = vld [vmem:[%s10779_s0 + $0x18] sm:$0xff]  ;;  %v8084_v36 = vld [vmem:[%s10778_s1 + $0x268] sm:$0xff]  }
  0x1a   :  { %7156 = vmatprep.subr.bf16.mxu1 %v8037_v25  ;;  %v46_v17 = vld [vmem:[%s10779_s0 + $0x110] sm:$0xff]  ;;  %v47_v19 = vld [vmem:[%s10779_s0 + $0x118] sm:$0xff]  ;;  %v8085_v37 = vld [vmem:[%s10778_s1 + $0x2e8] sm:$0xff]  }
  0x1b   :  { %v6480_v20 = vcombine.low %v14_v16, %v46_v17  ;;  %v6481_v21 = vcombine.high %v14_v16, %v46_v17  ;;  %v6482_v22 = vcombine.low %v15_v18, %v47_v19  ;;  %v6483_v23 = vcombine.high %v15_v18, %v47_v19  ;;  %v8076_v24 = vld [vmem:[%s10778_s1 + $0x278] sm:$0xff]   ;;  %v78_v32 = vld [vmem:[%s10779_s0 + $0x210] sm:$0xff]  ;;  %v8104_v60 = vld [vmem:[%s10778_s1 + $0x240] sm:$0xff]  }
  0x1c   :  { %7129 = vmatpush3.bf16.msra.mxu0 %v8038_v26  ;;  %v8077_v25 = vld [vmem:[%s10778_s1 + $0x2f8] sm:$0xff]   ;;  %v110_v33 = vld [vmem:[%s10779_s0 + $0x310] sm:$0xff]  ;;  %v8105_v61 = vld [vmem:[%s10778_s1 + $0x2c0] sm:$0xff]  }
  0x1d   :  { %7157 = vmatpush3.bf16.msra.mxu1 %v8039_v27  ;;  %7130 = vmatprep.subr.bf16.mxu0 %v8040_v28  ;;  %v8078_v26 = vld [vmem:[%s10778_s1 + $0x238] sm:$0xff]   ;;  %v8080_v28 = vld [vmem:[%s10778_s1 + $0x270] sm:$0xff]   ;;  %v6545_v34 = vcombine.high %v78_v32, %v110_v33  ;;  %v8107_v63 = vld [vmem:[%s10778_s1 + $0x280] sm:$0xff]  }
  0x1e   :  { %7158 = vmatprep.subr.bf16.mxu1 %v8041_v29  ;;  %v8079_v27 = vld [vmem:[%s10778_s1 + $0x2b8] sm:$0xff]   ;;  %v8081_v29 = vld [vmem:[%s10778_s1 + $0x2f0] sm:$0xff]   ;;  %v16_v0 = vld [vmem:[%s10779_s0 + $0x20] sm:$0xff] }
  0x1f   :  { %v111_v39 = vld [vmem:[%s10779_s0 + $0x318] sm:$0xff]  ;;  %v80_v16 = vld [vmem:[%s10779_s0 + $0x220] sm:$0xff] }
  0x20   :  { %7131 = vmatpush3.bf16.msra.mxu0 %v8042_v30  ;;  %v8082_v30 = vld [vmem:[%s10778_s1 + $0x230] sm:$0xff]   ;;  %v112_v17 = vld [vmem:[%s10779_s0 + $0x320] sm:$0xff] }
  0x21   :  { %7159 = vmatpush3.bf16.msra.mxu1 %v8043_v31  ;;  %7172 = vmatprep.subr.bf16.mxu0 %v8044_v40  ;;  %v8083_v31 = vld [vmem:[%s10778_s1 + $0x2b0] sm:$0xff]   ;;  %v6549_v18 = vcombine.high %v80_v16, %v112_v17  ;;  %v6548_v19 = vcombine.low %v80_v16, %v112_v17  ;;  %v8156_v16 = vld [vmem:[%s10778_s1 + $0x458] sm:$0xff]  }
  0x22   :  { %7200 = vmatprep.subr.bf16.mxu1 %v8045_v41  ;;  %v8086_v41 = vld [vmem:[%s10778_s1 + $0x228] sm:$0xff]   ;;  %v8157_v17 = vld [vmem:[%s10778_s1 + $0x4d8] sm:$0xff]  }
  0x23   :  { %4909 = vmatmul.mubr.bf16.vlgmr.msra.gmra.mxu0 %v6476_v35  ;;  %v6544_v35 = vcombine.low %v78_v32, %v110_v33  ;;  %v8124_v32 = vld [vmem:[%s10778_s1 + $0x358] sm:$0xff]  }
  0x24   :  { %4958 = vmatmul.mubr.bf16.vlgmr.msra.gmra.mxu1 %v6478_v38  ;;  %7173 = vmatpush3.bf16.msra.mxu0 %v8046_v42  ;;  %v79_v38 = vld [vmem:[%s10779_s0 + $0x218] sm:$0xff] }
  0x25   :  { %7201 = vmatpush3.bf16.msra.mxu1 %v8047_v43  ;;  %7174 = vmatprep.subr.bf16.mxu0 %v8048_v44  ;;  %v6547_v40 = vcombine.high %v79_v38, %v111_v39  ;;  %v6546_v42 = vcombine.low %v79_v38, %v111_v39  ;;  %v8087_v43 = vld [vmem:[%s10778_s1 + $0x2a8] sm:$0xff]   ;;  %v8088_v44 = vld [vmem:[%s10778_s1 + $0x260] sm:$0xff]   ;;  %v8125_v33 = vld [vmem:[%s10778_s1 + $0x3d8] sm:$0xff]  }
  0x26   :  { %7202 = vmatprep.subr.bf16.mxu1 %v8049_v45  ;;  %4916 = vmatprep.mubr.bf16.mxu0 %v6541_v62  ;;  %v8089_v45 = vld [vmem:[%s10778_s1 + $0x2e0] sm:$0xff]   ;;  %v8130_v38 = vld [vmem:[%s10778_s1 + $0x310] sm:$0xff]  }
  0x27   :  { %4965 = vmatprep.mubr.bf16.mxu1 %v6543_v2  ;;  %v8106_v62 = vld [vmem:[%s10778_s1 + $0x200] sm:$0xff]   ;;  %v8131_v39 = vld [vmem:[%s10778_s1 + $0x390] sm:$0xff]  }
  0x28   :  { %7175 = vmatpush3.bf16.msra.mxu0 %v8050_v46  ;;  %v8090_v46 = vld [vmem:[%s10778_s1 + $0x220] sm:$0xff]  }
  0x29   :  { %7203 = vmatpush3.bf16.msra.mxu1 %v8051_v47  ;;  %7176 = vmatprep.subr.bf16.mxu0 %v8052_v48  ;;  %v8091_v47 = vld [vmem:[%s10778_s1 + $0x2a0] sm:$0xff]   ;;  %v8092_v48 = vld [vmem:[%s10778_s1 + $0x258] sm:$0xff]  }
  0x2a   :  { %7204 = vmatprep.subr.bf16.mxu1 %v8053_v49  ;;  %v8093_v49 = vld [vmem:[%s10778_s1 + $0x2d8] sm:$0xff]  }
  0x2b   :  { %4917 = vmatmul.mubr.bf16.gmra.mxu0 %v6540_v1  ;;  %v48_v1 = vld [vmem:[%s10779_s0 + $0x120] sm:$0xff] }
  0x2c   :  { %7177 = vmatpush3.bf16.msra.mxu0 %v8054_v50  ;;  %4966 = vmatmul.mubr.bf16.gmra.mxu1 %v6542_v3  ;;  %v8094_v50 = vld [vmem:[%s10778_s1 + $0x218] sm:$0xff]   ;;  %v6484_v2 = vcombine.low %v16_v0, %v48_v1  ;;  %v6485_v3 = vcombine.high %v16_v0, %v48_v1  ;;  %v82_v0 = vld [vmem:[%s10779_s0 + $0x230] sm:$0xff] }
  0x2d   :  { %7205 = vmatpush3.bf16.msra.mxu1 %v8055_v51  ;;  %7178 = vmatprep.subr.bf16.mxu0 %v8056_v52  ;;  %v8095_v51 = vld [vmem:[%s10778_s1 + $0x298] sm:$0xff]   ;;  %v8096_v52 = vld [vmem:[%s10778_s1 + $0x250] sm:$0xff]  }
  0x2e   :  { %7206 = vmatprep.subr.bf16.mxu1 %v8057_v53  ;;  %5006 = vmatprep.mubr.bf16.mxu0 %v6481_v21  ;;  %v8097_v53 = vld [vmem:[%s10778_s1 + $0x2d0] sm:$0xff]   ;;  %v8117_v21 = vld [vmem:[%s10778_s1 + $0x3e8] sm:$0xff]  }
  0x2f   :  { %5055 = vmatprep.mubr.bf16.mxu1 %v6483_v23  ;;  %v113_v23 = vld [vmem:[%s10779_s0 + $0x328] sm:$0xff]  ;;  %v114_v1 = vld [vmem:[%s10779_s0 + $0x330] sm:$0xff] }
  0x30   :  { %7179 = vmatpush3.bf16.msra.mxu0 %v8058_v54  ;;  %v8098_v54 = vld [vmem:[%s10778_s1 + $0x210] sm:$0xff]  }
  0x31   :  { %7207 = vmatpush3.bf16.msra.mxu1 %v8059_v55  ;;  %7180 = vmatprep.subr.bf16.mxu0 %v8060_v56  ;;  %v8099_v55 = vld [vmem:[%s10778_s1 + $0x290] sm:$0xff]   ;;  %v8100_v56 = vld [vmem:[%s10778_s1 + $0x248] sm:$0xff]  }
  0x32   :  { %7208 = vmatprep.subr.bf16.mxu1 %v8061_v57  ;;  %v8101_v57 = vld [vmem:[%s10778_s1 + $0x2c8] sm:$0xff]  }
  0x34   :  { %7181 = vmatpush3.bf16.msra.mxu0 %v8062_v58  ;;  %v8102_v58 = vld [vmem:[%s10778_s1 + $0x208] sm:$0xff]  }
  0x35   :  { %7209 = vmatpush3.bf16.msra.mxu1 %v8063_v59  ;;  %7182 = vmatprep.subr.bf16.mxu0 %v8064_v4  ;;  %v8103_v59 = vld [vmem:[%s10778_s1 + $0x288] sm:$0xff]  }
  0x36   :  { %7210 = vmatprep.subr.bf16.mxu1 %v8065_v5  ;;  %v17_v4 = vld [vmem:[%s10779_s0 + $0x28] sm:$0xff] }
  0x37   :  { %v49_v5 = vld [vmem:[%s10779_s0 + $0x128] sm:$0xff] }
  0x38   :  { %7183 = vmatpush3.bf16.msra.mxu0 %v8066_v6  ;;  %v6486_v6 = vcombine.low %v17_v4, %v49_v5 }
  0x39   :  { %7211 = vmatpush3.bf16.msra.mxu1 %v8067_v7  ;;  %7184 = vmatprep.subr.bf16.mxu0 %v8068_v8  ;;  %v6487_v7 = vcombine.high %v17_v4, %v49_v5  ;;  %v8108_v8 = vld [vmem:[%s10778_s1 + $0x378] sm:$0xff]   ;;  %v8148_v4 = vld [vmem:[%s10778_s1 + $0x468] sm:$0xff]  }
  0x3a   :  { %7212 = vmatprep.subr.bf16.mxu1 %v8069_v9  ;;  %v8109_v9 = vld [vmem:[%s10778_s1 + $0x3f8] sm:$0xff]   ;;  %v8149_v5 = vld [vmem:[%s10778_s1 + $0x4e8] sm:$0xff]  }
  0x3c   :  { %7185 = vmatpush3.bf16.msra.mxu0 %v8070_v10  ;;  %v8110_v10 = vld [vmem:[%s10778_s1 + $0x338] sm:$0xff]  }
  0x3d   :  { %7213 = vmatpush3.bf16.msra.mxu1 %v8071_v11  ;;  %7186 = vmatprep.subr.bf16.mxu0 %v8072_v12  ;;  %v8111_v11 = vld [vmem:[%s10778_s1 + $0x3b8] sm:$0xff]   ;;  %v8112_v12 = vld [vmem:[%s10778_s1 + $0x370] sm:$0xff]  }
  0x3e   :  { %7214 = vmatprep.subr.bf16.mxu1 %v8073_v13  ;;  %v8113_v13 = vld [vmem:[%s10778_s1 + $0x3f0] sm:$0xff]  }
  0x40   :  { %7187 = vmatpush3.bf16.msra.mxu0 %v8074_v14  ;;  %v8114_v14 = vld [vmem:[%s10778_s1 + $0x330] sm:$0xff]  }
  0x41   :  { %7215 = vmatpush3.bf16.msra.mxu1 %v8075_v15  ;;  %7228 = vmatprep.subr.bf16.mxu0 %v8076_v24  ;;  %v8115_v15 = vld [vmem:[%s10778_s1 + $0x3b0] sm:$0xff]  }
  0x42   :  { %7256 = vmatprep.subr.bf16.mxu1 %v8077_v25  ;;  %v8118_v25 = vld [vmem:[%s10778_s1 + $0x328] sm:$0xff]  }
  0x43   :  { %5007 = vmatmul.mubr.bf16.vlgmr.msra.gmra.mxu0 %v6480_v20  ;;  %v8116_v20 = vld [vmem:[%s10778_s1 + $0x368] sm:$0xff]  }
  0x44   :  { %5056 = vmatmul.mubr.bf16.vlgmr.msra.gmra.mxu1 %v6482_v22  ;;  %7229 = vmatpush3.bf16.msra.mxu0 %v8078_v26  ;;  %v81_v22 = vld [vmem:[%s10779_s0 + $0x228] sm:$0xff] }
  0x45   :  { %7257 = vmatpush3.bf16.msra.mxu1 %v8079_v27  ;;  %7230 = vmatprep.subr.bf16.mxu0 %v8080_v28  ;;  %v6551_v24 = vcombine.high %v81_v22, %v113_v23  ;;  %v6550_v26 = vcombine.low %v81_v22, %v113_v23  ;;  %v8119_v27 = vld [vmem:[%s10778_s1 + $0x3a8] sm:$0xff]   ;;  %v8120_v28 = vld [vmem:[%s10778_s1 + $0x360] sm:$0xff]   ;;  %v8162_v22 = vld [vmem:[%s10778_s1 + $0x410] sm:$0xff]  }
  0x46   :  { %7258 = vmatprep.subr.bf16.mxu1 %v8081_v29  ;;  %5014 = vmatprep.mubr.bf16.mxu0 %v6545_v34  ;;  %v8121_v29 = vld [vmem:[%s10778_s1 + $0x3e0] sm:$0xff]   ;;  %v8126_v34 = vld [vmem:[%s10778_s1 + $0x318] sm:$0xff]   ;;  %v8163_v23 = vld [vmem:[%s10778_s1 + $0x490] sm:$0xff]  }
  0x47   :  { %5063 = vmatprep.mubr.bf16.mxu1 %v6547_v40  ;;  %v8132_v40 = vld [vmem:[%s10778_s1 + $0x348] sm:$0xff]  }
  0x48   :  { %7231 = vmatpush3.bf16.msra.mxu0 %v8082_v30  ;;  %v8122_v30 = vld [vmem:[%s10778_s1 + $0x320] sm:$0xff]  }
  0x49   :  { %7259 = vmatpush3.bf16.msra.mxu1 %v8083_v31  ;;  %7232 = vmatprep.subr.bf16.mxu0 %v8084_v36  ;;  %v8123_v31 = vld [vmem:[%s10778_s1 + $0x3a0] sm:$0xff]   ;;  %v8128_v36 = vld [vmem:[%s10778_s1 + $0x350] sm:$0xff]  }
  0x4a   :  { %7260 = vmatprep.subr.bf16.mxu1 %v8085_v37  ;;  %v8129_v37 = vld [vmem:[%s10778_s1 + $0x3d0] sm:$0xff]  }
  0x4b   :  { %5015 = vmatmul.mubr.bf16.gmra.mxu0 %v6544_v35  ;;  %v8127_v35 = vld [vmem:[%s10778_s1 + $0x398] sm:$0xff]  }
  0x4c   :  { %7233 = vmatpush3.bf16.msra.mxu0 %v8086_v41  ;;  %5064 = vmatmul.mubr.bf16.gmra.mxu1 %v6546_v42  ;;  %v8133_v41 = vld [vmem:[%s10778_s1 + $0x3c8] sm:$0xff]  }
  0x4d   :  { %7261 = vmatpush3.bf16.msra.mxu1 %v8087_v43  ;;  %7234 = vmatprep.subr.bf16.mxu0 %v8088_v44  ;;  %v8134_v42 = vld [vmem:[%s10778_s1 + $0x308] sm:$0xff]   ;;  %v8136_v44 = vld [vmem:[%s10778_s1 + $0x340] sm:$0xff]  }
  0x4e   :  { %7262 = vmatprep.subr.bf16.mxu1 %v8089_v45  ;;  %5104 = vmatprep.mubr.bf16.mxu0 %v6485_v3  ;;  %v8135_v43 = vld [vmem:[%s10778_s1 + $0x388] sm:$0xff]   ;;  %v8137_v45 = vld [vmem:[%s10778_s1 + $0x3c0] sm:$0xff]   ;;  %v6552_v3 = vcombine.low %v82_v0, %v114_v1 }
  0x4f   :  { %5153 = vmatprep.mubr.bf16.mxu1 %v6487_v7  ;;  %v115_v7 = vld [vmem:[%s10779_s0 + $0x338] sm:$0xff] }
  0x50   :  { %7235 = vmatpush3.bf16.msra.mxu0 %v8090_v46  ;;  %v8138_v46 = vld [vmem:[%s10778_s1 + $0x300] sm:$0xff]  }
  0x51   :  { %7263 = vmatpush3.bf16.msra.mxu1 %v8091_v47  ;;  %7236 = vmatprep.subr.bf16.mxu0 %v8092_v48  ;;  %v8139_v47 = vld [vmem:[%s10778_s1 + $0x380] sm:$0xff]   ;;  %v18_v48 = vld [vmem:[%s10779_s0 + $0x30] sm:$0xff] }
  0x52   :  { %7264 = vmatprep.subr.bf16.mxu1 %v8093_v49  ;;  %v50_v49 = vld [vmem:[%s10779_s0 + $0x130] sm:$0xff] }
  0x54   :  { %7237 = vmatpush3.bf16.msra.mxu0 %v8094_v50  ;;  %v19_v50 = vld [vmem:[%s10779_s0 + $0x38] sm:$0xff] }
  0x55   :  { %7265 = vmatpush3.bf16.msra.mxu1 %v8095_v51  ;;  %7238 = vmatprep.subr.bf16.mxu0 %v8096_v52  ;;  %v6488_v51 = vcombine.low %v18_v48, %v50_v49  ;;  %v6489_v52 = vcombine.high %v18_v48, %v50_v49  ;;  %v84_v48 = vld [vmem:[%s10779_s0 + $0x240] sm:$0xff] }
  0x56   :  { %7266 = vmatprep.subr.bf16.mxu1 %v8097_v53  ;;  %v51_v53 = vld [vmem:[%s10779_s0 + $0x138] sm:$0xff]  ;;  %v116_v49 = vld [vmem:[%s10779_s0 + $0x340] sm:$0xff] }
  0x58   :  { %7239 = vmatpush3.bf16.msra.mxu0 %v8098_v54  ;;  %v6490_v54 = vcombine.low %v19_v50, %v51_v53 }
  0x59   :  { %7267 = vmatpush3.bf16.msra.mxu1 %v8099_v55  ;;  %7240 = vmatprep.subr.bf16.mxu0 %v8100_v56  ;;  %v6491_v55 = vcombine.high %v19_v50, %v51_v53  ;;  %v8140_v56 = vld [vmem:[%s10778_s1 + $0x478] sm:$0xff]   ;;  %v6557_v50 = vcombine.high %v84_v48, %v116_v49  ;;  %v8181_v53 = vld [vmem:[%s10778_s1 + $0x5e8] sm:$0xff]  }
  0x5a   :  { %7268 = vmatprep.subr.bf16.mxu1 %v8101_v57  ;;  %v8141_v57 = vld [vmem:[%s10778_s1 + $0x4f8] sm:$0xff]  }
  0x5c   :  { %7241 = vmatpush3.bf16.msra.mxu0 %v8102_v58  ;;  %v8142_v58 = vld [vmem:[%s10778_s1 + $0x438] sm:$0xff]  }
  0x5d   :  { %7269 = vmatpush3.bf16.msra.mxu1 %v8103_v59  ;;  %7242 = vmatprep.subr.bf16.mxu0 %v8104_v60  ;;  %v8143_v59 = vld [vmem:[%s10778_s1 + $0x4b8] sm:$0xff]   ;;  %v8144_v60 = vld [vmem:[%s10778_s1 + $0x470] sm:$0xff]  }
  0x5e   :  { %7270 = vmatprep.subr.bf16.mxu1 %v8105_v61  ;;  %v8145_v61 = vld [vmem:[%s10778_s1 + $0x4f0] sm:$0xff]  }
  0x60   :  { %7243 = vmatpush3.bf16.msra.mxu0 %v8106_v62  ;;  %v8146_v62 = vld [vmem:[%s10778_s1 + $0x430] sm:$0xff]  }
  0x61   :  { %7271 = vmatpush3.bf16.msra.mxu1 %v8107_v63  ;;  %7284 = vmatprep.subr.bf16.mxu0 %v8108_v8  ;;  %v8147_v63 = vld [vmem:[%s10778_s1 + $0x4b0] sm:$0xff]  }
  0x62   :  { %7312 = vmatprep.subr.bf16.mxu1 %v8109_v9  ;;  %v8150_v9 = vld [vmem:[%s10778_s1 + $0x428] sm:$0xff]  }
  0x63   :  { %5105 = vmatmul.mubr.bf16.vlgmr.msra.gmra.mxu0 %v6484_v2  ;;  %v6553_v2 = vcombine.high %v82_v0, %v114_v1  ;;  %v8188_v0 = vld [vmem:[%s10778_s1 + $0x558] sm:$0xff]  }
  0x64   :  { %5154 = vmatmul.mubr.bf16.vlgmr.msra.gmra.mxu1 %v6486_v6  ;;  %7285 = vmatpush3.bf16.msra.mxu0 %v8110_v10  ;;  %v83_v6 = vld [vmem:[%s10779_s0 + $0x238] sm:$0xff] }
  0x65   :  { %7313 = vmatpush3.bf16.msra.mxu1 %v8111_v11  ;;  %7286 = vmatprep.subr.bf16.mxu0 %v8112_v12  ;;  %v6555_v8 = vcombine.high %v83_v6, %v115_v7  ;;  %v6554_v10 = vcombine.low %v83_v6, %v115_v7  ;;  %v8151_v11 = vld [vmem:[%s10778_s1 + $0x4a8] sm:$0xff]   ;;  %v8152_v12 = vld [vmem:[%s10778_s1 + $0x460] sm:$0xff]   ;;  %v8189_v1 = vld [vmem:[%s10778_s1 + $0x5d8] sm:$0xff]  }
  0x66   :  { %7314 = vmatprep.subr.bf16.mxu1 %v8113_v13  ;;  %5112 = vmatprep.mubr.bf16.mxu0 %v6549_v18  ;;  %v8153_v13 = vld [vmem:[%s10778_s1 + $0x4e0] sm:$0xff]   ;;  %v8158_v18 = vld [vmem:[%s10778_s1 + $0x418] sm:$0xff]   ;;  %v8194_v6 = vld [vmem:[%s10778_s1 + $0x510] sm:$0xff]  }
  0x67   :  { %5161 = vmatprep.mubr.bf16.mxu1 %v6551_v24  ;;  %v8164_v24 = vld [vmem:[%s10778_s1 + $0x448] sm:$0xff]   ;;  %v8195_v7 = vld [vmem:[%s10778_s1 + $0x590] sm:$0xff]  }
  0x68   :  { %7287 = vmatpush3.bf16.msra.mxu0 %v8114_v14  ;;  %v8154_v14 = vld [vmem:[%s10778_s1 + $0x420] sm:$0xff]  }
  0x69   :  { %7315 = vmatpush3.bf16.msra.mxu1 %v8115_v15  ;;  %7288 = vmatprep.subr.bf16.mxu0 %v8116_v20  ;;  %v8155_v15 = vld [vmem:[%s10778_s1 + $0x4a0] sm:$0xff]   ;;  %v8160_v20 = vld [vmem:[%s10778_s1 + $0x450] sm:$0xff]  }
  0x6a   :  { %7316 = vmatprep.subr.bf16.mxu1 %v8117_v21  ;;  %v8161_v21 = vld [vmem:[%s10778_s1 + $0x4d0] sm:$0xff]  }
  0x6b   :  { %5113 = vmatmul.mubr.bf16.gmra.mxu0 %v6548_v19  ;;  %v8159_v19 = vld [vmem:[%s10778_s1 + $0x498] sm:$0xff]  }
  0x6c   :  { %7289 = vmatpush3.bf16.msra.mxu0 %v8118_v25  ;;  %5162 = vmatmul.mubr.bf16.gmra.mxu1 %v6550_v26  ;;  %v8165_v25 = vld [vmem:[%s10778_s1 + $0x4c8] sm:$0xff]  }
  0x6d   :  { %7317 = vmatpush3.bf16.msra.mxu1 %v8119_v27  ;;  %7290 = vmatprep.subr.bf16.mxu0 %v8120_v28  ;;  %v8166_v26 = vld [vmem:[%s10778_s1 + $0x408] sm:$0xff]   ;;  %v8168_v28 = vld [vmem:[%s10778_s1 + $0x440] sm:$0xff]  }
  0x6e   :  { %7318 = vmatprep.subr.bf16.mxu1 %v8121_v29  ;;  %5202 = vmatprep.mubr.bf16.mxu0 %v6489_v52  ;;  %v8167_v27 = vld [vmem:[%s10778_s1 + $0x488] sm:$0xff]   ;;  %v8169_v29 = vld [vmem:[%s10778_s1 + $0x4c0] sm:$0xff]  }
  0x6f   :  { %5251 = vmatprep.mubr.bf16.mxu1 %v6491_v55  ;;  %v8180_v52 = vld [vmem:[%s10778_s1 + $0x568] sm:$0xff]  }
  0x70   :  { %7291 = vmatpush3.bf16.msra.mxu0 %v8122_v30  ;;  %v8170_v30 = vld [vmem:[%s10778_s1 + $0x400] sm:$0xff]   ;;  %v117_v55 = vld [vmem:[%s10779_s0 + $0x348] sm:$0xff] }
  0x71   :  { %7319 = vmatpush3.bf16.msra.mxu1 %v8123_v31  ;;  %7292 = vmatprep.subr.bf16.mxu0 %v8124_v32  ;;  %v8171_v31 = vld [vmem:[%s10778_s1 + $0x480] sm:$0xff]  }
  0x72   :  { %7320 = vmatprep.subr.bf16.mxu1 %v8125_v33  ;;  %v20_v32 = vld [vmem:[%s10779_s0 + $0x40] sm:$0xff] }
  0x73   :  { %v52_v33 = vld [vmem:[%s10779_s0 + $0x140] sm:$0xff] }
  0x74   :  { %7293 = vmatpush3.bf16.msra.mxu0 %v8126_v34  ;;  %v21_v34 = vld [vmem:[%s10779_s0 + $0x48] sm:$0xff] }
  0x75   :  { %7321 = vmatpush3.bf16.msra.mxu1 %v8127_v35  ;;  %7294 = vmatprep.subr.bf16.mxu0 %v8128_v36  ;;  %v53_v35 = vld [vmem:[%s10779_s0 + $0x148] sm:$0xff]  ;;  %v6492_v36 = vcombine.low %v20_v32, %v52_v33 }
  0x76   :  { %7322 = vmatprep.subr.bf16.mxu1 %v8129_v37  ;;  %v6493_v37 = vcombine.high %v20_v32, %v52_v33  ;;  %v86_v32 = vld [vmem:[%s10779_s0 + $0x250] sm:$0xff] }
  0x77   :  { %v118_v33 = vld [vmem:[%s10779_s0 + $0x350] sm:$0xff] }
  0x78   :  { %7295 = vmatpush3.bf16.msra.mxu0 %v8130_v38  ;;  %v6494_v38 = vcombine.low %v21_v34, %v53_v35 }
  0x79   :  { %7323 = vmatpush3.bf16.msra.mxu1 %v8131_v39  ;;  %7296 = vmatprep.subr.bf16.mxu0 %v8132_v40  ;;  %v6495_v39 = vcombine.high %v21_v34, %v53_v35  ;;  %v8172_v40 = vld [vmem:[%s10778_s1 + $0x578] sm:$0xff]   ;;  %v6561_v34 = vcombine.high %v86_v32, %v118_v33  ;;  %v6560_v35 = vcombine.low %v86_v32, %v118_v33 }
  0x7a   :  { %7324 = vmatprep.subr.bf16.mxu1 %v8133_v41  ;;  %v8173_v41 = vld [vmem:[%s10778_s1 + $0x5f8] sm:$0xff]  }
  0x7c   :  { %7297 = vmatpush3.bf16.msra.mxu0 %v8134_v42  ;;  %v8174_v42 = vld [vmem:[%s10778_s1 + $0x538] sm:$0xff]  }
  0x7d   :  { %7325 = vmatpush3.bf16.msra.mxu1 %v8135_v43  ;;  %7298 = vmatprep.subr.bf16.mxu0 %v8136_v44  ;;  %v8175_v43 = vld [vmem:[%s10778_s1 + $0x5b8] sm:$0xff]   ;;  %v8176_v44 = vld [vmem:[%s10778_s1 + $0x570] sm:$0xff]  }
  0x7e   :  { %7326 = vmatprep.subr.bf16.mxu1 %v8137_v45  ;;  %v8177_v45 = vld [vmem:[%s10778_s1 + $0x5f0] sm:$0xff]  }
  0x80   :  { %7299 = vmatpush3.bf16.msra.mxu0 %v8138_v46  ;;  %v8178_v46 = vld [vmem:[%s10778_s1 + $0x530] sm:$0xff]  }
  0x81   :  { %7327 = vmatpush3.bf16.msra.mxu1 %v8139_v47  ;;  %7340 = vmatprep.subr.bf16.mxu0 %v8140_v56  ;;  %v8179_v47 = vld [vmem:[%s10778_s1 + $0x5b0] sm:$0xff]  }
  0x82   :  { %7368 = vmatprep.subr.bf16.mxu1 %v8141_v57  ;;  %v8182_v57 = vld [vmem:[%s10778_s1 + $0x528] sm:$0xff]  }
  0x83   :  { %5203 = vmatmul.mubr.bf16.vlgmr.msra.gmra.mxu0 %v6488_v51  ;;  %v6556_v51 = vcombine.low %v84_v48, %v116_v49  ;;  %v8220_v48 = vld [vmem:[%s10778_s1 + $0x658] sm:$0xff]  }
  0x84   :  { %5252 = vmatmul.mubr.bf16.vlgmr.msra.gmra.mxu1 %v6490_v54  ;;  %7341 = vmatpush3.bf16.msra.mxu0 %v8142_v58  ;;  %v85_v54 = vld [vmem:[%s10779_s0 + $0x248] sm:$0xff]  ;;  %v8221_v49 = vld [vmem:[%s10778_s1 + $0x6d8] sm:$0xff]  }
  0x85   :  { %7369 = vmatpush3.bf16.msra.mxu1 %v8143_v59  ;;  %7342 = vmatprep.subr.bf16.mxu0 %v8144_v60  ;;  %v6559_v56 = vcombine.high %v85_v54, %v117_v55  ;;  %v6558_v58 = vcombine.low %v85_v54, %v117_v55  ;;  %v8183_v59 = vld [vmem:[%s10778_s1 + $0x5a8] sm:$0xff]   ;;  %v8184_v60 = vld [vmem:[%s10778_s1 + $0x560] sm:$0xff]   ;;  %v8225_v54 = vld [vmem:[%s10778_s1 + $0x6d0] sm:$0xff]  }
  0x86   :  { %7370 = vmatprep.subr.bf16.mxu1 %v8145_v61  ;;  %5210 = vmatprep.mubr.bf16.mxu0 %v6553_v2  ;;  %v8185_v61 = vld [vmem:[%s10778_s1 + $0x5e0] sm:$0xff]   ;;  %v8190_v2 = vld [vmem:[%s10778_s1 + $0x518] sm:$0xff]  }
  0x87   :  { %5259 = vmatprep.mubr.bf16.mxu1 %v6555_v8  ;;  %v8196_v8 = vld [vmem:[%s10778_s1 + $0x548] sm:$0xff]  }
  0x88   :  { %7343 = vmatpush3.bf16.msra.mxu0 %v8146_v62  ;;  %v8186_v62 = vld [vmem:[%s10778_s1 + $0x520] sm:$0xff]  }
  0x89   :  { %7371 = vmatpush3.bf16.msra.mxu1 %v8147_v63  ;;  %7344 = vmatprep.subr.bf16.mxu0 %v8148_v4  ;;  %v8187_v63 = vld [vmem:[%s10778_s1 + $0x5a0] sm:$0xff]   ;;  %v8192_v4 = vld [vmem:[%s10778_s1 + $0x550] sm:$0xff]  }
  0x8a   :  { %7372 = vmatprep.subr.bf16.mxu1 %v8149_v5  ;;  %v8193_v5 = vld [vmem:[%s10778_s1 + $0x5d0] sm:$0xff]  }
  0x8b   :  { %5211 = vmatmul.mubr.bf16.gmra.mxu0 %v6552_v3  ;;  %v8191_v3 = vld [vmem:[%s10778_s1 + $0x598] sm:$0xff]  }
  0x8c   :  { %7345 = vmatpush3.bf16.msra.mxu0 %v8150_v9  ;;  %5260 = vmatmul.mubr.bf16.gmra.mxu1 %v6554_v10  ;;  %v8197_v9 = vld [vmem:[%s10778_s1 + $0x5c8] sm:$0xff]  }
  0x8d   :  { %7373 = vmatpush3.bf16.msra.mxu1 %v8151_v11  ;;  %7346 = vmatprep.subr.bf16.mxu0 %v8152_v12  ;;  %v8198_v10 = vld [vmem:[%s10778_s1 + $0x508] sm:$0xff]   ;;  %v8200_v12 = vld [vmem:[%s10778_s1 + $0x540] sm:$0xff]  }
  0x8e   :  { %7374 = vmatprep.subr.bf16.mxu1 %v8153_v13  ;;  %5300 = vmatprep.mubr.bf16.mxu0 %v6493_v37  ;;  %v8199_v11 = vld [vmem:[%s10778_s1 + $0x588] sm:$0xff]   ;;  %v8201_v13 = vld [vmem:[%s10778_s1 + $0x5c0] sm:$0xff]  }
  0x8f   :  { %5349 = vmatprep.mubr.bf16.mxu1 %v6495_v39  ;;  %v8213_v37 = vld [vmem:[%s10778_s1 + $0x6e8] sm:$0xff]   ;;  %v119_v39 = vld [vmem:[%s10779_s0 + $0x358] sm:$0xff] }
  0x90   :  { %7347 = vmatpush3.bf16.msra.mxu0 %v8154_v14  ;;  %v8202_v14 = vld [vmem:[%s10778_s1 + $0x500] sm:$0xff]  }
  0x91   :  { %7375 = vmatpush3.bf16.msra.mxu1 %v8155_v15  ;;  %7348 = vmatprep.subr.bf16.mxu0 %v8156_v16  ;;  %v8203_v15 = vld [vmem:[%s10778_s1 + $0x580] sm:$0xff]   ;;  %v22_v16 = vld [vmem:[%s10779_s0 + $0x50] sm:$0xff] }
  0x92   :  { %7376 = vmatprep.subr.bf16.mxu1 %v8157_v17  ;;  %v54_v17 = vld [vmem:[%s10779_s0 + $0x150] sm:$0xff] }
  0x94   :  { %7349 = vmatpush3.bf16.msra.mxu0 %v8158_v18  ;;  %v6496_v18 = vcombine.low %v22_v16, %v54_v17 }
  0x95   :  { %7377 = vmatpush3.bf16.msra.mxu1 %v8159_v19  ;;  %7350 = vmatprep.subr.bf16.mxu0 %v8160_v20  ;;  %v6497_v19 = vcombine.high %v22_v16, %v54_v17  ;;  %v23_v20 = vld [vmem:[%s10779_s0 + $0x58] sm:$0xff]  ;;  %v25_v16 = vld [vmem:[%s10779_s0 + $0x68] sm:$0xff] }
  0x96   :  { %7378 = vmatprep.subr.bf16.mxu1 %v8161_v21  ;;  %v55_v21 = vld [vmem:[%s10779_s0 + $0x158] sm:$0xff] }
  0x98   :  { %7351 = vmatpush3.bf16.msra.mxu0 %v8162_v22  ;;  %v6498_v22 = vcombine.low %v23_v20, %v55_v21 }
  0x99   :  { %7379 = vmatpush3.bf16.msra.mxu1 %v8163_v23  ;;  %7352 = vmatprep.subr.bf16.mxu0 %v8164_v24  ;;  %v6499_v23 = vcombine.high %v23_v20, %v55_v21  ;;  %v8204_v24 = vld [vmem:[%s10778_s1 + $0x678] sm:$0xff]  }
  0x9a   :  { %7380 = vmatprep.subr.bf16.mxu1 %v8165_v25  ;;  %v8205_v25 = vld [vmem:[%s10778_s1 + $0x6f8] sm:$0xff]  }
  0x9c   :  { %7353 = vmatpush3.bf16.msra.mxu0 %v8166_v26  ;;  %v8206_v26 = vld [vmem:[%s10778_s1 + $0x638] sm:$0xff]  }
  0x9d   :  { %7381 = vmatpush3.bf16.msra.mxu1 %v8167_v27  ;;  %7354 = vmatprep.subr.bf16.mxu0 %v8168_v28  ;;  %v8207_v27 = vld [vmem:[%s10778_s1 + $0x6b8] sm:$0xff]   ;;  %v8208_v28 = vld [vmem:[%s10778_s1 + $0x670] sm:$0xff]  }
  0x9e   :  { %7382 = vmatprep.subr.bf16.mxu1 %v8169_v29  ;;  %v8209_v29 = vld [vmem:[%s10778_s1 + $0x6f0] sm:$0xff]  }
  0xa0   :  { %7355 = vmatpush3.bf16.msra.mxu0 %v8170_v30  ;;  %v8210_v30 = vld [vmem:[%s10778_s1 + $0x630] sm:$0xff]  }
  0xa1   :  { %7383 = vmatpush3.bf16.msra.mxu1 %v8171_v31  ;;  %7396 = vmatprep.subr.bf16.mxu0 %v8172_v40  ;;  %v8211_v31 = vld [vmem:[%s10778_s1 + $0x6b0] sm:$0xff]  }
  0xa2   :  { %7424 = vmatprep.subr.bf16.mxu1 %v8173_v41  ;;  %v8214_v41 = vld [vmem:[%s10778_s1 + $0x628] sm:$0xff]  }
  0xa3   :  { %5301 = vmatmul.mubr.bf16.vlgmr.msra.gmra.mxu0 %v6492_v36  ;;  %v8212_v36 = vld [vmem:[%s10778_s1 + $0x668] sm:$0xff]  }
  0xa4   :  { %5350 = vmatmul.mubr.bf16.vlgmr.msra.gmra.mxu1 %v6494_v38  ;;  %7397 = vmatpush3.bf16.msra.mxu0 %v8174_v42  ;;  %v87_v38 = vld [vmem:[%s10779_s0 + $0x258] sm:$0xff] }
  0xa5   :  { %7425 = vmatpush3.bf16.msra.mxu1 %v8175_v43  ;;  %7398 = vmatprep.subr.bf16.mxu0 %v8176_v44  ;;  %v6563_v40 = vcombine.high %v87_v38, %v119_v39  ;;  %v6562_v42 = vcombine.low %v87_v38, %v119_v39  ;;  %v8215_v43 = vld [vmem:[%s10778_s1 + $0x6a8] sm:$0xff]   ;;  %v8216_v44 = vld [vmem:[%s10778_s1 + $0x660] sm:$0xff]  }
  0xa6   :  { %7426 = vmatprep.subr.bf16.mxu1 %v8177_v45  ;;  %5308 = vmatprep.mubr.bf16.mxu0 %v6557_v50  ;;  %v8217_v45 = vld [vmem:[%s10778_s1 + $0x6e0] sm:$0xff]   ;;  %v8222_v50 = vld [vmem:[%s10778_s1 + $0x618] sm:$0xff]   ;;  %v89_v39 = vld [vmem:[%s10779_s0 + $0x268] sm:$0xff] }
  0xa7   :  { %5357 = vmatprep.mubr.bf16.mxu1 %v6559_v56  ;;  %v8226_v56 = vld [vmem:[%s10778_s1 + $0x610] sm:$0xff]  }
  0xa8   :  { %7399 = vmatpush3.bf16.msra.mxu0 %v8178_v46  ;;  %v8218_v46 = vld [vmem:[%s10778_s1 + $0x620] sm:$0xff]  }
  0xa9   :  { %7427 = vmatpush3.bf16.msra.mxu1 %v8179_v47  ;;  %7400 = vmatprep.subr.bf16.mxu0 %v8180_v52  ;;  %v8219_v47 = vld [vmem:[%s10778_s1 + $0x6a0] sm:$0xff]   ;;  %v8224_v52 = vld [vmem:[%s10778_s1 + $0x650] sm:$0xff]  }
  0xaa   :  { %7428 = vmatprep.subr.bf16.mxu1 %v8181_v53 }
  0xab   :  { %5309 = vmatmul.mubr.bf16.gmra.mxu0 %v6556_v51  ;;  %v8223_v51 = vld [vmem:[%s10778_s1 + $0x698] sm:$0xff]  }
  0xac   :  { %7401 = vmatpush3.bf16.msra.mxu0 %v8182_v57  ;;  %5358 = vmatmul.mubr.bf16.gmra.mxu1 %v6558_v58  ;;  %v8227_v58 = vld [vmem:[%s10778_s1 + $0x690] sm:$0xff]  }
  0xad   :  { %7429 = vmatpush3.bf16.msra.mxu1 %v8183_v59  ;;  %7402 = vmatprep.subr.bf16.mxu0 %v8184_v60 }
  0xae   :  { %7430 = vmatprep.subr.bf16.mxu1 %v8185_v61  ;;  %5398 = vmatprep.mubr.bf16.mxu0 %v6497_v19  ;;  %v8228_v61 = vld [vmem:[%s10778_s1 + $0x648] sm:$0xff]  }
  0xaf   :  { %5447 = vmatprep.mubr.bf16.mxu1 %v6499_v23  ;;  %v57_v19 = vld [vmem:[%s10779_s0 + $0x168] sm:$0xff]  ;;  %v8237_v23 = vld [vmem:[%s10778_s1 + $0x7f8] sm:$0xff]  }
  0xb0   :  { %7403 = vmatpush3.bf16.msra.mxu0 %v8186_v62  ;;  %v6502_v20 = vcombine.low %v25_v16, %v57_v19  ;;  %v6503_v21 = vcombine.high %v25_v16, %v57_v19 }
  0xb1   :  { %7431 = vmatpush3.bf16.msra.mxu1 %v8187_v63  ;;  %7404 = vmatprep.subr.bf16.mxu0 %v8188_v0  ;;  %v8229_v0 = vld [vmem:[%s10778_s1 + $0x6c8] sm:$0xff]  }
  0xb2   :  { %7432 = vmatprep.subr.bf16.mxu1 %v8189_v1 }
  0xb4   :  { %7405 = vmatpush3.bf16.msra.mxu0 %v8190_v2  ;;  %v8230_v2 = vld [vmem:[%s10778_s1 + $0x608] sm:$0xff]  }
  0xb5   :  { %7433 = vmatpush3.bf16.msra.mxu1 %v8191_v3  ;;  %7406 = vmatprep.subr.bf16.mxu0 %v8192_v4 }
  0xb6   :  { %7434 = vmatprep.subr.bf16.mxu1 %v8193_v5  ;;  %v8231_v5 = vld [vmem:[%s10778_s1 + $0x688] sm:$0xff]  }
  0xb8   :  { %7407 = vmatpush3.bf16.msra.mxu0 %v8194_v6 }
  0xb9   :  { %7435 = vmatpush3.bf16.msra.mxu1 %v8195_v7  ;;  %7408 = vmatprep.subr.bf16.mxu0 %v8196_v8  ;;  %v8232_v8 = vld [vmem:[%s10778_s1 + $0x640] sm:$0xff]  }
  0xba   :  { %7436 = vmatprep.subr.bf16.mxu1 %v8197_v9 }
  0xbc   :  { %7409 = vmatpush3.bf16.msra.mxu0 %v8198_v10  ;;  %v8233_v10 = vld [vmem:[%s10778_s1 + $0x6c0] sm:$0xff]  }
  0xbd   :  { %7437 = vmatpush3.bf16.msra.mxu1 %v8199_v11  ;;  %7410 = vmatprep.subr.bf16.mxu0 %v8200_v12  ;;  %v8234_v11 = vld [vmem:[%s10778_s1 + $0x600] sm:$0xff]  }
  0xbe   :  { %7438 = vmatprep.subr.bf16.mxu1 %v8201_v13  ;;  %v8235_v13 = vld [vmem:[%s10778_s1 + $0x680] sm:$0xff]  }
  0xc0   :  { %7411 = vmatpush3.bf16.msra.mxu0 %v8202_v14  ;;  %v24_v14 = vld [vmem:[%s10779_s0 + $0x60] sm:$0xff] }
  0xc1   :  { %7439 = vmatpush3.bf16.msra.mxu1 %v8203_v15  ;;  %7452 = vmatprep.subr.bf16.mxu0 %v8204_v24  ;;  %v56_v15 = vld [vmem:[%s10779_s0 + $0x160] sm:$0xff]  ;;  %v8238_v24 = vld [vmem:[%s10778_s1 + $0x738] sm:$0xff]  }
  0xc2   :  { %7480 = vmatprep.subr.bf16.mxu1 %v8205_v25  ;;  %v6500_v17 = vcombine.low %v24_v14, %v56_v15  ;;  %v8239_v25 = vld [vmem:[%s10778_s1 + $0x7b8] sm:$0xff]  }
  0xc3   :  { %5399 = vmatmul.mubr.bf16.vlgmr.msra.gmra.mxu0 %v6496_v18  ;;  %v6501_v18 = vcombine.high %v24_v14, %v56_v15  ;;  %v8261_v15 = vld [vmem:[%s10778_s1 + $0x7c8] sm:$0xff]  }
  0xc4   :  { %5448 = vmatmul.mubr.bf16.vlgmr.msra.gmra.mxu1 %v6498_v22  ;;  %7453 = vmatpush3.bf16.msra.mxu0 %v8206_v26  ;;  %v8236_v22 = vld [vmem:[%s10778_s1 + $0x778] sm:$0xff]   ;;  %v8240_v26 = vld [vmem:[%s10778_s1 + $0x770] sm:$0xff]  }
  0xc5   :  { %7481 = vmatpush3.bf16.msra.mxu1 %v8207_v27  ;;  %7454 = vmatprep.subr.bf16.mxu0 %v8208_v28  ;;  %v8241_v27 = vld [vmem:[%s10778_s1 + $0x7f0] sm:$0xff]  }
  0xc6   :  { %7482 = vmatprep.subr.bf16.mxu1 %v8209_v29  ;;  %5406 = vmatprep.mubr.bf16.mxu0 %v6561_v34  ;;  %v8242_v28 = vld [vmem:[%s10778_s1 + $0x730] sm:$0xff]  }
  0xc7   :  { %5455 = vmatprep.mubr.bf16.mxu1 %v6563_v40  ;;  %v8243_v29 = vld [vmem:[%s10778_s1 + $0x7b0] sm:$0xff]   ;;  %v121_v40 = vld [vmem:[%s10779_s0 + $0x368] sm:$0xff] }
  0xc8   :  { %7455 = vmatpush3.bf16.msra.mxu0 %v8210_v30  ;;  %v88_v30 = vld [vmem:[%s10779_s0 + $0x260] sm:$0xff] }
  0xc9   :  { %7483 = vmatpush3.bf16.msra.mxu1 %v8211_v31  ;;  %7456 = vmatprep.subr.bf16.mxu0 %v8212_v36  ;;  %v120_v31 = vld [vmem:[%s10779_s0 + $0x360] sm:$0xff] }
  0xca   :  { %7484 = vmatprep.subr.bf16.mxu1 %v8213_v37  ;;  %v6565_v33 = vcombine.high %v88_v30, %v120_v31  ;;  %v6564_v34 = vcombine.low %v88_v30, %v120_v31  ;;  %v8245_v37 = vld [vmem:[%s10778_s1 + $0x7e8] sm:$0xff]  }
  0xcb   :  { %5407 = vmatmul.mubr.bf16.gmra.mxu0 %v6560_v35  ;;  %v8244_v35 = vld [vmem:[%s10778_s1 + $0x768] sm:$0xff]  }
  0xcc   :  { %7457 = vmatpush3.bf16.msra.mxu0 %v8214_v41  ;;  %5456 = vmatmul.mubr.bf16.gmra.mxu1 %v6562_v42 }
  0xcd   :  { %7485 = vmatpush3.bf16.msra.mxu1 %v8215_v43  ;;  %7458 = vmatprep.subr.bf16.mxu0 %v8216_v44  ;;  %v6567_v43 = vcombine.high %v89_v39, %v121_v40  ;;  %v8246_v44 = vld [vmem:[%s10778_s1 + $0x728] sm:$0xff]  }
  0xce   :  { %7486 = vmatprep.subr.bf16.mxu1 %v8217_v45  ;;  %5496 = vmatprep.mubr.bf16.mxu0 %v6501_v18  ;;  %v6566_v45 = vcombine.low %v89_v39, %v121_v40  ;;  %v8268_v39 = vld [vmem:[%s10778_s1 + $0x878] sm:$0xff]  }
  0xcf   :  { %5545 = vmatprep.mubr.bf16.mxu1 %v6503_v21 }
  0xd0   :  { %7459 = vmatpush3.bf16.msra.mxu0 %v8218_v46 }
  0xd1   :  { %7487 = vmatpush3.bf16.msra.mxu1 %v8219_v47  ;;  %7460 = vmatprep.subr.bf16.mxu0 %v8220_v48  ;;  %v8247_v48 = vld [vmem:[%s10778_s1 + $0x7a8] sm:$0xff]  }
  0xd2   :  { %7488 = vmatprep.subr.bf16.mxu1 %v8221_v49 }
  0xd4   :  { %7461 = vmatpush3.bf16.msra.mxu0 %v8222_v50  ;;  %v8248_v50 = vld [vmem:[%s10778_s1 + $0x760] sm:$0xff]  }
  0xd5   :  { %7489 = vmatpush3.bf16.msra.mxu1 %v8223_v51  ;;  %7462 = vmatprep.subr.bf16.mxu0 %v8224_v52 }
  0xd6   :  { %7490 = vmatprep.subr.bf16.mxu1 %v8225_v54 }
  0xd8   :  { %7463 = vmatpush3.bf16.msra.mxu0 %v8226_v56  ;;  %v8250_v56 = vld [vmem:[%s10778_s1 + $0x720] sm:$0xff]  }
  0xd9   :  { %7491 = vmatpush3.bf16.msra.mxu1 %v8227_v58  ;;  %7464 = vmatprep.subr.bf16.mxu0 %v8228_v61  ;;  %v8251_v58 = vld [vmem:[%s10778_s1 + $0x7a0] sm:$0xff]   ;;  %v8253_v61 = vld [vmem:[%s10778_s1 + $0x7d8] sm:$0xff]  }
  0xda   :  { %7492 = vmatprep.subr.bf16.mxu1 %v8229_v0  ;;  %v8256_v0 = vld [vmem:[%s10778_s1 + $0x750] sm:$0xff]  }
  0xdc   :  { %7465 = vmatpush3.bf16.msra.mxu0 %v8230_v2 }
  0xdd   :  { %7493 = vmatpush3.bf16.msra.mxu1 %v8231_v5  ;;  %7466 = vmatprep.subr.bf16.mxu0 %v8232_v8  ;;  %v8258_v5 = vld [vmem:[%s10778_s1 + $0x710] sm:$0xff]  }
  0xde   :  { %7494 = vmatprep.subr.bf16.mxu1 %v8233_v10  ;;  %v8259_v8 = vld [vmem:[%s10778_s1 + $0x790] sm:$0xff]  }
  0xe0   :  { %7467 = vmatpush3.bf16.msra.mxu0 %v8234_v11  ;;  %v8260_v11 = vld [vmem:[%s10778_s1 + $0x748] sm:$0xff]  }
  0xe1   :  { %7495 = vmatpush3.bf16.msra.mxu1 %v8235_v13  ;;  %7508 = vmatprep.subr.bf16.mxu0 %v8236_v22 }
  0xe2   :  { %7536 = vmatprep.subr.bf16.mxu1 %v8237_v23  ;;  %v8265_v23 = vld [vmem:[%s10778_s1 + $0x7c0] sm:$0xff]  }
  0xe3   :  { %v7132_v53 = vpop.f32.mrf.mxu0  ;;  %5497 = vmatmul.mubr.bf16.vlgmr.msra.gmra.mxu0 %v6500_v17  ;;  %v8262_v17 = vld [vmem:[%s10778_s1 + $0x708] sm:$0xff]  }
  0xe4   :  { %v7160_v55 = vpop.f32.mrf.mxu1  ;;  %5546 = vmatmul.mubr.bf16.vlgmr.msra.gmra.mxu1 %v6502_v20  ;;  %7509 = vmatpush3.bf16.msra.mxu0 %v8238_v24  ;;  %v8263_v20 = vld [vmem:[%s10778_s1 + $0x788] sm:$0xff]  }
  0xe5   :  { %v7133_v57 = vpop.f32.mrf.mxu0  ;;  %7537 = vmatpush3.bf16.msra.mxu1 %v8239_v25  ;;  %7510 = vmatprep.subr.bf16.mxu0 %v8240_v26 }
  0xe6   :  { %v7134_v59 = vadd.f32 %v7133_v57, %v7132_v53  ;;  %v7161_v60 = vpop.f32.mrf.mxu1  ;;  %7538 = vmatprep.subr.bf16.mxu1 %v8241_v27  ;;  %5504 = vmatprep.mubr.bf16.mxu0 %v6565_v33  ;;  %v8249_v53 = vld [vmem:[%s10778_s1 + $0x7e0] sm:$0xff]   ;;  %v59_v33 = vld [vmem:[%s10779_s0 + $0x178] sm:$0xff] }
  0xe7   :  { %v7162_v62 = vadd.f32 %v7161_v60, %v7160_v55  ;;  %v7135_v63 = vpop.f32.mrf.mxu0  ;;  %5553 = vmatprep.mubr.bf16.mxu1 %v6567_v43  ;;  %v8266_v27 = vld [vmem:[%s10778_s1 + $0x700] sm:$0xff]  }
  0xe8   :  { %v7163_v1 = vpop.f32.mrf.mxu1  ;;  %7511 = vmatpush3.bf16.msra.mxu0 %v8242_v28  ;;  %v8267_v28 = vld [vmem:[%s10778_s1 + $0x780] sm:$0xff]  }
  0xe9   :  { %v9356_v3 = vadd.f32 %v7162_v62, %v7134_v59  ;;  %v7136_v4 = vpop.f32.mrf.mxu0  ;;  %7539 = vmatpush3.bf16.msra.mxu1 %v8243_v29  ;;  %7512 = vmatprep.subr.bf16.mxu0 %v8244_v35  ;;  %v8252_v59 = vld [vmem:[%s10778_s1 + $0x758] sm:$0xff]   ;;  %v26_v29 = vld [vmem:[%s10779_s0 + $0x70] sm:$0xff] }
  0xea   :  { %v7137_v6 = vadd.f32 %v7136_v4, %v7135_v63  ;;  %v7164_v7 = vpop.f32.mrf.mxu1  ;;  %7540 = vmatprep.subr.bf16.mxu1 %v8245_v37  ;;  %v8254_v62 = vld [vmem:[%s10778_s1 + $0x718] sm:$0xff]   ;;  %v8257_v4 = vld [vmem:[%s10778_s1 + $0x7d0] sm:$0xff]  }
  0xeb   :  { %v7165_v9 = vadd.f32 %v7164_v7, %v7163_v1  ;;  %v7138_v32 = vpop.f32.mrf.mxu0  ;;  %5505 = vmatmul.mubr.bf16.gmra.mxu0 %v6564_v34  ;;  %v8255_v63 = vld [vmem:[%s10778_s1 + $0x798] sm:$0xff]  }
  0xec   :  { %v7166_v36 = vpop.f32.mrf.mxu1  ;;  %7513 = vmatpush3.bf16.msra.mxu0 %v8246_v44  ;;  %5554 = vmatmul.mubr.bf16.gmra.mxu1 %v6566_v45  ;;  %v8270_v44 = vld [vmem:[%s10778_s1 + $0x838] sm:$0xff]  }
  0xed   :  { %v9370_v12 = vadd.f32 %v7165_v9, %v7137_v6  ;;  %v7139_v38 = vpop.f32.mrf.mxu0  ;;  %7541 = vmatpush3.bf16.msra.mxu1 %v8247_v48  ;;  %7514 = vmatprep.subr.bf16.mxu0 %v8248_v50  ;;  %v8272_v50 = vld [vmem:[%s10778_s1 + $0x870] sm:$0xff]  }
  0xee   :  { %v7140_v41 = vadd.f32 %v7139_v38, %v7138_v32  ;;  %v7167_v42 = vpop.f32.mrf.mxu1  ;;  %7542 = vmatprep.subr.bf16.mxu1 %v8249_v53  ;;  %v27_v32 = vld [vmem:[%s10779_s0 + $0x78] sm:$0xff] }
  0xef   :  { %v7168_v46 = vadd.f32 %v7167_v42, %v7166_v36  ;;  %v7141_v47 = vpop.f32.mrf.mxu0  ;;  %v6506_v37 = vcombine.low %v27_v32, %v59_v33  ;;  %v6507_v38 = vcombine.high %v27_v32, %v59_v33  ;;  %v8269_v42 = vld [vmem:[%s10778_s1 + $0x8f8] sm:$0xff]   ;;  %v8293_v32 = vld [vmem:[%s10778_s1 + $0x8c8] sm:$0xff]  }
  0xf0   :  { %v7169_v49 = vpop.f32.mrf.mxu1  ;;  %7515 = vmatpush3.bf16.msra.mxu0 %v8250_v56 }
  0xf1   :  { %v9438_v51 = vadd.f32 %v7168_v46, %v7140_v41  ;;  %v7142_v52 = vpop.f32.mrf.mxu0  ;;  %7543 = vmatpush3.bf16.msra.mxu1 %v8251_v58  ;;  %7516 = vmatprep.subr.bf16.mxu0 %v8252_v59  ;;  %v90_v59 = vld [vmem:[%s10779_s0 + $0x270] sm:$0xff] }
  0xf2   :  { %v7143_v54 = vadd.f32 %v7142_v52, %v7141_v47  ;;  %v7170_v55 = vpop.f32.mrf.mxu1  ;;  %7544 = vmatprep.subr.bf16.mxu1 %v8253_v61  ;;  %5643 = vmatprep.mubr.bf16.mxu1 %v6507_v38  ;;  %v8271_v47 = vld [vmem:[%s10778_s1 + $0x8b8] sm:$0xff]   ;;  %v8273_v52 = vld [vmem:[%s10778_s1 + $0x8f0] sm:$0xff]  }
  0xf3   :  { %v7171_v57 = vadd.f32 %v7170_v55, %v7169_v49  ;;  %v8274_v55 = vld [vmem:[%s10778_s1 + $0x830] sm:$0xff]  }
  0xf4   :  { %7517 = vmatpush3.bf16.msra.mxu0 %v8254_v62 }
  0xf5   :  { %v9452_v60 = vadd.f32 %v7171_v57, %v7143_v54  ;;  %7545 = vmatpush3.bf16.msra.mxu1 %v8255_v63  ;;  %7518 = vmatprep.subr.bf16.mxu0 %v8256_v0  ;;  %v8275_v57 = vld [vmem:[%s10778_s1 + $0x8b0] sm:$0xff]   ;;  %v8276_v63 = vld [vmem:[%s10778_s1 + $0x868] sm:$0xff]  }
  0xf6   :  { %7546 = vmatprep.subr.bf16.mxu1 %v8257_v4  ;;  %v123_v4 = vld [vmem:[%s10779_s0 + $0x378] sm:$0xff] }
  0xf8   :  { %7519 = vmatpush3.bf16.msra.mxu0 %v8258_v5 }
  0xf9   :  { %7547 = vmatpush3.bf16.msra.mxu1 %v8259_v8  ;;  %7520 = vmatprep.subr.bf16.mxu0 %v8260_v11  ;;  %v8279_v8 = vld [vmem:[%s10778_s1 + $0x8a8] sm:$0xff]   ;;  %v8282_v11 = vld [vmem:[%s10778_s1 + $0x820] sm:$0xff]  }
  0xfa   :  { %7548 = vmatprep.subr.bf16.mxu1 %v8261_v15  ;;  %v8285_v15 = vld [vmem:[%s10778_s1 + $0x8d8] sm:$0xff]  }
  0xfc   :  { %7521 = vmatpush3.bf16.msra.mxu0 %v8262_v17  ;;  %v8287_v17 = vld [vmem:[%s10778_s1 + $0x898] sm:$0xff]  }
  0xfd   :  { %7549 = vmatpush3.bf16.msra.mxu1 %v8263_v20 }
  0xfe   :  { %7550 = vmatprep.subr.bf16.mxu1 %v8265_v23  ;;  %v8290_v23 = vld [vmem:[%s10778_s1 + $0x810] sm:$0xff]  }
 0x101   :  { %7551 = vmatpush3.bf16.msra.mxu1 %v8267_v28 }
 0x102   :  { %7592 = vmatprep.subr.bf16.mxu1 %v8269_v42 }
 0x103   :  { %v7188_v1 = vpop.f32.mrf.mxu0 }
 0x104   :  { %v7216_v2 = vpop.f32.mrf.mxu1  ;;  %5644 = vmatmul.mubr.bf16.vlgmr.msra.gmra.mxu1 %v6506_v37 }
 0x105   :  { %v7189_v6 = vpop.f32.mrf.mxu0  ;;  %7593 = vmatpush3.bf16.msra.mxu1 %v8271_v47 }
 0x106   :  { %v7217_v7 = vpop.f32.mrf.mxu1  ;;  %v7190_v9 = vadd.f32 %v7189_v6, %v7188_v1  ;;  %7594 = vmatprep.subr.bf16.mxu1 %v8273_v52  ;;  %v8277_v1 = vld [vmem:[%s10778_s1 + $0x8e8] sm:$0xff]  }
 0x107   :  { %v7218_v10 = vadd.f32 %v7217_v7, %v7216_v2  ;;  %v7191_v13 = vpop.f32.mrf.mxu0  ;;  %v91_v2 = vld [vmem:[%s10779_s0 + $0x278] sm:$0xff]  ;;  %v8278_v6 = vld [vmem:[%s10778_s1 + $0x828] sm:$0xff]  }
 0x108   :  { %v7219_v14 = vpop.f32.mrf.mxu1  ;;  %v5009_v16 = vadd.f32 %v7190_v9, %v9356_v3  ;;  %v8264_v3 = vld [vmem:[%s10778_s1 + $0x740] sm:$0xff]   ;;  %v6571_v5 = vcombine.high %v91_v2, %v123_v4  ;;  %v6570_v7 = vcombine.low %v91_v2, %v123_v4  ;;  %v8303_v2 = vld [vmem:[%s10778_s1 + $0x9b8] sm:$0xff]  }
 0x109   :  { %v7192_v18 = vpop.f32.mrf.mxu0  ;;  %7522 = vmatprep.subr.bf16.mxu0 %v8264_v3  ;;  %7595 = vmatpush3.bf16.msra.mxu1 %v8275_v57  ;;  %v8280_v9 = vld [vmem:[%s10778_s1 + $0x860] sm:$0xff]   ;;  %v8300_v57 = vld [vmem:[%s10778_s1 + $0x978] sm:$0xff]  }
 0x10a   :  { %v7220_v19 = vpop.f32.mrf.mxu1  ;;  %v9488_v21 = vadd.f32 %v7218_v10, %v5009_v16  ;;  %v7193_v22 = vadd.f32 %v7192_v18, %v7191_v13  ;;  %7523 = vmatpush3.bf16.msra.mxu0 %v8266_v27  ;;  %7596 = vmatprep.subr.bf16.mxu1 %v8277_v1  ;;  %v8281_v10 = vld [vmem:[%s10778_s1 + $0x8e0] sm:$0xff]   ;;  %v8286_v16 = vld [vmem:[%s10778_s1 + $0x818] sm:$0xff]  }
 0x10b   :  { %v7221_v25 = vadd.f32 %v7220_v19, %v7219_v14  ;;  %v7194_v26 = vpop.f32.mrf.mxu0  ;;  %7564 = vmatprep.subr.bf16.mxu0 %v8268_v39  ;;  %5651 = vmatprep.mubr.bf16.mxu1 %v6571_v5  ;;  %v8283_v13 = vld [vmem:[%s10778_s1 + $0x8a0] sm:$0xff]   ;;  %v8284_v14 = vld [vmem:[%s10778_s1 + $0x858] sm:$0xff]   ;;  %v8288_v19 = vld [vmem:[%s10778_s1 + $0x850] sm:$0xff]  }
 0x10c   :  { %v5012_v24 = vadd.f32 %v7193_v22, %v9370_v12  ;;  %v58_v12 = vld [vmem:[%s10779_s0 + $0x170] sm:$0xff]  ;;  %v7222_v40 = vpop.f32.mrf.mxu1  ;;  %5652 = vmatmul.mubr.bf16.gmra.mxu1 %v6570_v7  ;;  %v8296_v39 = vld [vmem:[%s10778_s1 + $0x840] sm:$0xff]  }
 0x10d   :  { %v7195_v31 = vpop.f32.mrf.mxu0  ;;  %v6504_v35 = vcombine.low %v26_v29, %v58_v12  ;;  %v6505_v36 = vcombine.high %v26_v29, %v58_v12  ;;  %7597 = vmatpush3.bf16.msra.mxu1 %v8279_v8  ;;  %v8289_v22 = vld [vmem:[%s10778_s1 + $0x8d0] sm:$0xff]   ;;  %v8292_v29 = vld [vmem:[%s10778_s1 + $0x848] sm:$0xff]  }
 0x10e   :  { %v9506_v30 = vadd.f32 %v7221_v25, %v5012_v24  ;;  %v7196_v34 = vadd.f32 %v7195_v31, %v7194_v26  ;;  %v7223_v45 = vpop.f32.mrf.mxu1  ;;  %7598 = vmatprep.subr.bf16.mxu1 %v8281_v10  ;;  %v8291_v26 = vld [vmem:[%s10778_s1 + $0x890] sm:$0xff]  }
 0x10f   :  { %v7197_v41 = vpop.f32.mrf.mxu0  ;;  %5594 = vmatprep.mubr.bf16.mxu0 %v6505_v36  ;;  %v7224_v48 = vadd.f32 %v7223_v45, %v7222_v40  ;;  %v8299_v45 = vld [vmem:[%s10778_s1 + $0x880] sm:$0xff]   ;;  %v8305_v7 = vld [vmem:[%s10778_s1 + $0x9f0] sm:$0xff]  }
 0x110   :  { %v5017_v43 = vadd.f32 %v7196_v34, %v9438_v51  ;;  %5595 = vmatmul.mubr.bf16.vlgmr.msra.gmra.mxu0 %v6504_v35  ;;  %v7225_v51 = vpop.f32.mrf.mxu1  ;;  %v8294_v34 = vld [vmem:[%s10778_s1 + $0x808] sm:$0xff]   ;;  %v8306_v10 = vld [vmem:[%s10778_s1 + $0x930] sm:$0xff]  }
 0x111   :  { %v7198_v46 = vpop.f32.mrf.mxu0  ;;  %7565 = vmatpush3.bf16.msra.mxu0 %v8270_v44  ;;  %7599 = vmatpush3.bf16.msra.mxu1 %v8283_v13  ;;  %v8307_v13 = vld [vmem:[%s10778_s1 + $0x9b0] sm:$0xff]  }
 0x112   :  { %v7199_v49 = vadd.f32 %v7198_v46, %v7197_v41  ;;  %v9536_v53 = vadd.f32 %v7224_v48, %v5017_v43  ;;  %7566 = vmatprep.subr.bf16.mxu0 %v8272_v50  ;;  %v7226_v56 = vpop.f32.mrf.mxu1  ;;  %7600 = vmatprep.subr.bf16.mxu1 %v8285_v15  ;;  %v8297_v41 = vld [vmem:[%s10778_s1 + $0x8c0] sm:$0xff]   ;;  %v29_v50 = vld [vmem:[%s10779_s0 + $0x88] sm:$0xff] }
 0x113   :  { %v7227_v58 = vadd.f32 %v7226_v56, %v7225_v51  ;;  %v8298_v43 = vld [vmem:[%s10778_s1 + $0x800] sm:$0xff]   ;;  %v61_v51 = vld [vmem:[%s10779_s0 + $0x188] sm:$0xff] }
 0x114   :  { %v5020_v54 = vadd.f32 %v7199_v49, %v9452_v60  ;;  %v122_v60 = vld [vmem:[%s10779_s0 + $0x370] sm:$0xff]  ;;  %v60_v46 = vld [vmem:[%s10779_s0 + $0x180] sm:$0xff]  ;;  %v6511_v56 = vcombine.high %v29_v50, %v61_v51 }
 0x115   :  { %7567 = vmatpush3.bf16.msra.mxu0 %v8274_v55  ;;  %v6569_v61 = vcombine.high %v90_v59, %v122_v60  ;;  %v6568_v62 = vcombine.low %v90_v59, %v122_v60  ;;  %7601 = vmatpush3.bf16.msra.mxu1 %v8287_v17  ;;  %v6510_v55 = vcombine.low %v29_v50, %v61_v51  ;;  %v8301_v59 = vld [vmem:[%s10778_s1 + $0x9f8] sm:$0xff]   ;;  %v8327_v51 = vld [vmem:[%s10778_s1 + $0x988] sm:$0xff]  }
 0x116   :  { %v9554_v0 = vadd.f32 %v7227_v58, %v5020_v54  ;;  %7568 = vmatprep.subr.bf16.mxu0 %v8276_v63  ;;  %7602 = vmatprep.subr.bf16.mxu1 %v8289_v22  ;;  %v125_v22 = vld [vmem:[%s10779_s0 + $0x388] sm:$0xff] }
 0x117   :  { %5602 = vmatprep.mubr.bf16.mxu0 %v6569_v61  ;;  %5741 = vmatprep.mubr.bf16.mxu1 %v6511_v56 }
 0x118   :  { %5603 = vmatmul.mubr.bf16.gmra.mxu0 %v6568_v62  ;;  %v8302_v62 = vld [vmem:[%s10778_s1 + $0x938] sm:$0xff]  }
 0x119   :  { %7569 = vmatpush3.bf16.msra.mxu0 %v8278_v6  ;;  %7603 = vmatpush3.bf16.msra.mxu1 %v8291_v26  ;;  %v8312_v26 = vld [vmem:[%s10778_s1 + $0x960] sm:$0xff]  }
 0x11a   :  { %7570 = vmatprep.subr.bf16.mxu0 %v8280_v9  ;;  %7604 = vmatprep.subr.bf16.mxu1 %v8293_v32  ;;  %v8318_v32 = vld [vmem:[%s10778_s1 + $0x918] sm:$0xff]  }
 0x11d   :  { %7571 = vmatpush3.bf16.msra.mxu0 %v8282_v11 }
 0x11e   :  { %7572 = vmatprep.subr.bf16.mxu0 %v8284_v14  ;;  %v92_v14 = vld [vmem:[%s10779_s0 + $0x280] sm:$0xff] }
 0x121   :  { %7573 = vmatpush3.bf16.msra.mxu0 %v8286_v16 }
 0x122   :  { %7574 = vmatprep.subr.bf16.mxu0 %v8288_v19  ;;  %v8309_v19 = vld [vmem:[%s10778_s1 + $0x9e8] sm:$0xff]  }
 0x123   :  { %v7244_v18 = vpop.f32.mrf.mxu0 }
 0x124   :  { %v7272_v20 = vpop.f32.mrf.mxu1 }
 0x125   :  { %v7245_v3 = vpop.f32.mrf.mxu0  ;;  %7575 = vmatpush3.bf16.msra.mxu0 %v8290_v23  ;;  %v8310_v23 = vld [vmem:[%s10778_s1 + $0x928] sm:$0xff]  }
 0x126   :  { %v7246_v24 = vadd.f32 %v7245_v3, %v7244_v18  ;;  %v7273_v25 = vpop.f32.mrf.mxu1  ;;  %7576 = vmatprep.subr.bf16.mxu0 %v8292_v29  ;;  %v8308_v18 = vld [vmem:[%s10778_s1 + $0x968] sm:$0xff]   ;;  %v8315_v29 = vld [vmem:[%s10778_s1 + $0x9a0] sm:$0xff]  }
 0x127   :  { %v7274_v27 = vadd.f32 %v7273_v25, %v7272_v20  ;;  %v7247_v28 = vpop.f32.mrf.mxu0  ;;  %v93_v20 = vld [vmem:[%s10779_s0 + $0x288] sm:$0xff] }
 0x128   :  { %v5107_v31 = vadd.f32 %v7246_v24, %v9488_v21  ;;  %v7275_v12 = vpop.f32.mrf.mxu1  ;;  %v8295_v21 = vld [vmem:[%s10778_s1 + $0x888] sm:$0xff]   ;;  %v6575_v3 = vcombine.high %v93_v20, %v125_v22  ;;  %v6574_v24 = vcombine.low %v93_v20, %v125_v22 }
 0x129   :  { %v7248_v33 = vpop.f32.mrf.mxu0  ;;  %7577 = vmatpush3.bf16.msra.mxu0 %v8294_v34  ;;  %7605 = vmatpush3.bf16.msra.mxu1 %v8295_v21  ;;  %v8311_v25 = vld [vmem:[%s10778_s1 + $0x9a8] sm:$0xff]   ;;  %v8320_v34 = vld [vmem:[%s10778_s1 + $0x950] sm:$0xff]  }
 0x12a   :  { %v9617_v35 = vadd.f32 %v7274_v27, %v5107_v31  ;;  %v7249_v36 = vadd.f32 %v7248_v33, %v7247_v28  ;;  %v7276_v37 = vpop.f32.mrf.mxu1  ;;  %7578 = vmatprep.subr.bf16.mxu0 %v8296_v39  ;;  %7606 = vmatprep.subr.bf16.mxu1 %v8297_v41  ;;  %v8313_v27 = vld [vmem:[%s10778_s1 + $0x9e0] sm:$0xff]   ;;  %v8316_v31 = vld [vmem:[%s10778_s1 + $0x958] sm:$0xff]  }
 0x12b   :  { %v7277_v38 = vadd.f32 %v7276_v37, %v7275_v12  ;;  %v7250_v42 = vpop.f32.mrf.mxu0  ;;  %v8314_v28 = vld [vmem:[%s10778_s1 + $0x920] sm:$0xff]   ;;  %v8317_v12 = vld [vmem:[%s10778_s1 + $0x9d8] sm:$0xff]   ;;  %v8321_v37 = vld [vmem:[%s10778_s1 + $0x9d0] sm:$0xff]  }
 0x12c   :  { %v5110_v40 = vadd.f32 %v7249_v36, %v9506_v30  ;;  %v28_v30 = vld [vmem:[%s10779_s0 + $0x80] sm:$0xff]  ;;  %v7278_v54 = vpop.f32.mrf.mxu1  ;;  %v8319_v33 = vld [vmem:[%s10778_s1 + $0x998] sm:$0xff]  }
 0x12d   :  { %v7251_v47 = vpop.f32.mrf.mxu0  ;;  %7579 = vmatpush3.bf16.msra.mxu0 %v8298_v43  ;;  %v6508_v48 = vcombine.low %v28_v30, %v60_v46  ;;  %v6509_v49 = vcombine.high %v28_v30, %v60_v46  ;;  %7607 = vmatpush3.bf16.msra.mxu1 %v8299_v45  ;;  %v8324_v43 = vld [vmem:[%s10778_s1 + $0x948] sm:$0xff]  }
 0x12e   :  { %v9632_v44 = vadd.f32 %v7277_v38, %v5110_v40  ;;  %v7252_v52 = vadd.f32 %v7251_v47, %v7250_v42  ;;  %v7279_v61 = vpop.f32.mrf.mxu1  ;;  %7620 = vmatprep.subr.bf16.mxu0 %v8300_v57  ;;  %7648 = vmatprep.subr.bf16.mxu1 %v8301_v59  ;;  %v8322_v38 = vld [vmem:[%s10778_s1 + $0x910] sm:$0xff]   ;;  %v8325_v46 = vld [vmem:[%s10778_s1 + $0x9c8] sm:$0xff]   ;;  %v8329_v57 = vld [vmem:[%s10778_s1 + $0x9c0] sm:$0xff]  }
 0x12f   :  { %v7253_v58 = vpop.f32.mrf.mxu0  ;;  %5692 = vmatprep.mubr.bf16.mxu0 %v6509_v49  ;;  %v7280_v63 = vadd.f32 %v7279_v61, %v7278_v54  ;;  %v8323_v40 = vld [vmem:[%s10778_s1 + $0x990] sm:$0xff]   ;;  %v8326_v49 = vld [vmem:[%s10778_s1 + $0x908] sm:$0xff]   ;;  %v8331_v61 = vld [vmem:[%s10778_s1 + $0x980] sm:$0xff]  }
 0x130   :  { %v5115_v60 = vadd.f32 %v7252_v52, %v9536_v53  ;;  %5693 = vmatmul.mubr.bf16.vlgmr.msra.gmra.mxu0 %v6508_v48  ;;  %5742 = vmatmul.mubr.bf16.vlgmr.msra.gmra.mxu1 %v6510_v55  ;;  %v7281_v5 = vpop.f32.mrf.mxu1  ;;  %v8304_v53 = vld [vmem:[%s10778_s1 + $0x970] sm:$0xff]  }
 0x131   :  { %v7254_v1 = vpop.f32.mrf.mxu0  ;;  %7621 = vmatpush3.bf16.msra.mxu0 %v8302_v62  ;;  %7649 = vmatpush3.bf16.msra.mxu1 %v8303_v2  ;;  %v31_v2 = vld [vmem:[%s10779_s0 + $0x98] sm:$0xff] }
 0x132   :  { %v7255_v4 = vadd.f32 %v7254_v1, %v7253_v58  ;;  %v9665_v6 = vadd.f32 %v7280_v63, %v5115_v60  ;;  %v7282_v9 = vpop.f32.mrf.mxu1  ;;  %7622 = vmatprep.subr.bf16.mxu0 %v8304_v53  ;;  %7650 = vmatprep.subr.bf16.mxu1 %v8305_v7  ;;  %v8330_v60 = vld [vmem:[%s10778_s1 + $0x900] sm:$0xff]   ;;  %v30_v1 = vld [vmem:[%s10779_s0 + $0x90] sm:$0xff]  ;;  %v63_v7 = vld [vmem:[%s10779_s0 + $0x198] sm:$0xff] }
 0x133   :  { %v7283_v11 = vadd.f32 %v7282_v9, %v7281_v5  ;;  %5749 = vmatprep.mubr.bf16.mxu1 %v6575_v3  ;;  %v8336_v3 = vld [vmem:[%s10778_s1 + $0xa70] sm:$0xff]  }
 0x134   :  { %v5118_v8 = vadd.f32 %v7255_v4, %v9554_v0  ;;  %v124_v0 = vld [vmem:[%s10779_s0 + $0x380] sm:$0xff] }
 0x135   :  { %7623 = vmatpush3.bf16.msra.mxu0 %v8306_v10  ;;  %7651 = vmatpush3.bf16.msra.mxu1 %v8307_v13  ;;  %v6573_v16 = vcombine.high %v92_v14, %v124_v0  ;;  %v6572_v17 = vcombine.low %v92_v14, %v124_v0  ;;  %v6514_v10 = vcombine.low %v31_v2, %v63_v7  ;;  %v8332_v13 = vld [vmem:[%s10778_s1 + $0xa78] sm:$0xff]  }
 0x136   :  { %v9683_v15 = vadd.f32 %v7283_v11, %v5118_v8  ;;  %7624 = vmatprep.subr.bf16.mxu0 %v8308_v18  ;;  %7652 = vmatprep.subr.bf16.mxu1 %v8309_v19  ;;  %v6515_v11 = vcombine.high %v31_v2, %v63_v7  ;;  %v8333_v0 = vld [vmem:[%s10778_s1 + $0xaf8] sm:$0xff]   ;;  %v8359_v7 = vld [vmem:[%s10778_s1 + $0xa88] sm:$0xff]  }
 0x137   :  { %5700 = vmatprep.mubr.bf16.mxu0 %v6573_v16  ;;  %v8334_v18 = vld [vmem:[%s10778_s1 + $0xa38] sm:$0xff]  }
 0x138   :  { %5701 = vmatmul.mubr.bf16.gmra.mxu0 %v6572_v17  ;;  %5750 = vmatmul.mubr.bf16.gmra.mxu1 %v6574_v24 }
 0x139   :  { %7625 = vmatpush3.bf16.msra.mxu0 %v8310_v23  ;;  %7653 = vmatpush3.bf16.msra.mxu1 %v8311_v25  ;;  %v8337_v25 = vld [vmem:[%s10778_s1 + $0xaf0] sm:$0xff]  }
 0x13a   :  { %7626 = vmatprep.subr.bf16.mxu0 %v8312_v26  ;;  %7654 = vmatprep.subr.bf16.mxu1 %v8313_v27  ;;  %v8338_v27 = vld [vmem:[%s10778_s1 + $0xa30] sm:$0xff]  }
 0x13b   :  { %5839 = vmatprep.mubr.bf16.mxu1 %v6515_v11  ;;  %v8361_v11 = vld [vmem:[%s10778_s1 + $0xac0] sm:$0xff]  }
 0x13d   :  { %7627 = vmatpush3.bf16.msra.mxu0 %v8314_v28  ;;  %7655 = vmatpush3.bf16.msra.mxu1 %v8315_v29  ;;  %v8339_v29 = vld [vmem:[%s10778_s1 + $0xab0] sm:$0xff]  }
 0x13e   :  { %7628 = vmatprep.subr.bf16.mxu0 %v8316_v31  ;;  %7656 = vmatprep.subr.bf16.mxu1 %v8317_v12  ;;  %v126_v31 = vld [vmem:[%s10779_s0 + $0x390] sm:$0xff] }
 0x141   :  { %7629 = vmatpush3.bf16.msra.mxu0 %v8318_v32  ;;  %7657 = vmatpush3.bf16.msra.mxu1 %v8319_v33  ;;  %v8340_v33 = vld [vmem:[%s10778_s1 + $0xa68] sm:$0xff]  }
 0x142   :  { %7630 = vmatprep.subr.bf16.mxu0 %v8320_v34  ;;  %7658 = vmatprep.subr.bf16.mxu1 %v8321_v37  ;;  %v95_v37 = vld [vmem:[%s10779_s0 + $0x298] sm:$0xff] }
 0x143   :  { %v7300_v36 = vpop.f32.mrf.mxu0 }
 0x144   :  { %v7328_v21 = vpop.f32.mrf.mxu1 }
 0x145   :  { %v7301_v39 = vpop.f32.mrf.mxu0  ;;  %7631 = vmatpush3.bf16.msra.mxu0 %v8322_v38  ;;  %7659 = vmatpush3.bf16.msra.mxu1 %v8323_v40 }
 0x146   :  { %v7302_v41 = vadd.f32 %v7301_v39, %v7300_v36  ;;  %v7329_v42 = vpop.f32.mrf.mxu1  ;;  %7632 = vmatprep.subr.bf16.mxu0 %v8324_v43  ;;  %7660 = vmatprep.subr.bf16.mxu1 %v8325_v46  ;;  %v8341_v36 = vld [vmem:[%s10778_s1 + $0xae8] sm:$0xff]   ;;  %v8345_v43 = vld [vmem:[%s10778_s1 + $0xae0] sm:$0xff]   ;;  %v8348_v46 = vld [vmem:[%s10778_s1 + $0xa58] sm:$0xff]  }
 0x147   :  { %v7330_v45 = vadd.f32 %v7329_v42, %v7328_v21  ;;  %v7303_v30 = vpop.f32.mrf.mxu0  ;;  %v127_v21 = vld [vmem:[%s10779_s0 + $0x398] sm:$0xff]  ;;  %v8342_v39 = vld [vmem:[%s10778_s1 + $0xa28] sm:$0xff]   ;;  %v8344_v42 = vld [vmem:[%s10778_s1 + $0xa60] sm:$0xff]  }
 0x148   :  { %v5205_v47 = vadd.f32 %v7302_v41, %v9617_v35  ;;  %v7331_v48 = vpop.f32.mrf.mxu1  ;;  %v8328_v35 = vld [vmem:[%s10778_s1 + $0x940] sm:$0xff]   ;;  %v6579_v38 = vcombine.high %v95_v37, %v127_v21  ;;  %v6578_v40 = vcombine.low %v95_v37, %v127_v21  ;;  %v8343_v41 = vld [vmem:[%s10778_s1 + $0xaa8] sm:$0xff]  }
 0x149   :  { %v7304_v50 = vpop.f32.mrf.mxu0  ;;  %7633 = vmatpush3.bf16.msra.mxu0 %v8326_v49  ;;  %7661 = vmatpush3.bf16.msra.mxu1 %v8327_v51  ;;  %v8351_v49 = vld [vmem:[%s10778_s1 + $0xa98] sm:$0xff]  }
 0x14a   :  { %v9752_v52 = vadd.f32 %v7330_v45, %v5205_v47  ;;  %v7305_v54 = vadd.f32 %v7304_v50, %v7303_v30  ;;  %v7332_v55 = vpop.f32.mrf.mxu1  ;;  %7634 = vmatprep.subr.bf16.mxu0 %v8328_v35  ;;  %7662 = vmatprep.subr.bf16.mxu1 %v8329_v57  ;;  %v8346_v45 = vld [vmem:[%s10778_s1 + $0xa20] sm:$0xff]   ;;  %v8349_v47 = vld [vmem:[%s10778_s1 + $0xad8] sm:$0xff]   ;;  %v8352_v50 = vld [vmem:[%s10778_s1 + $0xa50] sm:$0xff]  }
 0x14b   :  { %v7333_v56 = vadd.f32 %v7332_v55, %v7331_v48  ;;  %v7306_v59 = vpop.f32.mrf.mxu0  ;;  %v8347_v30 = vld [vmem:[%s10778_s1 + $0xaa0] sm:$0xff]   ;;  %v8350_v48 = vld [vmem:[%s10778_s1 + $0xa18] sm:$0xff]   ;;  %v8353_v55 = vld [vmem:[%s10778_s1 + $0xad0] sm:$0xff]  }
 0x14c   :  { %v5208_v58 = vadd.f32 %v7305_v54, %v9632_v44  ;;  %v62_v44 = vld [vmem:[%s10779_s0 + $0x190] sm:$0xff]  ;;  %v7334_v8 = vpop.f32.mrf.mxu1 }
 0x14d   :  { %v7307_v63 = vpop.f32.mrf.mxu0  ;;  %7635 = vmatpush3.bf16.msra.mxu0 %v8330_v60  ;;  %7663 = vmatpush3.bf16.msra.mxu1 %v8331_v61  ;;  %v6512_v5 = vcombine.low %v30_v1, %v62_v44  ;;  %v6513_v53 = vcombine.high %v30_v1, %v62_v44  ;;  %v8354_v35 = vld [vmem:[%s10778_s1 + $0xa10] sm:$0xff]   ;;  %v8356_v61 = vld [vmem:[%s10778_s1 + $0xa48] sm:$0xff]  }
 0x14e   :  { %v9767_v62 = vadd.f32 %v7333_v56, %v5208_v58  ;;  %v7308_v4 = vadd.f32 %v7307_v63, %v7306_v59  ;;  %v7335_v16 = vpop.f32.mrf.mxu1  ;;  %7676 = vmatprep.subr.bf16.mxu0 %v8332_v13  ;;  %7704 = vmatprep.subr.bf16.mxu1 %v8333_v0  ;;  %v8355_v58 = vld [vmem:[%s10778_s1 + $0xa90] sm:$0xff]   ;;  %v8357_v44 = vld [vmem:[%s10778_s1 + $0xac8] sm:$0xff]   ;;  %v8362_v0 = vld [vmem:[%s10778_s1 + $0xa00] sm:$0xff]  }
 0x14f   :  { %v7309_v9 = vpop.f32.mrf.mxu0  ;;  %5790 = vmatprep.mubr.bf16.mxu0 %v6513_v53  ;;  %v7336_v19 = vadd.f32 %v7335_v16, %v7334_v8  ;;  %v8363_v16 = vld [vmem:[%s10778_s1 + $0xa80] sm:$0xff]  }
 0x150   :  { %v5213_v14 = vadd.f32 %v7308_v4, %v9665_v6  ;;  %5791 = vmatmul.mubr.bf16.vlgmr.msra.gmra.mxu0 %v6512_v5  ;;  %5840 = vmatmul.mubr.bf16.vlgmr.msra.gmra.mxu1 %v6514_v10  ;;  %v8335_v6 = vld [vmem:[%s10778_s1 + $0xab8] sm:$0xff]   ;;  %v7337_v22 = vpop.f32.mrf.mxu1  ;;  %v8358_v4 = vld [vmem:[%s10778_s1 + $0xa08] sm:$0xff]  }
 0x151   :  { %v7310_v17 = vpop.f32.mrf.mxu0  ;;  %7677 = vmatpush3.bf16.msra.mxu0 %v8334_v18  ;;  %7705 = vmatpush3.bf16.msra.mxu1 %v8335_v6  ;;  %v65_v6 = vld [vmem:[%s10779_s0 + $0x1a8] sm:$0xff] }
 0x152   :  { %v7311_v20 = vadd.f32 %v7310_v17, %v7309_v9  ;;  %v9797_v23 = vadd.f32 %v7336_v19, %v5213_v14  ;;  %v7338_v26 = vpop.f32.mrf.mxu1  ;;  %7678 = vmatprep.subr.bf16.mxu0 %v8336_v3  ;;  %7706 = vmatprep.subr.bf16.mxu1 %v8337_v25  ;;  %v32_v17 = vld [vmem:[%s10779_s0 + $0xa0] sm:$0xff] }
 0x153   :  { %v7339_v28 = vadd.f32 %v7338_v26, %v7337_v22  ;;  %5847 = vmatprep.mubr.bf16.mxu1 %v6579_v38 }
 0x154   :  { %v5216_v24 = vadd.f32 %v7311_v20, %v9683_v15  ;;  %v94_v15 = vld [vmem:[%s10779_s0 + $0x290] sm:$0xff]  ;;  %v33_v20 = vld [vmem:[%s10779_s0 + $0xa8] sm:$0xff] }
 0x155   :  { %7679 = vmatpush3.bf16.msra.mxu0 %v8338_v27  ;;  %v6577_v12 = vcombine.high %v94_v15, %v126_v31  ;;  %v6576_v32 = vcombine.low %v94_v15, %v126_v31  ;;  %7707 = vmatpush3.bf16.msra.mxu1 %v8339_v29  ;;  %v6518_v25 = vcombine.low %v33_v20, %v65_v6  ;;  %v8364_v27 = vld [vmem:[%s10778_s1 + $0xb78] sm:$0xff]  }
 0x156   :  { %v9818_v34 = vadd.f32 %v7339_v28, %v5216_v24  ;;  %7680 = vmatprep.subr.bf16.mxu0 %v8340_v33  ;;  %7708 = vmatprep.subr.bf16.mxu1 %v8341_v36  ;;  %v6519_v26 = vcombine.high %v33_v20, %v65_v6  ;;  %v8365_v15 = vld [vmem:[%s10778_s1 + $0xbf8] sm:$0xff]   ;;  %v8389_v20 = vld [vmem:[%s10778_s1 + $0xbc8] sm:$0xff]  }
 0x157   :  { %5798 = vmatprep.mubr.bf16.mxu0 %v6577_v12  ;;  %v8366_v12 = vld [vmem:[%s10778_s1 + $0xb38] sm:$0xff]  }
 0x158   :  { %5799 = vmatmul.mubr.bf16.gmra.mxu0 %v6576_v32  ;;  %5848 = vmatmul.mubr.bf16.gmra.mxu1 %v6578_v40  ;;  %v8367_v36 = vld [vmem:[%s10778_s1 + $0xbb8] sm:$0xff]  }
 0x159   :  { %7681 = vmatpush3.bf16.msra.mxu0 %v8342_v39  ;;  %7709 = vmatpush3.bf16.msra.mxu1 %v8343_v41  ;;  %v8369_v39 = vld [vmem:[%s10778_s1 + $0xbf0] sm:$0xff]  }
 0x15a   :  { %7682 = vmatprep.subr.bf16.mxu0 %v8344_v42  ;;  %7710 = vmatprep.subr.bf16.mxu1 %v8345_v43  ;;  %v8370_v42 = vld [vmem:[%s10778_s1 + $0xb30] sm:$0xff]  }
 0x15b   :  { %5937 = vmatprep.mubr.bf16.mxu1 %v6519_v26 }
 0x15d   :  { %7683 = vmatpush3.bf16.msra.mxu0 %v8346_v45  ;;  %7711 = vmatpush3.bf16.msra.mxu1 %v8347_v30  ;;  %v8371_v45 = vld [vmem:[%s10778_s1 + $0xbb0] sm:$0xff]  }
 0x15e   :  { %7684 = vmatprep.subr.bf16.mxu0 %v8348_v46  ;;  %7712 = vmatprep.subr.bf16.mxu1 %v8349_v47  ;;  %v96_v46 = vld [vmem:[%s10779_s0 + $0x2a0] sm:$0xff] }
 0x161   :  { %7685 = vmatpush3.bf16.msra.mxu0 %v8350_v48  ;;  %7713 = vmatpush3.bf16.msra.mxu1 %v8351_v49  ;;  %v8372_v49 = vld [vmem:[%s10778_s1 + $0xb68] sm:$0xff]  }
 0x162   :  { %7686 = vmatprep.subr.bf16.mxu0 %v8352_v50  ;;  %7714 = vmatprep.subr.bf16.mxu1 %v8353_v55  ;;  %v129_v55 = vld [vmem:[%s10779_s0 + $0x3a8] sm:$0xff] }
 0x163   :  { %v7356_v51 = vpop.f32.mrf.mxu0 }
 0x164   :  { %v7384_v54 = vpop.f32.mrf.mxu1 }
 0x165   :  { %v7357_v56 = vpop.f32.mrf.mxu0  ;;  %7687 = vmatpush3.bf16.msra.mxu0 %v8354_v35  ;;  %7715 = vmatpush3.bf16.msra.mxu1 %v8355_v58  ;;  %v8375_v58 = vld [vmem:[%s10778_s1 + $0xba8] sm:$0xff]  }
 0x166   :  { %v7385_v57 = vpop.f32.mrf.mxu1  ;;  %v7358_v59 = vadd.f32 %v7357_v56, %v7356_v51  ;;  %7688 = vmatprep.subr.bf16.mxu0 %v8356_v61  ;;  %7716 = vmatprep.subr.bf16.mxu1 %v8357_v44  ;;  %v8373_v51 = vld [vmem:[%s10778_s1 + $0xbe8] sm:$0xff]   ;;  %v8378_v61 = vld [vmem:[%s10778_s1 + $0xb20] sm:$0xff]   ;;  %v8381_v44 = vld [vmem:[%s10778_s1 + $0xbd8] sm:$0xff]  }
 0x167   :  { %v7386_v60 = vadd.f32 %v7385_v57, %v7384_v54  ;;  %v7359_v63 = vpop.f32.mrf.mxu0  ;;  %v97_v54 = vld [vmem:[%s10779_s0 + $0x2a8] sm:$0xff] }
 0x168   :  { %v7387_v1 = vpop.f32.mrf.mxu1  ;;  %v5303_v2 = vadd.f32 %v7358_v59, %v9752_v52  ;;  %v8360_v52 = vld [vmem:[%s10778_s1 + $0xa40] sm:$0xff]   ;;  %v6583_v35 = vcombine.high %v97_v54, %v129_v55  ;;  %v8374_v56 = vld [vmem:[%s10778_s1 + $0xb28] sm:$0xff]   ;;  %v6582_v57 = vcombine.low %v97_v54, %v129_v55  ;;  %v8399_v54 = vld [vmem:[%s10778_s1 + $0xcb8] sm:$0xff]  }
 0x169   :  { %v7360_v5 = vpop.f32.mrf.mxu0  ;;  %7689 = vmatpush3.bf16.msra.mxu0 %v8358_v4  ;;  %7717 = vmatpush3.bf16.msra.mxu1 %v8359_v7  ;;  %v8376_v59 = vld [vmem:[%s10778_s1 + $0xb60] sm:$0xff]   ;;  %v8383_v4 = vld [vmem:[%s10778_s1 + $0xb98] sm:$0xff]  }
 0x16a   :  { %v7388_v53 = vpop.f32.mrf.mxu1  ;;  %v9884_v8 = vadd.f32 %v7386_v60, %v5303_v2  ;;  %v7361_v9 = vadd.f32 %v7360_v5, %v7359_v63  ;;  %7690 = vmatprep.subr.bf16.mxu0 %v8360_v52  ;;  %7718 = vmatprep.subr.bf16.mxu1 %v8361_v11  ;;  %v8377_v60 = vld [vmem:[%s10778_s1 + $0xbe0] sm:$0xff]   ;;  %v8382_v2 = vld [vmem:[%s10778_s1 + $0xb18] sm:$0xff]   ;;  %v8386_v52 = vld [vmem:[%s10778_s1 + $0xb10] sm:$0xff]  }
 0x16b   :  { %v7389_v10 = vadd.f32 %v7388_v53, %v7387_v1  ;;  %v7362_v14 = vpop.f32.mrf.mxu0  ;;  %v8379_v63 = vld [vmem:[%s10778_s1 + $0xba0] sm:$0xff]   ;;  %v8380_v1 = vld [vmem:[%s10778_s1 + $0xb58] sm:$0xff]   ;;  %v8384_v53 = vld [vmem:[%s10778_s1 + $0xb50] sm:$0xff]  }
 0x16c   :  { %v5306_v13 = vadd.f32 %v7361_v9, %v9767_v62  ;;  %v64_v62 = vld [vmem:[%s10779_s0 + $0x1a0] sm:$0xff]  ;;  %v7390_v28 = vpop.f32.mrf.mxu1  ;;  %v8385_v9 = vld [vmem:[%s10778_s1 + $0xbd0] sm:$0xff]  }
 0x16d   :  { %v7363_v19 = vpop.f32.mrf.mxu0  ;;  %7691 = vmatpush3.bf16.msra.mxu0 %v8362_v0  ;;  %7719 = vmatpush3.bf16.msra.mxu1 %v8363_v16  ;;  %v6516_v3 = vcombine.low %v32_v17, %v64_v62  ;;  %v6517_v24 = vcombine.high %v32_v17, %v64_v62  ;;  %v8388_v17 = vld [vmem:[%s10778_s1 + $0xb48] sm:$0xff]  }
 0x16e   :  { %v9902_v18 = vadd.f32 %v7389_v10, %v5306_v13  ;;  %v7364_v22 = vadd.f32 %v7363_v19, %v7362_v14  ;;  %v7391_v32 = vpop.f32.mrf.mxu1  ;;  %7732 = vmatprep.subr.bf16.mxu0 %v8364_v27  ;;  %7760 = vmatprep.subr.bf16.mxu1 %v8365_v15  ;;  %v8387_v14 = vld [vmem:[%s10778_s1 + $0xb90] sm:$0xff]   ;;  %v8392_v27 = vld [vmem:[%s10778_s1 + $0xb40] sm:$0xff]  }
 0x16f   :  { %v7365_v29 = vpop.f32.mrf.mxu0  ;;  %5888 = vmatprep.mubr.bf16.mxu0 %v6517_v24  ;;  %v7392_v37 = vadd.f32 %v7391_v32, %v7390_v28  ;;  %v8395_v32 = vld [vmem:[%s10778_s1 + $0xb80] sm:$0xff]  }
 0x170   :  { %v5311_v31 = vadd.f32 %v7364_v22, %v9797_v23  ;;  %5889 = vmatmul.mubr.bf16.vlgmr.msra.gmra.mxu0 %v6516_v3  ;;  %5938 = vmatmul.mubr.bf16.vlgmr.msra.gmra.mxu1 %v6518_v25  ;;  %v8368_v23 = vld [vmem:[%s10778_s1 + $0xb70] sm:$0xff]   ;;  %v7393_v38 = vpop.f32.mrf.mxu1  ;;  %v8390_v22 = vld [vmem:[%s10778_s1 + $0xb08] sm:$0xff]  }
 0x171   :  { %v7366_v33 = vpop.f32.mrf.mxu0  ;;  %7733 = vmatpush3.bf16.msra.mxu0 %v8366_v12  ;;  %7761 = vmatpush3.bf16.msra.mxu1 %v8367_v36 }
 0x172   :  { %v7367_v21 = vadd.f32 %v7366_v33, %v7365_v29  ;;  %v9932_v40 = vadd.f32 %v7392_v37, %v5311_v31  ;;  %7734 = vmatprep.subr.bf16.mxu0 %v8368_v23  ;;  %v7394_v43 = vpop.f32.mrf.mxu1  ;;  %7762 = vmatprep.subr.bf16.mxu1 %v8369_v39  ;;  %v8393_v29 = vld [vmem:[%s10778_s1 + $0xbc0] sm:$0xff]   ;;  %v66_v33 = vld [vmem:[%s10779_s0 + $0x1b0] sm:$0xff]  ;;  %v35_v23 = vld [vmem:[%s10779_s0 + $0xb8] sm:$0xff] }
 0x173   :  { %v7395_v30 = vadd.f32 %v7394_v43, %v7393_v38  ;;  %5945 = vmatprep.mubr.bf16.mxu1 %v6583_v35  ;;  %v8394_v31 = vld [vmem:[%s10778_s1 + $0xb00] sm:$0xff]   ;;  %v67_v38 = vld [vmem:[%s10779_s0 + $0x1b8] sm:$0xff] }
 0x174   :  { %v5314_v41 = vadd.f32 %v7367_v21, %v9818_v34  ;;  %v128_v34 = vld [vmem:[%s10779_s0 + $0x3a0] sm:$0xff]  ;;  %v6523_v43 = vcombine.high %v35_v23, %v67_v38 }
 0x175   :  { %7735 = vmatpush3.bf16.msra.mxu0 %v8370_v42  ;;  %7763 = vmatpush3.bf16.msra.mxu1 %v8371_v45  ;;  %v6581_v47 = vcombine.high %v96_v46, %v128_v34  ;;  %v6580_v48 = vcombine.low %v96_v46, %v128_v34  ;;  %v6522_v42 = vcombine.low %v35_v23, %v67_v38  ;;  %v8396_v45 = vld [vmem:[%s10778_s1 + $0xc78] sm:$0xff]   ;;  %v8423_v38 = vld [vmem:[%s10778_s1 + $0xc88] sm:$0xff]  }
 0x176   :  { %v9950_v50 = vadd.f32 %v7395_v30, %v5314_v41  ;;  %7736 = vmatprep.subr.bf16.mxu0 %v8372_v49  ;;  %7764 = vmatprep.subr.bf16.mxu1 %v8373_v51  ;;  %v8397_v46 = vld [vmem:[%s10778_s1 + $0xcf8] sm:$0xff]  }
 0x177   :  { %5896 = vmatprep.mubr.bf16.mxu0 %v6581_v47 }
 0x178   :  { %5897 = vmatmul.mubr.bf16.gmra.mxu0 %v6580_v48  ;;  %5946 = vmatmul.mubr.bf16.gmra.mxu1 %v6582_v57  ;;  %v8398_v48 = vld [vmem:[%s10778_s1 + $0xc38] sm:$0xff]   ;;  %v8401_v57 = vld [vmem:[%s10778_s1 + $0xcf0] sm:$0xff]  }
 0x179   :  { %7737 = vmatpush3.bf16.msra.mxu0 %v8374_v56  ;;  %7765 = vmatpush3.bf16.msra.mxu1 %v8375_v58 }
 0x17a   :  { %7738 = vmatprep.subr.bf16.mxu0 %v8376_v59  ;;  %7766 = vmatprep.subr.bf16.mxu1 %v8377_v60  ;;  %v8402_v60 = vld [vmem:[%s10778_s1 + $0xc30] sm:$0xff]  }
 0x17b   :  { %6035 = vmatprep.mubr.bf16.mxu1 %v6523_v43 }
 0x17d   :  { %7739 = vmatpush3.bf16.msra.mxu0 %v8378_v61  ;;  %7767 = vmatpush3.bf16.msra.mxu1 %v8379_v63  ;;  %v8403_v63 = vld [vmem:[%s10778_s1 + $0xcb0] sm:$0xff]  }
 0x17e   :  { %7740 = vmatprep.subr.bf16.mxu0 %v8380_v1  ;;  %7768 = vmatprep.subr.bf16.mxu1 %v8381_v44  ;;  %v98_v1 = vld [vmem:[%s10779_s0 + $0x2b0] sm:$0xff] }
 0x181   :  { %7741 = vmatpush3.bf16.msra.mxu0 %v8382_v2  ;;  %7769 = vmatpush3.bf16.msra.mxu1 %v8383_v4 }
 0x182   :  { %7742 = vmatprep.subr.bf16.mxu0 %v8384_v53  ;;  %7770 = vmatprep.subr.bf16.mxu1 %v8385_v9  ;;  %v8405_v53 = vld [vmem:[%s10778_s1 + $0xce8] sm:$0xff]   ;;  %v131_v9 = vld [vmem:[%s10779_s0 + $0x3b8] sm:$0xff] }
 0x183   :  { %v7412_v5 = vpop.f32.mrf.mxu0 }
 0x184   :  { %v7440_v7 = vpop.f32.mrf.mxu1 }
 0x185   :  { %v7413_v10 = vpop.f32.mrf.mxu0  ;;  %7743 = vmatpush3.bf16.msra.mxu0 %v8386_v52  ;;  %7771 = vmatpush3.bf16.msra.mxu1 %v8387_v14  ;;  %v8406_v52 = vld [vmem:[%s10778_s1 + $0xc28] sm:$0xff]   ;;  %v8408_v14 = vld [vmem:[%s10778_s1 + $0xc60] sm:$0xff]  }
 0x186   :  { %v7414_v11 = vadd.f32 %v7413_v10, %v7412_v5  ;;  %v7441_v13 = vpop.f32.mrf.mxu1  ;;  %7744 = vmatprep.subr.bf16.mxu0 %v8388_v17  ;;  %7772 = vmatprep.subr.bf16.mxu1 %v8389_v20  ;;  %v8404_v5 = vld [vmem:[%s10778_s1 + $0xc68] sm:$0xff]   ;;  %v8411_v17 = vld [vmem:[%s10778_s1 + $0xca0] sm:$0xff]   ;;  %v8414_v20 = vld [vmem:[%s10778_s1 + $0xc18] sm:$0xff]  }
 0x187   :  { %v7442_v0 = vadd.f32 %v7441_v13, %v7440_v7  ;;  %v7415_v16 = vpop.f32.mrf.mxu0  ;;  %v99_v7 = vld [vmem:[%s10779_s0 + $0x2b8] sm:$0xff]  ;;  %v8407_v13 = vld [vmem:[%s10778_s1 + $0xca8] sm:$0xff]  }
 0x188   :  { %v5401_v19 = vadd.f32 %v7414_v11, %v9884_v8  ;;  %v7443_v62 = vpop.f32.mrf.mxu1  ;;  %v8391_v8 = vld [vmem:[%s10778_s1 + $0xb88] sm:$0xff]   ;;  %v6587_v10 = vcombine.high %v99_v7, %v131_v9  ;;  %v6586_v11 = vcombine.low %v99_v7, %v131_v9 }
 0x189   :  { %v7416_v6 = vpop.f32.mrf.mxu0  ;;  %7745 = vmatpush3.bf16.msra.mxu0 %v8390_v22  ;;  %7773 = vmatpush3.bf16.msra.mxu1 %v8391_v8  ;;  %v8416_v22 = vld [vmem:[%s10778_s1 + $0xc50] sm:$0xff]  }
 0x18a   :  { %v10013_v3 = vadd.f32 %v7442_v0, %v5401_v19  ;;  %v7417_v24 = vadd.f32 %v7416_v6, %v7415_v16  ;;  %v7444_v25 = vpop.f32.mrf.mxu1  ;;  %7746 = vmatprep.subr.bf16.mxu0 %v8392_v27  ;;  %7774 = vmatprep.subr.bf16.mxu1 %v8393_v29  ;;  %v8409_v0 = vld [vmem:[%s10778_s1 + $0xce0] sm:$0xff]   ;;  %v8412_v19 = vld [vmem:[%s10778_s1 + $0xc58] sm:$0xff]  }
 0x18b   :  { %v7445_v26 = vadd.f32 %v7444_v25, %v7443_v62  ;;  %v7418_v15 = vpop.f32.mrf.mxu0  ;;  %v8410_v16 = vld [vmem:[%s10778_s1 + $0xc20] sm:$0xff]   ;;  %v8413_v62 = vld [vmem:[%s10778_s1 + $0xcd8] sm:$0xff]   ;;  %v8417_v25 = vld [vmem:[%s10778_s1 + $0xcd0] sm:$0xff]  }
 0x18c   :  { %v5404_v28 = vadd.f32 %v7417_v24, %v9902_v18  ;;  %v34_v18 = vld [vmem:[%s10779_s0 + $0xb0] sm:$0xff]  ;;  %v7446_v41 = vpop.f32.mrf.mxu1  ;;  %v8415_v6 = vld [vmem:[%s10778_s1 + $0xc98] sm:$0xff]  }
 0x18d   :  { %v7419_v36 = vpop.f32.mrf.mxu0  ;;  %7747 = vmatpush3.bf16.msra.mxu0 %v8394_v31  ;;  %v6520_v37 = vcombine.low %v34_v18, %v66_v33  ;;  %v6521_v21 = vcombine.high %v34_v18, %v66_v33  ;;  %7775 = vmatpush3.bf16.msra.mxu1 %v8395_v32  ;;  %v8420_v31 = vld [vmem:[%s10778_s1 + $0xc48] sm:$0xff]  }
 0x18e   :  { %v10028_v12 = vadd.f32 %v7445_v26, %v5404_v28  ;;  %v7420_v39 = vadd.f32 %v7419_v36, %v7418_v15  ;;  %v7447_v47 = vpop.f32.mrf.mxu1  ;;  %7788 = vmatprep.subr.bf16.mxu0 %v8396_v45  ;;  %7816 = vmatprep.subr.bf16.mxu1 %v8397_v46  ;;  %v8418_v26 = vld [vmem:[%s10778_s1 + $0xc10] sm:$0xff]   ;;  %v8421_v33 = vld [vmem:[%s10778_s1 + $0xcc8] sm:$0xff]   ;;  %v8425_v45 = vld [vmem:[%s10778_s1 + $0xcc0] sm:$0xff]  }
 0x18f   :  { %v7421_v30 = vpop.f32.mrf.mxu0  ;;  %5986 = vmatprep.mubr.bf16.mxu0 %v6521_v21  ;;  %v7448_v49 = vadd.f32 %v7447_v47, %v7446_v41  ;;  %v8419_v28 = vld [vmem:[%s10778_s1 + $0xc90] sm:$0xff]   ;;  %v8422_v21 = vld [vmem:[%s10778_s1 + $0xc08] sm:$0xff]   ;;  %v8427_v47 = vld [vmem:[%s10778_s1 + $0xc80] sm:$0xff]  }
 0x190   :  { %v5409_v34 = vadd.f32 %v7420_v39, %v9932_v40  ;;  %5987 = vmatmul.mubr.bf16.vlgmr.msra.gmra.mxu0 %v6520_v37  ;;  %6036 = vmatmul.mubr.bf16.vlgmr.msra.gmra.mxu1 %v6522_v42  ;;  %v7449_v35 = vpop.f32.mrf.mxu1  ;;  %v8400_v40 = vld [vmem:[%s10778_s1 + $0xc70] sm:$0xff]  }
 0x191   :  { %v7422_v51 = vpop.f32.mrf.mxu0  ;;  %7789 = vmatpush3.bf16.msra.mxu0 %v8398_v48  ;;  %7817 = vmatpush3.bf16.msra.mxu1 %v8399_v54  ;;  %v37_v54 = vld [vmem:[%s10779_s0 + $0xc8] sm:$0xff] }
 0x192   :  { %v7423_v55 = vadd.f32 %v7422_v51, %v7421_v30  ;;  %v10061_v56 = vadd.f32 %v7448_v49, %v5409_v34  ;;  %v7450_v59 = vpop.f32.mrf.mxu1  ;;  %7790 = vmatprep.subr.bf16.mxu0 %v8400_v40  ;;  %7818 = vmatprep.subr.bf16.mxu1 %v8401_v57  ;;  %v8426_v34 = vld [vmem:[%s10778_s1 + $0xc00] sm:$0xff]   ;;  %v69_v57 = vld [vmem:[%s10779_s0 + $0x1c8] sm:$0xff] }
 0x193   :  { %v7451_v61 = vadd.f32 %v7450_v59, %v7449_v35  ;;  %6043 = vmatprep.mubr.bf16.mxu1 %v6587_v10  ;;  %v36_v51 = vld [vmem:[%s10779_s0 + $0xc0] sm:$0xff]  ;;  %v8432_v10 = vld [vmem:[%s10778_s1 + $0xd70] sm:$0xff]  }
 0x194   :  { %v5412_v58 = vadd.f32 %v7423_v55, %v9950_v50  ;;  %v130_v50 = vld [vmem:[%s10779_s0 + $0x3b0] sm:$0xff] }
 0x195   :  { %7791 = vmatpush3.bf16.msra.mxu0 %v8402_v60  ;;  %7819 = vmatpush3.bf16.msra.mxu1 %v8403_v63  ;;  %v6585_v2 = vcombine.high %v98_v1, %v130_v50  ;;  %v6584_v4 = vcombine.low %v98_v1, %v130_v50  ;;  %v6526_v60 = vcombine.low %v37_v54, %v69_v57  ;;  %v8428_v63 = vld [vmem:[%s10778_s1 + $0xd78] sm:$0xff]  }
 0x196   :  { %v10079_v44 = vadd.f32 %v7451_v61, %v5412_v58  ;;  %7792 = vmatprep.subr.bf16.mxu0 %v8404_v5  ;;  %7820 = vmatprep.subr.bf16.mxu1 %v8405_v53  ;;  %v6527_v61 = vcombine.high %v37_v54, %v69_v57  ;;  %v8429_v50 = vld [vmem:[%s10778_s1 + $0xdf8] sm:$0xff]   ;;  %v8455_v57 = vld [vmem:[%s10778_s1 + $0xd88] sm:$0xff]  }
 0x197   :  { %5994 = vmatprep.mubr.bf16.mxu0 %v6585_v2  ;;  %v8430_v5 = vld [vmem:[%s10778_s1 + $0xd38] sm:$0xff]  }
 0x198   :  { %5995 = vmatmul.mubr.bf16.gmra.mxu0 %v6584_v4  ;;  %6044 = vmatmul.mubr.bf16.gmra.mxu1 %v6586_v11 }
 0x199   :  { %7793 = vmatpush3.bf16.msra.mxu0 %v8406_v52  ;;  %7821 = vmatpush3.bf16.msra.mxu1 %v8407_v13  ;;  %v8433_v13 = vld [vmem:[%s10778_s1 + $0xdf0] sm:$0xff]  }
 0x19a   :  { %7794 = vmatprep.subr.bf16.mxu0 %v8408_v14  ;;  %7822 = vmatprep.subr.bf16.mxu1 %v8409_v0  ;;  %v8434_v0 = vld [vmem:[%s10778_s1 + $0xd30] sm:$0xff]  }
 0x19b   :  { %6133 = vmatprep.mubr.bf16.mxu1 %v6527_v61  ;;  %v8457_v61 = vld [vmem:[%s10778_s1 + $0xdc0] sm:$0xff]  }
 0x19d   :  { %7795 = vmatpush3.bf16.msra.mxu0 %v8410_v16  ;;  %7823 = vmatpush3.bf16.msra.mxu1 %v8411_v17  ;;  %v8435_v17 = vld [vmem:[%s10778_s1 + $0xdb0] sm:$0xff]  }
 0x19e   :  { %7796 = vmatprep.subr.bf16.mxu0 %v8412_v19  ;;  %7824 = vmatprep.subr.bf16.mxu1 %v8413_v62  ;;  %v132_v19 = vld [vmem:[%s10779_s0 + $0x3c0] sm:$0xff] }
 0x1a1   :  { %7797 = vmatpush3.bf16.msra.mxu0 %v8414_v20  ;;  %7825 = vmatpush3.bf16.msra.mxu1 %v8415_v6  ;;  %v8436_v6 = vld [vmem:[%s10778_s1 + $0xd68] sm:$0xff]  }
 0x1a2   :  { %7798 = vmatprep.subr.bf16.mxu0 %v8416_v22  ;;  %7826 = vmatprep.subr.bf16.mxu1 %v8417_v25  ;;  %v101_v25 = vld [vmem:[%s10779_s0 + $0x2c8] sm:$0xff] }
 0x1a3   :  { %v7468_v24 = vpop.f32.mrf.mxu0 }
 0x1a4   :  { %v7496_v8 = vpop.f32.mrf.mxu1 }
 0x1a5   :  { %v7469_v27 = vpop.f32.mrf.mxu0  ;;  %7799 = vmatpush3.bf16.msra.mxu0 %v8418_v26  ;;  %7827 = vmatpush3.bf16.msra.mxu1 %v8419_v28 }
 0x1a6   :  { %v7470_v29 = vadd.f32 %v7469_v27, %v7468_v24  ;;  %v7497_v15 = vpop.f32.mrf.mxu1  ;;  %7800 = vmatprep.subr.bf16.mxu0 %v8420_v31  ;;  %7828 = vmatprep.subr.bf16.mxu1 %v8421_v33  ;;  %v8437_v24 = vld [vmem:[%s10778_s1 + $0xde8] sm:$0xff]   ;;  %v8441_v31 = vld [vmem:[%s10778_s1 + $0xde0] sm:$0xff]   ;;  %v8444_v33 = vld [vmem:[%s10778_s1 + $0xd58] sm:$0xff]  }
 0x1a7   :  { %v7498_v32 = vadd.f32 %v7497_v15, %v7496_v8  ;;  %v7471_v18 = vpop.f32.mrf.mxu0  ;;  %v133_v8 = vld [vmem:[%s10779_s0 + $0x3c8] sm:$0xff]  ;;  %v8440_v15 = vld [vmem:[%s10778_s1 + $0xd60] sm:$0xff]  }
 0x1a8   :  { %v5499_v36 = vadd.f32 %v7470_v29, %v10013_v3  ;;  %v7499_v37 = vpop.f32.mrf.mxu1  ;;  %v8424_v3 = vld [vmem:[%s10778_s1 + $0xc40] sm:$0xff]   ;;  %v6591_v26 = vcombine.high %v101_v25, %v133_v8  ;;  %v8438_v27 = vld [vmem:[%s10778_s1 + $0xd28] sm:$0xff]   ;;  %v6590_v28 = vcombine.low %v101_v25, %v133_v8 }
 0x1a9   :  { %v7472_v23 = vpop.f32.mrf.mxu0  ;;  %7801 = vmatpush3.bf16.msra.mxu0 %v8422_v21  ;;  %7829 = vmatpush3.bf16.msra.mxu1 %v8423_v38  ;;  %v8439_v29 = vld [vmem:[%s10778_s1 + $0xda8] sm:$0xff]   ;;  %v8447_v21 = vld [vmem:[%s10778_s1 + $0xd98] sm:$0xff]  }
 0x1aa   :  { %v10148_v39 = vadd.f32 %v7498_v32, %v5499_v36  ;;  %v7473_v41 = vadd.f32 %v7472_v23, %v7471_v18  ;;  %v7500_v42 = vpop.f32.mrf.mxu1  ;;  %7802 = vmatprep.subr.bf16.mxu0 %v8424_v3  ;;  %7830 = vmatprep.subr.bf16.mxu1 %v8425_v45  ;;  %v8442_v32 = vld [vmem:[%s10778_s1 + $0xd20] sm:$0xff]   ;;  %v8445_v36 = vld [vmem:[%s10778_s1 + $0xdd8] sm:$0xff]   ;;  %v8448_v23 = vld [vmem:[%s10778_s1 + $0xd50] sm:$0xff]  }
 0x1ab   :  { %v7501_v43 = vadd.f32 %v7500_v42, %v7499_v37  ;;  %v7474_v46 = vpop.f32.mrf.mxu0  ;;  %v8443_v18 = vld [vmem:[%s10778_s1 + $0xda0] sm:$0xff]   ;;  %v8446_v37 = vld [vmem:[%s10778_s1 + $0xd18] sm:$0xff]   ;;  %v8449_v42 = vld [vmem:[%s10778_s1 + $0xdd0] sm:$0xff]  }
 0x1ac   :  { %v5502_v30 = vadd.f32 %v7473_v41, %v10028_v12  ;;  %v68_v12 = vld [vmem:[%s10779_s0 + $0x1c0] sm:$0xff]  ;;  %v7502_v58 = vpop.f32.mrf.mxu1  ;;  %v8450_v3 = vld [vmem:[%s10778_s1 + $0xd10] sm:$0xff]  }
 0x1ad   :  { %v7475_v49 = vpop.f32.mrf.mxu0  ;;  %7803 = vmatpush3.bf16.msra.mxu0 %v8426_v34  ;;  %7831 = vmatpush3.bf16.msra.mxu1 %v8427_v47  ;;  %v6524_v35 = vcombine.low %v36_v51, %v68_v12  ;;  %v6525_v40 = vcombine.high %v36_v51, %v68_v12  ;;  %v8452_v47 = vld [vmem:[%s10778_s1 + $0xd48] sm:$0xff]  }
 0x1ae   :  { %v10163_v48 = vadd.f32 %v7501_v43, %v5502_v30  ;;  %v7476_v55 = vadd.f32 %v7475_v49, %v7474_v46  ;;  %v7503_v2 = vpop.f32.mrf.mxu1  ;;  %7844 = vmatprep.subr.bf16.mxu0 %v8428_v63  ;;  %7872 = vmatprep.subr.bf16.mxu1 %v8429_v50  ;;  %v8451_v30 = vld [vmem:[%s10778_s1 + $0xd90] sm:$0xff]   ;;  %v8453_v12 = vld [vmem:[%s10778_s1 + $0xdc8] sm:$0xff]   ;;  %v8458_v50 = vld [vmem:[%s10778_s1 + $0xd00] sm:$0xff]  }
 0x1af   :  { %v7477_v59 = vpop.f32.mrf.mxu0  ;;  %6084 = vmatprep.mubr.bf16.mxu0 %v6525_v40  ;;  %v7504_v53 = vadd.f32 %v7503_v2, %v7502_v58  ;;  %v8459_v2 = vld [vmem:[%s10778_s1 + $0xd80] sm:$0xff]  }
 0x1b0   :  { %v5507_v1 = vadd.f32 %v7476_v55, %v10061_v56  ;;  %6085 = vmatmul.mubr.bf16.vlgmr.msra.gmra.mxu0 %v6524_v35  ;;  %6134 = vmatmul.mubr.bf16.vlgmr.msra.gmra.mxu1 %v6526_v60  ;;  %v8431_v56 = vld [vmem:[%s10778_s1 + $0xdb8] sm:$0xff]   ;;  %v7505_v9 = vpop.f32.mrf.mxu1  ;;  %v8454_v55 = vld [vmem:[%s10778_s1 + $0xd08] sm:$0xff]  }
 0x1b1   :  { %v7478_v4 = vpop.f32.mrf.mxu0  ;;  %7845 = vmatpush3.bf16.msra.mxu0 %v8430_v5  ;;  %7873 = vmatpush3.bf16.msra.mxu1 %v8431_v56  ;;  %v71_v56 = vld [vmem:[%s10779_s0 + $0x1d8] sm:$0xff] }
 0x1b2   :  { %v7479_v7 = vadd.f32 %v7478_v4, %v7477_v59  ;;  %v10193_v52 = vadd.f32 %v7504_v53, %v5507_v1  ;;  %v7506_v14 = vpop.f32.mrf.mxu1  ;;  %7846 = vmatprep.subr.bf16.mxu0 %v8432_v10  ;;  %7874 = vmatprep.subr.bf16.mxu1 %v8433_v13  ;;  %v38_v4 = vld [vmem:[%s10779_s0 + $0xd0] sm:$0xff] }
 0x1b3   :  { %v7507_v16 = vadd.f32 %v7506_v14, %v7505_v9  ;;  %6141 = vmatprep.mubr.bf16.mxu1 %v6591_v26 }
 0x1b4   :  { %v5510_v11 = vadd.f32 %v7479_v7, %v10079_v44  ;;  %v100_v44 = vld [vmem:[%s10779_s0 + $0x2c0] sm:$0xff]  ;;  %v39_v7 = vld [vmem:[%s10779_s0 + $0xd8] sm:$0xff] }
 0x1b5   :  { %7847 = vmatpush3.bf16.msra.mxu0 %v8434_v0  ;;  %v6589_v62 = vcombine.high %v100_v44, %v132_v19  ;;  %v6588_v20 = vcombine.low %v100_v44, %v132_v19  ;;  %7875 = vmatpush3.bf16.msra.mxu1 %v8435_v17  ;;  %v6530_v13 = vcombine.low %v39_v7, %v71_v56  ;;  %v8460_v0 = vld [vmem:[%s10778_s1 + $0xe78] sm:$0xff]  }
 0x1b6   :  { %v10214_v22 = vadd.f32 %v7507_v16, %v5510_v11  ;;  %7848 = vmatprep.subr.bf16.mxu0 %v8436_v6  ;;  %7876 = vmatprep.subr.bf16.mxu1 %v8437_v24  ;;  %v6531_v14 = vcombine.high %v39_v7, %v71_v56  ;;  %v8461_v44 = vld [vmem:[%s10778_s1 + $0xef8] sm:$0xff]   ;;  %v8485_v7 = vld [vmem:[%s10778_s1 + $0xec8] sm:$0xff]  }
 0x1b7   :  { %6092 = vmatprep.mubr.bf16.mxu0 %v6589_v62  ;;  %v8462_v62 = vld [vmem:[%s10778_s1 + $0xe38] sm:$0xff]  }
 0x1b8   :  { %6093 = vmatmul.mubr.bf16.gmra.mxu0 %v6588_v20  ;;  %6142 = vmatmul.mubr.bf16.gmra.mxu1 %v6590_v28  ;;  %v8463_v24 = vld [vmem:[%s10778_s1 + $0xeb8] sm:$0xff]  }
 0x1b9   :  { %7849 = vmatpush3.bf16.msra.mxu0 %v8438_v27  ;;  %7877 = vmatpush3.bf16.msra.mxu1 %v8439_v29  ;;  %v8465_v27 = vld [vmem:[%s10778_s1 + $0xef0] sm:$0xff]  }
 0x1ba   :  { %7850 = vmatprep.subr.bf16.mxu0 %v8440_v15  ;;  %7878 = vmatprep.subr.bf16.mxu1 %v8441_v31  ;;  %v8466_v15 = vld [vmem:[%s10778_s1 + $0xe30] sm:$0xff]  }
 0x1bb   :  { %6231 = vmatprep.mubr.bf16.mxu1 %v6531_v14 }
 0x1bd   :  { %7851 = vmatpush3.bf16.msra.mxu0 %v8442_v32  ;;  %7879 = vmatpush3.bf16.msra.mxu1 %v8443_v18  ;;  %v8467_v32 = vld [vmem:[%s10778_s1 + $0xeb0] sm:$0xff]  }
 0x1be   :  { %7852 = vmatprep.subr.bf16.mxu0 %v8444_v33  ;;  %7880 = vmatprep.subr.bf16.mxu1 %v8445_v36  ;;  %v102_v33 = vld [vmem:[%s10779_s0 + $0x2d0] sm:$0xff] }
 0x1c1   :  { %7853 = vmatpush3.bf16.msra.mxu0 %v8446_v37  ;;  %7881 = vmatpush3.bf16.msra.mxu1 %v8447_v21  ;;  %v8468_v21 = vld [vmem:[%s10778_s1 + $0xe68] sm:$0xff]  }
 0x1c2   :  { %7854 = vmatprep.subr.bf16.mxu0 %v8448_v23  ;;  %7882 = vmatprep.subr.bf16.mxu1 %v8449_v42  ;;  %v135_v42 = vld [vmem:[%s10779_s0 + $0x3d8] sm:$0xff] }
 0x1c4   :  { %v7552_v41 = vpop.f32.mrf.mxu1 }
 0x1c5   :  { %7855 = vmatpush3.bf16.msra.mxu0 %v8450_v3  ;;  %7883 = vmatpush3.bf16.msra.mxu1 %v8451_v30  ;;  %v8471_v30 = vld [vmem:[%s10778_s1 + $0xea8] sm:$0xff]  }
 0x1c6   :  { %v7553_v45 = vpop.f32.mrf.mxu1  ;;  %7856 = vmatprep.subr.bf16.mxu0 %v8452_v47  ;;  %7884 = vmatprep.subr.bf16.mxu1 %v8453_v12  ;;  %v8474_v47 = vld [vmem:[%s10778_s1 + $0xe20] sm:$0xff]   ;;  %v8477_v12 = vld [vmem:[%s10778_s1 + $0xed8] sm:$0xff]  }
 0x1c7   :  { %v7554_v34 = vadd.f32 %v7553_v45, %v7552_v41  ;;  %v103_v41 = vld [vmem:[%s10779_s0 + $0x2d8] sm:$0xff] }
 0x1c8   :  { %v7555_v51 = vpop.f32.mrf.mxu1  ;;  %v6595_v3 = vcombine.high %v103_v41, %v135_v42  ;;  %v6594_v45 = vcombine.low %v103_v41, %v135_v42  ;;  %v8495_v41 = vld [vmem:[%s10778_s1 + $0xfb8] sm:$0xff]  }
 0x1c9   :  { %7857 = vmatpush3.bf16.msra.mxu0 %v8454_v55  ;;  %7885 = vmatpush3.bf16.msra.mxu1 %v8455_v57  ;;  %v8479_v55 = vld [vmem:[%s10778_s1 + $0xe98] sm:$0xff]  }
 0x1ca   :  { %v7556_v40 = vpop.f32.mrf.mxu1  ;;  %7886 = vmatprep.subr.bf16.mxu1 %v8457_v61 }
 0x1cb   :  { %v7557_v60 = vadd.f32 %v7556_v40, %v7555_v51  ;;  %v8476_v51 = vld [vmem:[%s10778_s1 + $0xe58] sm:$0xff]   ;;  %v8480_v40 = vld [vmem:[%s10778_s1 + $0xe50] sm:$0xff]  }
 0x1cc   :  { %v7558_v16 = vpop.f32.mrf.mxu1 }
 0x1cd   :  { %7887 = vmatpush3.bf16.msra.mxu1 %v8459_v2 }
 0x1ce   :  { %v7559_v20 = vpop.f32.mrf.mxu1  ;;  %7928 = vmatprep.subr.bf16.mxu1 %v8461_v44 }
 0x1cf   :  { %v7560_v25 = vadd.f32 %v7559_v20, %v7558_v16  ;;  %v8491_v20 = vld [vmem:[%s10778_s1 + $0xe80] sm:$0xff]  }
 0x1d0   :  { %v7524_v38 = vpop.f32.mrf.mxu0  ;;  %6232 = vmatmul.mubr.bf16.vlgmr.msra.gmra.mxu1 %v6530_v13  ;;  %v7561_v26 = vpop.f32.mrf.mxu1 }
 0x1d1   :  { %7929 = vmatpush3.bf16.msra.mxu1 %v8463_v24  ;;  %6239 = vmatprep.mubr.bf16.mxu1 %v6595_v3 }
 0x1d2   :  { %v7525_v43 = vpop.f32.mrf.mxu0  ;;  %v7562_v31 = vpop.f32.mrf.mxu1  ;;  %7930 = vmatprep.subr.bf16.mxu1 %v8465_v27 }
 0x1d3   :  { %v7526_v46 = vadd.f32 %v7525_v43, %v7524_v38  ;;  %v7563_v18 = vadd.f32 %v7562_v31, %v7561_v26  ;;  %v8469_v38 = vld [vmem:[%s10778_s1 + $0xee8] sm:$0xff]  }
 0x1d4   :  { %v7527_v49 = vpop.f32.mrf.mxu0  ;;  %v8470_v43 = vld [vmem:[%s10778_s1 + $0xe28] sm:$0xff]  }
 0x1d5   :  { %v5597_v54 = vadd.f32 %v7526_v46, %v10148_v39  ;;  %v8456_v39 = vld [vmem:[%s10778_s1 + $0xd40] sm:$0xff]   ;;  %7931 = vmatpush3.bf16.msra.mxu1 %v8467_v32  ;;  %v73_v26 = vld [vmem:[%s10779_s0 + $0x1e8] sm:$0xff]  ;;  %v8492_v32 = vld [vmem:[%s10778_s1 + $0xf78] sm:$0xff]  }
 0x1d6   :  { %v7528_v35 = vpop.f32.mrf.mxu0  ;;  %7858 = vmatprep.subr.bf16.mxu0 %v8456_v39  ;;  %7932 = vmatprep.subr.bf16.mxu1 %v8469_v38  ;;  %v8472_v46 = vld [vmem:[%s10778_s1 + $0xe60] sm:$0xff]   ;;  %v8482_v39 = vld [vmem:[%s10778_s1 + $0xe10] sm:$0xff]  }
 0x1d7   :  { %v10280_v58 = vadd.f32 %v7554_v34, %v5597_v54  ;;  %v7529_v59 = vadd.f32 %v7528_v35, %v7527_v49  ;;  %7859 = vmatpush3.bf16.msra.mxu0 %v8458_v50  ;;  %v8473_v34 = vld [vmem:[%s10778_s1 + $0xee0] sm:$0xff]   ;;  %v8478_v54 = vld [vmem:[%s10778_s1 + $0xe18] sm:$0xff]  }
 0x1d8   :  { %v7530_v1 = vpop.f32.mrf.mxu0  ;;  %7900 = vmatprep.subr.bf16.mxu0 %v8460_v0  ;;  %6240 = vmatmul.mubr.bf16.gmra.mxu1 %v6594_v45  ;;  %v8475_v49 = vld [vmem:[%s10778_s1 + $0xea0] sm:$0xff]   ;;  %v8497_v45 = vld [vmem:[%s10778_s1 + $0xff0] sm:$0xff]  }
 0x1d9   :  { %v5600_v63 = vadd.f32 %v7529_v59, %v10163_v48  ;;  %v70_v48 = vld [vmem:[%s10779_s0 + $0x1d0] sm:$0xff]  ;;  %7933 = vmatpush3.bf16.msra.mxu1 %v8471_v30  ;;  %v8488_v0 = vld [vmem:[%s10778_s1 + $0xe40] sm:$0xff]  }
 0x1da   :  { %v7531_v53 = vpop.f32.mrf.mxu0  ;;  %v6528_v10 = vcombine.low %v38_v4, %v70_v48  ;;  %v6529_v11 = vcombine.high %v38_v4, %v70_v48  ;;  %7934 = vmatprep.subr.bf16.mxu1 %v8473_v34  ;;  %v8481_v59 = vld [vmem:[%s10778_s1 + $0xed0] sm:$0xff]   ;;  %v8484_v4 = vld [vmem:[%s10778_s1 + $0xe48] sm:$0xff]  }
 0x1db   :  { %v10298_v5 = vadd.f32 %v7557_v60, %v5600_v63  ;;  %v7532_v9 = vadd.f32 %v7531_v53, %v7530_v1  ;;  %v8483_v1 = vld [vmem:[%s10778_s1 + $0xe90] sm:$0xff]  }
 0x1dc   :  { %v7533_v17 = vpop.f32.mrf.mxu0  ;;  %6182 = vmatprep.mubr.bf16.mxu0 %v6529_v11  ;;  %v8498_v34 = vld [vmem:[%s10778_s1 + $0xf30] sm:$0xff]  }
 0x1dd   :  { %v5605_v19 = vadd.f32 %v7532_v9, %v10193_v52  ;;  %6183 = vmatmul.mubr.bf16.vlgmr.msra.gmra.mxu0 %v6528_v10  ;;  %v8464_v52 = vld [vmem:[%s10778_s1 + $0xe70] sm:$0xff]   ;;  %7935 = vmatpush3.bf16.msra.mxu1 %v8475_v49  ;;  %v8486_v9 = vld [vmem:[%s10778_s1 + $0xe08] sm:$0xff]  }
 0x1de   :  { %v7534_v6 = vpop.f32.mrf.mxu0  ;;  %7901 = vmatpush3.bf16.msra.mxu0 %v8462_v62  ;;  %7936 = vmatprep.subr.bf16.mxu1 %v8477_v12  ;;  %v8499_v49 = vld [vmem:[%s10778_s1 + $0xfb0] sm:$0xff]  }
 0x1df   :  { %v7535_v8 = vadd.f32 %v7534_v6, %v7533_v17  ;;  %v10328_v28 = vadd.f32 %v7560_v25, %v5605_v19  ;;  %7902 = vmatprep.subr.bf16.mxu0 %v8464_v52  ;;  %v8489_v17 = vld [vmem:[%s10778_s1 + $0xec0] sm:$0xff]   ;;  %v41_v52 = vld [vmem:[%s10779_s0 + $0xe8] sm:$0xff] }
 0x1e0   :  { %v8490_v19 = vld [vmem:[%s10778_s1 + $0xe00] sm:$0xff]   ;;  %v6535_v31 = vcombine.high %v41_v52, %v73_v26 }
 0x1e1   :  { %v5608_v29 = vadd.f32 %v7535_v8, %v10214_v22  ;;  %v134_v22 = vld [vmem:[%s10779_s0 + $0x3d0] sm:$0xff]  ;;  %7937 = vmatpush3.bf16.msra.mxu1 %v8479_v55  ;;  %v72_v6 = vld [vmem:[%s10779_s0 + $0x1e0] sm:$0xff] }
 0x1e2   :  { %7903 = vmatpush3.bf16.msra.mxu0 %v8466_v15  ;;  %v6593_v36 = vcombine.high %v102_v33, %v134_v22  ;;  %v6592_v37 = vcombine.low %v102_v33, %v134_v22  ;;  %7938 = vmatprep.subr.bf16.mxu1 %v8481_v59  ;;  %v6534_v15 = vcombine.low %v41_v52, %v73_v26  ;;  %v8493_v33 = vld [vmem:[%s10778_s1 + $0xff8] sm:$0xff]   ;;  %v137_v59 = vld [vmem:[%s10779_s0 + $0x3e8] sm:$0xff] }
 0x1e3   :  { %v10346_v23 = vadd.f32 %v7563_v18, %v5608_v29  ;;  %7904 = vmatprep.subr.bf16.mxu0 %v8468_v21  ;;  %6329 = vmatprep.mubr.bf16.mxu1 %v6535_v31  ;;  %v8519_v26 = vld [vmem:[%s10778_s1 + $0xf88] sm:$0xff]  }
 0x1e4   :  { %6190 = vmatprep.mubr.bf16.mxu0 %v6593_v36 }
 0x1e5   :  { %6191 = vmatmul.mubr.bf16.gmra.mxu0 %v6592_v37  ;;  %7939 = vmatpush3.bf16.msra.mxu1 %v8483_v1  ;;  %v8494_v37 = vld [vmem:[%s10778_s1 + $0xf38] sm:$0xff]   ;;  %v8504_v1 = vld [vmem:[%s10778_s1 + $0xf60] sm:$0xff]  }
 0x1e6   :  { %7905 = vmatpush3.bf16.msra.mxu0 %v8470_v43  ;;  %7940 = vmatprep.subr.bf16.mxu1 %v8485_v7  ;;  %v8510_v7 = vld [vmem:[%s10778_s1 + $0xf18] sm:$0xff]  }
 0x1e7   :  { %7906 = vmatprep.subr.bf16.mxu0 %v8472_v46 }
 0x1ea   :  { %7907 = vmatpush3.bf16.msra.mxu0 %v8474_v47 }
 0x1eb   :  { %7908 = vmatprep.subr.bf16.mxu0 %v8476_v51  ;;  %v104_v51 = vld [vmem:[%s10779_s0 + $0x2e0] sm:$0xff] }
 0x1ee   :  { %7909 = vmatpush3.bf16.msra.mxu0 %v8478_v54 }
 0x1ef   :  { %7910 = vmatprep.subr.bf16.mxu0 %v8480_v40  ;;  %v8501_v40 = vld [vmem:[%s10778_s1 + $0xfe8] sm:$0xff]  }
 0x1f0   :  { %v7580_v35 = vpop.f32.mrf.mxu0  ;;  %v7608_v57 = vpop.f32.mrf.mxu1 }
 0x1f2   :  { %v7581_v60 = vpop.f32.mrf.mxu0  ;;  %v7609_v63 = vpop.f32.mrf.mxu1  ;;  %7911 = vmatpush3.bf16.msra.mxu0 %v8482_v39 }
 0x1f3   :  { %v7582_v61 = vadd.f32 %v7581_v60, %v7580_v35  ;;  %v7610_v50 = vadd.f32 %v7609_v63, %v7608_v57  ;;  %7912 = vmatprep.subr.bf16.mxu0 %v8484_v4  ;;  %v8500_v35 = vld [vmem:[%s10778_s1 + $0xf68] sm:$0xff]   ;;  %v8507_v4 = vld [vmem:[%s10778_s1 + $0xfa0] sm:$0xff]  }
 0x1f4   :  { %v7583_v2 = vpop.f32.mrf.mxu0  ;;  %v7611_v48 = vpop.f32.mrf.mxu1  ;;  %v105_v57 = vld [vmem:[%s10779_s0 + $0x2e8] sm:$0xff] }
 0x1f5   :  { %v5695_v53 = vadd.f32 %v7582_v61, %v10280_v58  ;;  %v8487_v58 = vld [vmem:[%s10778_s1 + $0xe88] sm:$0xff]   ;;  %v6598_v60 = vcombine.low %v105_v57, %v137_v59  ;;  %v6599_v39 = vcombine.high %v105_v57, %v137_v59 }
 0x1f6   :  { %v7584_v56 = vpop.f32.mrf.mxu0  ;;  %v7612_v13 = vpop.f32.mrf.mxu1  ;;  %7913 = vmatpush3.bf16.msra.mxu0 %v8486_v9  ;;  %7941 = vmatpush3.bf16.msra.mxu1 %v8487_v58  ;;  %v8502_v61 = vld [vmem:[%s10778_s1 + $0xf28] sm:$0xff]   ;;  %v8512_v9 = vld [vmem:[%s10778_s1 + $0xf50] sm:$0xff]  }
 0x1f7   :  { %v10409_v10 = vadd.f32 %v7610_v50, %v5695_v53  ;;  %v7585_v11 = vadd.f32 %v7584_v56, %v7583_v2  ;;  %v7613_v14 = vadd.f32 %v7612_v13, %v7611_v48  ;;  %7914 = vmatprep.subr.bf16.mxu0 %v8488_v0  ;;  %7942 = vmatprep.subr.bf16.mxu1 %v8489_v17  ;;  %v8503_v63 = vld [vmem:[%s10778_s1 + $0xfa8] sm:$0xff]   ;;  %v8505_v50 = vld [vmem:[%s10778_s1 + $0xfe0] sm:$0xff]   ;;  %v8508_v53 = vld [vmem:[%s10778_s1 + $0xf58] sm:$0xff]  }
 0x1f8   :  { %v7586_v44 = vpop.f32.mrf.mxu0  ;;  %v7614_v29 = vpop.f32.mrf.mxu1  ;;  %v8506_v2 = vld [vmem:[%s10778_s1 + $0xf20] sm:$0xff]   ;;  %v8509_v48 = vld [vmem:[%s10778_s1 + $0xfd8] sm:$0xff]   ;;  %v8513_v13 = vld [vmem:[%s10778_s1 + $0xfd0] sm:$0xff]  }
 0x1f9   :  { %v5698_v16 = vadd.f32 %v7585_v11, %v10298_v5  ;;  %v40_v5 = vld [vmem:[%s10779_s0 + $0xe0] sm:$0xff]  ;;  %v8511_v56 = vld [vmem:[%s10778_s1 + $0xf98] sm:$0xff]  }
 0x1fa   :  { %v7587_v24 = vpop.f32.mrf.mxu0  ;;  %7915 = vmatpush3.bf16.msra.mxu0 %v8490_v19  ;;  %v6532_v25 = vcombine.low %v40_v5, %v72_v6  ;;  %v6533_v8 = vcombine.high %v40_v5, %v72_v6  ;;  %7943 = vmatpush3.bf16.msra.mxu1 %v8491_v20  ;;  %v7615_v36 = vpop.f32.mrf.mxu1  ;;  %v8516_v19 = vld [vmem:[%s10778_s1 + $0xf48] sm:$0xff]  }
 0x1fb   :  { %v10424_v62 = vadd.f32 %v7613_v14, %v5698_v16  ;;  %v7588_v27 = vadd.f32 %v7587_v24, %v7586_v44  ;;  %v7616_v21 = vadd.f32 %v7615_v36, %v7614_v29  ;;  %7956 = vmatprep.subr.bf16.mxu0 %v8492_v32  ;;  %7984 = vmatprep.subr.bf16.mxu1 %v8493_v33  ;;  %v8514_v14 = vld [vmem:[%s10778_s1 + $0xf10] sm:$0xff]   ;;  %v8517_v6 = vld [vmem:[%s10778_s1 + $0xfc8] sm:$0xff]   ;;  %v8521_v32 = vld [vmem:[%s10778_s1 + $0xfc0] sm:$0xff]  }
 0x1fc   :  { %v7589_v18 = vpop.f32.mrf.mxu0  ;;  %6280 = vmatprep.mubr.bf16.mxu0 %v6533_v8  ;;  %v7617_v3 = vpop.f32.mrf.mxu1  ;;  %v8515_v16 = vld [vmem:[%s10778_s1 + $0xf90] sm:$0xff]   ;;  %v8518_v8 = vld [vmem:[%s10778_s1 + $0xf08] sm:$0xff]   ;;  %v8523_v36 = vld [vmem:[%s10778_s1 + $0xf80] sm:$0xff]  }
 0x1fd   :  { %v5703_v22 = vadd.f32 %v7588_v27, %v10328_v28  ;;  %6281 = vmatmul.mubr.bf16.vlgmr.msra.gmra.mxu0 %v6532_v25  ;;  %6330 = vmatmul.mubr.bf16.vlgmr.msra.gmra.mxu1 %v6534_v15  ;;  %v8496_v28 = vld [vmem:[%s10778_s1 + $0xf70] sm:$0xff]  }
 0x1fe   :  { %v7590_v38 = vpop.f32.mrf.mxu0  ;;  %7957 = vmatpush3.bf16.msra.mxu0 %v8494_v37  ;;  %7985 = vmatpush3.bf16.msra.mxu1 %v8495_v41  ;;  %v7618_v46 = vpop.f32.mrf.mxu1  ;;  %v43_v41 = vld [vmem:[%s10779_s0 + $0xf8] sm:$0xff] }
 0x1ff   :  { %v7591_v42 = vadd.f32 %v7590_v38, %v7589_v18  ;;  %v10457_v43 = vadd.f32 %v7616_v21, %v5703_v22  ;;  %7958 = vmatprep.subr.bf16.mxu0 %v8496_v28  ;;  %v7619_v47 = vadd.f32 %v7618_v46, %v7617_v3  ;;  %7986 = vmatprep.subr.bf16.mxu1 %v8497_v45  ;;  %v8522_v22 = vld [vmem:[%s10778_s1 + $0xf00] sm:$0xff]   ;;  %v42_v38 = vld [vmem:[%s10779_s0 + $0xf0] sm:$0xff]  ;;  %v75_v45 = vld [vmem:[%s10779_s0 + $0x1f8] sm:$0xff] }
 0x200   :  { %6337 = vmatprep.mubr.bf16.mxu1 %v6599_v39  ;;  %v138_v46 = vld [vmem:[%s10779_s0 + $0x3f0] sm:$0xff] }
 0x201   :  { %v5706_v30 = vadd.f32 %v7591_v42, %v10346_v23  ;;  %v136_v23 = vld [vmem:[%s10779_s0 + $0x3e0] sm:$0xff] }
 0x202   :  { %7959 = vmatpush3.bf16.msra.mxu0 %v8498_v34  ;;  %7987 = vmatpush3.bf16.msra.mxu1 %v8499_v49  ;;  %v6596_v54 = vcombine.low %v104_v51, %v136_v23  ;;  %v6597_v55 = vcombine.high %v104_v51, %v136_v23  ;;  %v6538_v49 = vcombine.low %v43_v41, %v75_v45 }
 0x203   :  { %v10475_v12 = vadd.f32 %v7619_v47, %v5706_v30  ;;  %7960 = vmatprep.subr.bf16.mxu0 %v8500_v35  ;;  %7988 = vmatprep.subr.bf16.mxu1 %v8501_v40  ;;  %v106_v30 = vld [vmem:[%s10779_s0 + $0x2f0] sm:$0xff]  ;;  %v6539_v51 = vcombine.high %v43_v41, %v75_v45 }
 0x204   :  { %6288 = vmatprep.mubr.bf16.mxu0 %v6597_v55  ;;  %v6601_v23 = vcombine.high %v106_v30, %v138_v46  ;;  %v139_v55 = vld [vmem:[%s10779_s0 + $0x3f8] sm:$0xff] }
 0x205   :  { %6289 = vmatmul.mubr.bf16.gmra.mxu0 %v6596_v54  ;;  %6338 = vmatmul.mubr.bf16.gmra.mxu1 %v6598_v60  ;;  %v107_v54 = vld [vmem:[%s10779_s0 + $0x2f8] sm:$0xff] }
 0x206   :  { %7961 = vmatpush3.bf16.msra.mxu0 %v8502_v61  ;;  %7989 = vmatpush3.bf16.msra.mxu1 %v8503_v63  ;;  %v6603_v35 = vcombine.high %v107_v54, %v139_v55 }
 0x207   :  { %7962 = vmatprep.subr.bf16.mxu0 %v8504_v1  ;;  %7990 = vmatprep.subr.bf16.mxu1 %v8505_v50 }
 0x208   :  { %6427 = vmatprep.mubr.bf16.mxu1 %v6539_v51 }
 0x20a   :  { %7963 = vmatpush3.bf16.msra.mxu0 %v8506_v2  ;;  %7991 = vmatpush3.bf16.msra.mxu1 %v8507_v4  ;;  %v6600_v2 = vcombine.low %v106_v30, %v138_v46 }
 0x20b   :  { %7964 = vmatprep.subr.bf16.mxu0 %v8508_v53  ;;  %7992 = vmatprep.subr.bf16.mxu1 %v8509_v48  ;;  %v6602_v53 = vcombine.low %v107_v54, %v139_v55 }
 0x20e   :  { %7965 = vmatpush3.bf16.msra.mxu0 %v8510_v7  ;;  %7993 = vmatpush3.bf16.msra.mxu1 %v8511_v56 }
 0x20f   :  { %7966 = vmatprep.subr.bf16.mxu0 %v8512_v9  ;;  %7994 = vmatprep.subr.bf16.mxu1 %v8513_v13 }
 0x210   :  { %v7636_v11 = vpop.f32.mrf.mxu0  ;;  %v7664_v58 = vpop.f32.mrf.mxu1 }
 0x212   :  { %v7637_v0 = vpop.f32.mrf.mxu0  ;;  %v7665_v44 = vpop.f32.mrf.mxu1  ;;  %7967 = vmatpush3.bf16.msra.mxu0 %v8514_v14  ;;  %7995 = vmatpush3.bf16.msra.mxu1 %v8515_v16 }
 0x213   :  { %v7638_v17 = vadd.f32 %v7637_v0, %v7636_v11  ;;  %v7666_v20 = vadd.f32 %v7665_v44, %v7664_v58  ;;  %7968 = vmatprep.subr.bf16.mxu0 %v8516_v19  ;;  %7996 = vmatprep.subr.bf16.mxu1 %v8517_v6 }
 0x214   :  { %v7639_v5 = vpop.f32.mrf.mxu0  ;;  %v7667_v25 = vpop.f32.mrf.mxu1 }
 0x215   :  { %v5793_v24 = vadd.f32 %v7638_v17, %v10409_v10  ;;  %v8520_v10 = vld [vmem:[%s10778_s1 + $0xf40] sm:$0xff]  }
 0x216   :  { %v7640_v52 = vpop.f32.mrf.mxu0  ;;  %v7668_v15 = vpop.f32.mrf.mxu1  ;;  %7969 = vmatpush3.bf16.msra.mxu0 %v8518_v8  ;;  %7997 = vmatpush3.bf16.msra.mxu1 %v8519_v26 }
 0x217   :  { %v10544_v27 = vadd.f32 %v7666_v20, %v5793_v24  ;;  %v7641_v29 = vadd.f32 %v7640_v52, %v7639_v5  ;;  %v7669_v31 = vadd.f32 %v7668_v15, %v7667_v25  ;;  %7970 = vmatprep.subr.bf16.mxu0 %v8520_v10  ;;  %7998 = vmatprep.subr.bf16.mxu1 %v8521_v32 }
 0x218   :  { %v7642_v33 = vpop.f32.mrf.mxu0  ;;  %v7670_v34 = vpop.f32.mrf.mxu1 }
 0x219   :  { %v5796_v18 = vadd.f32 %v7641_v29, %v10424_v62  ;;  %v74_v62 = vld [vmem:[%s10779_s0 + $0x1f0] sm:$0xff] }
 0x21a   :  { %v7643_v21 = vpop.f32.mrf.mxu0  ;;  %7971 = vmatpush3.bf16.msra.mxu0 %v8522_v22  ;;  %7999 = vmatpush3.bf16.msra.mxu1 %v8523_v36  ;;  %v6536_v3 = vcombine.low %v42_v38, %v74_v62  ;;  %v6537_v28 = vcombine.high %v42_v38, %v74_v62  ;;  %v7671_v57 = vpop.f32.mrf.mxu1 }
 0x21b   :  { %v10559_v37 = vadd.f32 %v7669_v31, %v5796_v18  ;;  %v7644_v42 = vadd.f32 %v7643_v21, %v7642_v33  ;;  %v7672_v60 = vadd.f32 %v7671_v57, %v7670_v34 }
 0x21c   :  { %v7645_v47 = vpop.f32.mrf.mxu0  ;;  %6378 = vmatprep.mubr.bf16.mxu0 %v6537_v28  ;;  %v7673_v61 = vpop.f32.mrf.mxu1 }
 0x21d   :  { %v5801_v40 = vadd.f32 %v7644_v42, %v10457_v43  ;;  %6379 = vmatmul.mubr.bf16.vlgmr.msra.gmra.mxu0 %v6536_v3  ;;  %6428 = vmatmul.mubr.bf16.vlgmr.msra.gmra.mxu1 %v6538_v49 }
 0x21e   :  { %v7646_v59 = vpop.f32.mrf.mxu0  ;;  %6386 = vmatprep.mubr.bf16.mxu0 %v6601_v23  ;;  %6435 = vmatprep.mubr.bf16.mxu1 %v6603_v35  ;;  %v7674_v50 = vpop.f32.mrf.mxu1 }
 0x21f   :  { %v7647_v39 = vadd.f32 %v7646_v59, %v7645_v47  ;;  %v10586_v63 = vadd.f32 %v7672_v60, %v5801_v40  ;;  %v7675_v4 = vadd.f32 %v7674_v50, %v7673_v61 }
 0x221   :  { %v5804_v1 = vadd.f32 %v7647_v39, %v10475_v12 }
 0x223   :  { %v10589_v48 = vadd.f32 %v7675_v4, %v5804_v1 }
 0x225   :  { %6387 = vmatmul.mubr.bf16.gmra.mxu0 %v6600_v2  ;;  %6436 = vmatmul.mubr.bf16.gmra.mxu1 %v6602_v53 }
 0x230   :  { %v10591_v43 = vpop.f32.mrf.mxu0  ;;  %v10597_v9 = vpop.f32.mrf.mxu1 }
 0x232   :  { %v10593_v7 = vpop.f32.mrf.mxu0  ;;  %v10601_v13 = vpop.f32.mrf.mxu1 }
 0x234   :  { %v10595_v56 = vpop.f32.mrf.mxu0  ;;  %v10605_v58 = vpop.f32.mrf.mxu1 }
 0x236   :  { %v10599_v11 = vpop.f32.mrf.mxu0  ;;  %v10609_v0 = vpop.f32.mrf.mxu1 }
 0x238   :  { %v10603_v12 = vpop.f32.mrf.mxu0  ;;  %v10613_v17 = vpop.f32.mrf.mxu1 }
 0x23a   :  { %v10607_v14 = vpop.f32.mrf.mxu0  ;;  %v10617_v19 = vpop.f32.mrf.mxu1 }
 0x23c   :  { %v10611_v16 = vpop.f32.mrf.mxu0  ;;  %v10619_v5 = vpop.f32.mrf.mxu1 }
 0x23e   :  { %v10615_v44 = vpop.f32.mrf.mxu0  ;;  %v10621_v24 = vpop.f32.mrf.mxu1 }
 0x250   :  { %v7748_v20 = vpop.f32.mrf.mxu0  ;;  %v7776_v8 = vpop.f32.mrf.mxu1 }
 0x252   :  { %v7749_v6 = vpop.f32.mrf.mxu0  ;;  %v7777_v26 = vpop.f32.mrf.mxu1 }
 0x254   :  { %v7751_v25 = vpop.f32.mrf.mxu0  ;;  %v10625_v15 = vpop.f32.mrf.mxu1 }
 0x256   :  { %v7752_v52 = vpop.f32.mrf.mxu0  ;;  %v10629_v31 = vpop.f32.mrf.mxu1 }
 0x258   :  { %v10623_v29 = vpop.f32.mrf.mxu0  ;;  %v10631_v32 = vpop.f32.mrf.mxu1 }
 0x25a   :  { %v10627_v10 = vpop.f32.mrf.mxu0  ;;  %v10635_v33 = vpop.f32.mrf.mxu1 }
 0x25c   :  { %v10633_v18 = vpop.f32.mrf.mxu0  ;;  %v10639_v21 = vpop.f32.mrf.mxu1 }
 0x25e   :  { %v10637_v22 = vpop.f32.mrf.mxu0  ;;  %v10641_v62 = vpop.f32.mrf.mxu1 }
 0x270   :  { %v7804_v36 = vpop.f32.mrf.mxu0  ;;  %v10643_v41 = vpop.f32.mrf.mxu1 }
 0x272   :  { %v7805_v38 = vpop.f32.mrf.mxu0  ;;  %v7833_v3 = vpop.f32.mrf.mxu1 }
 0x274   :  { %v10645_v42 = vpop.f32.mrf.mxu0  ;;  %v10647_v45 = vpop.f32.mrf.mxu1 }
 0x276   :  { %v7808_v28 = vpop.f32.mrf.mxu0  ;;  %v10651_v46 = vpop.f32.mrf.mxu1 }
 0x278   :  { %v10649_v30 = vpop.f32.mrf.mxu0  ;;  %v10655_v47 = vpop.f32.mrf.mxu1 }
 0x27a   :  { %v10653_v34 = vpop.f32.mrf.mxu0  ;;  %v10659_v51 = vpop.f32.mrf.mxu1 }
 0x27b   :  { %10782 = vst [vmem:[#allocation3_spill] sm:$0xff] %v10659_v51 }
 0x27c   :  { %v10657_v49 = vpop.f32.mrf.mxu0  ;;  %v10663_v54 = vpop.f32.mrf.mxu1 }
 0x27d   :  { %10781 = vst [vmem:[#allocation2_spill] sm:$0xff] %v10657_v49  ;;  %10784 = vst [vmem:[#allocation5_spill] sm:$0xff] %v10663_v54 }
 0x27e   :  { %v10661_v23 = vpop.f32.mrf.mxu0  ;;  %v10665_v35 = vpop.f32.mrf.mxu1 }
 0x27f   :  { %10783 = vst [vmem:[#allocation4_spill] sm:$0xff] %v10661_v23  ;;  %10785 = vst [vmem:[#allocation6_spill] sm:$0xff] %v10665_v35 }
 0x290   :  { %v10667_v57 = vpop.f32.mrf.mxu1 }
 0x292   :  { %v10671_v60 = vpop.f32.mrf.mxu1 }
 0x294   :  { %v10675_v61 = vpop.f32.mrf.mxu1 }
 0x295   :  { %10786 = vst [vmem:[#allocation7_spill] sm:$0xff] %v10675_v61  ;;  %v7694_v61 = vadd.f32 %v10593_v7, %v10591_v43 }
 0x296   :  { %v10679_v50 = vpop.f32.mrf.mxu1 }
 0x297   :  { %10788 = vst [vmem:[#allocation9_spill] sm:$0xff] %v10679_v50 }
 0x298   :  { %v10681_v2 = vpop.f32.mrf.mxu1 }
 0x299   :  { %10789 = vst [vmem:[#allocation10_spill] sm:$0xff] %v10681_v2  ;;  %v5891_v2 = vadd.f32 %v7694_v61, %v10544_v27  ;;  %v7725_v27 = vadd.f32 %v10609_v0, %v10605_v58 }
 0x29a   :  { %v10685_v53 = vpop.f32.mrf.mxu1 }
 0x29b   :  { %10791 = vst [vmem:[#allocation12_spill] sm:$0xff] %v10685_v53  ;;  %v7722_v53 = vadd.f32 %v10601_v13, %v10597_v9  ;;  %v7753_v9 = vadd.f32 %v7752_v52, %v7751_v25 }
 0x29c   :  { %v10689_v54 = vpop.f32.mrf.mxu1 }
 0x29d   :  { %v7860_v55 = vpop.f32.mrf.mxu0  ;;  %10793 = vst [vmem:[#allocation14_spill] sm:$0xff] %v10689_v54  ;;  %v7750_v54 = vadd.f32 %v7749_v6, %v7748_v20  ;;  %v5940_v7 = vadd.f32 %v7722_v53, %v5891_v2  ;;  %v7806_v6 = vadd.f32 %v7805_v38, %v7804_v36  ;;  %v7784_v36 = vadd.f32 %v10635_v33, %v10631_v32 }
 0x29e   :  { %v10695_v51 = vpop.f32.mrf.mxu1  ;;  %v7837_v32 = vadd.f32 %v10651_v46, %v10647_v45 }
 0x29f   :  { %v7861_v40 = vpop.f32.mrf.mxu0  ;;  %10795 = vst [vmem:[#allocation16_spill] sm:$0xff] %v10695_v51  ;;  %v5989_v61 = vadd.f32 %v7750_v54, %v5940_v7 }
 0x2a1   :  { %v10669_v59 = vpop.f32.mrf.mxu0 }
 0x2a3   :  { %v10673_v39 = vpop.f32.mrf.mxu0 }
 0x2a5   :  { %v10677_v1 = vpop.f32.mrf.mxu0 }
 0x2a6   :  { %10787 = vst [vmem:[#allocation8_spill] sm:$0xff] %v10677_v1 }
 0x2a7   :  { %v10683_v4 = vpop.f32.mrf.mxu0 }
 0x2a8   :  { %10790 = vst [vmem:[#allocation11_spill] sm:$0xff] %v10683_v4 }
 0x2a9   :  { %v10687_v35 = vpop.f32.mrf.mxu0 }
 0x2aa   :  { %10792 = vst [vmem:[#allocation13_spill] sm:$0xff] %v10687_v35  ;;  %v7697_v35 = vadd.f32 %v10599_v11, %v10595_v56  ;;  %v7728_v11 = vadd.f32 %v10617_v19, %v10613_v17  ;;  %v7834_v19 = vadd.f32 %v7833_v3, %v10643_v41 }
 0x2ab   :  { %v10691_v23 = vpop.f32.mrf.mxu0 }
 0x2ac   :  { %10794 = vst [vmem:[#allocation15_spill] sm:$0xff] %v10691_v23  ;;  %v7700_v23 = vadd.f32 %v10607_v14, %v10603_v12  ;;  %v5894_v51 = vadd.f32 %v7697_v35, %v10559_v37  ;;  %v7703_v12 = vadd.f32 %v10615_v44, %v10611_v16  ;;  %v7756_v37 = vadd.f32 %v10627_v10, %v10623_v29  ;;  %v10799_v35 = vld [vmem:[#allocation4_spill] sm:$0xff] }
 0x2ad   :  { %v7781_v16 = vadd.f32 %v10629_v31, %v10625_v15  ;;  %v10800_v45 = vld [vmem:[#allocation8_spill] sm:$0xff] }
 0x2ae   :  { %v5899_v56 = vadd.f32 %v7700_v23, %v10586_v63  ;;  %v5943_v20 = vadd.f32 %v7725_v27, %v5894_v51  ;;  %v5902_v52 = vadd.f32 %v7703_v12, %v10589_v48  ;;  %v7731_v63 = vadd.f32 %v10621_v24, %v10619_v5 }
 0x2af   :  { %v7759_v48 = vadd.f32 %v10637_v22, %v10633_v18  ;;  %v7862_v51 = vadd.f32 %v7861_v40, %v7860_v55  ;;  %v7812_v24 = vadd.f32 %v10653_v34, %v10649_v30  ;;  %v7890_v18 = vadd.f32 %v10671_v60, %v10667_v57  ;;  %v10797_v34 = vld [vmem:[#allocation3_spill] sm:$0xff]  ;;  %v10798_v55 = vld [vmem:[#allocation2_spill] sm:$0xff] }
 0x2b0   :  { %v5992_v0 = vadd.f32 %v7753_v9, %v5943_v20  ;;  %v5948_v25 = vadd.f32 %v7728_v11, %v5899_v56  ;;  %v5951_v5 = vadd.f32 %v7731_v63, %v5902_v52  ;;  %v7865_v22 = vadd.f32 %v10673_v39, %v10669_v59  ;;  %v10801_v46 = vld [vmem:[#allocation11_spill] sm:$0xff]  ;;  %v10802_v59 = vld [vmem:[#allocation5_spill] sm:$0xff]  ;;  %v10803_v39 = vld [vmem:[#allocation6_spill] sm:$0xff] }
 0x2b1   :  { %v7840_v54 = vadd.f32 %v10797_v34, %v10655_v47  ;;  %v7815_v40 = vadd.f32 %v10799_v35, %v10798_v55  ;;  %v7868_v7 = vadd.f32 %v10801_v46, %v10800_v45  ;;  %v7843_v9 = vadd.f32 %v10803_v39, %v10802_v59  ;;  %v10804_v47 = vld [vmem:[#allocation7_spill] sm:$0xff]  ;;  %v10805_v11 = vld [vmem:[#allocation9_spill] sm:$0xff] }
 0x2b2   :  { %v5997_v10 = vadd.f32 %v7756_v37, %v5948_v25  ;;  %v6041_v38 = vadd.f32 %v7781_v16, %v5992_v0  ;;  %v7893_v12 = vadd.f32 %v10805_v11, %v10804_v47  ;;  %v10807_v0 = vld [vmem:[#allocation10_spill] sm:$0xff]  ;;  %v10808_v25 = vld [vmem:[#allocation12_spill] sm:$0xff]  ;;  %v10809_v63 = vld [vmem:[#allocation13_spill] sm:$0xff] }
 0x2b3   :  { %v7896_v52 = vadd.f32 %v10808_v25, %v10807_v0  ;;  %v10810_v16 = vld [vmem:[#allocation15_spill] sm:$0xff] }
 0x2b4   :  { %v6046_v3 = vadd.f32 %v7784_v36, %v5997_v10 }
 0x2b6   :  { %v6095_v30 = vadd.f32 %v7812_v24, %v6046_v3 }
 0x2b8   :  { %v6144_v60 = vadd.f32 %v7840_v54, %v6095_v30 }
 0x2bd   :  { %v7916_v49 = vpop.f32.mrf.mxu0  ;;  %v10697_v1 = vpop.f32.mrf.mxu1 }
 0x2be   :  { %10796 = vst [vmem:[#allocation17_spill] sm:$0xff] %v10697_v1  ;;  %v7778_v1 = vadd.f32 %v7777_v26, %v7776_v8  ;;  %v7809_v26 = vadd.f32 %v7808_v28, %v10645_v42  ;;  %v6000_v42 = vadd.f32 %v7759_v48, %v5951_v5  ;;  %v7787_v28 = vadd.f32 %v10641_v62, %v10639_v21 }
 0x2bf   :  { %v7917_v50 = vpop.f32.mrf.mxu0  ;;  %v10704_v4 = vpop.f32.mrf.mxu1 }
 0x2c0   :  { %v6038_v58 = vadd.f32 %v7778_v1, %v5989_v61  ;;  %v6090_v23 = vadd.f32 %v7809_v26, %v6041_v38  ;;  %v7918_v21 = vadd.f32 %v7917_v50, %v7916_v49  ;;  %v6049_v53 = vadd.f32 %v7787_v28, %v6000_v42 }
 0x2c1   :  { %v10708_v43 = vpop.f32.mrf.mxu0  ;;  %v10713_v13 = vpop.f32.mrf.mxu1 }
 0x2c2   :  { %v6087_v44 = vadd.f32 %v7806_v6, %v6038_v58  ;;  %v6139_v2 = vadd.f32 %v7837_v32, %v6090_v23  ;;  %v6098_v61 = vadd.f32 %v7815_v40, %v6049_v53  ;;  %v6193_v58 = vadd.f32 %v7868_v7, %v6144_v60  ;;  %v10812_v23 = vld [vmem:[#allocation16_spill] sm:$0xff] }
 0x2c3   :  { %v7920_v14 = vpop.f32.mrf.mxu0  ;;  %v10722_v8 = vpop.f32.mrf.mxu1 }
 0x2c4   :  { %v6136_v31 = vadd.f32 %v7834_v19, %v6087_v44  ;;  %v6188_v57 = vadd.f32 %v7865_v22, %v6139_v2  ;;  %v7921_v50 = vadd.f32 %v7920_v14, %v10708_v43  ;;  %v7871_v44 = vadd.f32 %v10810_v16, %v10809_v63  ;;  %v10811_v14 = vld [vmem:[#allocation14_spill] sm:$0xff] }
 0x2c5   :  { %v7922_v17 = vpop.f32.mrf.mxu0  ;;  %v7950_v29 = vpop.f32.mrf.mxu1  ;;  %v10806_v6 = vld [vmem:[#allocation17_spill] sm:$0xff]  ;;  %v6147_v36 = vadd.f32 %v7843_v9, %v6098_v61  ;;  %v7899_v3 = vadd.f32 %v10812_v23, %v10811_v14  ;;  %v7949_v28 = vadd.f32 %v10722_v8, %v10713_v13 }
 0x2c6   :  { %v6185_v33 = vadd.f32 %v7862_v51, %v6136_v31  ;;  %v7946_v49 = vadd.f32 %v10704_v4, %v10806_v6  ;;  %v6237_v26 = vadd.f32 %v7893_v12, %v6188_v57  ;;  %v6242_v31 = vadd.f32 %v7896_v52, %v6193_v58 }
 0x2c7   :  { %v7923_v15 = vpop.f32.mrf.mxu0  ;;  %v7951_v41 = vpop.f32.mrf.mxu1  ;;  %v6196_v43 = vadd.f32 %v7871_v44, %v6147_v36 }
 0x2c8   :  { %v6234_v27 = vadd.f32 %v7890_v18, %v6185_v33  ;;  %v7924_v48 = vadd.f32 %v7923_v15, %v7922_v17  ;;  %v6286_v5 = vadd.f32 %v7921_v50, %v6237_v26  ;;  %v7952_v30 = vadd.f32 %v7951_v41, %v7950_v29 }
 0x2c9   :  { %v7925_v1 = vpop.f32.mrf.mxu0  ;;  %v7953_v62 = vpop.f32.mrf.mxu1  ;;  %v6245_v40 = vadd.f32 %v7899_v3, %v6196_v43 }
 0x2ca   :  { %v6283_v20 = vadd.f32 %v7918_v21, %v6234_v27  ;;  %v6291_v22 = vadd.f32 %v7924_v48, %v6242_v31  ;;  %v6335_v34 = vadd.f32 %v7949_v28, %v6286_v5 }
 0x2cb   :  { %v7926_v56 = vpop.f32.mrf.mxu0  ;;  %v7954_v37 = vpop.f32.mrf.mxu1 }
 0x2cc   :  { %v6332_v51 = vadd.f32 %v7946_v49, %v6283_v20  ;;  %v7927_v17 = vadd.f32 %v7926_v56, %v7925_v1  ;;  %v6340_v7 = vadd.f32 %v7952_v30, %v6291_v22  ;;  %v7955_v8 = vadd.f32 %v7954_v37, %v7953_v62 }
 0x2ce   :  { %v6294_v27 = vadd.f32 %v7927_v17, %v6245_v40 }
 0x2d0   :  { %v6343_v47 = vadd.f32 %v7955_v8, %v6294_v27 }
 0x2dd   :  { %v7972_v19 = vpop.f32.mrf.mxu0  ;;  %v8000_v10 = vpop.f32.mrf.mxu1 }
 0x2df   :  { %v7973_v38 = vpop.f32.mrf.mxu0  ;;  %v8001_v4 = vpop.f32.mrf.mxu1 }
 0x2e0   :  { %v7974_v24 = vadd.f32 %v7973_v38, %v7972_v19  ;;  %v8002_v33 = vadd.f32 %v8001_v4, %v8000_v10 }
 0x2e1   :  { %v7975_v42 = vpop.f32.mrf.mxu0  ;;  %v8003_v18 = vpop.f32.mrf.mxu1 }
 0x2e2   :  { %v6381_v32 = vadd.f32 %v7974_v24, %v6332_v51 }
 0x2e3   :  { %v7976_v15 = vpop.f32.mrf.mxu0  ;;  %v8004_v35 = vpop.f32.mrf.mxu1 }
 0x2e4   :  { %v6430_v54 = vadd.f32 %v8002_v33, %v6381_v32  ;;  %v7977_v55 = vadd.f32 %v7976_v15, %v7975_v42  ;;  %v8005_v45 = vadd.f32 %v8004_v35, %v8003_v18 }
 0x2e5   :  { %v7978_v2 = vpop.f32.mrf.mxu0  ;;  %v8006_v46 = vpop.f32.mrf.mxu1 }
 0x2e6   :  { %v6444_v21 = vsub.f32 0.0, %v6430_v54  ;;  %v6384_v53 = vadd.f32 %v7977_v55, %v6335_v34 }
 0x2e7   :  { %v7979_v13 = vpop.f32.mrf.mxu0  ;;  %v8007_v29 = vpop.f32.mrf.mxu1 }
 0x2e8   :  { %v6448_v57 = vmul.f32 1.442695, %v6444_v21  ;;  %v6433_v60 = vadd.f32 %v8005_v45, %v6384_v53  ;;  %v7980_v61 = vadd.f32 %v7979_v13, %v7978_v2  ;;  %v8008_v39 = vadd.f32 %v8007_v29, %v8006_v46 }
 0x2e9   :  { %v7981_v41 = vpop.f32.mrf.mxu0  ;;  %v8009_v9 = vpop.f32.mrf.mxu1 }
 0x2ea   :  { %8524 = vpow2.f32 %v6448_v57  ;;  %v6445_v1 = vsub.f32 0.0, %v6433_v60  ;;  %v6389_v59 = vadd.f32 %v7980_v61, %v6340_v7 }
 0x2eb   :  { %v7982_v56 = vpop.f32.mrf.mxu0  ;;  %v8010_v6 = vpop.f32.mrf.mxu1 }
 0x2ec   :  { %v6450_v11 = vmul.f32 1.442695, %v6445_v1  ;;  %v6438_v12 = vadd.f32 %v8008_v39, %v6389_v59  ;;  %v7983_v20 = vadd.f32 %v7982_v56, %v7981_v41  ;;  %v8011_v62 = vadd.f32 %v8010_v6, %v8009_v9 }
 0x2ee   :  { %8526 = vpow2.f32 %v6450_v11  ;;  %v6446_v49 = vsub.f32 0.0, %v6438_v12  ;;  %v6392_v50 = vadd.f32 %v7983_v20, %v6343_v47 }
 0x2f0   :  { %v6452_v37 = vmul.f32 1.442695, %v6446_v49  ;;  %v6441_v58 = vadd.f32 %v8011_v62, %v6392_v50 }
 0x2f2   :  { %8528 = vpow2.f32 %v6452_v37  ;;  %v6447_v0 = vsub.f32 0.0, %v6441_v58 }
 0x2f4   :  { %v6454_v25 = vmul.f32 1.442695, %v6447_v0 }
 0x2f6   :  { %8530 = vpow2.f32 %v6454_v25 }
 0x2f7   :  { %v8525_v52 = vpop.eup %8524 }
 0x2f8   :  { %v6456_v63 = vadd.f32 1.0, %v8525_v52 }
 0x2fa   :  { %8532 = vrcp.f32 %v6456_v63 }
 0x2fb   :  { %v8527_v16 = vpop.eup %8526 }
 0x2fc   :  { %v6457_v44 = vadd.f32 1.0, %v8527_v16 }
 0x2fe   :  { %8534 = vrcp.f32 %v6457_v44 }
 0x2ff   :  { %v8529_v19 = vpop.eup %8528 }
 0x300   :  { %v6458_v26 = vadd.f32 1.0, %v8529_v19 }
 0x302   :  { %8536 = vrcp.f32 %v6458_v26 }
 0x303   :  { %v8531_v10 = vpop.eup %8530 }
 0x304   :  { %v6459_v36 = vadd.f32 1.0, %v8531_v10 }
 0x306   :  { %8538 = vrcp.f32 %v6459_v36 }
 0x307   :  { %v8533_v48 = vpop.eup %8532 }
 0x308   :  { %6468 = vst [vmem:[%s10780_s2] sm:$0xff] %v8533_v48 }
 0x30b   :  { %v8535_v38 = vpop.eup %8534 }
 0x30c   :  { %6469 = vst [vmem:[%s10780_s2 + $0x8] sm:$0xff] %v8535_v38 }
 0x30f   :  { %v8537_v51 = vpop.eup %8536 }
 0x310   :  { %6470 = vst [vmem:[%s10780_s2 + $0x10] sm:$0xff] %v8537_v51 }
 0x313   :  { %v8539_v5 = vpop.eup %8538 }
 0x314   :  { %6471 = vst [vmem:[%s10780_s2 + $0x18] sm:$0xff] %v8539_v5 }

</bundles_post_ra>
